<compile_context>
chip_gen: v7x
topology: tpu7x:2x2x1
jax: 0.10.0
libtpu: 0.0.40
codegen_flags: <defaults>
</compile_context>

<pallas_src>
import functools

import jax
import jax.numpy as jnp
import numpy as np
from jax.experimental import pallas as pl
from jax.experimental.pallas import tpu as pltpu

MULTIRES = 10
XYZ_DIM = 3
EMB_DIM = XYZ_DIM + XYZ_DIM * 2 * MULTIRES   # 63
POSE_DIM = 63
HIDDEN = 64
HEAD_DIM = 3 + 3 + 4                          # warp(3) | scaling(3) | rotation(4)
NEG_SLOPE = 0.01                              # F.leaky_relu default
NCHUNK = 4                                    # sub-chunks per tile (EUP/MXU overlap)


def _leaky_relu(v):
    return jnp.where(v >= 0, v, NEG_SLOPE * v)


def _round_up(n, m):
    return ((n + m - 1) // m) * m


def deform_kernel(xt_ref, emb_ref, w0_ref, wh_ref, b0_ref, bh_ref, whd_ref, bhd_ref,
                  out_ref):
    tn = out_ref.shape[0]
    chunk = tn // NCHUNK

    smat = emb_ref[0:XYZ_DIM, :]                         # (3, 63) frequency matrix
    id_m = emb_ref[XYZ_DIM:XYZ_DIM + 1, :]               # (1, 63) include_input mask
    trig_m = emb_ref[XYZ_DIM + 1:XYZ_DIM + 2, :]         # (1, 63) sin/cos column mask
    phase = emb_ref[XYZ_DIM + 2:XYZ_DIM + 3, :]          # (1, 63) pi/2 on cos columns

    # Static unroll over sub-chunks: independent dependency chains let the scheduler
    # overlap the EUP sin pass of one chunk with the MXU matmuls of another.
    for c in range(NCHUNK):
        r0 = c * chunk
        x = xt_ref[:, pl.ds(r0, chunk)].T                # (chunk, 3)  small XLU transpose

        # Positional embedding (f32 so sin(x * 2^9) stays exact):
        #   scaled[:, k] = x[:, k % 3] * freq(k);  cos(z) == sin(z + pi/2).
        scaled = jnp.dot(x, smat, preferred_element_type=jnp.float32)   # (chunk, 63)
        x_emb = id_m * scaled + trig_m * jnp.sin(scaled + phase)

        # Layer 0: cat([x_emb, pose]) @ W0 + b0 == x_emb @ W0x + (b0 + pose @ W0p),
        # the pose term is pre-folded into b0_ref on the host side.
        h = jnp.dot(x_emb.astype(jnp.bfloat16), w0_ref[...],
                    preferred_element_type=jnp.float32) + b0_ref[...]
        h = _leaky_relu(h)
        for l in range(3):                               # layers 1..3
            h = jnp.dot(h.astype(jnp.bfloat16), wh_ref[l],
                        preferred_element_type=jnp.float32) + bh_ref[l:l + 1, :]
            h = _leaky_relu(h)

        # Fused heads: [warp | scaling | rotation] in one (64, 10) matmul.
        out_ref[pl.ds(r0, chunk), :] = (
            jnp.dot(h.astype(jnp.bfloat16), whd_ref[...],
                    preferred_element_type=jnp.float32) + bhd_ref[...])


def make_embedding_constants():
    """(6, 63) table: rows 0-2 scaling matrix, row 3 identity mask, row 4 trig mask,
    row 5 phase offset (pi/2 on cos columns). Reproduces the torch Embedder order."""
    smat = np.zeros((XYZ_DIM, EMB_DIM), dtype=np.float32)
    id_mask = np.zeros((EMB_DIM,), dtype=np.float32)
    trig_mask = np.zeros((EMB_DIM,), dtype=np.float32)
    phase = np.zeros((EMB_DIM,), dtype=np.float32)
    for d in range(XYZ_DIM):                 # include_input columns 0..2
        smat[d, d] = 1.0
        id_mask[d] = 1.0
    for k in range(MULTIRES):                # freq_bands = 2 ** arange(multires)
        f = float(2.0 ** k)
        base = XYZ_DIM + 6 * k
        for d in range(XYZ_DIM):
            smat[d, base + d] = f            # sin(x * f) columns
            smat[d, base + 3 + d] = f        # cos(x * f) columns
            trig_mask[base + d] = 1.0
            trig_mask[base + 3 + d] = 1.0
            phase[base + 3 + d] = float(np.pi / 2.0)
    rows = np.concatenate([smat, id_mask[None], trig_mask[None], phase[None]], axis=0)
    return jnp.asarray(rows)                 # (6, 63)


def init_params(key):
    """Deterministic synthetic init, nn.Linear-like uniform(-1/sqrt(fan_in), 1/sqrt(fan_in))."""
    def linear(k, fan_in, fan_out):
        kw, kb = jax.random.split(k)
        bound = 1.0 / np.sqrt(fan_in)
        w = jax.random.uniform(kw, (fan_in, fan_out), jnp.float32, -bound, bound)
        b = jax.random.uniform(kb, (1, fan_out), jnp.float32, -bound, bound)
        return w, b

    keys = jax.random.split(key, 7)
    in_ch = EMB_DIM + POSE_DIM               # 126
    w0, b0 = linear(keys[0], in_ch, HIDDEN)
    w1, b1 = linear(keys[1], HIDDEN, HIDDEN)
    w2, b2 = linear(keys[2], HIDDEN, HIDDEN)
    w3, b3 = linear(keys[3], HIDDEN, HIDDEN)
    ww, bw = linear(keys[4], HIDDEN, 3)      # gaussian_warp
    wr, br = linear(keys[5], HIDDEN, 4)      # gaussian_rotation
    ws, bs = linear(keys[6], HIDDEN, 3)      # gaussian_scaling
    return dict(w0x=w0[:EMB_DIM], w0p=w0[EMB_DIM:], b0=b0,
                w1=w1, b1=b1, w2=w2, b2=b2, w3=w3, b3=b3,
                ww=ww, bw=bw, wr=wr, br=br, ws=ws, bs=bs)


def pack_params(params):
    """One-time weight packing (hoisted off the per-call hot path)."""
    return dict(
        emb=make_embedding_constants(),                                            # (6, 63)  f32
        w0x=params["w0x"].astype(jnp.bfloat16),                                    # (63, 64) bf16
        wh=jnp.stack([params["w1"], params["w2"], params["w3"]]).astype(jnp.bfloat16),  # (3,64,64)
        bh=jnp.concatenate([params["b1"], params["b2"], params["b3"]], axis=0),    # (3, 64)  f32
        whd=jnp.concatenate([params["ww"], params["ws"], params["wr"]],
                            axis=1).astype(jnp.bfloat16),                          # (64, 10) bf16
        bhd=jnp.concatenate([params["bw"], params["bs"], params["br"]], axis=1),   # (1, 10)  f32
        b0=params["b0"],                                                           # (1, 64)  f32
        w0p=params["w0p"],                                                         # (63, 64) f32
    )


@functools.partial(jax.jit, static_argnames=("tile_n",))
def deform_forward(x, body_pose, packed, tile_n=1024):
    N = x.shape[0]
    assert tile_n % 256 == 0
    # Tile heuristic: >= 2 grid steps when N is big enough so v7x's two TensorCores
    # both get work ("parallel" axis is megacore-sharded); no-op on v5e/v6e.
    tn = min(tile_n, _round_up(max(-(-N // 2), 1), 256))
    grid = -(-N // tn)          # ragged last block: Pallas masks the tail write-back

    x_t = x.astype(jnp.float32).T                                   # (3, N) lane-dense input
    pose = jnp.asarray(body_pose, jnp.float32).reshape(1, POSE_DIM)
    b0_eff = packed["b0"] + pose @ packed["w0p"]                    # fold shared pose into b0

    def full(shape):
        rank = len(shape)
        return pl.BlockSpec(shape, lambda i, r=rank: (0,) * r)

    in_specs = [
        pl.BlockSpec((XYZ_DIM, tn), lambda i: (0, i)),   # x^T : 3 contiguous lane-dense rows
        full((XYZ_DIM + 3, EMB_DIM)),                    # embedding constants
        full((EMB_DIM, HIDDEN)),                         # layer-0 weight (x_emb part)
        full((3, HIDDEN, HIDDEN)),                       # stacked layers 1-3
        full((1, HIDDEN)),                               # b0 (pose folded in)
        full((3, HIDDEN)),                               # biases 1-3
        full((HIDDEN, HEAD_DIM)),                        # fused head weight
        full((1, HEAD_DIM)),                             # fused head bias
    ]
    out_spec = pl.BlockSpec((tn, HEAD_DIM), lambda i: (i, 0))

    weight_bytes = (6 * EMB_DIM) * 4 + (EMB_DIM * HIDDEN) * 2 + (3 * HIDDEN * HIDDEN) * 2 \
        + (4 * HIDDEN) * 4 + (HIDDEN * HEAD_DIM) * 2 + HEAD_DIM * 4
    cost = pl.CostEstimate(
        flops=2 * N * (XYZ_DIM * EMB_DIM + EMB_DIM * HIDDEN
                       + 3 * HIDDEN * HIDDEN + HIDDEN * HEAD_DIM),
        transcendentals=EMB_DIM * N,
        bytes_accessed=N * (XYZ_DIM + HEAD_DIM) * 4 + weight_bytes,
    )

    out = pl.pallas_call(
        deform_kernel,
        out_shape=jax.ShapeDtypeStruct((N, HEAD_DIM), jnp.float32),
        grid_spec=pltpu.PrefetchScalarGridSpec(
            num_scalar_prefetch=0,
            grid=(grid,),
            in_specs=in_specs,
            out_specs=out_spec,
        ),
        compiler_params=pltpu.CompilerParams(
            dimension_semantics=("parallel",)),
        cost_estimate=cost,
    )(x_t, packed["emb"], packed["w0x"], packed["wh"], b0_eff,
      packed["bh"], packed["whd"], packed["bhd"])

    d_xyz = out[:, 0:3]
    d_scale = out[:, 3:6]
    d_rot = out[:, 6:10]
    # return order matches the torch module: (delta_positions, delta_scales, delta_quaternions)
    return d_xyz, d_scale, d_rot


def reference_forward(x, body_pose, params):
    """Pure-JAX f32 reference of DeformNetwork.forward (default config)."""
    N = x.shape[0]
    pose = jnp.broadcast_to(jnp.asarray(body_pose, jnp.float32).reshape(1, POSE_DIM),
                            (N, POSE_DIM))
    parts = [x]
    for k in range(MULTIRES):
        f = 2.0 ** k
        parts.append(jnp.sin(x * f))
        parts.append(jnp.cos(x * f))
    x_emb = jnp.concatenate(parts, axis=-1)
    h = jnp.concatenate([x_emb, pose], axis=-1)
    w0 = jnp.concatenate([params["w0x"], params["w0p"]], axis=0)
    h = _leaky_relu(h @ w0 + params["b0"])
    h = _leaky_relu(h @ params["w1"] + params["b1"])
    h = _leaky_relu(h @ params["w2"] + params["b2"])
    h = _leaky_relu(h @ params["w3"] + params["b3"])
    d_xyz = h @ params["ww"] + params["bw"]
    d_scale = h @ params["ws"] + params["bs"]
    d_rot = h @ params["wr"] + params["br"]
    return d_xyz, d_scale, d_rot


if __name__ == "__main__":
    key = jax.random.PRNGKey(0)
    k_x, k_pose, k_params = jax.random.split(key, 3)

    N = 300   # deliberately NOT a multiple of the tile size -> exercises the ragged path
    x = jax.random.normal(k_x, (N, XYZ_DIM), jnp.float32)
    body_pose = 0.1 * jax.random.normal(k_pose, (1, POSE_DIM), jnp.float32)
    params = init_params(k_params)
    packed = pack_params(params)   # one-time packing, not on the per-call path

    outs = deform_forward(x, body_pose, packed)
    outs = jax.block_until_ready(outs)

    refs = reference_forward(x, body_pose, params)
    for o, r in zip(outs, refs):
        # bf16 MXU matmuls (f32 accumulation) vs. a pure-f32 reference -> relaxed tolerance
        np.testing.assert_allclose(np.asarray(o), np.asarray(r), rtol=2e-2, atol=2e-2)

    print("KERNEL_OK")
</pallas_src>

<mosaic_0001>
module attributes {stable_mosaic.version = 11 : i64} {
  func.func @deform_kernel(%arg0: i32, %arg1: memref<3x256xf32, #tpu.memory_space<vmem>>, %arg2: memref<6x63xf32, #tpu.memory_space<vmem>>, %arg3: memref<63x64xbf16, #tpu.memory_space<vmem>>, %arg4: memref<3x64x64xbf16, #tpu.memory_space<vmem>>, %arg5: memref<1x64xf32, #tpu.memory_space<vmem>>, %arg6: memref<3x64xf32, #tpu.memory_space<vmem>>, %arg7: memref<64x10xbf16, #tpu.memory_space<vmem>>, %arg8: memref<1x10xf32, #tpu.memory_space<vmem>>, %arg9: memref<256x10xf32, #tpu.memory_space<vmem>>) attributes {dimension_semantics = [#tpu.dimension_semantics<parallel>], iteration_bounds = array<i64: 2>, scalar_prefetch = 0 : i64, scratch_operands = 0 : i64, tpu.core_type = #tpu.core_type<tc>, window_params = [{transform_indices = @transform_0, window_bounds = array<i64: 3, 256>}, {pipeline_mode = #tpu.pipeline_mode<synchronous>, transform_indices = @transform_1, window_bounds = array<i64: 6, 63>}, {pipeline_mode = #tpu.pipeline_mode<synchronous>, transform_indices = @transform_2, window_bounds = array<i64: 63, 64>}, {pipeline_mode = #tpu.pipeline_mode<synchronous>, transform_indices = @transform_3, window_bounds = array<i64: 3, 64, 64>}, {pipeline_mode = #tpu.pipeline_mode<synchronous>, transform_indices = @transform_4, window_bounds = array<i64: 1, 64>}, {pipeline_mode = #tpu.pipeline_mode<synchronous>, transform_indices = @transform_5, window_bounds = array<i64: 3, 64>}, {pipeline_mode = #tpu.pipeline_mode<synchronous>, transform_indices = @transform_6, window_bounds = array<i64: 64, 10>}, {pipeline_mode = #tpu.pipeline_mode<synchronous>, transform_indices = @transform_7, window_bounds = array<i64: 1, 10>}, {transform_indices = @transform_8, window_bounds = array<i64: 256, 10>}]} {
    %c0 = arith.constant 0 : index
    %c0_0 = arith.constant 0 : index
    %0 = vector.load %arg2[%c0, %c0_0] : memref<6x63xf32, #tpu.memory_space<vmem>>, vector<3x63xf32>
    %c3 = arith.constant 3 : index
    %c0_1 = arith.constant 0 : index
    %1 = vector.load %arg2[%c3, %c0_1] : memref<6x63xf32, #tpu.memory_space<vmem>>, vector<1x63xf32>
    %c4 = arith.constant 4 : index
    %c0_2 = arith.constant 0 : index
    %2 = vector.load %arg2[%c4, %c0_2] : memref<6x63xf32, #tpu.memory_space<vmem>>, vector<1x63xf32>
    %c5 = arith.constant 5 : index
    %c0_3 = arith.constant 0 : index
    %3 = vector.load %arg2[%c5, %c0_3] : memref<6x63xf32, #tpu.memory_space<vmem>>, vector<1x63xf32>
    %c0_4 = arith.constant 0 : index
    %c0_5 = arith.constant 0 : index
    %4 = vector.load %arg1[%c0_4, %c0_5] : memref<3x256xf32, #tpu.memory_space<vmem>>, vector<3x64xf32>
    %5 = tpu.transpose %4, [1, 0] : vector<3x64xf32> -> vector<64x3xf32>
    %cst = arith.constant dense<0.000000e+00> : vector<64x63xf32>
    %6 = tpu.matmul %5, %0, %cst {dimension_numbers = #tpu.dot_dimension_numbers<[1], [0], [0], [1], [0, 0, 1, 1], [], []>} : vector<64x3xf32>, vector<3x63xf32>, vector<64x63xf32> -> vector<64x63xf32>
    %7 = vector.broadcast %1 : vector<1x63xf32> to vector<64x63xf32>
    %8 = arith.mulf %7, %6 : vector<64x63xf32>
    %9 = vector.broadcast %3 : vector<1x63xf32> to vector<64x63xf32>
    %10 = arith.addf %6, %9 : vector<64x63xf32>
    %11 = math.sin %10 : vector<64x63xf32>
    %12 = vector.broadcast %2 : vector<1x63xf32> to vector<64x63xf32>
    %13 = arith.mulf %12, %11 : vector<64x63xf32>
    %14 = arith.addf %8, %13 : vector<64x63xf32>
    %15 = arith.truncf %14 : vector<64x63xf32> to vector<64x63xbf16>
    %c0_6 = arith.constant 0 : index
    %c0_7 = arith.constant 0 : index
    %16 = vector.load %arg3[%c0_6, %c0_7] : memref<63x64xbf16, #tpu.memory_space<vmem>>, vector<63x64xbf16>
    %cst_8 = arith.constant dense<0.000000e+00> : vector<64x64xf32>
    %17 = tpu.matmul %15, %16, %cst_8 {dimension_numbers = #tpu.dot_dimension_numbers<[1], [0], [0], [1], [0, 0, 1, 1], [], []>} : vector<64x63xbf16>, vector<63x64xbf16>, vector<64x64xf32> -> vector<64x64xf32>
    %c0_9 = arith.constant 0 : index
    %c0_10 = arith.constant 0 : index
    %18 = vector.load %arg5[%c0_9, %c0_10] : memref<1x64xf32, #tpu.memory_space<vmem>>, vector<1x64xf32>
    %19 = vector.broadcast %18 : vector<1x64xf32> to vector<64x64xf32>
    %20 = arith.addf %17, %19 : vector<64x64xf32>
    %cst_11 = arith.constant 0.000000e+00 : f32
    %21 = vector.broadcast %cst_11 : f32 to vector<64x64xf32>
    %22 = arith.cmpf oge, %20, %21 : vector<64x64xf32>
    %cst_12 = arith.constant 0.00999999977 : f32
    %23 = vector.broadcast %cst_12 : f32 to vector<64x64xf32>
    %24 = arith.mulf %23, %20 : vector<64x64xf32>
    %25 = arith.select %22, %20, %24 : vector<64x64xi1>, vector<64x64xf32>
    %26 = arith.truncf %25 : vector<64x64xf32> to vector<64x64xbf16>
    %c0_13 = arith.constant 0 : index
    %c0_14 = arith.constant 0 : index
    %c0_15 = arith.constant 0 : index
    %27 = vector.load %arg4[%c0_13, %c0_14, %c0_15] : memref<3x64x64xbf16, #tpu.memory_space<vmem>>, vector<1x64x64xbf16>
    %28 = vector.shape_cast %27 : vector<1x64x64xbf16> to vector<64x64xbf16>
    %cst_16 = arith.constant dense<0.000000e+00> : vector<64x64xf32>
    %29 = tpu.matmul %26, %28, %cst_16 {dimension_numbers = #tpu.dot_dimension_numbers<[1], [0], [0], [1], [0, 0, 1, 1], [], []>} : vector<64x64xbf16>, vector<64x64xbf16>, vector<64x64xf32> -> vector<64x64xf32>
    %c0_17 = arith.constant 0 : index
    %c0_18 = arith.constant 0 : index
    %30 = vector.load %arg6[%c0_17, %c0_18] : memref<3x64xf32, #tpu.memory_space<vmem>>, vector<1x64xf32>
    %31 = vector.broadcast %30 : vector<1x64xf32> to vector<64x64xf32>
    %32 = arith.addf %29, %31 : vector<64x64xf32>
    %cst_19 = arith.constant 0.000000e+00 : f32
    %33 = vector.broadcast %cst_19 : f32 to vector<64x64xf32>
    %34 = arith.cmpf oge, %32, %33 : vector<64x64xf32>
    %cst_20 = arith.constant 0.00999999977 : f32
    %35 = vector.broadcast %cst_20 : f32 to vector<64x64xf32>
    %36 = arith.mulf %35, %32 : vector<64x64xf32>
    %37 = arith.select %34, %32, %36 : vector<64x64xi1>, vector<64x64xf32>
    %38 = arith.truncf %37 : vector<64x64xf32> to vector<64x64xbf16>
    %c1 = arith.constant 1 : index
    %c0_21 = arith.constant 0 : index
    %c0_22 = arith.constant 0 : index
    %39 = vector.load %arg4[%c1, %c0_21, %c0_22] : memref<3x64x64xbf16, #tpu.memory_space<vmem>>, vector<1x64x64xbf16>
    %40 = vector.shape_cast %39 : vector<1x64x64xbf16> to vector<64x64xbf16>
    %cst_23 = arith.constant dense<0.000000e+00> : vector<64x64xf32>
    %41 = tpu.matmul %38, %40, %cst_23 {dimension_numbers = #tpu.dot_dimension_numbers<[1], [0], [0], [1], [0, 0, 1, 1], [], []>} : vector<64x64xbf16>, vector<64x64xbf16>, vector<64x64xf32> -> vector<64x64xf32>
    %c1_24 = arith.constant 1 : index
    %c0_25 = arith.constant 0 : index
    %42 = vector.load %arg6[%c1_24, %c0_25] : memref<3x64xf32, #tpu.memory_space<vmem>>, vector<1x64xf32>
    %43 = vector.broadcast %42 : vector<1x64xf32> to vector<64x64xf32>
    %44 = arith.addf %41, %43 : vector<64x64xf32>
    %cst_26 = arith.constant 0.000000e+00 : f32
    %45 = vector.broadcast %cst_26 : f32 to vector<64x64xf32>
    %46 = arith.cmpf oge, %44, %45 : vector<64x64xf32>
    %cst_27 = arith.constant 0.00999999977 : f32
    %47 = vector.broadcast %cst_27 : f32 to vector<64x64xf32>
    %48 = arith.mulf %47, %44 : vector<64x64xf32>
    %49 = arith.select %46, %44, %48 : vector<64x64xi1>, vector<64x64xf32>
    %50 = arith.truncf %49 : vector<64x64xf32> to vector<64x64xbf16>
    %c2 = arith.constant 2 : index
    %c0_28 = arith.constant 0 : index
    %c0_29 = arith.constant 0 : index
    %51 = vector.load %arg4[%c2, %c0_28, %c0_29] : memref<3x64x64xbf16, #tpu.memory_space<vmem>>, vector<1x64x64xbf16>
    %52 = vector.shape_cast %51 : vector<1x64x64xbf16> to vector<64x64xbf16>
    %cst_30 = arith.constant dense<0.000000e+00> : vector<64x64xf32>
    %53 = tpu.matmul %50, %52, %cst_30 {dimension_numbers = #tpu.dot_dimension_numbers<[1], [0], [0], [1], [0, 0, 1, 1], [], []>} : vector<64x64xbf16>, vector<64x64xbf16>, vector<64x64xf32> -> vector<64x64xf32>
    %c2_31 = arith.constant 2 : index
    %c0_32 = arith.constant 0 : index
    %54 = vector.load %arg6[%c2_31, %c0_32] : memref<3x64xf32, #tpu.memory_space<vmem>>, vector<1x64xf32>
    %55 = vector.broadcast %54 : vector<1x64xf32> to vector<64x64xf32>
    %56 = arith.addf %53, %55 : vector<64x64xf32>
    %cst_33 = arith.constant 0.000000e+00 : f32
    %57 = vector.broadcast %cst_33 : f32 to vector<64x64xf32>
    %58 = arith.cmpf oge, %56, %57 : vector<64x64xf32>
    %cst_34 = arith.constant 0.00999999977 : f32
    %59 = vector.broadcast %cst_34 : f32 to vector<64x64xf32>
    %60 = arith.mulf %59, %56 : vector<64x64xf32>
    %61 = arith.select %58, %56, %60 : vector<64x64xi1>, vector<64x64xf32>
    %62 = arith.truncf %61 : vector<64x64xf32> to vector<64x64xbf16>
    %c0_35 = arith.constant 0 : index
    %c0_36 = arith.constant 0 : index
    %63 = vector.load %arg7[%c0_35, %c0_36] : memref<64x10xbf16, #tpu.memory_space<vmem>>, vector<64x10xbf16>
    %cst_37 = arith.constant dense<0.000000e+00> : vector<64x10xf32>
    %64 = tpu.matmul %62, %63, %cst_37 {dimension_numbers = #tpu.dot_dimension_numbers<[1], [0], [0], [1], [0, 0, 1, 1], [], []>} : vector<64x64xbf16>, vector<64x10xbf16>, vector<64x10xf32> -> vector<64x10xf32>
    %c0_38 = arith.constant 0 : index
    %c0_39 = arith.constant 0 : index
    %65 = vector.load %arg8[%c0_38, %c0_39] : memref<1x10xf32, #tpu.memory_space<vmem>>, vector<1x10xf32>
    %66 = vector.broadcast %65 : vector<1x10xf32> to vector<64x10xf32>
    %67 = arith.addf %64, %66 : vector<64x10xf32>
    %c0_40 = arith.constant 0 : index
    %c0_41 = arith.constant 0 : index
    %68 = vector.load %arg9[%c0_40, %c0_41] : memref<256x10xf32, #tpu.memory_space<vmem>>, vector<64x10xf32>
    tpu.vector_store %arg9[%c0_40, %c0_41], %67 {strides = array<i32>} : memref<256x10xf32, #tpu.memory_space<vmem>>, vector<64x10xf32>,
    %c0_42 = arith.constant 0 : index
    %c64 = arith.constant 64 : index
    %69 = vector.load %arg1[%c0_42, %c64] : memref<3x256xf32, #tpu.memory_space<vmem>>, vector<3x64xf32>
    %70 = tpu.transpose %69, [1, 0] : vector<3x64xf32> -> vector<64x3xf32>
    %cst_43 = arith.constant dense<0.000000e+00> : vector<64x63xf32>
    %71 = tpu.matmul %70, %0, %cst_43 {dimension_numbers = #tpu.dot_dimension_numbers<[1], [0], [0], [1], [0, 0, 1, 1], [], []>} : vector<64x3xf32>, vector<3x63xf32>, vector<64x63xf32> -> vector<64x63xf32>
    %72 = vector.broadcast %1 : vector<1x63xf32> to vector<64x63xf32>
    %73 = arith.mulf %72, %71 : vector<64x63xf32>
    %74 = vector.broadcast %3 : vector<1x63xf32> to vector<64x63xf32>
    %75 = arith.addf %71, %74 : vector<64x63xf32>
    %76 = math.sin %75 : vector<64x63xf32>
    %77 = vector.broadcast %2 : vector<1x63xf32> to vector<64x63xf32>
    %78 = arith.mulf %77, %76 : vector<64x63xf32>
    %79 = arith.addf %73, %78 : vector<64x63xf32>
    %80 = arith.truncf %79 : vector<64x63xf32> to vector<64x63xbf16>
    %c0_44 = arith.constant 0 : index
    %c0_45 = arith.constant 0 : index
    %81 = vector.load %arg3[%c0_44, %c0_45] : memref<63x64xbf16, #tpu.memory_space<vmem>>, vector<63x64xbf16>
    %cst_46 = arith.constant dense<0.000000e+00> : vector<64x64xf32>
    %82 = tpu.matmul %80, %81, %cst_46 {dimension_numbers = #tpu.dot_dimension_numbers<[1], [0], [0], [1], [0, 0, 1, 1], [], []>} : vector<64x63xbf16>, vector<63x64xbf16>, vector<64x64xf32> -> vector<64x64xf32>
    %c0_47 = arith.constant 0 : index
    %c0_48 = arith.constant 0 : index
    %83 = vector.load %arg5[%c0_47, %c0_48] : memref<1x64xf32, #tpu.memory_space<vmem>>, vector<1x64xf32>
    %84 = vector.broadcast %83 : vector<1x64xf32> to vector<64x64xf32>
    %85 = arith.addf %82, %84 : vector<64x64xf32>
    %cst_49 = arith.constant 0.000000e+00 : f32
    %86 = vector.broadcast %cst_49 : f32 to vector<64x64xf32>
    %87 = arith.cmpf oge, %85, %86 : vector<64x64xf32>
    %cst_50 = arith.constant 0.00999999977 : f32
    %88 = vector.broadcast %cst_50 : f32 to vector<64x64xf32>
    %89 = arith.mulf %88, %85 : vector<64x64xf32>
    %90 = arith.select %87, %85, %89 : vector<64x64xi1>, vector<64x64xf32>
    %91 = arith.truncf %90 : vector<64x64xf32> to vector<64x64xbf16>
    %c0_51 = arith.constant 0 : index
    %c0_52 = arith.constant 0 : index
    %c0_53 = arith.constant 0 : index
    %92 = vector.load %arg4[%c0_51, %c0_52, %c0_53] : memref<3x64x64xbf16, #tpu.memory_space<vmem>>, vector<1x64x64xbf16>
    %93 = vector.shape_cast %92 : vector<1x64x64xbf16> to vector<64x64xbf16>
    %cst_54 = arith.constant dense<0.000000e+00> : vector<64x64xf32>
    %94 = tpu.matmul %91, %93, %cst_54 {dimension_numbers = #tpu.dot_dimension_numbers<[1], [0], [0], [1], [0, 0, 1, 1], [], []>} : vector<64x64xbf16>, vector<64x64xbf16>, vector<64x64xf32> -> vector<64x64xf32>
    %c0_55 = arith.constant 0 : index
    %c0_56 = arith.constant 0 : index
    %95 = vector.load %arg6[%c0_55, %c0_56] : memref<3x64xf32, #tpu.memory_space<vmem>>, vector<1x64xf32>
    %96 = vector.broadcast %95 : vector<1x64xf32> to vector<64x64xf32>
    %97 = arith.addf %94, %96 : vector<64x64xf32>
    %cst_57 = arith.constant 0.000000e+00 : f32
    %98 = vector.broadcast %cst_57 : f32 to vector<64x64xf32>
    %99 = arith.cmpf oge, %97, %98 : vector<64x64xf32>
    %cst_58 = arith.constant 0.00999999977 : f32
    %100 = vector.broadcast %cst_58 : f32 to vector<64x64xf32>
    %101 = arith.mulf %100, %97 : vector<64x64xf32>
    %102 = arith.select %99, %97, %101 : vector<64x64xi1>, vector<64x64xf32>
    %103 = arith.truncf %102 : vector<64x64xf32> to vector<64x64xbf16>
    %c1_59 = arith.constant 1 : index
    %c0_60 = arith.constant 0 : index
    %c0_61 = arith.constant 0 : index
    %104 = vector.load %arg4[%c1_59, %c0_60, %c0_61] : memref<3x64x64xbf16, #tpu.memory_space<vmem>>, vector<1x64x64xbf16>
    %105 = vector.shape_cast %104 : vector<1x64x64xbf16> to vector<64x64xbf16>
    %cst_62 = arith.constant dense<0.000000e+00> : vector<64x64xf32>
    %106 = tpu.matmul %103, %105, %cst_62 {dimension_numbers = #tpu.dot_dimension_numbers<[1], [0], [0], [1], [0, 0, 1, 1], [], []>} : vector<64x64xbf16>, vector<64x64xbf16>, vector<64x64xf32> -> vector<64x64xf32>
    %c1_63 = arith.constant 1 : index
    %c0_64 = arith.constant 0 : index
    %107 = vector.load %arg6[%c1_63, %c0_64] : memref<3x64xf32, #tpu.memory_space<vmem>>, vector<1x64xf32>
    %108 = vector.broadcast %107 : vector<1x64xf32> to vector<64x64xf32>
    %109 = arith.addf %106, %108 : vector<64x64xf32>
    %cst_65 = arith.constant 0.000000e+00 : f32
    %110 = vector.broadcast %cst_65 : f32 to vector<64x64xf32>
    %111 = arith.cmpf oge, %109, %110 : vector<64x64xf32>
    %cst_66 = arith.constant 0.00999999977 : f32
    %112 = vector.broadcast %cst_66 : f32 to vector<64x64xf32>
    %113 = arith.mulf %112, %109 : vector<64x64xf32>
    %114 = arith.select %111, %109, %113 : vector<64x64xi1>, vector<64x64xf32>
    %115 = arith.truncf %114 : vector<64x64xf32> to vector<64x64xbf16>
    %c2_67 = arith.constant 2 : index
    %c0_68 = arith.constant 0 : index
    %c0_69 = arith.constant 0 : index
    %116 = vector.load %arg4[%c2_67, %c0_68, %c0_69] : memref<3x64x64xbf16, #tpu.memory_space<vmem>>, vector<1x64x64xbf16>
    %117 = vector.shape_cast %116 : vector<1x64x64xbf16> to vector<64x64xbf16>
    %cst_70 = arith.constant dense<0.000000e+00> : vector<64x64xf32>
    %118 = tpu.matmul %115, %117, %cst_70 {dimension_numbers = #tpu.dot_dimension_numbers<[1], [0], [0], [1], [0, 0, 1, 1], [], []>} : vector<64x64xbf16>, vector<64x64xbf16>, vector<64x64xf32> -> vector<64x64xf32>
    %c2_71 = arith.constant 2 : index
    %c0_72 = arith.constant 0 : index
    %119 = vector.load %arg6[%c2_71, %c0_72] : memref<3x64xf32, #tpu.memory_space<vmem>>, vector<1x64xf32>
    %120 = vector.broadcast %119 : vector<1x64xf32> to vector<64x64xf32>
    %121 = arith.addf %118, %120 : vector<64x64xf32>
    %cst_73 = arith.constant 0.000000e+00 : f32
    %122 = vector.broadcast %cst_73 : f32 to vector<64x64xf32>
    %123 = arith.cmpf oge, %121, %122 : vector<64x64xf32>
    %cst_74 = arith.constant 0.00999999977 : f32
    %124 = vector.broadcast %cst_74 : f32 to vector<64x64xf32>
    %125 = arith.mulf %124, %121 : vector<64x64xf32>
    %126 = arith.select %123, %121, %125 : vector<64x64xi1>, vector<64x64xf32>
    %127 = arith.truncf %126 : vector<64x64xf32> to vector<64x64xbf16>
    %c0_75 = arith.constant 0 : index
    %c0_76 = arith.constant 0 : index
    %128 = vector.load %arg7[%c0_75, %c0_76] : memref<64x10xbf16, #tpu.memory_space<vmem>>, vector<64x10xbf16>
    %cst_77 = arith.constant dense<0.000000e+00> : vector<64x10xf32>
    %129 = tpu.matmul %127, %128, %cst_77 {dimension_numbers = #tpu.dot_dimension_numbers<[1], [0], [0], [1], [0, 0, 1, 1], [], []>} : vector<64x64xbf16>, vector<64x10xbf16>, vector<64x10xf32> -> vector<64x10xf32>
    %c0_78 = arith.constant 0 : index
    %c0_79 = arith.constant 0 : index
    %130 = vector.load %arg8[%c0_78, %c0_79] : memref<1x10xf32, #tpu.memory_space<vmem>>, vector<1x10xf32>
    %131 = vector.broadcast %130 : vector<1x10xf32> to vector<64x10xf32>
    %132 = arith.addf %129, %131 : vector<64x10xf32>
    %c64_80 = arith.constant 64 : index
    %c0_81 = arith.constant 0 : index
    %133 = vector.load %arg9[%c64_80, %c0_81] : memref<256x10xf32, #tpu.memory_space<vmem>>, vector<64x10xf32>
    tpu.vector_store %arg9[%c64_80, %c0_81], %132 {strides = array<i32>} : memref<256x10xf32, #tpu.memory_space<vmem>>, vector<64x10xf32>,
    %c0_82 = arith.constant 0 : index
    %c128 = arith.constant 128 : index
    %134 = vector.load %arg1[%c0_82, %c128] : memref<3x256xf32, #tpu.memory_space<vmem>>, vector<3x64xf32>
    %135 = tpu.transpose %134, [1, 0] : vector<3x64xf32> -> vector<64x3xf32>
    %cst_83 = arith.constant dense<0.000000e+00> : vector<64x63xf32>
    %136 = tpu.matmul %135, %0, %cst_83 {dimension_numbers = #tpu.dot_dimension_numbers<[1], [0], [0], [1], [0, 0, 1, 1], [], []>} : vector<64x3xf32>, vector<3x63xf32>, vector<64x63xf32> -> vector<64x63xf32>
    %137 = vector.broadcast %1 : vector<1x63xf32> to vector<64x63xf32>
    %138 = arith.mulf %137, %136 : vector<64x63xf32>
    %139 = vector.broadcast %3 : vector<1x63xf32> to vector<64x63xf32>
    %140 = arith.addf %136, %139 : vector<64x63xf32>
    %141 = math.sin %140 : vector<64x63xf32>
    %142 = vector.broadcast %2 : vector<1x63xf32> to vector<64x63xf32>
    %143 = arith.mulf %142, %141 : vector<64x63xf32>
    %144 = arith.addf %138, %143 : vector<64x63xf32>
    %145 = arith.truncf %144 : vector<64x63xf32> to vector<64x63xbf16>
    %c0_84 = arith.constant 0 : index
    %c0_85 = arith.constant 0 : index
    %146 = vector.load %arg3[%c0_84, %c0_85] : memref<63x64xbf16, #tpu.memory_space<vmem>>, vector<63x64xbf16>
    %cst_86 = arith.constant dense<0.000000e+00> : vector<64x64xf32>
    %147 = tpu.matmul %145, %146, %cst_86 {dimension_numbers = #tpu.dot_dimension_numbers<[1], [0], [0], [1], [0, 0, 1, 1], [], []>} : vector<64x63xbf16>, vector<63x64xbf16>, vector<64x64xf32> -> vector<64x64xf32>
    %c0_87 = arith.constant 0 : index
    %c0_88 = arith.constant 0 : index
    %148 = vector.load %arg5[%c0_87, %c0_88] : memref<1x64xf32, #tpu.memory_space<vmem>>, vector<1x64xf32>
    %149 = vector.broadcast %148 : vector<1x64xf32> to vector<64x64xf32>
    %150 = arith.addf %147, %149 : vector<64x64xf32>
    %cst_89 = arith.constant 0.000000e+00 : f32
    %151 = vector.broadcast %cst_89 : f32 to vector<64x64xf32>
    %152 = arith.cmpf oge, %150, %151 : vector<64x64xf32>
    %cst_90 = arith.constant 0.00999999977 : f32
    %153 = vector.broadcast %cst_90 : f32 to vector<64x64xf32>
    %154 = arith.mulf %153, %150 : vector<64x64xf32>
    %155 = arith.select %152, %150, %154 : vector<64x64xi1>, vector<64x64xf32>
    %156 = arith.truncf %155 : vector<64x64xf32> to vector<64x64xbf16>
    %c0_91 = arith.constant 0 : index
    %c0_92 = arith.constant 0 : index
    %c0_93 = arith.constant 0 : index
    %157 = vector.load %arg4[%c0_91, %c0_92, %c0_93] : memref<3x64x64xbf16, #tpu.memory_space<vmem>>, vector<1x64x64xbf16>
    %158 = vector.shape_cast %157 : vector<1x64x64xbf16> to vector<64x64xbf16>
    %cst_94 = arith.constant dense<0.000000e+00> : vector<64x64xf32>
    %159 = tpu.matmul %156, %158, %cst_94 {dimension_numbers = #tpu.dot_dimension_numbers<[1], [0], [0], [1], [0, 0, 1, 1], [], []>} : vector<64x64xbf16>, vector<64x64xbf16>, vector<64x64xf32> -> vector<64x64xf32>
    %c0_95 = arith.constant 0 : index
    %c0_96 = arith.constant 0 : index
    %160 = vector.load %arg6[%c0_95, %c0_96] : memref<3x64xf32, #tpu.memory_space<vmem>>, vector<1x64xf32>
    %161 = vector.broadcast %160 : vector<1x64xf32> to vector<64x64xf32>
    %162 = arith.addf %159, %161 : vector<64x64xf32>
    %cst_97 = arith.constant 0.000000e+00 : f32
    %163 = vector.broadcast %cst_97 : f32 to vector<64x64xf32>
    %164 = arith.cmpf oge, %162, %163 : vector<64x64xf32>
    %cst_98 = arith.constant 0.00999999977 : f32
    %165 = vector.broadcast %cst_98 : f32 to vector<64x64xf32>
    %166 = arith.mulf %165, %162 : vector<64x64xf32>
    %167 = arith.select %164, %162, %166 : vector<64x64xi1>, vector<64x64xf32>
    %168 = arith.truncf %167 : vector<64x64xf32> to vector<64x64xbf16>
    %c1_99 = arith.constant 1 : index
    %c0_100 = arith.constant 0 : index
    %c0_101 = arith.constant 0 : index
    %169 = vector.load %arg4[%c1_99, %c0_100, %c0_101] : memref<3x64x64xbf16, #tpu.memory_space<vmem>>, vector<1x64x64xbf16>
    %170 = vector.shape_cast %169 : vector<1x64x64xbf16> to vector<64x64xbf16>
    %cst_102 = arith.constant dense<0.000000e+00> : vector<64x64xf32>
    %171 = tpu.matmul %168, %170, %cst_102 {dimension_numbers = #tpu.dot_dimension_numbers<[1], [0], [0], [1], [0, 0, 1, 1], [], []>} : vector<64x64xbf16>, vector<64x64xbf16>, vector<64x64xf32> -> vector<64x64xf32>
    %c1_103 = arith.constant 1 : index
    %c0_104 = arith.constant 0 : index
    %172 = vector.load %arg6[%c1_103, %c0_104] : memref<3x64xf32, #tpu.memory_space<vmem>>, vector<1x64xf32>
    %173 = vector.broadcast %172 : vector<1x64xf32> to vector<64x64xf32>
    %174 = arith.addf %171, %173 : vector<64x64xf32>
    %cst_105 = arith.constant 0.000000e+00 : f32
    %175 = vector.broadcast %cst_105 : f32 to vector<64x64xf32>
    %176 = arith.cmpf oge, %174, %175 : vector<64x64xf32>
    %cst_106 = arith.constant 0.00999999977 : f32
    %177 = vector.broadcast %cst_106 : f32 to vector<64x64xf32>
    %178 = arith.mulf %177, %174 : vector<64x64xf32>
    %179 = arith.select %176, %174, %178 : vector<64x64xi1>, vector<64x64xf32>
    %180 = arith.truncf %179 : vector<64x64xf32> to vector<64x64xbf16>
    %c2_107 = arith.constant 2 : index
    %c0_108 = arith.constant 0 : index
    %c0_109 = arith.constant 0 : index
    %181 = vector.load %arg4[%c2_107, %c0_108, %c0_109] : memref<3x64x64xbf16, #tpu.memory_space<vmem>>, vector<1x64x64xbf16>
    %182 = vector.shape_cast %181 : vector<1x64x64xbf16> to vector<64x64xbf16>
    %cst_110 = arith.constant dense<0.000000e+00> : vector<64x64xf32>
    %183 = tpu.matmul %180, %182, %cst_110 {dimension_numbers = #tpu.dot_dimension_numbers<[1], [0], [0], [1], [0, 0, 1, 1], [], []>} : vector<64x64xbf16>, vector<64x64xbf16>, vector<64x64xf32> -> vector<64x64xf32>
    %c2_111 = arith.constant 2 : index
    %c0_112 = arith.constant 0 : index
    %184 = vector.load %arg6[%c2_111, %c0_112] : memref<3x64xf32, #tpu.memory_space<vmem>>, vector<1x64xf32>
    %185 = vector.broadcast %184 : vector<1x64xf32> to vector<64x64xf32>
    %186 = arith.addf %183, %185 : vector<64x64xf32>
    %cst_113 = arith.constant 0.000000e+00 : f32
    %187 = vector.broadcast %cst_113 : f32 to vector<64x64xf32>
    %188 = arith.cmpf oge, %186, %187 : vector<64x64xf32>
    %cst_114 = arith.constant 0.00999999977 : f32
    %189 = vector.broadcast %cst_114 : f32 to vector<64x64xf32>
    %190 = arith.mulf %189, %186 : vector<64x64xf32>
    %191 = arith.select %188, %186, %190 : vector<64x64xi1>, vector<64x64xf32>
    %192 = arith.truncf %191 : vector<64x64xf32> to vector<64x64xbf16>
    %c0_115 = arith.constant 0 : index
    %c0_116 = arith.constant 0 : index
    %193 = vector.load %arg7[%c0_115, %c0_116] : memref<64x10xbf16, #tpu.memory_space<vmem>>, vector<64x10xbf16>
    %cst_117 = arith.constant dense<0.000000e+00> : vector<64x10xf32>
    %194 = tpu.matmul %192, %193, %cst_117 {dimension_numbers = #tpu.dot_dimension_numbers<[1], [0], [0], [1], [0, 0, 1, 1], [], []>} : vector<64x64xbf16>, vector<64x10xbf16>, vector<64x10xf32> -> vector<64x10xf32>
    %c0_118 = arith.constant 0 : index
    %c0_119 = arith.constant 0 : index
    %195 = vector.load %arg8[%c0_118, %c0_119] : memref<1x10xf32, #tpu.memory_space<vmem>>, vector<1x10xf32>
    %196 = vector.broadcast %195 : vector<1x10xf32> to vector<64x10xf32>
    %197 = arith.addf %194, %196 : vector<64x10xf32>
    %c128_120 = arith.constant 128 : index
    %c0_121 = arith.constant 0 : index
    %198 = vector.load %arg9[%c128_120, %c0_121] : memref<256x10xf32, #tpu.memory_space<vmem>>, vector<64x10xf32>
    tpu.vector_store %arg9[%c128_120, %c0_121], %197 {strides = array<i32>} : memref<256x10xf32, #tpu.memory_space<vmem>>, vector<64x10xf32>,
    %c0_122 = arith.constant 0 : index
    %c192 = arith.constant 192 : index
    %199 = vector.load %arg1[%c0_122, %c192] : memref<3x256xf32, #tpu.memory_space<vmem>>, vector<3x64xf32>
    %200 = tpu.transpose %199, [1, 0] : vector<3x64xf32> -> vector<64x3xf32>
    %cst_123 = arith.constant dense<0.000000e+00> : vector<64x63xf32>
    %201 = tpu.matmul %200, %0, %cst_123 {dimension_numbers = #tpu.dot_dimension_numbers<[1], [0], [0], [1], [0, 0, 1, 1], [], []>} : vector<64x3xf32>, vector<3x63xf32>, vector<64x63xf32> -> vector<64x63xf32>
    %202 = vector.broadcast %1 : vector<1x63xf32> to vector<64x63xf32>
    %203 = arith.mulf %202, %201 : vector<64x63xf32>
    %204 = vector.broadcast %3 : vector<1x63xf32> to vector<64x63xf32>
    %205 = arith.addf %201, %204 : vector<64x63xf32>
    %206 = math.sin %205 : vector<64x63xf32>
    %207 = vector.broadcast %2 : vector<1x63xf32> to vector<64x63xf32>
    %208 = arith.mulf %207, %206 : vector<64x63xf32>
    %209 = arith.addf %203, %208 : vector<64x63xf32>
    %210 = arith.truncf %209 : vector<64x63xf32> to vector<64x63xbf16>
    %c0_124 = arith.constant 0 : index
    %c0_125 = arith.constant 0 : index
    %211 = vector.load %arg3[%c0_124, %c0_125] : memref<63x64xbf16, #tpu.memory_space<vmem>>, vector<63x64xbf16>
    %cst_126 = arith.constant dense<0.000000e+00> : vector<64x64xf32>
    %212 = tpu.matmul %210, %211, %cst_126 {dimension_numbers = #tpu.dot_dimension_numbers<[1], [0], [0], [1], [0, 0, 1, 1], [], []>} : vector<64x63xbf16>, vector<63x64xbf16>, vector<64x64xf32> -> vector<64x64xf32>
    %c0_127 = arith.constant 0 : index
    %c0_128 = arith.constant 0 : index
    %213 = vector.load %arg5[%c0_127, %c0_128] : memref<1x64xf32, #tpu.memory_space<vmem>>, vector<1x64xf32>
    %214 = vector.broadcast %213 : vector<1x64xf32> to vector<64x64xf32>
    %215 = arith.addf %212, %214 : vector<64x64xf32>
    %cst_129 = arith.constant 0.000000e+00 : f32
    %216 = vector.broadcast %cst_129 : f32 to vector<64x64xf32>
    %217 = arith.cmpf oge, %215, %216 : vector<64x64xf32>
    %cst_130 = arith.constant 0.00999999977 : f32
    %218 = vector.broadcast %cst_130 : f32 to vector<64x64xf32>
    %219 = arith.mulf %218, %215 : vector<64x64xf32>
    %220 = arith.select %217, %215, %219 : vector<64x64xi1>, vector<64x64xf32>
    %221 = arith.truncf %220 : vector<64x64xf32> to vector<64x64xbf16>
    %c0_131 = arith.constant 0 : index
    %c0_132 = arith.constant 0 : index
    %c0_133 = arith.constant 0 : index
    %222 = vector.load %arg4[%c0_131, %c0_132, %c0_133] : memref<3x64x64xbf16, #tpu.memory_space<vmem>>, vector<1x64x64xbf16>
    %223 = vector.shape_cast %222 : vector<1x64x64xbf16> to vector<64x64xbf16>
    %cst_134 = arith.constant dense<0.000000e+00> : vector<64x64xf32>
    %224 = tpu.matmul %221, %223, %cst_134 {dimension_numbers = #tpu.dot_dimension_numbers<[1], [0], [0], [1], [0, 0, 1, 1], [], []>} : vector<64x64xbf16>, vector<64x64xbf16>, vector<64x64xf32> -> vector<64x64xf32>
    %c0_135 = arith.constant 0 : index
    %c0_136 = arith.constant 0 : index
    %225 = vector.load %arg6[%c0_135, %c0_136] : memref<3x64xf32, #tpu.memory_space<vmem>>, vector<1x64xf32>
    %226 = vector.broadcast %225 : vector<1x64xf32> to vector<64x64xf32>
    %227 = arith.addf %224, %226 : vector<64x64xf32>
    %cst_137 = arith.constant 0.000000e+00 : f32
    %228 = vector.broadcast %cst_137 : f32 to vector<64x64xf32>
    %229 = arith.cmpf oge, %227, %228 : vector<64x64xf32>
    %cst_138 = arith.constant 0.00999999977 : f32
    %230 = vector.broadcast %cst_138 : f32 to vector<64x64xf32>
    %231 = arith.mulf %230, %227 : vector<64x64xf32>
    %232 = arith.select %229, %227, %231 : vector<64x64xi1>, vector<64x64xf32>
    %233 = arith.truncf %232 : vector<64x64xf32> to vector<64x64xbf16>
    %c1_139 = arith.constant 1 : index
    %c0_140 = arith.constant 0 : index
    %c0_141 = arith.constant 0 : index
    %234 = vector.load %arg4[%c1_139, %c0_140, %c0_141] : memref<3x64x64xbf16, #tpu.memory_space<vmem>>, vector<1x64x64xbf16>
    %235 = vector.shape_cast %234 : vector<1x64x64xbf16> to vector<64x64xbf16>
    %cst_142 = arith.constant dense<0.000000e+00> : vector<64x64xf32>
    %236 = tpu.matmul %233, %235, %cst_142 {dimension_numbers = #tpu.dot_dimension_numbers<[1], [0], [0], [1], [0, 0, 1, 1], [], []>} : vector<64x64xbf16>, vector<64x64xbf16>, vector<64x64xf32> -> vector<64x64xf32>
    %c1_143 = arith.constant 1 : index
    %c0_144 = arith.constant 0 : index
    %237 = vector.load %arg6[%c1_143, %c0_144] : memref<3x64xf32, #tpu.memory_space<vmem>>, vector<1x64xf32>
    %238 = vector.broadcast %237 : vector<1x64xf32> to vector<64x64xf32>
    %239 = arith.addf %236, %238 : vector<64x64xf32>
    %cst_145 = arith.constant 0.000000e+00 : f32
    %240 = vector.broadcast %cst_145 : f32 to vector<64x64xf32>
    %241 = arith.cmpf oge, %239, %240 : vector<64x64xf32>
    %cst_146 = arith.constant 0.00999999977 : f32
    %242 = vector.broadcast %cst_146 : f32 to vector<64x64xf32>
    %243 = arith.mulf %242, %239 : vector<64x64xf32>
    %244 = arith.select %241, %239, %243 : vector<64x64xi1>, vector<64x64xf32>
    %245 = arith.truncf %244 : vector<64x64xf32> to vector<64x64xbf16>
    %c2_147 = arith.constant 2 : index
    %c0_148 = arith.constant 0 : index
    %c0_149 = arith.constant 0 : index
    %246 = vector.load %arg4[%c2_147, %c0_148, %c0_149] : memref<3x64x64xbf16, #tpu.memory_space<vmem>>, vector<1x64x64xbf16>
    %247 = vector.shape_cast %246 : vector<1x64x64xbf16> to vector<64x64xbf16>
    %cst_150 = arith.constant dense<0.000000e+00> : vector<64x64xf32>
    %248 = tpu.matmul %245, %247, %cst_150 {dimension_numbers = #tpu.dot_dimension_numbers<[1], [0], [0], [1], [0, 0, 1, 1], [], []>} : vector<64x64xbf16>, vector<64x64xbf16>, vector<64x64xf32> -> vector<64x64xf32>
    %c2_151 = arith.constant 2 : index
    %c0_152 = arith.constant 0 : index
    %249 = vector.load %arg6[%c2_151, %c0_152] : memref<3x64xf32, #tpu.memory_space<vmem>>, vector<1x64xf32>
    %250 = vector.broadcast %249 : vector<1x64xf32> to vector<64x64xf32>
    %251 = arith.addf %248, %250 : vector<64x64xf32>
    %cst_153 = arith.constant 0.000000e+00 : f32
    %252 = vector.broadcast %cst_153 : f32 to vector<64x64xf32>
    %253 = arith.cmpf oge, %251, %252 : vector<64x64xf32>
    %cst_154 = arith.constant 0.00999999977 : f32
    %254 = vector.broadcast %cst_154 : f32 to vector<64x64xf32>
    %255 = arith.mulf %254, %251 : vector<64x64xf32>
    %256 = arith.select %253, %251, %255 : vector<64x64xi1>, vector<64x64xf32>
    %257 = arith.truncf %256 : vector<64x64xf32> to vector<64x64xbf16>
    %c0_155 = arith.constant 0 : index
    %c0_156 = arith.constant 0 : index
    %258 = vector.load %arg7[%c0_155, %c0_156] : memref<64x10xbf16, #tpu.memory_space<vmem>>, vector<64x10xbf16>
    %cst_157 = arith.constant dense<0.000000e+00> : vector<64x10xf32>
    %259 = tpu.matmul %257, %258, %cst_157 {dimension_numbers = #tpu.dot_dimension_numbers<[1], [0], [0], [1], [0, 0, 1, 1], [], []>} : vector<64x64xbf16>, vector<64x10xbf16>, vector<64x10xf32> -> vector<64x10xf32>
    %c0_158 = arith.constant 0 : index
    %c0_159 = arith.constant 0 : index
    %260 = vector.load %arg8[%c0_158, %c0_159] : memref<1x10xf32, #tpu.memory_space<vmem>>, vector<1x10xf32>
    %261 = vector.broadcast %260 : vector<1x10xf32> to vector<64x10xf32>
    %262 = arith.addf %259, %261 : vector<64x10xf32>
    %c192_160 = arith.constant 192 : index
    %c0_161 = arith.constant 0 : index
    %263 = vector.load %arg9[%c192_160, %c0_161] : memref<256x10xf32, #tpu.memory_space<vmem>>, vector<64x10xf32>
    tpu.vector_store %arg9[%c192_160, %c0_161], %262 {strides = array<i32>} : memref<256x10xf32, #tpu.memory_space<vmem>>, vector<64x10xf32>,
    return
  }
  func.func @transform_0(%arg0: i32) -> (i32, i32) {
    %c0_i32 = arith.constant 0 : i32
    %c0_i32_0 = arith.constant 0 : i32
    return %c0_i32, %arg0 : i32, i32
  }
  func.func @transform_1(%arg0: i32) -> (i32, i32) {
    %c0_i32 = arith.constant 0 : i32
    %c0_i32_0 = arith.constant 0 : i32
    %c0_i32_1 = arith.constant 0 : i32
    return %c0_i32, %c0_i32_0 : i32, i32
  }
  func.func @transform_2(%arg0: i32) -> (i32, i32) {
    %c0_i32 = arith.constant 0 : i32
    %c0_i32_0 = arith.constant 0 : i32
    %c0_i32_1 = arith.constant 0 : i32
    return %c0_i32, %c0_i32_0 : i32, i32
  }
  func.func @transform_3(%arg0: i32) -> (i32, i32, i32) {
    %c0_i32 = arith.constant 0 : i32
    %c0_i32_0 = arith.constant 0 : i32
    %c0_i32_1 = arith.constant 0 : i32
    %c0_i32_2 = arith.constant 0 : i32
    return %c0_i32, %c0_i32_0, %c0_i32_1 : i32, i32, i32
  }
  func.func @transform_4(%arg0: i32) -> (i32, i32) {
    %c0_i32 = arith.constant 0 : i32
    %c0_i32_0 = arith.constant 0 : i32
    %c0_i32_1 = arith.constant 0 : i32
    return %c0_i32, %c0_i32_0 : i32, i32
  }
  func.func @transform_5(%arg0: i32) -> (i32, i32) {
    %c0_i32 = arith.constant 0 : i32
    %c0_i32_0 = arith.constant 0 : i32
    %c0_i32_1 = arith.constant 0 : i32
    return %c0_i32, %c0_i32_0 : i32, i32
  }
  func.func @transform_6(%arg0: i32) -> (i32, i32) {
    %c0_i32 = arith.constant 0 : i32
    %c0_i32_0 = arith.constant 0 : i32
    %c0_i32_1 = arith.constant 0 : i32
    return %c0_i32, %c0_i32_0 : i32, i32
  }
  func.func @transform_7(%arg0: i32) -> (i32, i32) {
    %c0_i32 = arith.constant 0 : i32
    %c0_i32_0 = arith.constant 0 : i32
    %c0_i32_1 = arith.constant 0 : i32
    return %c0_i32, %c0_i32_0 : i32, i32
  }
  func.func @transform_8(%arg0: i32) -> (i32, i32) {
    %c0_i32 = arith.constant 0 : i32
    %c0_i32_0 = arith.constant 0 : i32
    return %arg0, %c0_i32 : i32, i32
  }
}

</mosaic_0001>

<bundles_post_ra>
// kernel: deform_forward.1
= control target key start
LH: loop header
LB: loop body
LE: loop exit
PB: predicated region body
PF: predicated region fallthrough
CT: control target
= control target key end

     0   :  { %13 = vsyncpa [#allocation3], 0  ;;  %s12968_s0 = inlined_call_operand.vmem [shape: f32[3,300], index: 0, kind: input, shape index: {}]   ;;  %s12969_s1 = inlined_call_operand.hbm [shape: f32[6,63], index: 1, kind: input, shape index: {}]   ;;  %s12970_s2 = inlined_call_operand.vmem [shape: bf16[63,64], index: 2, kind: input, shape index: {}]   ;;  %s12971_s3 = inlined_call_operand.vmem [shape: bf16[3,64,64], index: 3, kind: input, shape index: {}]   ;;  %s12972_s4 = inlined_call_operand.vmem [shape: f32[1,64], index: 4, kind: input, shape index: {}]   ;;  %s12973_s5 = inlined_call_operand.hbm [shape: f32[3,64], index: 5, kind: input, shape index: {}]   ;;  %s12974_s6 = inlined_call_operand.vmem [shape: bf16[64,10], index: 6, kind: input, shape index: {}]   ;;  %s12975_s7 = inlined_call_operand.vmem [shape: f32[1,10], index: 7, kind: input, shape index: {}]   ;;  %s12976_s8 = inlined_call_operand.vmem [shape: f32[300,10], index: 8, kind: output, shape index: {}]  }
   0x1   :  { %14 = vsyncpa [#allocation5], 0  ;;  %s9363_s27 = smov 0   ;;  %s9365_s28 = smov 0  }
   0x2   :  { %s9367_s29 = smov 0  }
   0x3 LB: > { %s9376_s30 = sadd.s32 4294967295, %s9274_s29   ;;  %s9378_s9 = sadd.s32 1, %s9274_s29   ;;  %s9274_s29 = sphi %s9367_s29, %s13054_s29   ;;  %s9270_s28 = sphi %s9365_s28, %s13053_s28   ;;  %s9266_s27 = sphi %s9363_s27, %s13052_s27  }
   0x4   : > { %s197_s10 = ssub.s32 %s9274_s29, %s9378_s9  ;;  %s200_s11 = sadd.s32 1, %s9270_s28 }
   0x5   : > { %p198_p0 = scmp.eq.s32.totalorder %s197_s10, 0  ;;  %p210_p1 = scmp.ne.s32.totalorder %s9270_s28, %s9266_s27 }
   0x6   : > { %p211_p2 = scmp.eq.s32.totalorder %s9376_s30, 1  ;;  %p7658_p3 = scmp.ge.s32.totalorder %s9274_s29, 1 }
   0x7   : > { %s9386_s12 = scalar_select %p198_p0, %s9270_s28, %s200_s11  }
   0x8   : > { %p9388_p4 = por %p211_p2, %p210_p1  ;;  %p224_p5 = scmp.lt.s32.totalorder %s9274_s29, 3 }
   0x9   : > { %p12977_p6 = scmp.eq.s32.totalorder %s9376_s30, 0  ;;  %s9308_s15 = smov [#allocation2]  }
   0xa   : > { %s12980_s13 = scalar_select %p9388_p4, 1, 0 }
   0xb   : > { %p9393_p7 = pnand %p7658_p3, %p224_p5  ;;  %s237_s16 = sshll.u32 %s9308_s15, 4  ;;  %s238_s16 = int_to_ptr.vmem [resolvable:$true] %s237_s16 }
   0xc   : > { %s9309_s17 = smov [#allocation4]   ;;  %s9156_s22 = scalar_lea.hbm %s12969_s1, 128 }
   0xd   : > { %s12981_s14 = scalar_select %p9393_p7, 1, 0 }
   0xe   : > { %p8815_p8 = pneg %p9393_p7  ;;  %s257_s18 = sshll.u32 %s9309_s17, 4  ;;  %s9405_s18 = int_to_ptr.vmem [resolvable:$true] %s257_s18 }
   0xf   : > { %p9157_p10 = scmp.ne.s32.totalorder %s12969_s1, %s9156_s22  ;;  %p9163_p0 = scmp.lt.u32.totalorder %s9156_s22, %s12969_s1 }
  0x10   : > { %p9401_p9 = pnand %p12977_p6, %p8815_p8 }
  0x12   : > { %p9158_p11 = pneg %p9401_p9 }
  0x14   : > { %p9159_p12 = pnand %p9158_p11, %p9157_p10 }
  0x16   : > { %p9160_p13 = pneg %p9159_p12 }
  0x18   : > { %p9165_p1 = pnand %p9163_p0, %p9160_p13 }
  0x1a   : > { %9168 = shalt.err (!%p9165_p1)
}
  0x1b   : > { %s9169_s29 = scalar_lea.vmem %s238_s16, 128  ;;  %p9177_p8 = scmp.lt.s32.totalorder %s238_s16, %s238_s16 }
  0x1c   : > { %p9170_p2 = scmp.ne.s32.totalorder %s238_s16, %s9169_s29  ;;  %p9178_p6 = scmp.lt.s32.totalorder %s9169_s29, %s9169_s29 }
  0x1e   : > { %p9172_p3 = pnand %p9170_p2, %p9158_p11  ;;  %p9179_p4 = por %p9178_p6, %p9177_p8 }
  0x20   : > { %p9173_p5 = pneg %p9172_p3 }
  0x22   : > { %p9180_p7 = pnand %p9179_p4, %p9173_p5 }
  0x24   : > { %9183 = shalt.err (!%p9180_p7)
}
  0x25   : > { %8818 = dma.hbm_to_vmem [thread:$0]  (!%p9401_p9), %s12969_s1, 128, %s238_s16, [#allocation3]  }
  0x26   : > { %s9184_s20 = scalar_lea.hbm %s12973_s5, 64 }
  0x27   : > { %p9185_p10 = scmp.ne.s32.totalorder %s12973_s5, %s9184_s20  ;;  %p9191_p7 = scmp.lt.u32.totalorder %s9184_s20, %s12973_s5 }
  0x29   : > { %p9187_p6 = pnand %p9185_p10, %p9158_p11 }
  0x2b   : > { %p9188_p4 = pneg %p9187_p6 }
  0x2d   : > { %p9193_p12 = pnand %p9191_p7, %p9188_p4 }
  0x2f   : > { %9196 = shalt.err (!%p9193_p12)
}
  0x30   : > { %s9197_s16 = scalar_lea.vmem %s9405_s18, 64  ;;  %p9205_p2 = scmp.lt.s32.totalorder %s9405_s18, %s9405_s18 }
  0x31   : > { %p9198_p13 = scmp.ne.s32.totalorder %s9405_s18, %s9197_s16  ;;  %p9206_p3 = scmp.lt.s32.totalorder %s9197_s16, %s9197_s16 }
  0x33   : > { %p9200_p0 = pnand %p9198_p13, %p9158_p11  ;;  %p9207_p5 = por %p9206_p3, %p9205_p2 }
  0x35   : > { %p9201_p1 = pneg %p9200_p0 }
  0x37   : > { %p9208_p8 = pnand %p9207_p5, %p9201_p1 }
  0x39   : > { %9211 = shalt.err (!%p9208_p8)
}
  0x3a   : > { %8821 = dma.hbm_to_vmem [thread:$0]  (!%p9401_p9), %s12973_s5, 64, %s9405_s18, [#allocation5]  }
  0x3b   : > { %p12983_p10 = scmp.ne.s32.totalorder %s12981_s14, 0 }
  0x3c   : > { %p12984_p6 = scmp.eq.s32.totalorder (!%p12983_p10), %s9376_s30, 0 }
  0x3d   : > { %293 = sbr.rel (%p12983_p10) target bundleno = 5240 (0x1478), region = 52 }
  0x44   : > { %9257 = dma.done.wait (%p12984_p6), [#allocation3], 128   ;;  %p12985_p11 = pmov %p12984_p6 }
  0x45   : > { %p12986_p4 = pmov %p12984_p6 }
  0x46   : > { %9259 = vsyncadd (%p12985_p11), [#allocation3], 4294967168 }
  0x47   : > { %9261 = dma.done.wait (%p12986_p4), [#allocation5], 64   ;;  %p12987_p7 = pmov %p12986_p4 }
  0x48   : > { %s7666_s19 = sshll.u32 %s9376_s30, 1  ;;  %v354_v1 = vld [vmem:[#allocation2] sm:$0x7]  ;;  %vm416_vm0 = vcmask 1042432   ;;  %vm391_vm1 = vcmask 23552   ;;  %s9317_s20 = smov 64  }
  0x49   : > { %9263 = vsyncadd (%p12987_p7), [#allocation5], 4294967232  ;;  %p339_p12 = scmp.lt.s32.totalorder %s7666_s19, 2  ;;  %8295 = vmatprep.subr.msk.mxu0 %vm416_vm0, %v354_v1  ;;  %v9481_v10 = vld [vmem:[#allocation2 + $0x5] ss:$0 sm:$0xff]  ;;  %p13046_p9 = scmp.ne.s32.totalorder %s12980_s13, 0 }
  0x4a   : > { %8296 = vmatpush3.msk.msra.mxu0 %vm416_vm0, %v354_v1  ;;  %v9310_v43 = vmov 683565275   ;;  %v9311_v47 = vmov 2475754826   ;;  %v9312_v49 = vmov 2131351028  }
  0x4b   : > { %s13056_s19 = smov (!%p339_p12, %s7666_s19), 2  ;;  %v9313_v51 = vmov 2102212464   ;;  %v9314_v53 = vmov 920167782  }
  0x4c   : > { %s7667_s18 = sshll.u32 %s13056_s19, 2  ;;  %v9315_v62 = vmov 1326507024  }
  0x4d   : > { %s9468_s10 = scalar_lea.vmem %s12968_s0, %s7667_s18  ;;  %s331_s18 = sand.u32 1, %s9266_s27  }
  0x4e   : > { %v358_v0 = vld [vmem:[%s9468_s10] sm:$0x7]  ;;  %s7665_s27 = sshll.u32 %s331_s18, 8 }
  0x4f   : > { %359 = vxpose.xlu0.b32.start.end [1/1] (short) (narrow) %v358_v0, 64  ;;  %s10991_s11 = scalar_lea.vmem [#allocation6], %s7665_s27  }
  0xcf   : > { %v375_v2 = vpop.trf.xlu0 }
  0xd0   : > { %8297 = vmatprep.mubr.msk.f32.mxu0 %vm391_vm1, %v375_v2 }
  0xd3   : > { %v376_v3 = vpop.trf.xlu0 }
  0xd4   : > { %8298 = vmatmul.mubr.msk.f32.vlgmr.msra.gmra.mrb[0].mxu0 %vm391_vm1, %v376_v3 }
  0xd7   : > { %v377_v4 = vpop.trf.xlu0 }
  0xd8   : > { %8300 = vmatprep.mubr.msk.f32.mxu0 %vm391_vm1, %v377_v4 }
  0xdb   : > { %v378_v5 = vpop.trf.xlu0 }
  0xdc   : > { %8301 = vmatmul.mubr.msk.f32.gmra.mrb[2].mxu0 %vm391_vm1, %v378_v5 }
  0xdf   : > { %v379_v6 = vpop.trf.xlu0 }
  0xe0   : > { %8303 = vmatprep.mubr.msk.f32.mxu0 %vm391_vm1, %v379_v6 }
  0xe3   : > { %v380_v7 = vpop.trf.xlu0 }
  0xe4   : > { %8304 = vmatmul.mubr.msk.f32.gmra.mrb[4].mxu0 %vm391_vm1, %v380_v7 }
  0xe7   : > { %v381_v8 = vpop.trf.xlu0 }
  0xe8   : > { %8306 = vmatprep.mubr.msk.f32.mxu0 %vm391_vm1, %v381_v8 }
  0xeb   : > { %v382_v9 = vpop.trf.xlu0 }
  0xec   : > { %8307 = vmatmul.mubr.msk.f32.gmra.mrb[6].mxu0 %vm391_vm1, %v382_v9 }
 0x1a7   : > { %v9483_v11 = vpop.f32.mrb[0].mxu0 }
 0x1a8   : > { %v9487_v12 = vadd.f32 %v9483_v11, %v9481_v10  ;;  %v9489_v13 = vpop.f32.mrb[1].mxu0 }
 0x1a9   : > { %v9493_v14 = vadd.f32 %v9481_v10, %v9489_v13 }
 0x1aa   : > { %v653_v15 = vand.u32 2147483647, %v9487_v12  ;;  %v656_v16 = vand.u32 2139095040, %v9487_v12 }
 0x1ab   : > { %v549_v17 = vand.u32 2147483647, %v9493_v14  ;;  %v552_v18 = vand.u32 2139095040, %v9493_v14 }
 0x1ac   : > { %v657_v19 = vshrl.u32 %v656_v16, 23  ;;  %v660_v20 = vand.u32 8388607, %v653_v15 }
 0x1ad   : > { %v553_v21 = vshrl.u32 %v552_v18, 23  ;;  %v556_v22 = vand.u32 8388607, %v549_v17 }
 0x1ae   : > { %v7683_v23 = vadd.s32 4294967169, %v657_v19  ;;  %v661_v26 = vor.u32 8388608, %v660_v20 }
 0x1af   : > { %v7679_v24 = vadd.s32 4294967169, %v553_v21  ;;  %v9503_v25 = vpop.f32.mrb[2].mxu0  ;;  %v557_v30 = vor.u32 8388608, %v556_v22 }
 0x1b0   : > { %v663_v27 = vadd.s32 1, %v7683_v23  ;;  %v9507_v28 = vadd.f32 %v9503_v25, %v9481_v10  ;;  %v9509_v29 = vpop.f32.mrb[3].mxu0  ;;  %v9512_v36 = vshll.u32 %v661_v26, 8 }
 0x1b1   : > { %v559_v31 = vadd.s32 1, %v7679_v24  ;;  %v9516_v39 = vshll.u32 %v557_v30, 8  ;;  %v9521_v41 = vadd.f32 %v9481_v10, %v9509_v29 }
 0x1b2   : > { %vm664_vm2 = vcmp.gt.s32.totalorder %v663_v27, 0  ;;  %v864_v32 = vand.u32 2139095040, %v9507_v28  ;;  %v861_v40 = vand.u32 2147483647, %v9507_v28 }
 0x1b3   : > { %v665_v33 = vsel %vm664_vm2, %v663_v27, 0  ;;  %vm560_vm3 = vcmp.gt.s32.totalorder %v559_v31, 0 }
 0x1b4   : > { %v666_v34 = vshrl.u32 %v665_v33, 5  ;;  %v667_v35 = vand.u32 31, %v665_v33  ;;  %v561_v37 = vsel %vm560_vm3, %v559_v31, 0  ;;  %v9524_v46 = vshrl.u32 %v864_v32, 23 }
 0x1b5   : > { %v9514_v38 = vshrl.u32 %v561_v37, 5  ;;  %v563_v45 = vand.u32 31, %v561_v37 }
 0x1b6   : > { %v668_v42 = vsub.s32 32, %v667_v35  ;;  %v670_v44 = vshll.u32 %v9310_v43, %v667_v35  ;;  %v673_v48 = vshll.u32 %v9311_v47, %v667_v35  ;;  %v676_v50 = vshll.u32 %v9312_v49, %v667_v35 }
 0x1b7   : > { %v679_v52 = vshll.u32 %v9313_v51, %v667_v35  ;;  %v682_v54 = vshll.u32 %v9314_v53, %v667_v35  ;;  %v9530_v55 = vpop.f32.mrb[4].mxu0  ;;  %vm685_vm4 = vcmp.lt.s32.totalorder %v666_v34, 1  ;;  %vm686_vm5 = vcmp.lt.s32.totalorder %v666_v34, 2 }
 0x1b8   : > { %v671_v56 = vshrl.u32 %v9311_v47, %v668_v42  ;;  %v674_v57 = vshrl.u32 %v9312_v49, %v668_v42  ;;  %v677_v58 = vshrl.u32 %v9313_v51, %v668_v42  ;;  %v9535_v59 = vpop.f32.mrb[5].mxu0  ;;  %v669_v60 = vshrl.u32 %v9310_v43, %v668_v42 }
 0x1b9   : > { %v680_v61 = vshrl.u32 %v9314_v53, %v668_v42  ;;  %v683_v63 = vshrl.u32 %v9315_v62, %v668_v42  ;;  %v564_v3 = vsub.s32 32, %v563_v45  ;;  %vm687_vm6 = vcmp.lt.s32.totalorder %v666_v34, 3 }
 0x1ba   : > { %v672_v0 = vor.u32 %v671_v56, %v670_v44  ;;  %v675_v1 = vor.u32 %v674_v57, %v673_v48  ;;  %v678_v2 = vor.u32 %v677_v58, %v676_v50  ;;  %vm688_vm7 = vcmp.lt.s32.totalorder %v666_v34, 4 }
 0x1bb   : > { %v681_v4 = vor.u32 %v680_v61, %v679_v52  ;;  %v684_v5 = vor.u32 %v683_v63, %v682_v54  ;;  %v566_v20 = vshll.u32 %v9310_v43, %v563_v45  ;;  %v567_v23 = vshrl.u32 %v9311_v47, %v564_v3 }
 0x1bc   : > { %v689_v6 = vsel %vm685_vm4, %v669_v60, %v672_v0  ;;  %v690_v7 = vsel %vm688_vm7, %v678_v2, 2102212464  ;;  %v693_v8 = vsel %vm685_vm4, %v672_v0, %v675_v1  ;;  %v697_v9 = vsel %vm685_vm4, %v675_v1, %v678_v2 }
 0x1bd   : > { %v691_v16 = vsel %vm687_vm6, %v675_v1, %v690_v7  ;;  %v694_v18 = vsel %vm688_vm7, %v681_v4, 920167782  ;;  %v698_v19 = vsel %vm688_vm7, %v684_v5, 1326507024  ;;  %v569_v24 = vshll.u32 %v9311_v47, %v563_v45 }
 0x1be   : > { %v695_v21 = vsel %vm687_vm6, %v678_v2, %v694_v18  ;;  %v699_v22 = vsel %vm687_vm6, %v681_v4, %v698_v19  ;;  %v692_v26 = vsel %vm686_vm5, %v689_v6, %v691_v16  ;;  %v570_v31 = vshrl.u32 %v9312_v49, %v564_v3 }
 0x1bf   : > { %v696_v27 = vsel %vm686_vm5, %v693_v8, %v695_v21  ;;  %v700_v30 = vsel %vm686_vm5, %v697_v9, %v699_v22  ;;  %v9550_v32 = vpop.f32.mrb[6].mxu0  ;;  %v568_v48 = vor.u32 %v567_v23, %v566_v20  ;;  %v572_v34 = vshll.u32 %v9312_v49, %v563_v45 }
 0x1c0   : > { %v9553_v33 = vmul.u32.u64.low %v9512_v36, %v700_v30  ;;  %v9554_v35 = vmul.u32.u64.high %v9512_v36, %v700_v30, %v9553_v33  ;;  %v9557_v37 = vmul.u32.u64.low %v9512_v36, %v696_v27  ;;  %v9558_v42 = vmul.u32.u64.high %v9512_v36, %v696_v27, %v9557_v37  ;;  %v9561_v44 = vpop.f32.mrb[7].mxu0 }
 0x1c1   : > { %v571_v50 = vor.u32 %v570_v31, %v569_v24  ;;  %v573_v52 = vshrl.u32 %v9313_v51, %v564_v3  ;;  %v565_v54 = vshrl.u32 %v9310_v43, %v564_v3  ;;  %v575_v56 = vshll.u32 %v9313_v51, %v563_v45 }
 0x1c2   : > { %v576_v57 = vshrl.u32 %v9314_v53, %v564_v3  ;;  %v579_v58 = vshrl.u32 %v9315_v62, %v564_v3  ;;  %v708_v60 = vmul.u32 %v9512_v36, %v692_v26  ;;  %v578_v63 = vshll.u32 %v9314_v53, %v563_v45 }
 0x1c3   : > { %v574_v61 = vor.u32 %v573_v52, %v572_v34  ;;  %vm581_vm8 = vcmp.lt.s32.totalorder %v9514_v38, 1  ;;  %vm710_vm9 = vc.u32 %v9554_v35, %v9557_v37  ;;  %v711_v0 = vadd.s32 1, %v9558_v42 }
 0x1c4   : > { %v577_v1 = vor.u32 %v576_v57, %v575_v56  ;;  %vm582_vm10 = vcmp.lt.s32.totalorder %v9514_v38, 2  ;;  %v580_v2 = vor.u32 %v579_v58, %v578_v63  ;;  %vm583_vm11 = vcmp.lt.s32.totalorder %v9514_v38, 3 }
 0x1c5   : > { %vm584_vm12 = vcmp.lt.s32.totalorder %v9514_v38, 4  ;;  %v589_v3 = vsel %vm581_vm8, %v568_v48, %v571_v50  ;;  %v712_v36 = vsel %vm710_vm9, %v711_v0, %v9558_v42  ;;  %v593_v5 = vsel %vm581_vm8, %v571_v50, %v574_v61 }
 0x1c6   : > { %v586_v4 = vsel %vm584_vm12, %v574_v61, 2102212464  ;;  %v590_v45 = vsel %vm584_vm12, %v577_v1, 920167782  ;;  %v713_v6 = vadd.s32 %v712_v36, %v708_v60  ;;  %v585_v7 = vsel %vm581_vm8, %v565_v54, %v568_v48 }
 0x1c7   : > { %v591_v8 = vsel %vm583_vm11, %v574_v61, %v590_v45  ;;  %v594_v9 = vsel %vm584_vm12, %v580_v2, 1326507024  ;;  %v587_v16 = vsel %vm583_vm11, %v571_v50, %v586_v4  ;;  %v7691_v20 = vadd.s32 4294967169, %v9524_v46 }
 0x1c8   : > { %v592_v18 = vsel %vm582_vm10, %v589_v3, %v591_v8  ;;  %v595_v19 = vsel %vm583_vm11, %v577_v1, %v594_v9  ;;  %v714_v21 = vadd.s32 536870912, %v713_v6  ;;  %v588_v31 = vsel %vm582_vm10, %v585_v7, %v587_v16 }
 0x1c9   : > { %v596_v22 = vsel %vm582_vm10, %v593_v5, %v595_v19  ;;  %v9585_v23 = vmul.u32.u64.low %v9516_v39, %v592_v18  ;;  %v9586_v24 = vmul.u32.u64.high %v9516_v39, %v592_v18, %v9585_v23  ;;  %v871_v33 = vadd.s32 1, %v7691_v20 }
 0x1ca   : > { %v9590_v26 = vmul.u32.u64.low %v9516_v39, %v596_v22  ;;  %v9591_v27 = vmul.u32.u64.high %v9516_v39, %v596_v22, %v9590_v26  ;;  %v9593_v30 = vshrl.u32 %v714_v21, 30  ;;  %v868_v46 = vand.u32 8388607, %v861_v40 }
 0x1cb   : > { %v607_v48 = vadd.s32 1, %v9586_v24  ;;  %vm872_vm13 = vcmp.gt.s32.totalorder %v871_v33, 0  ;;  %v760_v50 = vand.u32 2139095040, %v9521_v41  ;;  %v604_v34 = vmul.u32 %v9516_v39, %v588_v31 }
 0x1cc   : > { %v716_v42 = vshll.u32 %v9593_v30, 30  ;;  %vm606_vm14 = vc.u32 %v9591_v27, %v9585_v23  ;;  %v873_v52 = vsel %vm872_vm13, %v871_v33, 0  ;;  %v869_v58 = vor.u32 8388608, %v868_v46 }
 0x1cd   : > { %v608_v38 = vsel %vm606_vm14, %v607_v48, %v9586_v24  ;;  %v875_v56 = vand.u32 31, %v873_v52  ;;  %v874_v61 = vshrl.u32 %v873_v52, 5  ;;  %v761_v0 = vshrl.u32 %v760_v50, 23 }
 0x1ce   : > { %v9605_v54 = vsub.s32 %v713_v6, %v716_v42  ;;  %v609_v57 = vadd.s32 %v608_v38, %v604_v34  ;;  %v909_v31 = vshll.u32 %v869_v58, 8  ;;  %vm655_vm11 = vcmp.lt.s32.totalorder %v9487_v12, 0 }
 0x1cf   : > { %v876_v63 = vsub.s32 32, %v875_v56  ;;  %v878_v2 = vshll.u32 %v9310_v43, %v875_v56  ;;  %v881_v39 = vshll.u32 %v9311_v47, %v875_v56  ;;  %v884_v3 = vshll.u32 %v9312_v49, %v875_v56 }
 0x1d0   : > { %v719_v60 = vsub.s32 0, %v9605_v54  ;;  %v610_v1 = vadd.s32 536870912, %v609_v57  ;;  %v887_v5 = vshll.u32 %v9313_v51, %v875_v56  ;;  %v890_v24 = vshll.u32 %v9314_v53, %v875_v56 }
 0x1d1   : > { %v879_v4 = vshrl.u32 %v9311_v47, %v876_v63  ;;  %v882_v45 = vshrl.u32 %v9312_v49, %v876_v63  ;;  %v885_v7 = vshrl.u32 %v9313_v51, %v876_v63  ;;  %v888_v8 = vshrl.u32 %v9314_v53, %v876_v63 }
 0x1d2   : > { %v7684_v36 = vmin.u32 %v719_v60, %v9605_v54  ;;  %v9616_v6 = vshrl.u32 %v610_v1, 30  ;;  %v891_v9 = vshrl.u32 %v9315_v62, %v876_v63  ;;  %vm893_vm15 = vcmp.lt.s32.totalorder %v874_v61, 1 }
 0x1d3   : > { %v880_v18 = vor.u32 %v879_v4, %v878_v2  ;;  %v883_v19 = vor.u32 %v882_v45, %v881_v39  ;;  %v886_v21 = vor.u32 %v885_v7, %v884_v3  ;;  %v889_v22 = vor.u32 %v888_v8, %v887_v5 }
 0x1d4   : > { %v721_v16 = vclz %v7684_v36  ;;  %v612_v20 = vshll.u32 %v9616_v6, 30  ;;  %v7687_v33 = vadd.s32 4294967169, %v761_v0  ;;  %v892_v42 = vor.u32 %v891_v9, %v890_v24 }
 0x1d5   : > { %vm896_vm2 = vcmp.lt.s32.totalorder %v874_v61, 4  ;;  %v901_v48 = vsel %vm893_vm15, %v880_v18, %v883_v19  ;;  %vm894_vm4 = vcmp.lt.s32.totalorder %v874_v61, 2  ;;  %vm895_vm5 = vcmp.lt.s32.totalorder %v874_v61, 3 }
 0x1d6   : > { %v7685_v26 = vadd.s32 4294967294, %v721_v16  ;;  %v9623_v46 = vsub.s32 %v609_v57, %v612_v20  ;;  %v902_v50 = vsel %vm896_vm2, %v889_v22, 920167782  ;;  %v898_v38 = vsel %vm896_vm2, %v886_v21, 2102212464 }
 0x1d7   : > { %v903_v60 = vsel %vm895_vm5, %v886_v21, %v902_v50  ;;  %v877_v1 = vshrl.u32 %v9310_v43, %v876_v63  ;;  %v905_v57 = vsel %vm893_vm15, %v883_v19, %v886_v21  ;;  %v906_v2 = vsel %vm896_vm2, %v892_v42, 1326507024 }
 0x1d8   : > { %vm7686_vm3 = vcmp.lt.s32.totalorder %v7685_v26, 0  ;;  %v615_v52 = vsub.s32 0, %v9623_v46  ;;  %v904_v58 = vsel %vm894_vm4, %v901_v48, %v903_v60  ;;  %v899_v4 = vsel %vm895_vm5, %v883_v19, %v898_v38 }
 0x1d9   : > { %v724_v34 = vsel %vm7686_vm3, 0, %v7685_v26  ;;  %v9631_v39 = vmul.u32.u64.low %v909_v31, %v904_v58  ;;  %v9632_v3 = vmul.u32.u64.high %v909_v31, %v904_v58, %v9631_v39  ;;  %v897_v36 = vsel %vm893_vm15, %v877_v1, %v880_v18 }
 0x1da   : > { %v729_v56 = vsub.s32 4294967266, %v724_v34  ;;  %v7680_v0 = vmin.u32 %v615_v52, %v9623_v46  ;;  %v907_v45 = vsel %vm895_vm5, %v889_v22, %v906_v2  ;;  %v725_v5 = vsub.s32 32, %v724_v34 }
 0x1db   : > { %v908_v8 = vsel %vm894_vm4, %v905_v57, %v907_v45  ;;  %v767_v63 = vadd.s32 1, %v7687_v33  ;;  %v709_v9 = vadd.s32 %v9557_v37, %v9554_v35  ;;  %v900_v26 = vsel %vm894_vm4, %v897_v36, %v899_v4 }
 0x1dc   : > { %v617_v7 = vclz %v7680_v0  ;;  %v730_v16 = vadd.s32 127, %v729_v56  ;;  %v9639_v20 = vmul.u32.u64.low %v909_v31, %v908_v8  ;;  %v9640_v21 = vmul.u32.u64.high %v909_v31, %v908_v8, %v9639_v20 }
 0x1dd   : > { %v919_v42 = vadd.s32 1, %v9632_v3  ;;  %vm768_vm6 = vcmp.gt.s32.totalorder %v767_v63, 0  ;;  %v727_v19 = vshrl.u32 %v709_v9, %v725_v5  ;;  %v757_v22 = vand.u32 2147483647, %v9521_v41 }
 0x1de   : > { %v7681_v24 = vadd.s32 4294967294, %v617_v7  ;;  %v769_v18 = vsel %vm768_vm6, %v767_v63, 0  ;;  %v731_v33 = vshll.u32 %v730_v16, 23  ;;  %v916_v50 = vmul.u32 %v909_v31, %v900_v26 }
 0x1df   : > { %v771_v48 = vand.u32 31, %v769_v18  ;;  %vm918_vm8 = vc.u32 %v9640_v21, %v9631_v39  ;;  %v726_v35 = vshll.u32 %v9605_v54, %v724_v34  ;;  %v764_v56 = vand.u32 8388607, %v757_v22 }
 0x1e0   : > { %vm7682_vm7 = vcmp.lt.s32.totalorder %v7681_v24, 0  ;;  %v920_v37 = vsel %vm918_vm8, %v919_v42, %v9632_v3  ;;  %v732_v1 = vor.u32 4788187, %v731_v33  ;;  %v605_v31 = vadd.s32 %v9585_v23, %v9591_v27 }
 0x1e1   : > { %v9649_v61 = vsel %vm7682_vm7, 0, %v7681_v24  ;;  %v921_v52 = vadd.s32 %v920_v37, %v916_v50  ;;  %v772_v38 = vsub.s32 32, %v771_v48  ;;  %v728_v60 = vor.u32 %v727_v19, %v726_v35 }
 0x1e2   : > { %v625_v57 = vsub.s32 4294967266, %v9649_v61  ;;  %v765_v3 = vor.u32 8388608, %v764_v56  ;;  %v9660_v36 = vshrl.u32 %v769_v18, 5  ;;  %v733_v45 = vand.u32 2147483647, %v732_v1 }
 0x1e3   : > { %v922_v58 = vadd.s32 536870912, %v921_v52  ;;  %v775_v54 = vshrl.u32 %v9311_v47, %v772_v38  ;;  %v778_v34 = vshrl.u32 %v9312_v49, %v772_v38  ;;  %v735_v2 = vcvt.s32.f32 %v728_v60 }
 0x1e4   : > { %v781_v4 = vshrl.u32 %v9313_v51, %v772_v38  ;;  %v774_v7 = vshll.u32 %v9310_v43, %v771_v48  ;;  %v777_v8 = vshll.u32 %v9311_v47, %v771_v48  ;;  %v626_v23 = vadd.s32 127, %v625_v57 }
 0x1e5   : > { %v9656_v0 = vshrl.u32 %v922_v58, 30  ;;  %v780_v27 = vshll.u32 %v9312_v49, %v771_v48  ;;  %v783_v63 = vshll.u32 %v9313_v51, %v771_v48  ;;  %v784_v9 = vshrl.u32 %v9314_v53, %v772_v38 }
 0x1e6   : > { %v776_v20 = vor.u32 %v775_v54, %v774_v7  ;;  %v779_v24 = vor.u32 %v778_v34, %v777_v8  ;;  %v787_v26 = vshrl.u32 %v9315_v62, %v772_v38  ;;  %v786_v19 = vshll.u32 %v9314_v53, %v771_v48 }
 0x1e7   : > { %v924_v5 = vshll.u32 %v9656_v0, 30  ;;  %v782_v42 = vor.u32 %v781_v4, %v780_v27  ;;  %v785_v18 = vor.u32 %v784_v9, %v783_v63  ;;  %v9675_v33 = vadd.f32 %v9530_v55, %v9481_v10 }
 0x1e8   : > { %v736_v50 = vmul.f32 %v735_v2, %v733_v45  ;;  %v621_v35 = vsub.s32 32, %v9649_v61  ;;  %v9679_v60 = vshll.u32 %v765_v3, 8  ;;  %v788_v56 = vor.u32 %v787_v26, %v786_v19 }
 0x1e9   : > { %v9669_v16 = vsub.s32 %v921_v52, %v924_v5  ;;  %v627_v52 = vshll.u32 %v626_v23, 23  ;;  %vm789_vm9 = vcmp.lt.s32.totalorder %v9660_v36, 1  ;;  %vm792_vm10 = vcmp.lt.s32.totalorder %v9660_v36, 4 }
 0x1ea   : > { %vm791_vm12 = vcmp.lt.s32.totalorder %v9660_v36, 3  ;;  %v797_v1 = vsel %vm789_vm9, %v776_v20, %v779_v24  ;;  %v798_v58 = vsel %vm792_vm10, %v785_v18, 920167782  ;;  %v622_v57 = vshll.u32 %v9623_v46, %v9649_v61 }
 0x1eb   : > { %v927_v37 = vsub.s32 0, %v9669_v16  ;;  %vm863_vm13 = vcmp.lt.s32.totalorder %v9507_v28, 0  ;;  %v794_v54 = vsel %vm792_vm10, %v782_v42, 2102212464  ;;  %v799_v34 = vsel %vm791_vm12, %v782_v42, %v798_v58 }
 0x1ec   : > { %v12979_v2 = vand.u32 2147483647, %v9675_v33  ;;  %v623_v3 = vshrl.u32 %v605_v31, %v621_v35  ;;  %v773_v45 = vshrl.u32 %v9310_v43, %v772_v38  ;;  %vm790_vm14 = vcmp.lt.s32.totalorder %v9660_v36, 2 }
 0x1ed   : > { %v7692_v48 = vmin.u32 %v927_v37, %v9669_v16  ;;  %vm9702_vm15 = vcmp.le.f32.partialorder %v653_v15, 0.7853982  ;;  %v737_v61 = vxor.u32 2147483648, %v736_v50  ;;  %v628_v5 = vor.u32 4788187, %v627_v52 }
 0x1ee   : > { %v800_v7 = vsel %vm790_vm14, %v797_v1, %v799_v34  ;;  %v801_v8 = vsel %vm789_vm9, %v779_v24, %v782_v42  ;;  %vm9712_vm2 = vcmp.le.f32.partialorder %v861_v40, 0.7853982  ;;  %v793_v15 = vsel %vm789_vm9, %v773_v45, %v776_v20 }
 0x1ef   : > { %v929_v4 = vclz %v7692_v48  ;;  %v795_v23 = vsel %vm791_vm12, %v779_v24, %v794_v54  ;;  %v802_v27 = vsel %vm792_vm10, %v788_v56, 1326507024  ;;  %v1072_v40 = vand.u32 2139095040, %v9675_v33 }
 0x1f0   : > { %v803_v63 = vsel %vm791_vm12, %v785_v18, %v802_v27  ;;  %v9725_v9 = vmul.u32.u64.low %v9679_v60, %v800_v7  ;;  %v9726_v26 = vmul.u32.u64.high %v9679_v60, %v800_v7, %v9725_v9  ;;  %v624_v42 = vor.u32 %v623_v3, %v622_v57 }
 0x1f1   : > { %v7693_v31 = vadd.s32 4294967294, %v929_v4  ;;  %v947_v20 = vsub.s32 4, %v9656_v0  ;;  %v804_v24 = vsel %vm790_vm14, %v801_v8, %v803_v63  ;;  %v1073_v18 = vshrl.u32 %v1072_v40, 23 }
 0x1f2   : > { %v9734_v35 = vmul.u32.u64.low %v9679_v60, %v804_v24  ;;  %v9735_v37 = vmul.u32.u64.high %v9679_v60, %v804_v24, %v9734_v35  ;;  %v917_v52 = vadd.s32 %v9631_v39, %v9640_v21  ;;  %v796_v1 = vsel %vm790_vm14, %v793_v15, %v795_v23 }
 0x1f3   : > { %vm7694_vm3 = vcmp.lt.s32.totalorder %v7693_v31, 0  ;;  %v738_v58 = vsel %vm655_vm11, %v737_v61, %v736_v50  ;;  %v629_v57 = vand.u32 2147483647, %v628_v5  ;;  %v815_v54 = vadd.s32 1, %v9726_v26 }
 0x1f4   : > { %v932_v19 = vsel %vm7694_vm3, 0, %v7693_v31  ;;  %v7699_v34 = vadd.s32 4294967169, %v1073_v18  ;;  %v948_v39 = vsel %vm863_vm13, %v947_v20, %v9656_v0  ;;  %v631_v21 = vcvt.s32.f32 %v624_v42  ;;  %v8925_v0 = vld [vmem:[%s12970_s2] sm:$0xff]   ;;  %v8926_v18 = vld [vmem:[%s12970_s2 + $0x8] sm:$0xff]  }
 0x1f5   : > { %v933_v56 = vsub.s32 32, %v932_v19  ;;  %v937_v48 = vsub.s32 4294967266, %v932_v19  ;;  %v934_v3 = vshll.u32 %v9669_v16, %v932_v19  ;;  %v812_v7 = vmul.u32 %v9679_v60, %v796_v1  ;;  %8309 = vmatprep.subr.bf16.mxu1 %v8925_v0 }
 0x1f6   : > { %vm814_vm4 = vc.u32 %v9735_v37, %v9725_v9  ;;  %v1079_v36 = vadd.s32 1, %v7699_v34  ;;  %v9754_v50 = vsel %vm9702_vm15, %v9487_v12, %v738_v58  ;;  %v9760_v8 = vmul.f32 %v631_v21, %v629_v57  ;;  %8310 = vmatpush3.bf16.msra.mxu1 %v8925_v0 }
 0x1f7   : > { %v935_v4 = vshrl.u32 %v917_v52, %v933_v56  ;;  %v938_v45 = vadd.s32 127, %v937_v48  ;;  %v816_v5 = vsel %vm814_vm4, %v815_v54, %v9726_v26  ;;  %v950_v60 = vsel %vm9712_vm2, 0, %v948_v39  ;;  %v9770_v26 = vld [vmem:[#allocation2 + $0x3] ss:$0 sm:$0xff]  ;;  %8311 = vmatprep.subr.bf16.mxu1 %v8926_v18 }
 0x1f8   : > { %v817_v31 = vadd.s32 %v816_v5, %v812_v7  ;;  %vm1080_vm5 = vcmp.gt.s32.totalorder %v1079_v36, 0  ;;  %v1076_v23 = vand.u32 8388607, %v12979_v2  ;;  %v9768_v63 = vadd.f32 %v9481_v10, %v9535_v59  ;;  %v8927_v7 = vld [vmem:[%s12970_s2 + $0x10] sm:$0xff]  }
 0x1f9   : > { %v936_v61 = vor.u32 %v935_v4, %v934_v3  ;;  %v939_v16 = vshll.u32 %v938_v45, 23  ;;  %v1081_v27 = vsel %vm1080_vm5, %v1079_v36, 0  ;;  %v9774_v20 = vmul.f32 %v9503_v25, %v9770_v26 }
 0x1fa   : > { %v818_v40 = vadd.s32 536870912, %v817_v31  ;;  %v1083_v42 = vand.u32 31, %v1081_v27  ;;  %v9778_v35 = vmul.f32 %v9770_v26, %v9509_v29  ;;  %9005 = vcosq.f32 %v9754_v50  ;;  %8312 = vmatpush3.bf16.msra.mxu1 %v8926_v18 }
 0x1fb   : > { %v940_v15 = vor.u32 4788187, %v939_v16  ;;  %v943_v19 = vcvt.s32.f32 %v936_v61  ;;  %v9784_v52 = vadd.s32 3, %v950_v60  ;;  %v633_v1 = vxor.u32 2147483648, %v9760_v8  ;;  %8313 = vmatprep.subr.bf16.mxu1 %v8927_v7 }
 0x1fc   : > { %v819_v56 = vshrl.u32 %v818_v40, 30  ;;  %v1084_v48 = vsub.s32 32, %v1083_v42  ;;  %v1077_v58 = vor.u32 8388608, %v1076_v23  ;;  %v968_v57 = vand.u32 2139095040, %v9768_v63 }
 0x1fd   : > { %v941_v24 = vand.u32 2147483647, %v940_v15  ;;  %vm759_vm6 = vcmp.lt.s32.totalorder %v9521_v41, 0  ;;  %v9789_v54 = vshrl.u32 %v1081_v27, 5  ;;  %v1086_v34 = vshll.u32 %v9310_v43, %v1083_v42 }
 0x1fe   : > { %v820_v29 = vshll.u32 %v819_v56, 30  ;;  %v1087_v3 = vshrl.u32 %v9311_v47, %v1084_v48  ;;  %v1090_v45 = vshrl.u32 %v9312_v49, %v1084_v48  ;;  %v1093_v39 = vshrl.u32 %v9313_v51, %v1084_v48  ;;  %8314 = vmatpush3.bf16.msra.mxu1 %v8927_v7 }
 0x1ff   : > { %v944_v25 = vmul.f32 %v943_v19, %v941_v24  ;;  %v1096_v21 = vshrl.u32 %v9314_v53, %v1084_v48  ;;  %v1089_v61 = vshll.u32 %v9311_v47, %v1083_v42  ;;  %v1092_v16 = vshll.u32 %v9312_v49, %v1083_v42 }
 0x200   : > { %v9799_v36 = vsub.s32 %v817_v31, %v820_v29  ;;  %v1099_v5 = vshrl.u32 %v9315_v62, %v1084_v48  ;;  %v1088_v60 = vor.u32 %v1087_v3, %v1086_v34  ;;  %v1095_v15 = vshll.u32 %v9313_v51, %v1083_v42 }
 0x201   : > { %v945_v4 = vxor.u32 2147483648, %v944_v25  ;;  %v1098_v23 = vshll.u32 %v9314_v53, %v1083_v42  ;;  %v1091_v40 = vor.u32 %v1090_v45, %v1089_v61  ;;  %v1094_v24 = vor.u32 %v1093_v39, %v1092_v16 }
 0x202   : > { %v823_v27 = vsub.s32 0, %v9799_v36  ;;  %v843_v19 = vsub.s32 4, %v819_v56  ;;  %v1097_v18 = vor.u32 %v1096_v21, %v1095_v15  ;;  %v9812_v2 = vshll.u32 %v1077_v58, 8 }
 0x203   : > { %v946_v0 = vsel %vm863_vm13, %v945_v4, %v944_v25  ;;  %v1100_v29 = vor.u32 %v1099_v5, %v1098_v23  ;;  %vm9816_vm7 = vcmp.le.f32.partialorder %v757_v22, 0.7853982  ;;  %v965_v25 = vand.u32 2147483647, %v9768_v63 }
 0x204   : > { %v949_v31 = vsel %vm9712_vm2, %v9507_v28, %v946_v0  ;;  %v7688_v38 = vmin.u32 %v823_v27, %v9799_v36  ;;  %v969_v34 = vshrl.u32 %v968_v57, 23  ;;  %vm551_vm8 = vcmp.lt.s32.totalorder %v9493_v14, 0  ;;  %v9826_v58 = vpop.eup %9005 }
 0x205   : > { %9007 = vcosq.f32 %v949_v31  ;;  %v1085_v3 = vshrl.u32 %v9310_v43, %v1084_v48  ;;  %vm1101_vm9 = vcmp.lt.s32.totalorder %v9789_v54, 1  ;;  %vm1103_vm10 = vcmp.lt.s32.totalorder %v9789_v54, 3 }
 0x206   : > { %9009 = vsinq.f32 %v949_v31  ;;  %v825_v22 = vclz %v7688_v38  ;;  %vm1104_vm12 = vcmp.lt.s32.totalorder %v9789_v54, 4  ;;  %v1109_v4 = vsel %vm1101_vm9, %v1088_v60, %v1091_v40 }
 0x207   : > { %v1113_v57 = vsel %vm1101_vm9, %v1091_v40, %v1094_v24  ;;  %v844_v45 = vsel %vm759_vm6, %v843_v19, %v819_v56  ;;  %v1106_v39 = vsel %vm1104_vm12, %v1094_v24, 2102212464  ;;  %v1110_v48 = vsel %vm1104_vm12, %v1097_v18, 920167782 }
 0x208   : > { %v1114_v21 = vsel %vm1104_vm12, %v1100_v29, 1326507024  ;;  %vm9837_vm13 = vcmp.le.f32.partialorder %v549_v17, 0.7853982  ;;  %v7689_v61 = vadd.s32 4294967294, %v825_v22  ;;  %vm1102_vm14 = vcmp.lt.s32.totalorder %v9789_v54, 2 }
 0x209   : > { %v1111_v16 = vsel %vm1103_vm10, %v1094_v24, %v1110_v48  ;;  %v1115_v5 = vsel %vm1103_vm10, %v1097_v18, %v1114_v21  ;;  %v1105_v56 = vsel %vm1101_vm9, %v1085_v3, %v1088_v60  ;;  %v7695_v15 = vadd.s32 4294967169, %v969_v34 }
 0x20a   : > { %v1112_v0 = vsel %vm1102_vm14, %v1109_v4, %v1111_v16  ;;  %v1116_v17 = vsel %vm1102_vm14, %v1113_v57, %v1115_v5  ;;  %vm7690_vm2 = vcmp.lt.s32.totalorder %v7689_v61, 0  ;;  %v1107_v23 = vsel %vm1103_vm10, %v1091_v40, %v1106_v39 }
 0x20b   : > { %v9855_v31 = vmul.u32.u64.low %v9812_v2, %v1116_v17  ;;  %v9856_v27 = vmul.u32.u64.high %v9812_v2, %v1116_v17, %v9855_v31  ;;  %v828_v24 = vsel %vm7690_vm2, 0, %v7689_v61  ;;  %v975_v60 = vadd.s32 1, %v7695_v15 }
 0x20c   : > { %v9859_v19 = vmul.u32.u64.low %v9812_v2, %v1112_v0  ;;  %v9860_v18 = vmul.u32.u64.high %v9812_v2, %v1112_v0, %v9859_v19  ;;  %9011 = vsinq.f32 %v9754_v50  ;;  %v813_v29 = vadd.s32 %v9725_v9, %v9735_v37 }
 0x20d   : > { %v829_v38 = vsub.s32 32, %v828_v24  ;;  %v833_v34 = vsub.s32 4294967266, %v828_v24  ;;  %v9867_v40 = vand.u32 3, %v9784_v52  ;;  %v846_v3 = vsel %vm9816_vm7, 0, %v844_v45 }
 0x20e   : > { %v1108_v22 = vsel %vm1102_vm14, %v1105_v56, %v1107_v23  ;;  %vm976_vm3 = vcmp.gt.s32.totalorder %v975_v60, 0  ;;  %v634_v50 = vsel %vm551_vm8, %v633_v1, %v9760_v8  ;;  %v830_v9 = vshll.u32 %v9799_v36, %v828_v24 }
 0x20f   : > { %v9008_v4 = vpop.eup %9007  ;;  %v831_v37 = vshrl.u32 %v813_v29, %v829_v38  ;;  %v834_v57 = vadd.s32 127, %v833_v34  ;;  %vm1126_vm4 = vc.u32 %v9856_v27, %v9859_v19  ;;  %v1127_v45 = vadd.s32 1, %v9860_v18 }
 0x210   : > { %v9010_v52 = vpop.eup %9009  ;;  %v9884_v54 = vand.u32 8388607, %v965_v25  ;;  %v977_v39 = vsel %vm976_vm3, %v975_v60, 0  ;;  %v850_v61 = vadd.s32 3, %v846_v3  ;;  %v1124_v8 = vmul.u32 %v9812_v2, %v1108_v22 }
 0x211   : > { %v832_v48 = vor.u32 %v831_v37, %v830_v9  ;;  %v835_v21 = vshll.u32 %v834_v57, 23  ;;  %v9890_v1 = vsel %vm9837_vm13, %v9493_v14, %v634_v50  ;;  %v961_v36 = vxor.u32 2147483648, %v9008_v4 }
 0x212   : > { %v1128_v16 = vsel %vm1126_vm4, %v1127_v45, %v9860_v18  ;;  %v979_v5 = vand.u32 31, %v977_v39  ;;  %vm956_vm5 = vcmp.lt.s32.totalorder %v9867_v40, 2  ;;  %vm957_vm9 = vcmp.eq.s32.totalorder %v9867_v40, 0 }
 0x213   : > { %vm960_vm10 = vcmp.eq.s32.totalorder %v9867_v40, 2  ;;  %v836_v56 = vor.u32 4788187, %v835_v21  ;;  %v1129_v0 = vadd.s32 %v1128_v16, %v1124_v8  ;;  %v958_v17 = vxor.u32 2147483648, %v9010_v52 }
 0x214   : > { %v973_v2 = vor.u32 8388608, %v9884_v54  ;;  %v980_v15 = vsub.s32 32, %v979_v5  ;;  %v9899_v23 = vadd.f32 %v9550_v32, %v9481_v10  ;;  %v839_v24 = vcvt.s32.f32 %v832_v48 }
 0x215   : > { %v837_v31 = vand.u32 2147483647, %v836_v56  ;;  %v9901_v18 = vand.u32 3, %v850_v61  ;;  %v1130_v60 = vadd.s32 536870912, %v1129_v0  ;;  %v962_v29 = vsel %vm960_vm10, %v961_v36, %v9010_v52 }
 0x216   : > { %v9903_v38 = vshrl.u32 %v977_v39, 5  ;;  %v983_v34 = vshrl.u32 %v9311_v47, %v980_v15  ;;  %v986_v3 = vshrl.u32 %v9312_v49, %v980_v15  ;;  %v9907_v22 = vpop.eup %9011  ;;  %v982_v10 = vshll.u32 %v9310_v43, %v979_v5  ;;  %v8929_v39 = vld [vmem:[%s12971_s3] sm:$0xff]  }
 0x217   : > { %v840_v50 = vmul.f32 %v839_v24, %v837_v31  ;;  %v9909_v9 = vshrl.u32 %v1130_v60, 30  ;;  %v989_v37 = vshrl.u32 %v9313_v51, %v980_v15  ;;  %vm953_vm12 = vweird.f32 %v9507_v28  ;;  %8325 = vmatprep.subr.bf16.mxu0 %v8929_v39 }
 0x218   : > { %v959_v57 = vsel %vm957_vm9, %v9008_v4, %v958_v17  ;;  %v985_v52 = vshll.u32 %v9311_v47, %v979_v5  ;;  %v991_v45 = vshll.u32 %v9313_v51, %v979_v5  ;;  %v992_v54 = vshrl.u32 %v9314_v53, %v980_v15  ;;  %8326 = vmatpush3.bf16.msra.mxu0 %v8929_v39 }
 0x219   : > { %v841_v48 = vxor.u32 2147483648, %v840_v50  ;;  %v1132_v21 = vshll.u32 %v9909_v9, 30  ;;  %v984_v61 = vor.u32 %v983_v34, %v982_v10  ;;  %v988_v8 = vshll.u32 %v9312_v49, %v979_v5 }
 0x21a   : > { %v987_v36 = vor.u32 %v986_v3, %v985_v52  ;;  %v993_v16 = vor.u32 %v992_v54, %v991_v45  ;;  %v994_v4 = vshll.u32 %v9314_v53, %v979_v5  ;;  %v995_v56 = vshrl.u32 %v9315_v62, %v980_v15 }
 0x21b   : > { %v842_v17 = vsel %vm759_vm6, %v841_v48, %v840_v50  ;;  %v9928_v31 = vsub.s32 %v1129_v0, %v1132_v21  ;;  %v990_v24 = vor.u32 %v989_v37, %v988_v8  ;;  %v1280_v60 = vand.u32 2139095040, %v9899_v23 }
 0x21c   : > { %v963_v34 = vsel %vm956_vm5, %v959_v57, %v962_v29  ;;  %v845_v3 = vsel %vm9816_vm7, %v9521_v41, %v842_v17  ;;  %v981_v5 = vshrl.u32 %v9310_v43, %v980_v15  ;;  %v996_v10 = vor.u32 %v995_v56, %v994_v4 }
 0x21d   : > { %9013 = vcosq.f32 %v845_v3  ;;  %v1135_v52 = vsub.s32 0, %v9928_v31  ;;  %vm997_vm6 = vcmp.lt.s32.totalorder %v9903_v38, 1  ;;  %vm1000_vm14 = vcmp.lt.s32.totalorder %v9903_v38, 4 }
 0x21e   : > { %9015 = vsinq.f32 %v845_v3  ;;  %vm1071_vm2 = vcmp.lt.s32.totalorder %v9675_v33, 0  ;;  %vm999_vm3 = vcmp.lt.s32.totalorder %v9903_v38, 3  ;;  %v1005_v40 = vsel %vm997_vm6, %v984_v61, %v987_v36 }
 0x21f   : > { %v1006_v42 = vsel %vm1000_vm14, %v993_v16, 920167782  ;;  %v7700_v0 = vmin.u32 %v1135_v52, %v9928_v31  ;;  %vm998_vm7 = vcmp.lt.s32.totalorder %v9903_v38, 2  ;;  %v1002_v15 = vsel %vm1000_vm14, %v990_v24, 2102212464 }
 0x220   : > { %v1007_v29 = vsel %vm999_vm3, %v990_v24, %v1006_v42  ;;  %v1009_v37 = vsel %vm997_vm6, %v987_v36, %v990_v24  ;;  %v1010_v57 = vsel %vm1000_vm14, %v996_v10, 1326507024  ;;  %v1013_v45 = vshll.u32 %v973_v2, 8 }
 0x221   : > { %v1008_v50 = vsel %vm998_vm7, %v1005_v40, %v1007_v29  ;;  %9017 = vcosq.f32 %v9890_v1  ;;  %v964_v54 = vsel %vm953_vm12, nan, %v963_v34  ;;  %v12996_v39 = vand.u32 2147483647, %v9675_v33 }
 0x222   : > { %v1137_v21 = vclz %v7700_v0  ;;  %v1001_v8 = vsel %vm997_vm6, %v981_v5, %v984_v61  ;;  %v1003_v4 = vsel %vm999_vm3, %v987_v36, %v1002_v15  ;;  %v1011_v2 = vsel %vm999_vm3, %v993_v16, %v1010_v57  ;;  %v9981_v16 = vld [vmem:[#allocation2 + $0x4] ss:$0 sm:$0xff] }
 0x223   : > { %vm9957_vm4 = vcmp.le.f32.partialorder %v12996_v39, 0.7853982  ;;  %v9967_v56 = vmul.u32.u64.low %v1013_v45, %v1008_v50  ;;  %v9968_v17 = vmul.u32.u64.high %v1013_v45, %v1008_v50, %v9967_v56  ;;  %vm852_vm5 = vcmp.lt.s32.totalorder %v9901_v18, 2 }
 0x224   : > { %v7701_v28 = vadd.s32 4294967294, %v1137_v21  ;;  %v1155_v24 = vsub.s32 4, %v9909_v9  ;;  %v1012_v34 = vsel %vm998_vm7, %v1009_v37, %v1011_v2  ;;  %v1281_v3 = vshrl.u32 %v1280_v60, 23 }
 0x225   : > { %vm849_vm9 = vweird.f32 %v9521_v41  ;;  %vm853_vm10 = vcmp.eq.s32.totalorder %v9901_v18, 0  ;;  %vm856_vm12 = vcmp.eq.s32.totalorder %v9901_v18, 2  ;;  %v1004_v5 = vsel %vm998_vm7, %v1001_v8, %v1003_v4 }
 0x226   : > { %v9978_v61 = vmul.u32.u64.low %v1013_v45, %v1012_v34  ;;  %v9979_v36 = vmul.u32.u64.high %v1013_v45, %v1012_v34, %v9978_v61  ;;  %vm7702_vm6 = vcmp.lt.s32.totalorder %v7701_v28, 0  ;;  %v1277_v10 = vand.u32 2147483647, %v9899_v23 }
 0x227   : > { %v7707_v52 = vadd.s32 4294967169, %v1281_v3  ;;  %v1388_v60 = vmul.f32 %v9981_v16, %v964_v54  ;;  %v1125_v40 = vadd.s32 %v9859_v19, %v9856_v27  ;;  %v1140_v42 = vsel %vm7702_vm6, 0, %v7701_v28  ;;  %v9014_v15 = vpop.eup %9013 }
 0x228   : > { %v1023_v0 = vadd.s32 1, %v9968_v17  ;;  %v1141_v29 = vsub.s32 32, %v1140_v42  ;;  %v1145_v50 = vsub.s32 4294967266, %v1140_v42  ;;  %v1156_v37 = vsel %vm1071_vm2, %v1155_v24, %v9909_v9  ;;  %v9016_v57 = vpop.eup %9015 }
 0x229   : > { %v1287_v38 = vadd.s32 1, %v7707_v52  ;;  %v857_v39 = vxor.u32 2147483648, %v9014_v15  ;;  %v1142_v21 = vshll.u32 %v9928_v31, %v1140_v42  ;;  %v1020_v8 = vmul.u32 %v1013_v45, %v1004_v5 }
 0x22a   : > { %vm1022_vm14 = vc.u32 %v9979_v36, %v9967_v56  ;;  %v854_v27 = vxor.u32 2147483648, %v9016_v57  ;;  %v1143_v19 = vshrl.u32 %v1125_v40, %v1141_v29  ;;  %v1146_v54 = vadd.s32 127, %v1145_v50 }
 0x22b   : > { %v1024_v4 = vsel %vm1022_vm14, %v1023_v0, %v9968_v17  ;;  %v858_v2 = vsel %vm856_vm12, %v857_v39, %v9016_v57  ;;  %v1158_v9 = vsel %vm9957_vm4, 0, %v1156_v37  ;;  %vm1288_vm3 = vcmp.gt.s32.totalorder %v1287_v38, 0  ;;  %v10001_v24 = vpop.eup %9017 }
 0x22c   : > { %v1025_v28 = vadd.s32 %v1024_v4, %v1020_v8  ;;  %v855_v31 = vsel %vm853_vm10, %v9014_v15, %v854_v27  ;;  %v1144_v45 = vor.u32 %v1143_v19, %v1142_v21  ;;  %v1147_v34 = vshll.u32 %v1146_v54, 23 }
 0x22d   : > { %v1289_v3 = vsel %vm1288_vm3, %v1287_v38, 0  ;;  %v859_v61 = vsel %vm852_vm5, %v855_v31, %v858_v2  ;;  %v1284_v5 = vand.u32 8388607, %v1277_v10  ;;  %9019 = vsinq.f32 %v9890_v1  ;;  %v9133_v1 = vld [vmem:[#allocation2 + $0x5] ss:$0 sm:$0xff] }
 0x22e   : > { %v1026_v17 = vadd.s32 536870912, %v1025_v28  ;;  %v1291_v52 = vand.u32 31, %v1289_v3  ;;  %v860_v40 = vsel %vm849_vm9, nan, %v859_v61  ;;  %v10014_v42 = vmul.f32 %v9530_v55, %v9770_v26 }
 0x22f   : > { %v1148_v0 = vor.u32 4788187, %v1147_v34  ;;  %v10017_v15 = vadd.f32 %v1388_v60, %v9774_v20  ;;  %v1387_v18 = vmul.f32 %v9981_v16, %v860_v40  ;;  %v1151_v38 = vcvt.s32.f32 %v1144_v45 }
 0x230   : > { %v1027_v29 = vshrl.u32 %v1026_v17, 30  ;;  %v1292_v50 = vsub.s32 32, %v1291_v52  ;;  %v10020_v57 = vadd.s32 3, %v1158_v9  ;;  %v10023_v41 = vadd.f32 %v9133_v1, %v9561_v44 }
 0x231   : > { %v1149_v37 = vand.u32 2147483647, %v1148_v0  ;;  %v10026_v39 = vadd.f32 %v1387_v18, %v9778_v35  ;;  %vm967_vm7 = vcmp.lt.s32.totalorder %v9768_v63, 0  ;;  %v1285_v20 = vor.u32 8388608, %v1284_v5 }
 0x232   : > { %v1028_v55 = vshll.u32 %v1027_v29, 30  ;;  %v1294_v60 = vshll.u32 %v9310_v43, %v1291_v52  ;;  %v1295_v8 = vshrl.u32 %v9311_v47, %v1292_v50  ;;  %v1298_v27 = vshrl.u32 %v9312_v49, %v1292_v50 }
 0x233   : > { %v1152_v21 = vmul.f32 %v1151_v38, %v1149_v37  ;;  %v1301_v19 = vshrl.u32 %v9313_v51, %v1292_v50  ;;  %v1297_v35 = vshll.u32 %v9311_v47, %v1291_v52  ;;  %v1304_v2 = vshrl.u32 %v9314_v53, %v1292_v50 }
 0x234   : > { %v10035_v4 = vsub.s32 %v1025_v28, %v1028_v55  ;;  %v1290_v31 = vshrl.u32 %v1289_v3, 5  ;;  %v1300_v45 = vshll.u32 %v9312_v49, %v1291_v52  ;;  %v1303_v34 = vshll.u32 %v9313_v51, %v1291_v52 }
 0x235   : > { %v1153_v9 = vxor.u32 2147483648, %v1152_v21  ;;  %v1051_v17 = vsub.s32 4, %v1027_v29  ;;  %v1296_v5 = vor.u32 %v1295_v8, %v1294_v60  ;;  %v1299_v40 = vor.u32 %v1298_v27, %v1297_v35 }
 0x236   : > { %v1031_v61 = vsub.s32 0, %v10035_v4  ;;  %v1302_v28 = vor.u32 %v1301_v19, %v1300_v45  ;;  %v1306_v18 = vshll.u32 %v9314_v53, %v1291_v52  ;;  %v1307_v37 = vshrl.u32 %v9315_v62, %v1292_v50 }
 0x237   : > { %v1154_v0 = vsel %vm1071_vm2, %v1153_v9, %v1152_v21  ;;  %vm10051_vm5 = vcmp.le.f32.partialorder %v965_v25, 0.7853982  ;;  %v1305_v55 = vor.u32 %v1304_v2, %v1303_v34  ;;  %v1325_v60 = vshll.u32 %v1285_v20, 8  ;;  %v10056_v21 = vpop.eup %9019 }
 0x238   : > { %v1157_v3 = vsel %vm9957_vm4, %v9675_v33, %v1154_v0  ;;  %v7696_v1 = vmin.u32 %v1031_v61, %v10035_v4  ;;  %v1293_v52 = vshrl.u32 %v9310_v43, %v1292_v50  ;;  %v1308_v8 = vor.u32 %v1307_v37, %v1306_v18 }
 0x239   : > { %9021 = vcosq.f32 %v1157_v3  ;;  %v1176_v27 = vand.u32 2139095040, %v10023_v41  ;;  %vm1309_vm2 = vcmp.lt.s32.totalorder %v1290_v31, 1  ;;  %vm1312_vm4 = vcmp.lt.s32.totalorder %v1290_v31, 4 }
 0x23a   : > { %9023 = vsinq.f32 %v1157_v3  ;;  %v1033_v48 = vclz %v7696_v1  ;;  %v1052_v25 = vsel %vm967_vm7, %v1051_v17, %v1027_v29  ;;  %vm1310_vm9 = vcmp.lt.s32.totalorder %v1290_v31, 2 }
 0x23b   : > { %v1314_v19 = vsel %vm1312_vm4, %v1302_v28, 2102212464  ;;  %v1317_v35 = vsel %vm1309_vm2, %v1296_v5, %v1299_v40  ;;  %vm1311_vm10 = vcmp.lt.s32.totalorder %v1290_v31, 3  ;;  %v1318_v20 = vsel %vm1312_vm4, %v1305_v55, 920167782 }
 0x23c   : > { %v7697_v2 = vadd.s32 4294967294, %v1033_v48  ;;  %v1321_v9 = vsel %vm1309_vm2, %v1299_v40, %v1302_v28  ;;  %v1313_v45 = vsel %vm1309_vm2, %v1293_v52, %v1296_v5  ;;  %v1319_v34 = vsel %vm1311_vm10, %v1302_v28, %v1318_v20 }
 0x23d   : > { %v1322_v50 = vsel %vm1312_vm4, %v1308_v8, 1326507024  ;;  %v1177_v61 = vshrl.u32 %v1176_v27, 23  ;;  %v1315_v0 = vsel %vm1311_vm10, %v1299_v40, %v1314_v19  ;;  %v1320_v18 = vsel %vm1310_vm9, %v1317_v35, %v1319_v34 }
 0x23e   : > { %vm7698_vm12 = vcmp.lt.s32.totalorder %v7697_v2, 0  ;;  %v1323_v37 = vsel %vm1311_vm10, %v1305_v55, %v1322_v50  ;;  %v10064_v29 = vmul.u32.u64.low %v1325_v60, %v1320_v18  ;;  %v10065_v17 = vmul.u32.u64.high %v1325_v60, %v1320_v18, %v10064_v29 }
 0x23f   : > { %v1036_v3 = vsel %vm7698_vm12, 0, %v7697_v2  ;;  %v1324_v1 = vsel %vm1310_vm9, %v1321_v9, %v1323_v37  ;;  %v1021_v48 = vadd.s32 %v9967_v56, %v9979_v36  ;;  %v7703_v28 = vadd.s32 4294967169, %v1177_v61 }
 0x240   : > { %v1037_v54 = vsub.s32 32, %v1036_v3  ;;  %v1041_v5 = vsub.s32 4294967266, %v1036_v3  ;;  %v1054_v52 = vsel %vm10051_vm5, 0, %v1052_v25  ;;  %v1316_v40 = vsel %vm1310_vm9, %v1313_v45, %v1315_v0 }
 0x241   : > { %v10073_v8 = vmul.u32.u64.low %v1325_v60, %v1324_v1  ;;  %v10074_v55 = vmul.u32.u64.high %v1325_v60, %v1324_v1, %v10073_v8  ;;  %v1038_v27 = vshll.u32 %v10035_v4, %v1036_v3  ;;  %v1183_v2 = vadd.s32 1, %v7703_v28 }
 0x242   : > { %v1039_v19 = vshrl.u32 %v1021_v48, %v1037_v54  ;;  %v1042_v35 = vadd.s32 127, %v1041_v5  ;;  %v1163_v9 = vand.u32 3, %v10020_v57  ;;  %v10080_v56 = vmul.f32 %v9770_v26, %v9535_v59 }
 0x243   : > { %v9022_v20 = vpop.eup %9021  ;;  %v1335_v36 = vadd.s32 1, %v10065_v17  ;;  %v635_v31 = vsub.s32 4, %v9616_v6  ;;  %v1173_v50 = vand.u32 2147483647, %v10023_v41  ;;  %vm1184_vm6 = vcmp.gt.s32.totalorder %v1183_v2, 0 }
 0x244   : > { %v9024_v25 = vpop.eup %9023  ;;  %v1040_v45 = vor.u32 %v1039_v19, %v1038_v27  ;;  %v1043_v34 = vshll.u32 %v1042_v35, 23  ;;  %v1058_v54 = vadd.s32 3, %v1054_v52  ;;  %v1332_v4 = vmul.u32 %v1325_v60, %v1316_v40 }
 0x245   : > { %vm1334_vm14 = vc.u32 %v10074_v55, %v10064_v29  ;;  %v1185_v57 = vsel %vm1184_vm6, %v1183_v2, 0  ;;  %v1166_v61 = vxor.u32 2147483648, %v9024_v25  ;;  %v1169_v0 = vxor.u32 2147483648, %v9022_v20 }
 0x246   : > { %v1044_v59 = vor.u32 4788187, %v1043_v34  ;;  %v1336_v18 = vsel %vm1334_vm14, %v1335_v36, %v10065_v17  ;;  %vm1164_vm3 = vcmp.lt.s32.totalorder %v1163_v9, 2  ;;  %v1187_v3 = vand.u32 31, %v1185_v57 }
 0x247   : > { %v1337_v37 = vadd.s32 %v1336_v18, %v1332_v4  ;;  %v636_v1 = vsel %vm551_vm8, %v635_v31, %v9616_v6  ;;  %vm1165_vm2 = vcmp.eq.s32.totalorder %v1163_v9, 0  ;;  %vm1168_vm4 = vcmp.eq.s32.totalorder %v1163_v9, 2 }
 0x248   : > { %v1045_v48 = vand.u32 2147483647, %v1044_v59  ;;  %v1047_v60 = vcvt.s32.f32 %v1040_v45  ;;  %v10091_v5 = vand.u32 3, %v1058_v54  ;;  %v1180_v52 = vand.u32 8388607, %v1173_v50 }
 0x249   : > { %v1338_v28 = vadd.s32 536870912, %v1337_v37  ;;  %v1188_v40 = vsub.s32 32, %v1187_v3  ;;  %v1167_v8 = vsel %vm1165_vm2, %v9022_v20, %v1166_v61  ;;  %v1170_v17 = vsel %vm1168_vm4, %v1169_v0, %v9024_v25 }
 0x24a   : > { %v1048_v27 = vmul.f32 %v1047_v60, %v1045_v48  ;;  %v638_v19 = vsel %vm9837_vm13, 0, %v636_v1  ;;  %v1190_v6 = vshll.u32 %v9310_v43, %v1187_v3  ;;  %vm1161_vm8 = vweird.f32 %v9675_v33 }
 0x24b   : > { %v10097_v35 = vshrl.u32 %v1338_v28, 30  ;;  %v1191_v2 = vshrl.u32 %v9311_v47, %v1188_v40  ;;  %v1194_v36 = vshrl.u32 %v9312_v49, %v1188_v40  ;;  %v1193_v45 = vshll.u32 %v9311_v47, %v1187_v3 }
 0x24c   : > { %v1049_v31 = vxor.u32 2147483648, %v1048_v27  ;;  %v1196_v20 = vshll.u32 %v9312_v49, %v1187_v3  ;;  %v1197_v25 = vshrl.u32 %v9313_v51, %v1188_v40  ;;  %v1186_v34 = vshrl.u32 %v1185_v57, 5 }
 0x24d   : > { %v1340_v7 = vshll.u32 %v10097_v35, 30  ;;  %v1192_v54 = vor.u32 %v1191_v2, %v1190_v6  ;;  %v1199_v4 = vshll.u32 %v9313_v51, %v1187_v3  ;;  %v1195_v0 = vor.u32 %v1194_v36, %v1193_v45 }
 0x24e   : > { %v1050_v61 = vsel %vm967_vm7, %v1049_v31, %v1048_v27  ;;  %v1198_v59 = vor.u32 %v1197_v25, %v1196_v20  ;;  %v1200_v18 = vshrl.u32 %v9314_v53, %v1188_v40  ;;  %v1202_v60 = vshll.u32 %v9314_v53, %v1187_v3 }
 0x24f   : > { %v1053_v1 = vsel %vm10051_vm5, %v9768_v63, %v1050_v61  ;;  %v10114_v48 = vsub.s32 %v1337_v37, %v1340_v7  ;;  %v1203_v57 = vshrl.u32 %v9315_v62, %v1188_v40  ;;  %v1171_v28 = vsel %vm1164_vm3, %v1167_v8, %v1170_v17 }
 0x250   : > { %9025 = vcosq.f32 %v1053_v1  ;;  %v1181_v6 = vor.u32 8388608, %v1180_v52  ;;  %v1201_v2 = vor.u32 %v1200_v18, %v1199_v4  ;;  %v1189_v36 = vshrl.u32 %v9310_v43, %v1188_v40 }
 0x251   : > { %9027 = vsinq.f32 %v1053_v1  ;;  %v1343_v27 = vsub.s32 0, %v10114_v48  ;;  %v1204_v31 = vor.u32 %v1203_v57, %v1202_v60  ;;  %vm1205_vm13 = vcmp.lt.s32.totalorder %v1186_v34, 1 }
 0x252   : > { %vm1207_vm7 = vcmp.lt.s32.totalorder %v1186_v34, 3  ;;  %vm1208_vm5 = vcmp.lt.s32.totalorder %v1186_v34, 4  ;;  %v642_v38 = vadd.s32 3, %v638_v19  ;;  %v1209_v3 = vsel %vm1205_vm13, %v1189_v36, %v1192_v54 }
 0x253   : > { %v7708_v37 = vmin.u32 %v1343_v27, %v10114_v48  ;;  %v1210_v45 = vsel %vm1208_vm5, %v1198_v59, 2102212464  ;;  %v1213_v20 = vsel %vm1205_vm13, %v1192_v54, %v1195_v0  ;;  %v1214_v8 = vsel %vm1208_vm5, %v1201_v2, 920167782 }
 0x254   : > { %v1211_v9 = vsel %vm1207_vm7, %v1195_v0, %v1210_v45  ;;  %v1217_v52 = vsel %vm1205_vm13, %v1195_v0, %v1198_v59  ;;  %v1218_v17 = vsel %vm1208_vm5, %v1204_v31, 1326507024  ;;  %v1172_v25 = vsel %vm1161_vm8, nan, %v1171_v28 }
 0x255   : > { %vm1061_vm9 = vcmp.eq.s32.totalorder %v10091_v5, 0  ;;  %v1345_v40 = vclz %v7708_v37  ;;  %vm1206_vm10 = vcmp.lt.s32.totalorder %v1186_v34, 2  ;;  %v1221_v7 = vshll.u32 %v1181_v6, 8 }
 0x256   : > { %vm1060_vm12 = vcmp.lt.s32.totalorder %v10091_v5, 2  ;;  %v1212_v19 = vsel %vm1206_vm10, %v1209_v3, %v1211_v9  ;;  %v1215_v4 = vsel %vm1207_vm7, %v1198_v59, %v1214_v8  ;;  %v1219_v54 = vsel %vm1207_vm7, %v1201_v2, %v1218_v17 }
 0x257   : > { %v643_v61 = vand.u32 3, %v642_v38  ;;  %vm1057_vm6 = vweird.f32 %v9768_v63  ;;  %vm1064_vm14 = vcmp.eq.s32.totalorder %v10091_v5, 2  ;;  %v7709_v0 = vadd.s32 4294967294, %v1345_v40 }
 0x258   : > { %v1216_v33 = vsel %vm1206_vm10, %v1213_v20, %v1215_v4  ;;  %v1220_v18 = vsel %vm1206_vm10, %v1217_v52, %v1219_v54  ;;  %v1390_v6 = vmul.f32 %v9981_v16, %v1172_v25  ;;  %v1333_v34 = vadd.s32 %v10064_v29, %v10074_v55 }
 0x259   : > { %v10131_v1 = vmul.u32.u64.low %v1221_v7, %v1220_v18  ;;  %v10132_v60 = vmul.u32.u64.high %v1221_v7, %v1220_v18, %v10131_v1  ;;  %v10134_v57 = vmul.u32.u64.low %v1221_v7, %v1216_v33  ;;  %v10135_v28 = vmul.u32.u64.high %v1221_v7, %v1216_v33, %v10134_v57 }
 0x25a   : > { %vm7710_vm3 = vcmp.lt.s32.totalorder %v7709_v0, 0  ;;  %v1228_v59 = vmul.u32 %v1221_v7, %v1212_v19  ;;  %v9026_v2 = vpop.eup %9025  ;;  %vm645_vm2 = vcmp.eq.s32.totalorder %v643_v61, 0  ;;  %v646_v36 = vxor.u32 2147483648, %v10056_v21 }
 0x25b   : > { %v1348_v27 = vsel %vm7710_vm3, 0, %v7709_v0  ;;  %v739_v31 = vsub.s32 4, %v9593_v30  ;;  %v9028_v38 = vpop.eup %9027  ;;  %v1065_v37 = vxor.u32 2147483648, %v9026_v2  ;;  %v649_v20 = vxor.u32 2147483648, %v10001_v24 }
 0x25c   : > { %v1349_v3 = vsub.s32 32, %v1348_v27  ;;  %v1353_v45 = vsub.s32 4294967266, %v1348_v27  ;;  %v1062_v9 = vxor.u32 2147483648, %v9028_v38  ;;  %vm1230_vm4 = vc.u32 %v10132_v60, %v10134_v57 }
 0x25d   : > { %v1231_v29 = vadd.s32 1, %v10135_v28  ;;  %vm648_vm8 = vcmp.eq.s32.totalorder %v643_v61, 2  ;;  %v1066_v55 = vsel %vm1064_vm14, %v1065_v37, %v9028_v38  ;;  %v1350_v8 = vshll.u32 %v10114_v48, %v1348_v27 }
 0x25e   : > { %v1351_v52 = vshrl.u32 %v1333_v34, %v1349_v3  ;;  %v1354_v17 = vadd.s32 127, %v1353_v45  ;;  %v1063_v25 = vsel %vm1061_vm9, %v9026_v2, %v1062_v9  ;;  %v647_v7 = vsel %vm645_vm2, %v10001_v24, %v646_v36 }
 0x25f   : > { %v1232_v40 = vsel %vm1230_vm4, %v1231_v29, %v10135_v28  ;;  %v740_v19 = vsel %vm655_vm11, %v739_v31, %v9593_v30  ;;  %v1067_v4 = vsel %vm1060_vm12, %v1063_v25, %v1066_v55  ;;  %v650_v48 = vsel %vm648_vm8, %v649_v20, %v10056_v21  ;;  %v8928_v55 = vld [vmem:[%s12970_s2 + $0x18] sm:$0xff]  }
 0x260   : > { %v1355_v54 = vshll.u32 %v1354_v17, 23  ;;  %v1233_v0 = vadd.s32 %v1232_v40, %v1228_v59  ;;  %v10162_v33 = vadd.f32 %v1390_v6, %v10014_v42  ;;  %v1068_v18 = vsel %vm1057_vm6, nan, %v1067_v4 }
 0x261   : > { %vm644_vm13 = vcmp.lt.s32.totalorder %v643_v61, 2  ;;  %v742_v24 = vsel %vm9702_vm15, 0, %v740_v19  ;;  %v1389_v1 = vmul.f32 %v9981_v16, %v1068_v18  ;;  %v1352_v30 = vor.u32 %v1351_v52, %v1350_v8 }
 0x262   : > { %v1356_v28 = vor.u32 4788187, %v1355_v54  ;;  %v1234_v5 = vadd.s32 536870912, %v1233_v0  ;;  %v651_v34 = vsel %vm644_vm13, %v647_v7, %v650_v48  ;;  %v746_v2 = vadd.s32 3, %v742_v24 }
 0x263   : > { %v1397_v59 = vadd.f32 %v1389_v1, %v10080_v56  ;;  %v750_v42 = vxor.u32 2147483648, %v9907_v22  ;;  %vm641_vm11 = vweird.f32 %v9493_v14  ;;  %v753_v46 = vxor.u32 2147483648, %v9826_v58 }
 0x264   : > { %v1357_v21 = vand.u32 2147483647, %v1356_v28  ;;  %v10170_v27 = vshrl.u32 %v1234_v5, 30  ;;  %v747_v63 = vand.u32 3, %v746_v2  ;;  %v1359_v6 = vcvt.s32.f32 %v1352_v30 }
 0x265   : > { %v1403_v61 = vpack.c.bf16 %v10162_v33, %v1397_v59  ;;  %v652_v31 = vsel %vm641_vm11, nan, %v651_v34  ;;  %vm1456_vm7 = vcmask 1046528   ;;  %vm745_vm10 = vweird.f32 %v9487_v12 }
 0x266   : > { %v1236_v36 = vshll.u32 %v10170_v27, 30  ;;  %vm749_vm15 = vcmp.eq.s32.totalorder %v747_v63, 0  ;;  %v1360_v38 = vmul.f32 %v1359_v6, %v1357_v21  ;;  %vm752_vm5 = vcmp.eq.s32.totalorder %v747_v63, 2 }
 0x267   : > { %v751_v37 = vsel %vm749_vm15, %v9826_v58, %v750_v42  ;;  %vm748_vm9 = vcmp.lt.s32.totalorder %v747_v63, 2  ;;  %v754_v3 = vsel %vm752_vm5, %v753_v46, %v9907_v22  ;;  %v1385_v14 = vmul.f32 %v9981_v16, %v652_v31 }
 0x268   : > { %v1237_v56 = vsub.s32 %v1233_v0, %v1236_v36  ;;  %v755_v20 = vsel %vm748_vm9, %v751_v37, %v754_v3  ;;  %vm1457_vm12 = vcmask 1047552   ;;  %v529_v9 = vmul.f32 %v9770_v26, %v9489_v13 }
 0x269   : > { %v756_v29 = vsel %vm745_vm10, nan, %v755_v20  ;;  %v9316_v58 = vmov 65535   ;;  %v1361_v52 = vxor.u32 2147483648, %v1360_v38  ;;  %v530_v12 = vmul.f32 %v9483_v11, %v9770_v26  ;;  %v8930_v11 = vld [vmem:[%s12971_s3 + $0x8] sm:$0xff]  }
 0x26a   : > { %v1239_v45 = vsub.s32 0, %v1237_v56  ;;  %v1458_v8 = vsel %vm1456_vm7, 4294967295, %v9316_v58  ;;  %v1386_v17 = vmul.f32 %v9981_v16, %v756_v29  ;;  %v1393_v25 = vadd.f32 %v1385_v14, %v529_v9  ;;  %8327 = vmatprep.subr.bf16.mxu0 %v8930_v11 }
 0x26b   : > { %v10190_v40 = vsel %vm1457_vm12, %v1458_v8, 0  ;;  %vm1279_vm6 = vcmp.lt.s32.totalorder %v9899_v23, 0  ;;  %vm1443_vm14 = vcmask 515072   ;;  %vm10198_vm3 = vcmp.le.f32.partialorder %v1277_v10, 0.7853982  ;;  %8328 = vmatpush3.bf16.msra.mxu0 %v8930_v11 }
 0x26c   : > { %v7704_v22 = vmin.u32 %v1239_v45, %v1237_v56  ;;  %v1394_v13 = vadd.f32 %v1386_v17, %v530_v12  ;;  %v1461_v19 = vand.u32 %v8928_v55, %v10190_v40  ;;  %v1362_v4 = vsel %vm1279_vm6, %v1361_v52, %v1360_v38  ;;  %v9134_v12 = vld [vmem:[#allocation2 + $0x3] ss:$0 sm:$0xff] }
 0x26d   : > { %v1365_v26 = vsel %vm10198_vm3, %v9899_v23, %v1362_v4  ;;  %v1229_v33 = vadd.s32 %v10134_v57, %v10132_v60  ;;  %v1363_v1 = vsub.s32 4, %v10097_v35  ;;  %v13003_v10 = vpack.c.bf16 %v10017_v15, %v10026_v39 }
 0x26e   : > { %v1241_v7 = vclz %v7704_v22  ;;  %v1401_v0 = vpack.c.bf16 %v1394_v13, %v1393_v25  ;;  %8315 = vmatprep.subr.bf16.mxu1 %v1461_v19  ;;  %9029 = vcosq.f32 %v1365_v26  ;;  %v1259_v42 = vsub.s32 4, %v10170_v27 }
 0x26f   : > { %8316 = vmatpush3.bf16.msra.mxu1 %v1461_v19  ;;  %9031 = vsinq.f32 %v1365_v26  ;;  %v1364_v60 = vsel %vm1279_vm6, %v1363_v1, %v10097_v35  ;;  %vm1175_vm4 = vcmp.lt.s32.totalorder %v10023_v41, 0  ;;  %vm1174_vm8 = vcmp.le.f32.partialorder %v1173_v50, 0.7853982  ;;  %v7712_v26 = vld [vmem:[%s12972_s4] ss:$0 sm:$0xff] }
 0x270   : > { %v7705_v54 = vadd.s32 4294967294, %v1241_v7  ;;  %8317 = vmatprep.mubr.msk.bf16.mxu1 %vm1443_vm14, %v1401_v0  ;;  %v1366_v59 = vsel %vm10198_vm3, 0, %v1364_v60  ;;  %v1260_v35 = vsel %vm1175_vm4, %v1259_v42, %v10170_v27  ;;  %vm1369_vm7 = vweird.f32 %v9899_v23 }
 0x271   : > { %v1370_v63 = vadd.s32 3, %v1366_v59  ;;  %v1262_v3 = vsel %vm1174_vm8, 0, %v1260_v35  ;;  %v536_v25 = vmul.f32 %v9134_v12, %v9550_v32  ;;  %vm1265_vm12 = vweird.f32 %v10023_v41  ;;  %v8931_v32 = vld [vmem:[%s12971_s3 + $0x10] sm:$0xff]  }
 0x272   : > { %vm7706_vm2 = vcmp.lt.s32.totalorder %v7705_v54, 0  ;;  %8318 = vmatmul.mubr.msk.bf16.vlgmr.msra.gmra.mrb[0].mxu1 %vm1443_vm14, %v13003_v10  ;;  %v1266_v20 = vadd.s32 3, %v1262_v3  ;;  %v535_v19 = vmul.f32 %v9134_v12, %v9561_v44  ;;  %v8932_v44 = vld [vmem:[%s12971_s3 + $0x18] sm:$0xff]   ;;  %8329 = vmatprep.subr.bf16.mxu0 %v8931_v32 }
 0x273   : > { %v1244_v48 = vsel %vm7706_vm2, 0, %v7705_v54  ;;  %8321 = vmatprep.mubr.msk.bf16.mxu1 %vm1443_vm14, %v1403_v61  ;;  %v1371_v31 = vand.u32 3, %v1370_v63  ;;  %8330 = vmatpush3.bf16.msra.mxu0 %v8931_v32 }
 0x274   : > { %v1245_v18 = vsub.s32 32, %v1244_v48  ;;  %v1249_v24 = vsub.s32 4294967266, %v1244_v48  ;;  %v1246_v30 = vshll.u32 %v1237_v56, %v1244_v48  ;;  %v1267_v29 = vand.u32 3, %v1266_v20  ;;  %8331 = vmatprep.subr.bf16.mxu0 %v8932_v44 }
 0x275   : > { %vm1373_vm13 = vcmp.eq.s32.totalorder %v1371_v31, 0  ;;  %vm1376_vm11 = vcmp.eq.s32.totalorder %v1371_v31, 2  ;;  %vm1372_vm15 = vcmp.lt.s32.totalorder %v1371_v31, 2 }
 0x276   : > { %v1247_v28 = vshrl.u32 %v1229_v33, %v1245_v18  ;;  %v1250_v5 = vadd.s32 127, %v1249_v24  ;;  %vm1272_vm5 = vcmp.eq.s32.totalorder %v1267_v29, 2  ;;  %vm1269_vm9 = vcmp.eq.s32.totalorder %v1267_v29, 0 }
 0x277   : > { %vm1268_vm10 = vcmp.lt.s32.totalorder %v1267_v29, 2  ;;  %8332 = vmatpush3.bf16.msra.mxu0 %v8932_v44 }
 0x278   : > { %v1248_v34 = vor.u32 %v1247_v28, %v1246_v30  ;;  %v1251_v2 = vshll.u32 %v1250_v5, 23  ;;  %v9030_v46 = vpop.eup %9029 }
 0x279   : > { %v9032_v61 = vpop.eup %9031  ;;  %v1377_v37 = vxor.u32 2147483648, %v9030_v46 }
 0x27a   : > { %v1252_v57 = vor.u32 4788187, %v1251_v2  ;;  %v1255_v39 = vcvt.s32.f32 %v1248_v34  ;;  %v1374_v56 = vxor.u32 2147483648, %v9032_v61 }
 0x27b   : > { %v1378_v45 = vsel %vm1376_vm11, %v1377_v37, %v9032_v61 }
 0x27c   : > { %v1253_v15 = vand.u32 2147483647, %v1252_v57  ;;  %v1375_v14 = vsel %vm1373_vm13, %v9030_v46, %v1374_v56 }
 0x27d   : > { %v1379_v9 = vsel %vm1372_vm15, %v1375_v14, %v1378_v45 }
 0x27e   : > { %v1256_v21 = vmul.f32 %v1255_v39, %v1253_v15  ;;  %v1380_v27 = vsel %vm1369_vm7, nan, %v1379_v9 }
 0x27f   : > { %v1392_v52 = vmul.f32 %v9981_v16, %v1380_v27 }
 0x280   : > { %v1257_v6 = vxor.u32 2147483648, %v1256_v21 }
 0x281   : > { %v1400_v23 = vadd.f32 %v1392_v52, %v536_v25 }
 0x282   : > { %v1258_v36 = vsel %vm1175_vm4, %v1257_v6, %v1256_v21 }
 0x283   : > { %v1261_v38 = vsel %vm1174_vm8, %v10023_v41, %v1258_v36  ;;  %v2110_v41 = vld [vmem:[%s9468_s10] sm:$0x7]  ;;  %vm1593_vm8 = vcmask 523264  }
 0x284   : > { %9033 = vcosq.f32 %v1261_v38  ;;  %2112 = vrot.lane.b32.xlu0 %v2110_v41, %s9317_s20 }
 0x285   : > { %9035 = vsinq.f32 %v1261_v38 }
 0x28e   : > { %v9034_v50 = vpop.eup %9033 }
 0x28f   : > { %v9036_v55 = vpop.eup %9035  ;;  %v1273_v58 = vxor.u32 2147483648, %v9034_v50 }
 0x290   : > { %v1270_v8 = vxor.u32 2147483648, %v9036_v55 }
 0x291   : > { %v1274_v22 = vsel %vm1272_vm5, %v1273_v58, %v9036_v55  ;;  %v8934_v55 = vld [vmem:[%s12971_s3 + $0x28] sm:$0xff]   ;;  %v8935_v58 = vld [vmem:[%s12971_s3 + $0x30] sm:$0xff]  }
 0x292   : > { %v1271_v17 = vsel %vm1269_vm9, %v9034_v50, %v1270_v8  ;;  %v8936_v8 = vld [vmem:[%s12971_s3 + $0x38] sm:$0xff]  }
 0x293   : > { %v1275_v7 = vsel %vm1268_vm10, %v1271_v17, %v1274_v22  ;;  %v8937_v22 = vld [vmem:[%s12971_s3 + $0x40] sm:$0xff]   ;;  %v7721_v17 = vld [vmem:[#allocation4] ss:$0 sm:$0xff] }
 0x294   : > { %v1276_v13 = vsel %vm1265_vm12, nan, %v1275_v7  ;;  %8357 = vmatprep.subr.bf16.mxu0 %v8937_v22 }
 0x295   : > { %v1391_v4 = vmul.f32 %v9981_v16, %v1276_v13  ;;  %v8933_v16 = vld [vmem:[%s12971_s3 + $0x20] sm:$0xff]  }
 0x296   : > { %8341 = vmatprep.subr.bf16.mxu1 %v8933_v16 }
 0x297   : > { %v1399_v54 = vadd.f32 %v1391_v4, %v535_v19  ;;  %8342 = vmatpush3.bf16.msra.mxu1 %v8933_v16 }
 0x298   : > { %8343 = vmatprep.subr.bf16.mxu1 %v8934_v55 }
 0x299   : > { %v1404_v0 = vpack.c.bf16 %v1400_v23, %v1399_v54 }
 0x29b   : > { %8322 = vmatmul.mubr.msk.bf16.gmra.mrb[4].mxu1 %vm1443_vm14, %v1404_v0 }
 0x29c   : > { %8344 = vmatpush3.bf16.msra.mxu1 %v8934_v55 }
 0x29d   : > { %8345 = vmatprep.subr.bf16.mxu1 %v8935_v58 }
 0x2a0   : > { %8346 = vmatpush3.bf16.msra.mxu1 %v8935_v58 }
 0x2a1   : > { %8347 = vmatprep.subr.bf16.mxu1 %v8936_v8 }
 0x2a4   : > { %8348 = vmatpush3.bf16.msra.mxu1 %v8936_v8 }
 0x2f6   : > { %v2113_v52 = vpop.permute.xlu0 %2112 }
 0x2f7   : > { %2115 = vxpose.xlu1.b32.start.end [1/1] (short) (narrow) %v2113_v52, 64 }
 0x345   : > { %v8319_v48 = vpop.f32.mrb[0].mxu1 }
 0x346   : > { %v1506_v33 = vadd.f32 %v8319_v48, %v7712_v26  ;;  %v1497_v18 = vpop.f32.mrb[1].mxu1 }
 0x347   : > { %v1498_v24 = vadd.f32 %v7712_v26, %v1497_v18  ;;  %v8320_v1 = vpop.f32.mrb[2].mxu1 }
 0x348   : > { %v1538_v10 = vmul.f32 0.01, %v1506_v33  ;;  %v1509_v30 = vadd.f32 %v8320_v1, %v7712_v26  ;;  %v1500_v28 = vpop.f32.mrb[3].mxu1  ;;  %vm1530_vm6 = vcmp.ge.f32.partialorder %v1506_v33, 0.0 }
 0x349   : > { %v1536_v5 = vmul.f32 0.01, %v1498_v24  ;;  %v1501_v34 = vadd.f32 %v7712_v26, %v1500_v28  ;;  %vm1528_vm3 = vcmp.ge.f32.partialorder %v1498_v24, 0.0 }
 0x34a   : > { %vm1531_vm2 = vcmp.ge.f32.partialorder %v1509_v30, 0.0  ;;  %v1539_v2 = vmul.f32 0.01, %v1509_v30  ;;  %v1546_v57 = vsel %vm1530_vm6, %v1506_v33, %v1538_v10 }
 0x34b   : > { %vm1529_vm4 = vcmp.ge.f32.partialorder %v1501_v34, 0.0  ;;  %v1537_v60 = vmul.f32 0.01, %v1501_v34  ;;  %v1544_v15 = vsel %vm1528_vm3, %v1498_v24, %v1536_v5 }
 0x34c   : > { %v1547_v59 = vsel %vm1531_vm2, %v1509_v30, %v1539_v2 }
 0x34d   : > { %v1553_v39 = vpack.c.bf16 %v1547_v59, %v1546_v57  ;;  %v1545_v21 = vsel %vm1529_vm4, %v1501_v34, %v1537_v60 }
 0x34e   : > { %v1552_v42 = vpack.c.bf16 %v1545_v21, %v1544_v15 }
 0x350   : > { %8333 = vmatprep.mubr.msk.bf16.mxu0 %vm1593_vm8, %v1552_v42 }
 0x351   : > { %8334 = vmatmul.mubr.msk.bf16.vlgmr.msra.gmra.mrb[8].mxu0 %vm1593_vm8, %v1553_v39 }
 0x352   : > { %8358 = vmatpush3.bf16.msra.mxu0 %v8937_v22 }
 0x36e   : > { %v8323_v63 = vpop.f32.mrb[4].mxu1 }
 0x36f   : > { %v1522_v46 = vadd.f32 %v8323_v63, %v7712_v26  ;;  %v1513_v6 = vpop.f32.mrb[5].mxu1 }
 0x370   : > { %v1514_v61 = vadd.f32 %v7712_v26, %v1513_v6  ;;  %v8324_v36 = vpop.f32.mrb[6].mxu1 }
 0x371   : > { %v1542_v35 = vmul.f32 0.01, %v1522_v46  ;;  %v1525_v31 = vadd.f32 %v8324_v36, %v7712_v26  ;;  %v1516_v38 = vpop.f32.mrb[7].mxu1  ;;  %vm1534_vm13 = vcmp.ge.f32.partialorder %v1522_v46, 0.0  ;;  %v8939_v36 = vld [vmem:[%s12971_s3 + $0x50] sm:$0xff]  }
 0x372   : > { %v1540_v56 = vmul.f32 0.01, %v1514_v61  ;;  %v1517_v37 = vadd.f32 %v7712_v26, %v1516_v38  ;;  %vm1532_vm11 = vcmp.ge.f32.partialorder %v1514_v61, 0.0  ;;  %v8941_v38 = vld [vmem:[%s12974_s6] sm:$0xff]  }
 0x373   : > { %vm1535_vm15 = vcmp.ge.f32.partialorder %v1525_v31, 0.0  ;;  %v1543_v3 = vmul.f32 0.01, %v1525_v31  ;;  %v1550_v45 = vsel %vm1534_vm13, %v1522_v46, %v1542_v35  ;;  %v8940_v35 = vld [vmem:[%s12971_s3 + $0x58] sm:$0xff]   ;;  %8373 = vmatprep.subr.bf16.mxu1 %v8941_v38 }
 0x374   : > { %vm1533_vm7 = vcmp.ge.f32.partialorder %v1517_v37, 0.0  ;;  %v1541_v14 = vmul.f32 0.01, %v1517_v37  ;;  %v1548_v9 = vsel %vm1532_vm11, %v1514_v61, %v1540_v56  ;;  %v8938_v61 = vld [vmem:[%s12971_s3 + $0x48] sm:$0xff]  }
 0x375   : > { %v1551_v20 = vsel %vm1535_vm15, %v1525_v31, %v1543_v3  ;;  %8359 = vmatprep.subr.bf16.mxu0 %v8938_v61  ;;  %v9135_v31 = vld [vmem:[#allocation2] sm:$0x7]  ;;  %v7738_v56 = vld [vmem:[#allocation4 + $0x1] ss:$0 sm:$0xff] }
 0x376   : > { %v1555_v29 = vpack.c.bf16 %v1551_v20, %v1550_v45  ;;  %v1549_v50 = vsel %vm1533_vm7, %v1517_v37, %v1541_v14  ;;  %8360 = vmatpush3.bf16.msra.mxu0 %v8938_v61 }
 0x377   : > { %v1554_v27 = vpack.c.bf16 %v1549_v50, %v1548_v9  ;;  %8361 = vmatprep.subr.bf16.mxu0 %v8939_v36 }
 0x379   : > { %8337 = vmatprep.mubr.msk.bf16.mxu0 %vm1593_vm8, %v1554_v27 }
 0x37a   : > { %8338 = vmatmul.mubr.msk.bf16.gmra.mrb[12].mxu0 %vm1593_vm8, %v1555_v29 }
 0x37b   : > { %8362 = vmatpush3.bf16.msra.mxu0 %v8939_v36 }
 0x37c   : > { %8363 = vmatprep.subr.bf16.mxu0 %v8940_v35 }
 0x37f   : > { %8364 = vmatpush3.bf16.msra.mxu0 %v8940_v35 }
 0x380   : > { %8389 = vmatprep.subr.msk.mxu0 %vm416_vm0, %v9135_v31 }
 0x424   : > { %v8335_v12 = vpop.f32.mrb[8].mxu0 }
 0x425   : > { %v1649_v25 = vadd.f32 %v8335_v12, %v7721_v17  ;;  %v1640_v7 = vpop.f32.mrb[9].mxu0 }
 0x426   : > { %v1641_v13 = vadd.f32 %v7721_v17, %v1640_v7  ;;  %v8336_v23 = vpop.f32.mrb[10].mxu0 }
 0x427   : > { %v1681_v19 = vmul.f32 0.01, %v1649_v25  ;;  %v1652_v4 = vadd.f32 %v8336_v23, %v7721_v17  ;;  %v1643_v54 = vpop.f32.mrb[11].mxu0  ;;  %vm1673_vm5 = vcmp.ge.f32.partialorder %v1649_v25, 0.0 }
 0x428   : > { %v1679_v0 = vmul.f32 0.01, %v1641_v13  ;;  %v1644_v11 = vadd.f32 %v7721_v17, %v1643_v54  ;;  %vm1671_vm9 = vcmp.ge.f32.partialorder %v1641_v13, 0.0 }
 0x429   : > { %vm1674_vm10 = vcmp.ge.f32.partialorder %v1652_v4, 0.0  ;;  %v1682_v32 = vmul.f32 0.01, %v1652_v4  ;;  %v1689_v16 = vsel %vm1673_vm5, %v1649_v25, %v1681_v19 }
 0x42a   : > { %vm1672_vm12 = vcmp.ge.f32.partialorder %v1644_v11, 0.0  ;;  %v1680_v44 = vmul.f32 0.01, %v1644_v11  ;;  %v1687_v26 = vsel %vm1671_vm9, %v1641_v13, %v1679_v0  ;;  %v2131_v13 = vpop.trf.xlu1 }
 0x42b   : > { %v1690_v41 = vsel %vm1674_vm10, %v1652_v4, %v1682_v32 }
 0x42c   : > { %v1696_v48 = vpack.c.bf16 %v1690_v41, %v1689_v16  ;;  %v1688_v33 = vsel %vm1672_vm12, %v1644_v11, %v1680_v44 }
 0x42d   : > { %v1695_v18 = vpack.c.bf16 %v1688_v33, %v1687_v26 }
 0x42e   : > { %v2132_v23 = vpop.trf.xlu1 }
 0x42f   : > { %8349 = vmatprep.mubr.msk.bf16.mxu1 %vm1593_vm8, %v1695_v18 }
 0x430   : > { %8350 = vmatmul.mubr.msk.bf16.vlgmr.msra.gmra.mrb[8].mxu1 %vm1593_vm8, %v1696_v48 }
 0x431   : > { %8374 = vmatpush3.bf16.msra.mxu1 %v8941_v38 }
 0x432   : > { %v2133_v19 = vpop.trf.xlu1 }
 0x436   : > { %v2134_v18 = vpop.trf.xlu1 }
 0x44d   : > { %v8339_v24 = vpop.f32.mrb[12].mxu0 }
 0x44e   : > { %v1665_v1 = vadd.f32 %v8339_v24, %v7721_v17  ;;  %v1656_v10 = vpop.f32.mrb[13].mxu0 }
 0x44f   : > { %v1657_v30 = vadd.f32 %v7721_v17, %v1656_v10  ;;  %v8340_v28 = vpop.f32.mrb[14].mxu0 }
 0x450   : > { %v1685_v5 = vmul.f32 0.01, %v1665_v1  ;;  %v1668_v34 = vadd.f32 %v8340_v28, %v7721_v17  ;;  %v1659_v2 = vpop.f32.mrb[15].mxu0  ;;  %vm1677_vm6 = vcmp.ge.f32.partialorder %v1665_v1, 0.0 }
 0x451   : > { %v1683_v60 = vmul.f32 0.01, %v1657_v30  ;;  %v1660_v57 = vadd.f32 %v7721_v17, %v1659_v2  ;;  %vm1675_vm3 = vcmp.ge.f32.partialorder %v1657_v30, 0.0  ;;  %v2135_v2 = vpop.trf.xlu1 }
 0x452   : > { %vm1678_vm2 = vcmp.ge.f32.partialorder %v1668_v34, 0.0  ;;  %v1686_v59 = vmul.f32 0.01, %v1668_v34  ;;  %v1693_v39 = vsel %vm1677_vm6, %v1665_v1, %v1685_v5 }
 0x453   : > { %vm1676_vm4 = vcmp.ge.f32.partialorder %v1660_v57, 0.0  ;;  %v1684_v15 = vmul.f32 0.01, %v1660_v57  ;;  %v1691_v42 = vsel %vm1675_vm3, %v1657_v30, %v1683_v60 }
 0x454   : > { %v1694_v21 = vsel %vm1678_vm2, %v1668_v34, %v1686_v59 }
 0x455   : > { %v1698_v63 = vpack.c.bf16 %v1694_v21, %v1693_v39  ;;  %v1692_v46 = vsel %vm1676_vm4, %v1660_v57, %v1684_v15  ;;  %v2136_v60 = vpop.trf.xlu1  ;;  %v8942_v15 = vld [vmem:[%s12974_s6 + $0x8] sm:$0xff]   ;;  %v8943_v39 = vld [vmem:[%s12974_s6 + $0x10] sm:$0xff]   ;;  %v8944_v21 = vld [vmem:[%s12974_s6 + $0x18] sm:$0xff]  }
 0x456   : > { %v1697_v6 = vpack.c.bf16 %v1692_v46, %v1691_v42  ;;  %8375 = vmatprep.subr.bf16.mxu1 %v8942_v15  ;;  %v7755_v42 = vld [vmem:[#allocation4 + $0x2] ss:$0 sm:$0xff] }
 0x457   : > { %8376 = vmatpush3.bf16.msra.mxu1 %v8942_v15 }
 0x458   : > { %8353 = vmatprep.mubr.msk.bf16.mxu1 %vm1593_vm8, %v1697_v6  ;;  %8377 = vmatprep.subr.bf16.mxu1 %v8943_v39 }
 0x459   : > { %8354 = vmatmul.mubr.msk.bf16.gmra.mrb[12].mxu1 %vm1593_vm8, %v1698_v63  ;;  %v2137_v57 = vpop.trf.xlu1 }
 0x45b   : > { %8378 = vmatpush3.bf16.msra.mxu1 %v8943_v39 }
 0x45c   : > { %8379 = vmatprep.subr.bf16.mxu1 %v8944_v21 }
 0x45d   : > { %v2138_v59 = vpop.trf.xlu1 }
 0x45f   : > { %8380 = vmatpush3.bf16.msra.mxu1 %v8944_v21 }
 0x503   : > { %v8351_v37 = vpop.f32.mrb[8].mxu1 }
 0x504   : > { %v1792_v3 = vadd.f32 %v8351_v37, %v7738_v56  ;;  %v1783_v14 = vpop.f32.mrb[9].mxu1 }
 0x505   : > { %v1784_v45 = vadd.f32 %v7738_v56, %v1783_v14  ;;  %v8352_v20 = vpop.f32.mrb[10].mxu1 }
 0x506   : > { %v1824_v9 = vmul.f32 0.01, %v1792_v3  ;;  %v1795_v29 = vadd.f32 %v8352_v20, %v7738_v56  ;;  %v1786_v50 = vpop.f32.mrb[11].mxu1  ;;  %vm1816_vm13 = vcmp.ge.f32.partialorder %v1792_v3, 0.0 }
 0x507   : > { %v1822_v27 = vmul.f32 0.01, %v1784_v45  ;;  %v1787_v55 = vadd.f32 %v7738_v56, %v1786_v50  ;;  %vm1814_vm11 = vcmp.ge.f32.partialorder %v1784_v45, 0.0 }
 0x508   : > { %vm1817_vm15 = vcmp.ge.f32.partialorder %v1795_v29, 0.0  ;;  %v1825_v58 = vmul.f32 0.01, %v1795_v29  ;;  %v1832_v52 = vsel %vm1816_vm13, %v1792_v3, %v1824_v9 }
 0x509   : > { %vm1815_vm7 = vcmp.ge.f32.partialorder %v1787_v55, 0.0  ;;  %v1823_v8 = vmul.f32 0.01, %v1787_v55  ;;  %v1830_v17 = vsel %vm1814_vm11, %v1784_v45, %v1822_v27 }
 0x50a   : > { %v1833_v22 = vsel %vm1817_vm15, %v1795_v29, %v1825_v58 }
 0x50b   : > { %v1839_v12 = vpack.c.bf16 %v1833_v22, %v1832_v52  ;;  %v1831_v25 = vsel %vm1815_vm7, %v1787_v55, %v1823_v8 }
 0x50c   : > { %v1838_v7 = vpack.c.bf16 %v1831_v25, %v1830_v17 }
 0x50e   : > { %8365 = vmatprep.mubr.msk.bf16.mxu0 %vm1593_vm8, %v1838_v7 }
 0x50f   : > { %8366 = vmatmul.mubr.msk.bf16.vlgmr.msra.gmra.mrb[16].mxu0 %vm1593_vm8, %v1839_v12 }
 0x510   : > { %8390 = vmatpush3.msk.msra.mxu0 %vm416_vm0, %v9135_v31 }
 0x52c   : > { %v8355_v4 = vpop.f32.mrb[12].mxu1 }
 0x52d   : > { %v1808_v54 = vadd.f32 %v8355_v4, %v7738_v56  ;;  %v1799_v0 = vpop.f32.mrb[13].mxu1 }
 0x52e   : > { %v1800_v11 = vadd.f32 %v7738_v56, %v1799_v0  ;;  %v8356_v32 = vpop.f32.mrb[14].mxu1 }
 0x52f   : > { %v1828_v44 = vmul.f32 0.01, %v1808_v54  ;;  %v1811_v16 = vadd.f32 %v8356_v32, %v7738_v56  ;;  %v1802_v41 = vpop.f32.mrb[15].mxu1  ;;  %vm1820_vm5 = vcmp.ge.f32.partialorder %v1808_v54, 0.0 }
 0x530   : > { %v1826_v26 = vmul.f32 0.01, %v1800_v11  ;;  %v1803_v48 = vadd.f32 %v7738_v56, %v1802_v41  ;;  %vm1818_vm9 = vcmp.ge.f32.partialorder %v1800_v11, 0.0  ;;  %v10308_v41 = vld [vmem:[#allocation2 + $0x5] ss:$0 sm:$0xff] }
 0x531   : > { %vm1821_vm10 = vcmp.ge.f32.partialorder %v1811_v16, 0.0  ;;  %v1829_v33 = vmul.f32 0.01, %v1811_v16  ;;  %v1836_v1 = vsel %vm1820_vm5, %v1808_v54, %v1828_v44 }
 0x532   : > { %vm1819_vm12 = vcmp.ge.f32.partialorder %v1803_v48, 0.0  ;;  %v1827_v24 = vmul.f32 0.01, %v1803_v48  ;;  %v1834_v30 = vsel %vm1818_vm9, %v1800_v11, %v1826_v26 }
 0x533   : > { %v1837_v10 = vsel %vm1821_vm10, %v1811_v16, %v1829_v33 }
 0x534   : > { %v1841_v28 = vpack.c.bf16 %v1837_v10, %v1836_v1  ;;  %v1835_v5 = vsel %vm1819_vm12, %v1803_v48, %v1827_v24 }
 0x535   : > { %v1840_v34 = vpack.c.bf16 %v1835_v5, %v1834_v30 }
 0x537   : > { %8369 = vmatprep.mubr.msk.bf16.mxu0 %vm1593_vm8, %v1840_v34 }
 0x538   : > { %8370 = vmatmul.mubr.msk.bf16.gmra.mrb[20].mxu0 %vm1593_vm8, %v1841_v28 }
 0x539   : > { %8391 = vmatprep.mubr.msk.f32.mxu0 %vm391_vm1, %v2131_v13 }
 0x540   : > { %8392 = vmatmul.mubr.msk.f32.vlgmr.msra.gmra.mrb[24].mxu0 %vm391_vm1, %v2132_v23 }
 0x541   : > { %8394 = vmatprep.mubr.msk.f32.mxu0 %vm391_vm1, %v2133_v19 }
 0x544   : > { %8395 = vmatmul.mubr.msk.f32.gmra.mrb[26].mxu0 %vm391_vm1, %v2134_v18 }
 0x545   : > { %8397 = vmatprep.mubr.msk.f32.mxu0 %vm391_vm1, %v2135_v2 }
 0x548   : > { %8398 = vmatmul.mubr.msk.f32.gmra.mrb[28].mxu0 %vm391_vm1, %v2136_v60 }
 0x549   : > { %8400 = vmatprep.mubr.msk.f32.mxu0 %vm391_vm1, %v2137_v57 }
 0x54c   : > { %8401 = vmatmul.mubr.msk.f32.gmra.mrb[30].mxu0 %vm391_vm1, %v2138_v59 }
 0x5e2   : > { %v8367_v63 = vpop.f32.mrb[16].mxu0 }
 0x5e3   : > { %v1935_v46 = vadd.f32 %v8367_v63, %v7755_v42  ;;  %v1926_v6 = vpop.f32.mrb[17].mxu0 }
 0x5e4   : > { %v1927_v61 = vadd.f32 %v7755_v42, %v1926_v6  ;;  %v8368_v36 = vpop.f32.mrb[18].mxu0 }
 0x5e5   : > { %v1967_v35 = vmul.f32 0.01, %v1935_v46  ;;  %v1938_v31 = vadd.f32 %v8368_v36, %v7755_v42  ;;  %v1929_v38 = vpop.f32.mrb[19].mxu0  ;;  %vm1959_vm6 = vcmp.ge.f32.partialorder %v1935_v46, 0.0 }
 0x5e6   : > { %v1965_v56 = vmul.f32 0.01, %v1927_v61  ;;  %v1930_v37 = vadd.f32 %v7755_v42, %v1929_v38  ;;  %vm1957_vm3 = vcmp.ge.f32.partialorder %v1927_v61, 0.0 }
 0x5e7   : > { %vm1960_vm2 = vcmp.ge.f32.partialorder %v1938_v31, 0.0  ;;  %v1968_v3 = vmul.f32 0.01, %v1938_v31  ;;  %v1975_v45 = vsel %vm1959_vm6, %v1935_v46, %v1967_v35 }
 0x5e8   : > { %vm1958_vm4 = vcmp.ge.f32.partialorder %v1930_v37, 0.0  ;;  %v1966_v14 = vmul.f32 0.01, %v1930_v37  ;;  %v1973_v9 = vsel %vm1957_vm3, %v1927_v61, %v1965_v56 }
 0x5e9   : > { %v1976_v20 = vsel %vm1960_vm2, %v1938_v31, %v1968_v3 }
 0x5ea   : > { %v1982_v29 = vpack.c.bf16 %v1976_v20, %v1975_v45  ;;  %v1974_v50 = vsel %vm1958_vm4, %v1930_v37, %v1966_v14 }
 0x5eb   : > { %v1981_v27 = vpack.c.bf16 %v1974_v50, %v1973_v9 }
 0x5ed   : > { %8381 = vmatprep.mubr.msk.bf16.mxu1 %vm1593_vm8, %v1981_v27 }
 0x5ee   : > { %8382 = vmatmul.mubr.msk.bf16.vlgmr.msra.gmra.mrb[16].mxu1 %vm1593_vm8, %v1982_v29 }
 0x60b   : > { %v8371_v55 = vpop.f32.mrb[20].mxu0 }
 0x60c   : > { %v1951_v58 = vadd.f32 %v8371_v55, %v7755_v42  ;;  %v1942_v8 = vpop.f32.mrb[21].mxu0 }
 0x60d   : > { %v1943_v52 = vadd.f32 %v7755_v42, %v1942_v8  ;;  %v8372_v22 = vpop.f32.mrb[22].mxu0 }
 0x60e   : > { %v1971_v17 = vmul.f32 0.01, %v1951_v58  ;;  %v1954_v12 = vadd.f32 %v8372_v22, %v7755_v42  ;;  %v1945_v25 = vpop.f32.mrb[23].mxu0  ;;  %vm1963_vm13 = vcmp.ge.f32.partialorder %v1951_v58, 0.0 }
 0x60f   : > { %v1969_v7 = vmul.f32 0.01, %v1943_v52  ;;  %v1946_v13 = vadd.f32 %v7755_v42, %v1945_v25  ;;  %vm1961_vm11 = vcmp.ge.f32.partialorder %v1943_v52, 0.0 }
 0x610   : > { %vm1964_vm15 = vcmp.ge.f32.partialorder %v1954_v12, 0.0  ;;  %v1972_v23 = vmul.f32 0.01, %v1954_v12  ;;  %v1979_v4 = vsel %vm1963_vm13, %v1951_v58, %v1971_v17 }
 0x611   : > { %vm1962_vm7 = vcmp.ge.f32.partialorder %v1946_v13, 0.0  ;;  %v1970_v19 = vmul.f32 0.01, %v1946_v13  ;;  %v1977_v0 = vsel %vm1961_vm11, %v1943_v52, %v1969_v7 }
 0x612   : > { %v1980_v54 = vsel %vm1964_vm15, %v1954_v12, %v1972_v23 }
 0x613   : > { %v1984_v11 = vpack.c.bf16 %v1980_v54, %v1979_v4  ;;  %v1978_v32 = vsel %vm1962_vm7, %v1946_v13, %v1970_v19  ;;  %v10306_v44 = vpop.f32.mrb[24].mxu0 }
 0x614   : > { %v1983_v16 = vpack.c.bf16 %v1978_v32, %v1977_v0  ;;  %v10312_v26 = vadd.f32 %v10308_v41, %v10306_v44  ;;  %v10314_v48 = vpop.f32.mrb[25].mxu0 }
 0x615   : > { %v10318_v33 = vadd.f32 %v10308_v41, %v10314_v48 }
 0x616   : > { %v2396_v18 = vand.u32 2147483647, %v10312_v26  ;;  %v2399_v24 = vand.u32 2139095040, %v10312_v26  ;;  %8385 = vmatprep.mubr.msk.bf16.mxu1 %vm1593_vm8, %v1983_v16 }
 0x617   : > { %v2292_v1 = vand.u32 2147483647, %v10318_v33  ;;  %v2295_v10 = vand.u32 2139095040, %v10318_v33  ;;  %8386 = vmatmul.mubr.msk.bf16.gmra.mrb[20].mxu1 %vm1593_vm8, %v1984_v11  ;;  %v10326_v30 = vpop.f32.mrb[26].mxu0 }
 0x618   : > { %v2400_v28 = vshrl.u32 %v2399_v24, 23  ;;  %v10328_v5 = vpop.f32.mrb[27].mxu0  ;;  %v2403_v34 = vand.u32 8388607, %v2396_v18  ;;  %v10336_v57 = vadd.f32 %v10308_v41, %v10326_v30 }
 0x619   : > { %v2296_v2 = vshrl.u32 %v2295_v10, 23  ;;  %v2299_v60 = vand.u32 8388607, %v2292_v1  ;;  %v10348_v14 = vadd.f32 %v10308_v41, %v10328_v5 }
 0x61a   : > { %v7786_v59 = vadd.s32 4294967169, %v2400_v28  ;;  %v2607_v42 = vand.u32 2139095040, %v10336_v57  ;;  %v2404_v46 = vor.u32 8388608, %v2403_v34  ;;  %v2604_v36 = vand.u32 2147483647, %v10336_v57 }
 0x61b   : > { %v7782_v15 = vadd.s32 4294967169, %v2296_v2  ;;  %v10338_v39 = vpop.f32.mrb[28].mxu0  ;;  %v2300_v6 = vor.u32 8388608, %v2299_v60 }
 0x61c   : > { %v2406_v21 = vadd.s32 1, %v7786_v59  ;;  %v10341_v63 = vpop.f32.mrb[29].mxu0  ;;  %v2608_v35 = vshrl.u32 %v2607_v42, 23  ;;  %v10350_v45 = vshll.u32 %v2404_v46, 8  ;;  %v10358_v29 = vand.u32 8388607, %v2604_v36 }
 0x61d   : > { %v2302_v61 = vadd.s32 1, %v7782_v15  ;;  %v10352_v20 = vshll.u32 %v2300_v6, 8 }
 0x61e   : > { %vm2407_vm5 = vcmp.gt.s32.totalorder %v2406_v21, 0  ;;  %v10354_v9 = vadd.s32 4294967169, %v2608_v35 }
 0x61f   : > { %v2408_v31 = vsel %vm2407_vm5, %v2406_v21, 0  ;;  %vm2303_vm9 = vcmp.gt.s32.totalorder %v2302_v61, 0  ;;  %v10344_v38 = vpop.f32.mrb[30].mxu0 }
 0x620   : > { %v2409_v56 = vshrl.u32 %v2408_v31, 5  ;;  %v2410_v37 = vand.u32 31, %v2408_v31  ;;  %v2304_v3 = vsel %vm2303_vm9, %v2302_v61, 0  ;;  %v10363_v8 = vpop.f32.mrb[31].mxu0  ;;  %vm2398_vm9 = vcmp.lt.s32.totalorder %v10312_v26, 0 }
 0x621   : > { %v10361_v55 = vshrl.u32 %v2304_v3, 5  ;;  %v2306_v58 = vand.u32 31, %v2304_v3 }
 0x622   : > { %v2411_v50 = vsub.s32 32, %v2410_v37  ;;  %v2413_v27 = vshll.u32 %v9310_v43, %v2410_v37  ;;  %v2416_v52 = vshll.u32 %v9311_v47, %v2410_v37  ;;  %v2419_v22 = vshll.u32 %v9312_v49, %v2410_v37 }
 0x623   : > { %v2422_v17 = vshll.u32 %v9313_v51, %v2410_v37  ;;  %v2425_v12 = vshll.u32 %v9314_v53, %v2410_v37  ;;  %vm2428_vm10 = vcmp.lt.s32.totalorder %v2409_v56, 1  ;;  %vm2429_vm12 = vcmp.lt.s32.totalorder %v2409_v56, 2 }
 0x624   : > { %v2414_v25 = vshrl.u32 %v9311_v47, %v2411_v50  ;;  %v2417_v7 = vshrl.u32 %v9312_v49, %v2411_v50  ;;  %v2420_v13 = vshrl.u32 %v9313_v51, %v2411_v50  ;;  %v2412_v23 = vshrl.u32 %v9310_v43, %v2411_v50 }
 0x625   : > { %v2423_v19 = vshrl.u32 %v9314_v53, %v2411_v50  ;;  %v2426_v4 = vshrl.u32 %v9315_v62, %v2411_v50  ;;  %v2307_v32 = vsub.s32 32, %v2306_v58  ;;  %vm2430_vm6 = vcmp.lt.s32.totalorder %v2409_v56, 3 }
 0x626   : > { %v2415_v54 = vor.u32 %v2414_v25, %v2413_v27  ;;  %v2418_v0 = vor.u32 %v2417_v7, %v2416_v52  ;;  %v2421_v11 = vor.u32 %v2420_v13, %v2419_v22  ;;  %vm2431_vm3 = vcmp.lt.s32.totalorder %v2409_v56, 4 }
 0x627   : > { %v2424_v16 = vor.u32 %v2423_v19, %v2422_v17  ;;  %v2427_v24 = vor.u32 %v2426_v4, %v2425_v12  ;;  %v2309_v21 = vshll.u32 %v9310_v43, %v2306_v58  ;;  %v2310_v6 = vshrl.u32 %v9311_v47, %v2307_v32 }
 0x628   : > { %v2432_v10 = vsel %vm2428_vm10, %v2412_v23, %v2415_v54  ;;  %v2433_v28 = vsel %vm2431_vm3, %v2421_v11, 2102212464  ;;  %v2436_v34 = vsel %vm2428_vm10, %v2415_v54, %v2418_v0  ;;  %v2440_v2 = vsel %vm2428_vm10, %v2418_v0, %v2421_v11 }
 0x629   : > { %v2434_v60 = vsel %vm2430_vm6, %v2418_v0, %v2433_v28  ;;  %v2437_v59 = vsel %vm2431_vm3, %v2424_v16, 920167782  ;;  %v2441_v15 = vsel %vm2431_vm3, %v2427_v24, 1326507024  ;;  %v2312_v61 = vshll.u32 %v9311_v47, %v2306_v58 }
 0x62a   : > { %v2438_v42 = vsel %vm2430_vm6, %v2421_v11, %v2437_v59  ;;  %v2442_v46 = vsel %vm2430_vm6, %v2424_v16, %v2441_v15  ;;  %v2435_v35 = vsel %vm2429_vm12, %v2432_v10, %v2434_v60  ;;  %v2313_v3 = vshrl.u32 %v9312_v49, %v2307_v32 }
 0x62b   : > { %v2439_v31 = vsel %vm2429_vm12, %v2436_v34, %v2438_v42  ;;  %v2443_v37 = vsel %vm2429_vm12, %v2440_v2, %v2442_v46  ;;  %v2311_v17 = vor.u32 %v2310_v6, %v2309_v21  ;;  %v2315_v25 = vshll.u32 %v9312_v49, %v2306_v58 }
 0x62c   : > { %v10386_v50 = vmul.u32.u64.low %v10350_v45, %v2443_v37  ;;  %v10387_v27 = vmul.u32.u64.high %v10350_v45, %v2443_v37, %v10386_v50  ;;  %v10390_v52 = vmul.u32.u64.low %v10350_v45, %v2439_v31  ;;  %v10391_v22 = vmul.u32.u64.high %v10350_v45, %v2439_v31, %v10390_v52 }
 0x62d   : > { %v2314_v12 = vor.u32 %v2313_v3, %v2312_v61  ;;  %v2316_v7 = vshrl.u32 %v9313_v51, %v2307_v32  ;;  %v2308_v13 = vshrl.u32 %v9310_v43, %v2307_v32  ;;  %v2318_v56 = vshll.u32 %v9313_v51, %v2306_v58 }
 0x62e   : > { %v2319_v23 = vshrl.u32 %v9314_v53, %v2307_v32  ;;  %v2322_v19 = vshrl.u32 %v9315_v62, %v2307_v32  ;;  %v2451_v4 = vmul.u32 %v10350_v45, %v2435_v35  ;;  %v2321_v0 = vshll.u32 %v9314_v53, %v2306_v58 }
 0x62f   : > { %v2317_v54 = vor.u32 %v2316_v7, %v2315_v25  ;;  %vm2324_vm2 = vcmp.lt.s32.totalorder %v10361_v55, 1  ;;  %vm2453_vm4 = vc.u32 %v10387_v27, %v10390_v52  ;;  %v2454_v11 = vadd.s32 1, %v10391_v22 }
 0x630   : > { %v2320_v16 = vor.u32 %v2319_v23, %v2318_v56  ;;  %vm2325_vm13 = vcmp.lt.s32.totalorder %v10361_v55, 2  ;;  %v2323_v24 = vor.u32 %v2322_v19, %v2321_v0  ;;  %vm2326_vm11 = vcmp.lt.s32.totalorder %v10361_v55, 3 }
 0x631   : > { %vm2327_vm15 = vcmp.lt.s32.totalorder %v10361_v55, 4  ;;  %v2332_v32 = vsel %vm2324_vm2, %v2311_v17, %v2314_v12  ;;  %v2455_v45 = vsel %vm2453_vm4, %v2454_v11, %v10391_v22  ;;  %v2336_v58 = vsel %vm2324_vm2, %v2314_v12, %v2317_v54 }
 0x632   : > { %v2329_v10 = vsel %vm2327_vm15, %v2317_v54, 2102212464  ;;  %v2333_v28 = vsel %vm2327_vm15, %v2320_v16, 920167782  ;;  %v2456_v34 = vadd.s32 %v2455_v45, %v2451_v4  ;;  %v2328_v2 = vsel %vm2324_vm2, %v2308_v13, %v2311_v17 }
 0x633   : > { %v2334_v60 = vsel %vm2326_vm11, %v2317_v54, %v2333_v28  ;;  %v2337_v59 = vsel %vm2327_vm15, %v2323_v24, 1326507024  ;;  %v2330_v15 = vsel %vm2326_vm11, %v2314_v12, %v2329_v10  ;;  %v2614_v46 = vadd.s32 1, %v10354_v9 }
 0x634   : > { %v2335_v21 = vsel %vm2325_vm13, %v2332_v32, %v2334_v60  ;;  %v2338_v42 = vsel %vm2326_vm11, %v2320_v16, %v2337_v59  ;;  %v2457_v6 = vadd.s32 536870912, %v2456_v34  ;;  %v2331_v22 = vsel %vm2325_vm13, %v2328_v2, %v2330_v15 }
 0x635   : > { %v2339_v61 = vsel %vm2325_vm13, %v2336_v58, %v2338_v42  ;;  %v10414_v35 = vmul.u32.u64.low %v10352_v20, %v2335_v21  ;;  %v10415_v31 = vmul.u32.u64.high %v10352_v20, %v2335_v21, %v10414_v35  ;;  %vm2615_vm7 = vcmp.gt.s32.totalorder %v2614_v46, 0 }
 0x636   : > { %v10419_v37 = vmul.u32.u64.low %v10352_v20, %v2339_v61  ;;  %v10420_v3 = vmul.u32.u64.high %v10352_v20, %v2339_v61, %v10419_v37  ;;  %v2458_v50 = vshrl.u32 %v2457_v6, 30  ;;  %v2616_v17 = vsel %vm2615_vm7, %v2614_v46, 0 }
 0x637   : > { %v2618_v9 = vand.u32 31, %v2616_v17  ;;  %v2503_v12 = vand.u32 2139095040, %v10348_v14  ;;  %v2350_v7 = vadd.s32 1, %v10415_v31  ;;  %v2612_v13 = vor.u32 8388608, %v10358_v29 }
 0x638   : > { %v2459_v25 = vshll.u32 %v2458_v50, 30  ;;  %v2347_v56 = vmul.u32 %v10352_v20, %v2331_v22  ;;  %vm2349_vm5 = vc.u32 %v10420_v3, %v10414_v35  ;;  %v2500_v29 = vand.u32 2147483647, %v10348_v14 }
 0x639   : > { %v2619_v23 = vsub.s32 32, %v2618_v9  ;;  %v2351_v55 = vsel %vm2349_vm5, %v2350_v7, %v10415_v31  ;;  %v2504_v54 = vshrl.u32 %v2503_v12, 23  ;;  %v10435_v11 = vshll.u32 %v2612_v13, 8 }
 0x63a   : > { %v10430_v19 = vsub.s32 %v2456_v34, %v2459_v25  ;;  %v2352_v4 = vadd.s32 %v2351_v55, %v2347_v56  ;;  %v2452_v20 = vadd.s32 %v10390_v52, %v10387_v27  ;;  %v2482_v16 = vsub.s32 4, %v2458_v50 }
 0x63b   : > { %v2622_v32 = vshrl.u32 %v9311_v47, %v2619_v23  ;;  %v2617_v10 = vshrl.u32 %v2616_v17, 5  ;;  %v2625_v28 = vshrl.u32 %v9312_v49, %v2619_v23  ;;  %v2628_v58 = vshrl.u32 %v9313_v51, %v2619_v23 }
 0x63c   : > { %v2462_v0 = vsub.s32 0, %v10430_v19  ;;  %v2353_v24 = vadd.s32 536870912, %v2352_v4  ;;  %v2621_v2 = vshll.u32 %v9310_v43, %v2618_v9  ;;  %v2631_v60 = vshrl.u32 %v9314_v53, %v2619_v23 }
 0x63d   : > { %v7790_v59 = vadd.s32 4294967169, %v2504_v54  ;;  %vm2294_vm10 = vcmp.lt.s32.totalorder %v10318_v33, 0  ;;  %v2624_v27 = vshll.u32 %v9311_v47, %v2618_v9  ;;  %v2627_v52 = vshll.u32 %v9312_v49, %v2618_v9 }
 0x63e   : > { %v7787_v45 = vmin.u32 %v2462_v0, %v10430_v19  ;;  %v2354_v34 = vshrl.u32 %v2353_v24, 30  ;;  %v2634_v21 = vshrl.u32 %v9315_v62, %v2619_v23  ;;  %v10451_v42 = vsel %vm2398_vm9, %v2482_v16, %v2458_v50 }
 0x63f   : > { %v2623_v6 = vor.u32 %v2622_v32, %v2621_v2  ;;  %v2630_v61 = vshll.u32 %v9313_v51, %v2618_v9  ;;  %v2626_v37 = vor.u32 %v2625_v28, %v2624_v27  ;;  %v2629_v22 = vor.u32 %v2628_v58, %v2627_v52 }
 0x640   : > { %v2464_v15 = vclz %v7787_v45  ;;  %v2355_v46 = vshll.u32 %v2354_v34, 30  ;;  %v2633_v17 = vshll.u32 %v9314_v53, %v2618_v9  ;;  %v2378_v25 = vsub.s32 4, %v2354_v34 }
 0x641   : > { %v2620_v7 = vshrl.u32 %v9310_v43, %v2619_v23  ;;  %v2632_v13 = vor.u32 %v2631_v60, %v2630_v61  ;;  %vm10460_vm12 = vcmp.le.f32.partialorder %v2396_v18, 0.7853982  ;;  %vm2636_vm3 = vcmp.lt.s32.totalorder %v2617_v10, 1 }
 0x642   : > { %v7788_v31 = vadd.s32 4294967294, %v2464_v15  ;;  %v10455_v12 = vsub.s32 %v2352_v4, %v2355_v46  ;;  %v2635_v56 = vor.u32 %v2634_v21, %v2633_v17  ;;  %vm2637_vm2 = vcmp.lt.s32.totalorder %v2617_v10, 2 }
 0x643   : > { %vm10466_vm4 = vcmp.le.f32.partialorder %v2292_v1, 0.7853982  ;;  %vm2638_vm13 = vcmp.lt.s32.totalorder %v2617_v10, 3  ;;  %vm2639_vm11 = vcmp.lt.s32.totalorder %v2617_v10, 4  ;;  %v2644_v0 = vsel %vm2636_vm3, %v2623_v6, %v2626_v37 }
 0x644   : > { %vm7789_vm6 = vcmp.lt.s32.totalorder %v7788_v31, 0  ;;  %v2358_v23 = vsub.s32 0, %v10455_v12  ;;  %v2641_v54 = vsel %vm2639_vm11, %v2629_v22, 2102212464  ;;  %v2645_v32 = vsel %vm2639_vm11, %v2632_v13, 920167782 }
 0x645   : > { %v2467_v55 = vsel %vm7789_vm6, 0, %v7788_v31  ;;  %v2648_v45 = vsel %vm2636_vm3, %v2626_v37, %v2629_v22  ;;  %v2646_v58 = vsel %vm2638_vm13, %v2629_v22, %v2645_v32  ;;  %v2649_v2 = vsel %vm2639_vm11, %v2635_v56, 1326507024 }
 0x646   : > { %v2468_v4 = vsub.s32 32, %v2467_v55  ;;  %v2472_v18 = vsub.s32 4294967266, %v2467_v55  ;;  %v2469_v16 = vshll.u32 %v10430_v19, %v2467_v55  ;;  %v7783_v24 = vmin.u32 %v2358_v23, %v10455_v12 }
 0x647   : > { %v2379_v15 = vsel %vm2294_vm10, %v2378_v25, %v2354_v34  ;;  %v2640_v27 = vsel %vm2636_vm3, %v2620_v7, %v2623_v6  ;;  %v2642_v52 = vsel %vm2638_vm13, %v2626_v37, %v2641_v54  ;;  %v2647_v46 = vsel %vm2637_vm2, %v2644_v0, %v2646_v58 }
 0x648   : > { %v2470_v1 = vshrl.u32 %v2452_v20, %v2468_v4  ;;  %v2473_v28 = vadd.s32 127, %v2472_v18  ;;  %v2360_v60 = vclz %v7783_v24  ;;  %v2650_v61 = vsel %vm2638_vm13, %v2632_v13, %v2649_v2 }
 0x649   : > { %v2651_v20 = vsel %vm2637_vm2, %v2648_v45, %v2650_v61  ;;  %v10484_v22 = vmul.u32.u64.low %v10435_v11, %v2647_v46  ;;  %v10485_v17 = vmul.u32.u64.high %v10435_v11, %v2647_v46, %v10484_v22  ;;  %v2643_v34 = vsel %vm2637_vm2, %v2640_v27, %v2642_v52  ;;  %v10513_v46 = vld [vmem:[#allocation2 + $0x3] ss:$0 sm:$0xff] }
 0x64a   : > { %v2471_v21 = vor.u32 %v2470_v1, %v2469_v16  ;;  %v2474_v19 = vshll.u32 %v2473_v28, 23  ;;  %v7784_v31 = vadd.s32 4294967294, %v2360_v60  ;;  %v2485_v25 = vsel %vm10460_vm12, 0, %v10451_v42 }
 0x64b   : > { %v10490_v6 = vmul.u32.u64.low %v10435_v11, %v2651_v20  ;;  %v10491_v37 = vmul.u32.u64.high %v10435_v11, %v2651_v20, %v10490_v6  ;;  %v2348_v7 = vadd.s32 %v10414_v35, %v10420_v3  ;;  %v2510_v13 = vadd.s32 1, %v7790_v59 }
 0x64c   : > { %v2475_v56 = vor.u32 4788187, %v2474_v19  ;;  %vm7785_vm15 = vcmp.lt.s32.totalorder %v7784_v31, 0  ;;  %v2478_v23 = vcvt.s32.f32 %v2471_v21  ;;  %v2381_v10 = vsel %vm10466_vm4, 0, %v2379_v15 }
 0x64d   : > { %v2363_v4 = vsel %vm7785_vm15, 0, %v7784_v31  ;;  %v2659_v0 = vmul.u32 %v10435_v11, %v2643_v34  ;;  %v2662_v16 = vadd.s32 1, %v10485_v17  ;;  %vm2661_vm7 = vc.u32 %v10491_v37, %v10484_v22 }
 0x64e   : > { %v2476_v55 = vand.u32 2147483647, %v2475_v56  ;;  %v2364_v18 = vsub.s32 32, %v2363_v4  ;;  %v2368_v54 = vsub.s32 4294967266, %v2363_v4  ;;  %v2365_v42 = vshll.u32 %v10455_v12, %v2363_v4 }
 0x64f   : > { %vm2511_vm5 = vcmp.gt.s32.totalorder %v2510_v13, 0  ;;  %v2663_v59 = vsel %vm2661_vm7, %v2662_v16, %v10485_v17  ;;  %v2489_v1 = vadd.s32 3, %v2485_v25  ;;  %v2507_v60 = vand.u32 8388607, %v2500_v29 }
 0x650   : > { %v2479_v24 = vmul.f32 %v2478_v23, %v2476_v55  ;;  %v2366_v35 = vshrl.u32 %v2348_v7, %v2364_v18  ;;  %v2369_v3 = vadd.s32 127, %v2368_v54  ;;  %v2512_v32 = vsel %vm2511_vm5, %v2510_v13, 0 }
 0x651   : > { %v2664_v28 = vadd.s32 %v2663_v59, %v2659_v0  ;;  %v2514_v58 = vand.u32 31, %v2512_v32  ;;  %v2385_v15 = vadd.s32 3, %v2381_v10  ;;  %v10517_v61 = vmul.f32 %v10513_v46, %v10306_v44 }
 0x652   : > { %v2480_v45 = vxor.u32 2147483648, %v2479_v24  ;;  %v2367_v2 = vor.u32 %v2366_v35, %v2365_v42  ;;  %v2370_v11 = vshll.u32 %v2369_v3, 23  ;;  %v10519_v31 = vand.u32 3, %v2489_v1 }
 0x653   : > { %v2665_v27 = vadd.s32 536870912, %v2664_v28  ;;  %v2515_v52 = vsub.s32 32, %v2514_v58  ;;  %v10525_v17 = vmul.f32 %v10513_v46, %v10314_v48  ;;  %v10527_v34 = vand.u32 3, %v2385_v15 }
 0x654   : > { %v2481_v12 = vsel %vm2398_vm9, %v2480_v45, %v2479_v24  ;;  %v2371_v19 = vor.u32 4788187, %v2370_v11  ;;  %v2374_v50 = vcvt.s32.f32 %v2367_v2  ;;  %v2508_v25 = vor.u32 8388608, %v2507_v60 }
 0x655   : > { %v2484_v21 = vsel %vm10460_vm12, %v10312_v26, %v2481_v12  ;;  %v10521_v20 = vshrl.u32 %v2665_v27, 30  ;;  %v2518_v44 = vshrl.u32 %v9311_v47, %v2515_v52  ;;  %v2524_v13 = vshrl.u32 %v9313_v51, %v2515_v52 }
 0x656   : > { %9037 = vcosq.f32 %v2484_v21  ;;  %v2372_v56 = vand.u32 2147483647, %v2371_v19  ;;  %v2526_v55 = vshll.u32 %v9313_v51, %v2514_v58  ;;  %v2527_v23 = vshrl.u32 %v9314_v53, %v2515_v52 }
 0x657   : > { %9039 = vsinq.f32 %v2484_v21  ;;  %v2667_v6 = vshll.u32 %v10521_v20, 30  ;;  %vm2495_vm9 = vcmp.eq.s32.totalorder %v10519_v31, 2  ;;  %v10537_v4 = vshrl.u32 %v2512_v32, 5 }
 0x658   : > { %v2375_v7 = vmul.f32 %v2374_v50, %v2372_v56  ;;  %v2517_v10 = vshll.u32 %v9310_v43, %v2514_v58  ;;  %v2521_v18 = vshrl.u32 %v9312_v49, %v2515_v52  ;;  %vm2492_vm12 = vcmp.eq.s32.totalorder %v10519_v31, 0 }
 0x659   : > { %v10535_v48 = vsub.s32 %v2664_v28, %v2667_v6  ;;  %v2523_v0 = vshll.u32 %v9312_v49, %v2514_v58  ;;  %v2528_v16 = vor.u32 %v2527_v23, %v2526_v55  ;;  %v2530_v24 = vshrl.u32 %v9315_v62, %v2515_v52 }
 0x65a   : > { %v2376_v54 = vxor.u32 2147483648, %v2375_v7  ;;  %vm2491_vm6 = vcmp.lt.s32.totalorder %v10519_v31, 2  ;;  %v2660_v42 = vadd.s32 %v10484_v22, %v10491_v37  ;;  %v2520_v3 = vshll.u32 %v9311_v47, %v2514_v58 }
 0x65b   : > { %v2670_v35 = vsub.s32 0, %v10535_v48  ;;  %v10551_v59 = vadd.f32 %v10308_v41, %v10338_v39  ;;  %vm2488_vm3 = vweird.f32 %v10312_v26  ;;  %v2519_v45 = vor.u32 %v2518_v44, %v2517_v10 }
 0x65c   : > { %v2377_v32 = vsel %vm2294_vm10, %v2376_v54, %v2375_v7  ;;  %v2525_v1 = vor.u32 %v2524_v13, %v2523_v0  ;;  %v2529_v28 = vshll.u32 %v9314_v53, %v2514_v58  ;;  %v2522_v2 = vor.u32 %v2521_v18, %v2520_v3 }
 0x65d   : > { %v2380_v22 = vsel %vm10466_vm4, %v10318_v33, %v2377_v32  ;;  %v7795_v37 = vmin.u32 %v2670_v35, %v10535_v48  ;;  %vm2535_vm2 = vcmp.lt.s32.totalorder %v10537_v4, 4  ;;  %v10564_v12 = vshll.u32 %v2508_v25, 8 }
 0x65e   : > { %9041 = vcosq.f32 %v2380_v22  ;;  %v2531_v11 = vor.u32 %v2530_v24, %v2529_v28  ;;  %v2541_v60 = vsel %vm2535_vm2, %v2528_v16, 920167782  ;;  %v2516_v58 = vshrl.u32 %v9310_v43, %v2515_v52 }
 0x65f   : > { %9043 = vsinq.f32 %v2380_v22  ;;  %v2672_v27 = vclz %v7795_v37  ;;  %vm2532_vm10 = vcmp.lt.s32.totalorder %v10537_v4, 1  ;;  %vm2533_vm4 = vcmp.lt.s32.totalorder %v10537_v4, 2 }
 0x660   : > { %v9038_v15 = vpop.eup %9037  ;;  %vm2534_vm13 = vcmp.lt.s32.totalorder %v10537_v4, 3  ;;  %v2537_v19 = vsel %vm2535_vm2, %v2525_v1, 2102212464  ;;  %v2540_v6 = vsel %vm2532_vm10, %v2519_v45, %v2522_v2  ;;  %v2536_v7 = vsel %vm2532_vm10, %v2516_v58, %v2519_v45 }
 0x661   : > { %v9040_v9 = vpop.eup %9039  ;;  %v2496_v21 = vxor.u32 2147483648, %v9038_v15  ;;  %v7796_v50 = vadd.s32 4294967294, %v2672_v27  ;;  %v2542_v25 = vsel %vm2534_vm13, %v2525_v1, %v2541_v60  ;;  %v2544_v52 = vsel %vm2532_vm10, %v2522_v2, %v2525_v1 }
 0x662   : > { %v2493_v56 = vxor.u32 2147483648, %v9040_v9  ;;  %v2545_v13 = vsel %vm2535_vm2, %v2531_v11, 1326507024  ;;  %v2538_v23 = vsel %vm2534_vm13, %v2522_v2, %v2537_v19  ;;  %v2543_v0 = vsel %vm2533_vm4, %v2540_v6, %v2542_v25 }
 0x663   : > { %v2497_v44 = vsel %vm2495_vm9, %v2496_v21, %v9040_v9  ;;  %vm7797_vm11 = vcmp.lt.s32.totalorder %v7796_v50, 0  ;;  %v2546_v10 = vsel %vm2534_vm13, %v2528_v16, %v2545_v13  ;;  %vm2384_vm15 = vweird.f32 %v10318_v33  ;;  %v10588_v16 = vld [vmem:[#allocation2 + $0x4] ss:$0 sm:$0xff] }
 0x664   : > { %v2494_v55 = vsel %vm2492_vm12, %v9038_v15, %v2493_v56  ;;  %v2675_v54 = vsel %vm7797_vm11, 0, %v7796_v50  ;;  %v2547_v24 = vsel %vm2533_vm4, %v2544_v52, %v2546_v10  ;;  %v2815_v22 = vand.u32 2139095040, %v10551_v59 }
 0x665   : > { %v2498_v18 = vsel %vm2491_vm6, %v2494_v55, %v2497_v44  ;;  %v2676_v3 = vsub.s32 32, %v2675_v54  ;;  %v2677_v32 = vshll.u32 %v10535_v48, %v2675_v54  ;;  %v2680_v45 = vsub.s32 4294967266, %v2675_v54 }
 0x666   : > { %v2499_v35 = vsel %vm2488_vm3, nan, %v2498_v18  ;;  %v10592_v1 = vmul.u32.u64.low %v10564_v12, %v2547_v24  ;;  %v10593_v28 = vmul.u32.u64.high %v10564_v12, %v2547_v24, %v10592_v1  ;;  %vm2387_vm7 = vcmp.lt.s32.totalorder %v10527_v34, 2 }
 0x667   : > { %v3125_v31 = vmul.f32 %v10588_v16, %v2499_v35  ;;  %v2678_v37 = vshrl.u32 %v2660_v42, %v2676_v3  ;;  %v2681_v2 = vadd.s32 127, %v2680_v45  ;;  %vm2388_vm5 = vcmp.eq.s32.totalorder %v10527_v34, 0 }
 0x668   : > { %v10597_v26 = vmul.u32.u64.low %v10564_v12, %v2543_v0  ;;  %v10598_v11 = vmul.u32.u64.high %v10564_v12, %v2543_v0, %v10597_v26  ;;  %v9042_v60 = vpop.eup %9041  ;;  %v2816_v15 = vshrl.u32 %v2815_v22, 23  ;;  %v2539_v42 = vsel %vm2533_vm4, %v2536_v7, %v2538_v23 }
 0x669   : > { %v3133_v48 = vadd.f32 %v3125_v31, %v10517_v61  ;;  %v9044_v27 = vpop.eup %9043  ;;  %v2392_v58 = vxor.u32 2147483648, %v9042_v60  ;;  %v2679_v9 = vor.u32 %v2678_v37, %v2677_v32  ;;  %v2682_v21 = vshll.u32 %v2681_v2, 23  ;;  %v8945_v31 = vld [vmem:[%s12970_s2] sm:$0xff]  }
 0x66a   : > { %v2389_v19 = vxor.u32 2147483648, %v9044_v27  ;;  %vm2391_vm9 = vcmp.eq.s32.totalorder %v10527_v34, 2  ;;  %vm2557_vm12 = vc.u32 %v10593_v28, %v10597_v26  ;;  %v7802_v56 = vadd.s32 4294967169, %v2816_v15  ;;  %8403 = vmatprep.subr.bf16.mxu1 %v8945_v31 }
 0x66b   : > { %v2393_v61 = vsel %vm2391_vm9, %v2392_v58, %v9044_v27  ;;  %v2683_v50 = vor.u32 4788187, %v2682_v21  ;;  %v2558_v6 = vadd.s32 1, %v10598_v11  ;;  %v2812_v25 = vand.u32 2147483647, %v10551_v59  ;;  %8404 = vmatpush3.bf16.msra.mxu1 %v8945_v31 }
 0x66c   : > { %v2390_v44 = vsel %vm2388_vm5, %v9042_v60, %v2389_v19  ;;  %v2690_v52 = vsub.s32 4, %v10521_v20  ;;  %v2555_v4 = vmul.u32 %v10564_v12, %v2539_v42  ;;  %v2822_v7 = vadd.s32 1, %v7802_v56 }
 0x66d   : > { %v2394_v13 = vsel %vm2387_vm7, %v2390_v44, %v2393_v61  ;;  %v2684_v55 = vand.u32 2147483647, %v2683_v50  ;;  %v2686_v23 = vcvt.s32.f32 %v2679_v9  ;;  %v2559_v10 = vsel %vm2557_vm12, %v2558_v6, %v10598_v11 }
 0x66e   : > { %v2395_v18 = vsel %vm2384_vm15, nan, %v2394_v13  ;;  %vm2606_vm6 = vcmp.lt.s32.totalorder %v10336_v57, 0  ;;  %v2560_v54 = vadd.s32 %v2559_v10, %v2555_v4  ;;  %vm2823_vm3 = vcmp.gt.s32.totalorder %v2822_v7, 0 }
 0x66f   : > { %v3124_v0 = vmul.f32 %v10588_v16, %v2395_v18  ;;  %v2687_v24 = vmul.f32 %v2686_v23, %v2684_v55  ;;  %v2819_v12 = vand.u32 8388607, %v2812_v25  ;;  %v2824_v35 = vsel %vm2823_vm3, %v2822_v7, 0 }
 0x670   : > { %v2691_v34 = vsel %vm2606_vm6, %v2690_v52, %v10521_v20  ;;  %v2561_v3 = vadd.s32 536870912, %v2560_v54  ;;  %v2826_v32 = vand.u32 31, %v2824_v35  ;;  %vm10630_vm2 = vcmp.le.f32.partialorder %v2604_v36, 0.7853982 }
 0x671   : > { %v3132_v33 = vadd.f32 %v3124_v0, %v10525_v17  ;;  %v2688_v45 = vxor.u32 2147483648, %v2687_v24  ;;  %v2693_v20 = vsel %vm10630_vm2, 0, %v2691_v34  ;;  %v2820_v11 = vor.u32 8388608, %v2819_v12 }
 0x672   : > { %v10634_v1 = vshrl.u32 %v2561_v3, 30  ;;  %v2827_v22 = vsub.s32 32, %v2826_v32  ;;  %v2829_v60 = vshll.u32 %v9310_v43, %v2826_v32  ;;  %v2832_v15 = vshll.u32 %v9311_v47, %v2826_v32 }
 0x673   : > { %v3140_v37 = vpack.c.bf16 %v3133_v48, %v3132_v33  ;;  %v2689_v2 = vsel %vm2606_vm6, %v2688_v45, %v2687_v24  ;;  %v2835_v58 = vshll.u32 %v9312_v49, %v2826_v32  ;;  %v2825_v42 = vshrl.u32 %v2824_v35, 5 }
 0x674   : > { %v2692_v17 = vsel %vm10630_vm2, %v10336_v57, %v2689_v2  ;;  %v2563_v36 = vshll.u32 %v10634_v1, 30  ;;  %v2830_v27 = vshrl.u32 %v9311_v47, %v2827_v22  ;;  %v2833_v48 = vshrl.u32 %v9312_v49, %v2827_v22 }
 0x675   : > { %v2836_v9 = vshrl.u32 %v9313_v51, %v2827_v22  ;;  %8411 = vmatprep.mubr.msk.bf16.mxu1 %vm1443_vm14, %v3140_v37  ;;  %v2838_v19 = vshll.u32 %v9313_v51, %v2826_v32  ;;  %v2839_v56 = vshrl.u32 %v9314_v53, %v2827_v22  ;;  %9045 = vcosq.f32 %v2692_v17 }
 0x676   : > { %v10651_v21 = vsub.s32 %v2560_v54, %v2563_v36  ;;  %v2831_v61 = vor.u32 %v2830_v27, %v2829_v60  ;;  %v2834_v50 = vor.u32 %v2833_v48, %v2832_v15  ;;  %9047 = vsinq.f32 %v2692_v17 }
 0x677   : > { %v2837_v6 = vor.u32 %v2836_v9, %v2835_v58  ;;  %v2840_v52 = vor.u32 %v2839_v56, %v2838_v19  ;;  %v10658_v4 = vadd.f32 %v10308_v41, %v10341_v63  ;;  %v2697_v7 = vadd.s32 3, %v2693_v20 }
 0x678   : > { %v2566_v44 = vsub.s32 0, %v10651_v21  ;;  %v2841_v13 = vshll.u32 %v9314_v53, %v2826_v32  ;;  %v2842_v55 = vshrl.u32 %v9315_v62, %v2827_v22  ;;  %v10662_v23 = vshll.u32 %v2820_v11, 8 }
 0x679   : > { %v2828_v18 = vshrl.u32 %v9310_v43, %v2827_v22  ;;  %vm2844_vm10 = vcmp.lt.s32.totalorder %v2825_v42, 1  ;;  %vm2847_vm4 = vcmp.lt.s32.totalorder %v2825_v42, 4  ;;  %vm2845_vm13 = vcmp.lt.s32.totalorder %v2825_v42, 2 }
 0x67a   : > { %v7791_v10 = vmin.u32 %v2566_v44, %v10651_v21  ;;  %v2843_v54 = vor.u32 %v2842_v55, %v2841_v13  ;;  %v2849_v0 = vsel %vm2847_vm4, %v2837_v6, 2102212464  ;;  %v2852_v24 = vsel %vm2844_vm10, %v2831_v61, %v2834_v50 }
 0x67b   : > { %v2853_v12 = vsel %vm2847_vm4, %v2840_v52, 920167782  ;;  %vm2846_vm11 = vcmp.lt.s32.totalorder %v2825_v42, 3  ;;  %v2711_v34 = vand.u32 2139095040, %v10658_v4  ;;  %v2848_v3 = vsel %vm2844_vm10, %v2828_v18, %v2831_v61  ;;  %v8946_v61 = vld [vmem:[%s12970_s2 + $0x8] sm:$0xff]  }
 0x67c   : > { %v2568_v35 = vclz %v7791_v10  ;;  %v2854_v32 = vsel %vm2846_vm11, %v2837_v6, %v2853_v12  ;;  %v2856_v33 = vsel %vm2844_vm10, %v2834_v50, %v2837_v6  ;;  %v2857_v45 = vsel %vm2847_vm4, %v2843_v54, 1326507024  ;;  %8405 = vmatprep.subr.bf16.mxu1 %v8946_v61 }
 0x67d   : > { %v2850_v37 = vsel %vm2846_vm11, %v2834_v50, %v2849_v0  ;;  %v2855_v2 = vsel %vm2845_vm13, %v2852_v24, %v2854_v32  ;;  %v2858_v20 = vsel %vm2846_vm11, %v2840_v52, %v2857_v45  ;;  %v2586_v11 = vsub.s32 4, %v10634_v1  ;;  %8406 = vmatpush3.bf16.msra.mxu1 %v8946_v61 }
 0x67e   : > { %v7792_v22 = vadd.s32 4294967294, %v2568_v35  ;;  %v2859_v17 = vsel %vm2845_vm13, %v2856_v33, %v2858_v20  ;;  %v10674_v36 = vmul.u32.u64.low %v10662_v23, %v2855_v2  ;;  %v10675_v60 = vmul.u32.u64.high %v10662_v23, %v2855_v2, %v10674_v36 }
 0x67f   : > { %v10680_v15 = vmul.f32 %v10513_v46, %v10326_v30  ;;  %v10683_v27 = vmul.u32.u64.low %v10662_v23, %v2859_v17  ;;  %v10684_v48 = vmul.u32.u64.high %v10662_v23, %v2859_v17, %v10683_v27  ;;  %v9046_v58 = vpop.eup %9045  ;;  %vm2502_vm7 = vcmp.lt.s32.totalorder %v10348_v14, 0 }
 0x680   : > { %vm7793_vm15 = vcmp.lt.s32.totalorder %v7792_v22, 0  ;;  %v2851_v19 = vsel %vm2845_vm13, %v2848_v3, %v2850_v37  ;;  %v2712_v56 = vshrl.u32 %v2711_v34, 23  ;;  %v9048_v50 = vpop.eup %9047  ;;  %v2698_v30 = vand.u32 3, %v2697_v7 }
 0x681   : > { %v2571_v9 = vsel %vm7793_vm15, 0, %v7792_v22  ;;  %v2556_v6 = vadd.s32 %v10597_v26, %v10593_v28  ;;  %v2587_v13 = vsel %vm2502_vm7, %v2586_v11, %v10634_v1  ;;  %v2870_v55 = vadd.s32 1, %v10675_v60  ;;  %v8947_v1 = vld [vmem:[%s12970_s2 + $0x10] sm:$0xff]  }
 0x682   : > { %v2572_v44 = vsub.s32 32, %v2571_v9  ;;  %v2576_v52 = vsub.s32 4294967266, %v2571_v9  ;;  %v2708_v42 = vand.u32 2147483647, %v10658_v4  ;;  %v7798_v10 = vadd.s32 4294967169, %v2712_v56  ;;  %8407 = vmatprep.subr.bf16.mxu1 %v8947_v1 }
 0x683   : > { %v2573_v18 = vshll.u32 %v10651_v21, %v2571_v9  ;;  %v2867_v7 = vmul.u32 %v10662_v23, %v2851_v19  ;;  %v2701_v28 = vxor.u32 2147483648, %v9048_v50  ;;  %v2704_v26 = vxor.u32 2147483648, %v9046_v58  ;;  %8408 = vmatpush3.bf16.msra.mxu1 %v8947_v1 }
 0x684   : > { %v2574_v54 = vshrl.u32 %v2556_v6, %v2572_v44  ;;  %v2577_v0 = vadd.s32 127, %v2576_v52  ;;  %vm2869_vm5 = vc.u32 %v10684_v48, %v10674_v36  ;;  %v2718_v24 = vadd.s32 1, %v7798_v10 }
 0x685   : > { %vm10707_vm9 = vcmp.le.f32.partialorder %v2500_v29, 0.7853982  ;;  %v2871_v23 = vsel %vm2869_vm5, %v2870_v55, %v10675_v60  ;;  %vm2700_vm12 = vcmp.eq.s32.totalorder %v2698_v30, 0  ;;  %vm2703_vm6 = vcmp.eq.s32.totalorder %v2698_v30, 2 }
 0x686   : > { %v2575_v21 = vor.u32 %v2574_v54, %v2573_v18  ;;  %v2578_v35 = vshll.u32 %v2577_v0, 23  ;;  %v2872_v34 = vadd.s32 %v2871_v23, %v2867_v7  ;;  %vm2719_vm3 = vcmp.gt.s32.totalorder %v2718_v24, 0 }
 0x687   : > { %v2589_v32 = vsel %vm10707_vm9, 0, %v2587_v13  ;;  %v2715_v33 = vand.u32 8388607, %v2708_v42  ;;  %v2720_v29 = vsel %vm2719_vm3, %v2718_v24, 0  ;;  %v2702_v45 = vsel %vm2700_vm12, %v9046_v58, %v2701_v28  ;;  %v8950_v13 = vld [vmem:[%s12971_s3 + $0x8] sm:$0xff]  }
 0x688   : > { %v2579_v3 = vor.u32 4788187, %v2578_v35  ;;  %v2705_v31 = vsel %vm2703_vm6, %v2704_v26, %v9048_v50  ;;  %v2873_v22 = vadd.s32 536870912, %v2872_v34  ;;  %v2722_v37 = vand.u32 31, %v2720_v29 }
 0x689   : > { %vm2696_vm2 = vweird.f32 %v10336_v57  ;;  %v10719_v2 = vmul.f32 %v10513_v46, %v10328_v5  ;;  %v2582_v11 = vcvt.s32.f32 %v2575_v21  ;;  %vm2699_vm10 = vcmp.lt.s32.totalorder %v2698_v30, 2  ;;  %v8949_v30 = vld [vmem:[%s12971_s3] sm:$0xff]  }
 0x68a   : > { %v2580_v20 = vand.u32 2147483647, %v2579_v3  ;;  %v2593_v17 = vadd.s32 3, %v2589_v32  ;;  %v10721_v60 = vshrl.u32 %v2873_v22, 30  ;;  %v2723_v27 = vsub.s32 32, %v2722_v37  ;;  %8419 = vmatprep.subr.bf16.mxu0 %v8949_v30 }
 0x68b   : > { %v2706_v9 = vsel %vm2699_vm10, %v2702_v45, %v2705_v31  ;;  %v2716_v56 = vor.u32 8388608, %v2715_v33  ;;  %v10725_v58 = vadd.f32 %v10308_v41, %v10344_v38  ;;  %v10728_v50 = vshrl.u32 %v2720_v29, 5  ;;  %8420 = vmatpush3.bf16.msra.mxu0 %v8949_v30 }
 0x68c   : > { %v2583_v19 = vmul.f32 %v2582_v11, %v2580_v20  ;;  %v2875_v61 = vshll.u32 %v10721_v60, 30  ;;  %v2725_v5 = vshll.u32 %v9310_v43, %v2722_v37  ;;  %v2726_v46 = vshrl.u32 %v9311_v47, %v2723_v27  ;;  %8421 = vmatprep.subr.bf16.mxu0 %v8950_v13 }
 0x68d   : > { %v2729_v44 = vshrl.u32 %v9312_v49, %v2723_v27  ;;  %v2732_v52 = vshrl.u32 %v9313_v51, %v2723_v27  ;;  %v2735_v41 = vshrl.u32 %v9314_v53, %v2723_v27  ;;  %v2728_v10 = vshll.u32 %v9311_v47, %v2722_v37 }
 0x68e   : > { %v2584_v6 = vxor.u32 2147483648, %v2583_v19  ;;  %v10741_v55 = vsub.s32 %v2872_v34, %v2875_v61  ;;  %v2731_v18 = vshll.u32 %v9312_v49, %v2722_v37  ;;  %v2738_v54 = vshrl.u32 %v9315_v62, %v2723_v27 }
 0x68f   : > { %vm2814_vm4 = vcmp.lt.s32.totalorder %v10551_v59, 0  ;;  %v2727_v7 = vor.u32 %v2726_v46, %v2725_v5  ;;  %v2734_v28 = vshll.u32 %v9313_v51, %v2722_v37  ;;  %v2737_v26 = vshll.u32 %v9314_v53, %v2722_v37  ;;  %8422 = vmatpush3.bf16.msra.mxu0 %v8950_v13 }
 0x690   : > { %v2585_v0 = vsel %vm2502_vm7, %v2584_v6, %v2583_v19  ;;  %v2878_v1 = vsub.s32 0, %v10741_v55  ;;  %v2730_v21 = vor.u32 %v2729_v44, %v2728_v10  ;;  %v2733_v35 = vor.u32 %v2732_v52, %v2731_v18 }
 0x691   : > { %v2588_v24 = vsel %vm10707_vm9, %v10348_v14, %v2585_v0  ;;  %v10755_v23 = vand.u32 3, %v2593_v17  ;;  %v2736_v34 = vor.u32 %v2735_v41, %v2734_v28  ;;  %v2739_v3 = vor.u32 %v2738_v54, %v2737_v26 }
 0x692   : > { %9049 = vcosq.f32 %v2588_v24  ;;  %v2707_v32 = vsel %vm2696_vm2, nan, %v2706_v9  ;;  %vm10761_vm13 = vcmp.le.f32.partialorder %v2812_v25, 0.7853982  ;;  %v7803_v12 = vmin.u32 %v2878_v1, %v10741_v55 }
 0x693   : > { %9051 = vsinq.f32 %v2588_v24  ;;  %v10766_v29 = vshll.u32 %v2716_v56, 8  ;;  %v2898_v45 = vsub.s32 4, %v10721_v60  ;;  %vm2740_vm11 = vcmp.lt.s32.totalorder %v10728_v50, 1 }
 0x694   : > { %vm2742_vm15 = vcmp.lt.s32.totalorder %v10728_v50, 3  ;;  %v3023_v57 = vand.u32 2139095040, %v10725_v58  ;;  %v2880_v31 = vclz %v7803_v12  ;;  %vm2743_vm7 = vcmp.lt.s32.totalorder %v10728_v50, 4 }
 0x695   : > { %v2748_v25 = vsel %vm2740_vm11, %v2727_v7, %v2730_v21  ;;  %v2752_v22 = vsel %vm2740_vm11, %v2730_v21, %v2733_v35  ;;  %vm2599_vm5 = vcmp.eq.s32.totalorder %v10755_v23, 2  ;;  %v2724_v37 = vshrl.u32 %v9310_v43, %v2723_v27 }
 0x696   : > { %v2745_v20 = vsel %vm2743_vm7, %v2733_v35, 2102212464  ;;  %v2749_v11 = vsel %vm2743_vm7, %v2736_v34, 920167782  ;;  %v2753_v17 = vsel %vm2743_vm7, %v2739_v3, 1326507024  ;;  %vm2592_vm3 = vweird.f32 %v10348_v14 }
 0x697   : > { %vm2596_vm9 = vcmp.eq.s32.totalorder %v10755_v23, 0  ;;  %v7804_v9 = vadd.s32 4294967294, %v2880_v31  ;;  %vm2741_vm12 = vcmp.lt.s32.totalorder %v10728_v50, 2  ;;  %v2750_v19 = vsel %vm2742_vm15, %v2733_v35, %v2749_v11 }
 0x698   : > { %v2754_v56 = vsel %vm2742_vm15, %v2736_v34, %v2753_v17  ;;  %vm2595_vm6 = vcmp.lt.s32.totalorder %v10755_v23, 2  ;;  %v2744_v61 = vsel %vm2740_vm11, %v2724_v37, %v2727_v7  ;;  %v2746_v27 = vsel %vm2742_vm15, %v2730_v21, %v2745_v20 }
 0x699   : > { %v2751_v5 = vsel %vm2741_vm12, %v2748_v25, %v2750_v19  ;;  %v2755_v46 = vsel %vm2741_vm12, %v2752_v22, %v2754_v56  ;;  %vm7805_vm2 = vcmp.lt.s32.totalorder %v7804_v9, 0  ;;  %v2899_v30 = vsel %vm2814_vm4, %v2898_v45, %v10721_v60 }
 0x69a   : > { %v10799_v6 = vmul.u32.u64.low %v10766_v29, %v2755_v46  ;;  %v10800_v44 = vmul.u32.u64.high %v10766_v29, %v2755_v46, %v10799_v6  ;;  %v2883_v52 = vsel %vm7805_vm2, 0, %v7804_v9  ;;  %v3024_v10 = vshrl.u32 %v3023_v57, 23 }
 0x69b   : > { %v10803_v41 = vmul.u32.u64.low %v10766_v29, %v2751_v5  ;;  %v10804_v13 = vmul.u32.u64.high %v10766_v29, %v2751_v5, %v10803_v41  ;;  %v2868_v18 = vadd.s32 %v10674_v36, %v10684_v48  ;;  %v2884_v54 = vsub.s32 32, %v2883_v52 }
 0x69c   : > { %v2888_v0 = vsub.s32 4294967266, %v2883_v52  ;;  %v2747_v7 = vsel %vm2741_vm12, %v2744_v61, %v2746_v27  ;;  %v9050_v60 = vpop.eup %9049  ;;  %v3127_v28 = vmul.f32 %v10588_v16, %v2707_v32  ;;  %v2901_v26 = vsel %vm10761_vm13, 0, %v2899_v30 }
 0x69d   : > { %v3020_v24 = vand.u32 2147483647, %v10725_v58  ;;  %v7810_v1 = vadd.s32 4294967169, %v3024_v10  ;;  %v9052_v21 = vpop.eup %9051  ;;  %v2600_v35 = vxor.u32 2147483648, %v9050_v60  ;;  %v2885_v34 = vshll.u32 %v10741_v55, %v2883_v52 }
 0x69e   : > { %v2886_v3 = vshrl.u32 %v2868_v18, %v2884_v54  ;;  %v2889_v36 = vadd.s32 127, %v2888_v0  ;;  %v2597_v48 = vxor.u32 2147483648, %v9052_v21  ;;  %v2763_v12 = vmul.u32 %v10766_v29, %v2747_v7  ;;  %v9139_v29 = vld [vmem:[#allocation2 + $0x5] ss:$0 sm:$0xff] }
 0x69f   : > { %vm2765_vm10 = vc.u32 %v10800_v44, %v10803_v41  ;;  %v2766_v50 = vadd.s32 1, %v10804_v13  ;;  %v2601_v32 = vsel %vm2599_vm5, %v2600_v35, %v9052_v21  ;;  %v3030_v31 = vadd.s32 1, %v7810_v1 }
 0x6a0   : > { %v2887_v45 = vor.u32 %v2886_v3, %v2885_v34  ;;  %v2890_v57 = vshll.u32 %v2889_v36, 23  ;;  %v10823_v25 = vadd.f32 %v3127_v28, %v10680_v15  ;;  %v2598_v55 = vsel %vm2596_vm9, %v9050_v60, %v2597_v48 }
 0x6a1   : > { %v2767_v22 = vsel %vm2765_vm10, %v2766_v50, %v10804_v13  ;;  %v10829_v37 = vadd.f32 %v9139_v29, %v10363_v8  ;;  %v2602_v20 = vsel %vm2595_vm6, %v2598_v55, %v2601_v32  ;;  %v2905_v17 = vadd.s32 3, %v2901_v26 }
 0x6a2   : > { %v2891_v11 = vor.u32 4788187, %v2890_v57  ;;  %v2768_v9 = vadd.s32 %v2767_v22, %v2763_v12  ;;  %v2603_v19 = vsel %vm2592_vm3, nan, %v2602_v20  ;;  %v2894_v15 = vcvt.s32.f32 %v2887_v45 }
 0x6a3   : > { %v3027_v56 = vand.u32 8388607, %v3020_v24  ;;  %vm3031_vm11 = vcmp.gt.s32.totalorder %v3030_v31, 0  ;;  %v3126_v61 = vmul.f32 %v10588_v16, %v2603_v19  ;;  %v2919_v23 = vand.u32 2139095040, %v10829_v37 }
 0x6a4   : > { %v2892_v27 = vand.u32 2147483647, %v2891_v11  ;;  %v2769_v5 = vadd.s32 536870912, %v2768_v9  ;;  %v3032_v46 = vsel %vm3031_vm11, %v3030_v31, 0  ;;  %v10844_v14 = vand.u32 3, %v2905_v17 }
 0x6a5   : > { %v3034_v30 = vand.u32 31, %v3032_v46  ;;  %v10840_v6 = vadd.f32 %v3126_v61, %v10719_v2  ;;  %v3028_v10 = vor.u32 8388608, %v3027_v56  ;;  %v2916_v60 = vand.u32 2147483647, %v10829_v37 }
 0x6a6   : > { %v2895_v52 = vmul.f32 %v2894_v15, %v2892_v27  ;;  %v10842_v13 = vshrl.u32 %v2769_v5, 30  ;;  %v2920_v1 = vshrl.u32 %v2919_v23, 23  ;;  %v3033_v48 = vshrl.u32 %v3032_v46, 5 }
 0x6a7   : > { %v3035_v18 = vsub.s32 32, %v3034_v30  ;;  %v3141_v54 = vpack.c.bf16 %v10823_v25, %v10840_v6  ;;  %v3037_v34 = vshll.u32 %v9310_v43, %v3034_v30  ;;  %v3040_v3 = vshll.u32 %v9311_v47, %v3034_v30 }
 0x6a8   : > { %v2896_v0 = vxor.u32 2147483648, %v2895_v52  ;;  %v2771_v7 = vshll.u32 %v10842_v13, 30  ;;  %v3043_v12 = vshll.u32 %v9312_v49, %v3034_v30  ;;  %v10863_v50 = vshll.u32 %v3028_v10, 8 }
 0x6a9   : > { %v3038_v28 = vshrl.u32 %v9311_v47, %v3035_v18  ;;  %v3041_v2 = vshrl.u32 %v9312_v49, %v3035_v18  ;;  %v3044_v26 = vshrl.u32 %v9313_v51, %v3035_v18  ;;  %v3046_v31 = vshll.u32 %v9313_v51, %v3034_v30 }
 0x6aa   : > { %v2897_v21 = vsel %vm2814_vm4, %v2896_v0, %v2895_v52  ;;  %v10855_v35 = vsub.s32 %v2768_v9, %v2771_v7  ;;  %v3047_v22 = vshrl.u32 %v9314_v53, %v3035_v18  ;;  %v3049_v29 = vshll.u32 %v9314_v53, %v3034_v30 }
 0x6ab   : > { %v2900_v36 = vsel %vm10761_vm13, %v10551_v59, %v2897_v21  ;;  %v3039_v45 = vor.u32 %v3038_v28, %v3037_v34  ;;  %v3042_v57 = vor.u32 %v3041_v2, %v3040_v3  ;;  %v3045_v55 = vor.u32 %v3044_v26, %v3043_v12 }
 0x6ac   : > { %v2774_v32 = vsub.s32 0, %v10855_v35  ;;  %v3050_v20 = vshrl.u32 %v9315_v62, %v3035_v18  ;;  %9053 = vcosq.f32 %v2900_v36  ;;  %vm2710_vm4 = vcmp.lt.s32.totalorder %v10658_v4, 0 }
 0x6ad   : > { %v2794_v11 = vsub.s32 4, %v10842_v13  ;;  %v7806_v17 = vadd.s32 4294967169, %v2920_v1  ;;  %9055 = vsinq.f32 %v2900_v36  ;;  %v3036_v9 = vshrl.u32 %v9310_v43, %v3035_v18 }
 0x6ae   : > { %v7799_v33 = vmin.u32 %v2774_v32, %v10855_v35  ;;  %v3048_v19 = vor.u32 %v3047_v22, %v3046_v31  ;;  %v3051_v15 = vor.u32 %v3050_v20, %v3049_v29  ;;  %vm3052_vm13 = vcmp.lt.s32.totalorder %v3033_v48, 1 }
 0x6af   : > { %vm3053_vm15 = vcmp.lt.s32.totalorder %v3033_v48, 2  ;;  %vm3055_vm7 = vcmp.lt.s32.totalorder %v3033_v48, 4  ;;  %vm3054_vm5 = vcmp.lt.s32.totalorder %v3033_v48, 3  ;;  %v3060_v27 = vsel %vm3052_vm13, %v3039_v45, %v3042_v57 }
 0x6b0   : > { %v2776_v56 = vclz %v7799_v33  ;;  %v3057_v61 = vsel %vm3055_vm7, %v3045_v55, 2102212464  ;;  %v3061_v5 = vsel %vm3055_vm7, %v3048_v19, 920167782  ;;  %v3056_v30 = vsel %vm3052_vm13, %v3036_v9, %v3039_v45 }
 0x6b1   : > { %v3062_v23 = vsel %vm3054_vm5, %v3045_v55, %v3061_v5  ;;  %v3064_v52 = vsel %vm3052_vm13, %v3042_v57, %v3045_v55  ;;  %v3058_v10 = vsel %vm3054_vm5, %v3042_v57, %v3057_v61  ;;  %v3065_v7 = vsel %vm3055_vm7, %v3051_v15, 1326507024 }
 0x6b2   : > { %v7800_v46 = vadd.s32 4294967294, %v2776_v56  ;;  %v3063_v0 = vsel %vm3053_vm15, %v3060_v27, %v3062_v23  ;;  %v2926_v28 = vadd.s32 1, %v7806_v17  ;;  %v3066_v18 = vsel %vm3054_vm5, %v3048_v19, %v3065_v7 }
 0x6b3   : > { %v10876_v2 = vmul.u32.u64.low %v10863_v50, %v3063_v0  ;;  %v10877_v26 = vmul.u32.u64.high %v10863_v50, %v3063_v0, %v10876_v2  ;;  %v2764_v1 = vadd.s32 %v10803_v41, %v10800_v44  ;;  %v3067_v34 = vsel %vm3053_vm15, %v3064_v52, %v3066_v18 }
 0x6b4   : > { %vm7801_vm9 = vcmp.lt.s32.totalorder %v7800_v46, 0  ;;  %vm2927_vm12 = vcmp.gt.s32.totalorder %v2926_v28, 0  ;;  %v10885_v12 = vand.u32 8388607, %v2916_v60  ;;  %v2795_v45 = vsel %vm2710_vm4, %v2794_v11, %v10842_v13 }
 0x6b5   : > { %v2779_v21 = vsel %vm7801_vm9, 0, %v7800_v46  ;;  %v2928_v32 = vsel %vm2927_vm12, %v2926_v28, 0  ;;  %v3059_v57 = vsel %vm3053_vm15, %v3056_v30, %v3058_v10  ;;  %v3078_v20 = vadd.s32 1, %v10877_v26 }
 0x6b6   : > { %v2780_v3 = vsub.s32 32, %v2779_v21  ;;  %v2784_v36 = vsub.s32 4294967266, %v2779_v21  ;;  %v10892_v31 = vmul.u32.u64.low %v10863_v50, %v3067_v34  ;;  %v10893_v44 = vmul.u32.u64.high %v10863_v50, %v3067_v34, %v10892_v31  ;;  %v9054_v41 = vpop.eup %9053 }
 0x6b7   : > { %v2781_v55 = vshll.u32 %v10855_v35, %v2779_v21  ;;  %v9056_v33 = vpop.eup %9055  ;;  %vm10899_vm6 = vcmp.le.f32.partialorder %v2708_v42, 0.7853982  ;;  %v2930_v13 = vand.u32 31, %v2928_v32  ;;  %vm2908_vm3 = vcmp.eq.s32.totalorder %v10844_v14, 0 }
 0x6b8   : > { %v2782_v22 = vshrl.u32 %v2764_v1, %v2780_v3  ;;  %v2785_v29 = vadd.s32 127, %v2784_v36  ;;  %v2797_v9 = vsel %vm10899_vm6, 0, %v2795_v45  ;;  %v3075_v35 = vmul.u32 %v10863_v50, %v3059_v57 }
 0x6b9   : > { %vm3077_vm2 = vc.u32 %v10893_v44, %v10876_v2  ;;  %v10909_v19 = vsub.s32 32, %v2930_v13  ;;  %vm2911_vm10 = vcmp.eq.s32.totalorder %v10844_v14, 2  ;;  %v2924_v56 = vor.u32 8388608, %v10885_v12 }
 0x6ba   : > { %v2783_v48 = vor.u32 %v2782_v22, %v2781_v55  ;;  %v2786_v11 = vshll.u32 %v2785_v29, 23  ;;  %v3079_v15 = vsel %vm3077_vm2, %v3078_v20, %v10877_v26  ;;  %v2912_v61 = vxor.u32 2147483648, %v9054_v41 }
 0x6bb   : > { %v2801_v5 = vadd.s32 3, %v2797_v9  ;;  %v3080_v46 = vadd.s32 %v3079_v15, %v3075_v35  ;;  %v2933_v23 = vshll.u32 %v9310_v43, %v2930_v13  ;;  %v2934_v50 = vshrl.u32 %v9311_v47, %v10909_v19  ;;  %v10958_v15 = vld [vmem:[%s12975_s7] ss:$0 sm:$0xff] }
 0x6bc   : > { %v2787_v42 = vor.u32 4788187, %v2786_v11  ;;  %v2790_v27 = vcvt.s32.f32 %v2783_v48  ;;  %v2937_v52 = vshrl.u32 %v9312_v49, %v10909_v19  ;;  %v10919_v0 = vshrl.u32 %v2928_v32, 5 }
 0x6bd   : > { %v3081_v10 = vadd.s32 536870912, %v3080_v46  ;;  %v2936_v7 = vshll.u32 %v9311_v47, %v2930_v13  ;;  %v2940_v28 = vshrl.u32 %v9313_v51, %v10909_v19  ;;  %v2909_v18 = vxor.u32 2147483648, %v9056_v33 }
 0x6be   : > { %v2788_v30 = vand.u32 2147483647, %v2787_v42  ;;  %v2935_v1 = vor.u32 %v2934_v50, %v2933_v23  ;;  %v2939_v21 = vshll.u32 %v9312_v49, %v2930_v13  ;;  %v2942_v36 = vshll.u32 %v9313_v51, %v2930_v13 }
 0x6bf   : > { %v10925_v34 = vshrl.u32 %v3081_v10, 30  ;;  %v2938_v3 = vor.u32 %v2937_v52, %v2936_v7  ;;  %v2943_v12 = vshrl.u32 %v9314_v53, %v10909_v19  ;;  %vm2907_vm11 = vcmp.lt.s32.totalorder %v10844_v14, 2 }
 0x6c0   : > { %v2791_v26 = vmul.f32 %v2790_v27, %v2788_v30  ;;  %v2941_v45 = vor.u32 %v2940_v28, %v2939_v21  ;;  %v2945_v57 = vshll.u32 %v9314_v53, %v2930_v13  ;;  %v2946_v31 = vshrl.u32 %v9315_v62, %v10909_v19  ;;  %v8948_v13 = vld [vmem:[%s12970_s2 + $0x18] sm:$0xff]  }
 0x6c1   : > { %v2913_v55 = vsel %vm2911_vm10, %v2912_v61, %v9056_v33  ;;  %v3083_v22 = vshll.u32 %v10925_v34, 30  ;;  %v2944_v29 = vor.u32 %v2943_v12, %v2942_v36  ;;  %vm2948_vm13 = vcmp.lt.s32.totalorder %v10919_v0, 1  ;;  %v8383_v20 = vpop.f32.mrb[16].mxu1 }
 0x6c2   : > { %v2792_v32 = vxor.u32 2147483648, %v2791_v26  ;;  %v2910_v48 = vsel %vm2908_vm3, %v9054_v41, %v2909_v18  ;;  %v2947_v9 = vor.u32 %v2946_v31, %v2945_v57  ;;  %vm2949_vm15 = vcmp.lt.s32.totalorder %v10919_v0, 2  ;;  %v2070_v33 = vpop.f32.mrb[17].mxu1 }
 0x6c3   : > { %v10950_v42 = vsub.s32 %v3080_v46, %v3083_v22  ;;  %vm2951_vm7 = vcmp.lt.s32.totalorder %v10919_v0, 4  ;;  %v2956_v41 = vsel %vm2948_vm13, %v2935_v1, %v2938_v3  ;;  %v8384_v61 = vpop.f32.mrb[18].mxu1  ;;  %v2960_v50 = vsel %vm2948_vm13, %v2938_v3, %v2941_v45 }
 0x6c4   : > { %v2793_v11 = vsel %vm2710_vm4, %v2792_v32, %v2791_v26  ;;  %vm2950_vm4 = vcmp.lt.s32.totalorder %v10919_v0, 3  ;;  %v2953_v27 = vsel %vm2951_vm7, %v2941_v45, 2102212464  ;;  %v2957_v30 = vsel %vm2951_vm7, %v2944_v29, 920167782  ;;  %v2073_v17 = vpop.f32.mrb[19].mxu1 }
 0x6c5   : > { %v2796_v35 = vsel %vm10899_vm6, %v10658_v4, %v2793_v11  ;;  %v3086_v46 = vsub.s32 0, %v10950_v42  ;;  %v2958_v23 = vsel %vm2950_vm4, %v2941_v45, %v2957_v30  ;;  %v2961_v10 = vsel %vm2951_vm7, %v2947_v9, 1326507024 }
 0x6c6   : > { %9057 = vcosq.f32 %v2796_v35  ;;  %v2959_v52 = vsel %vm2949_vm15, %v2956_v41, %v2958_v23  ;;  %v2964_v7 = vshll.u32 %v2924_v56, 8  ;;  %v3195_v28 = vand.u32 %v8948_v13, %v10190_v40 }
 0x6c7   : > { %9059 = vsinq.f32 %v2796_v35  ;;  %v7811_v18 = vmin.u32 %v3086_v46, %v10950_v42  ;;  %v2932_v26 = vshrl.u32 %v9310_v43, %v10909_v19  ;;  %v2962_v21 = vsel %vm2950_vm4, %v2944_v29, %v2961_v10 }
 0x6c8   : > { %v2079_v36 = vadd.f32 %v8383_v20, %v10958_v15  ;;  %v2802_v12 = vand.u32 3, %v2801_v5  ;;  %v2963_v32 = vsel %vm2949_vm15, %v2960_v50, %v2962_v21  ;;  %8409 = vmatprep.subr.bf16.mxu1 %v3195_v28  ;;  %v2914_v56 = vsel %vm2907_vm11, %v2910_v48, %v2913_v55 }
 0x6c9   : > { %v10977_v45 = vmul.u32.u64.low %v2964_v7, %v2959_v52  ;;  %v10978_v57 = vmul.u32.u64.high %v2964_v7, %v2959_v52, %v10977_v45  ;;  %v3088_v31 = vclz %v7811_v18  ;;  %v2952_v19 = vsel %vm2948_vm13, %v2932_v26, %v2935_v1  ;;  %8410 = vmatpush3.bf16.msra.mxu1 %v3195_v28 }
 0x6ca   : > { %v2954_v22 = vsel %vm2950_vm4, %v2938_v3, %v2953_v27  ;;  %v10987_v5 = vmul.u32.u64.low %v2964_v7, %v2963_v32  ;;  %v10988_v29 = vmul.u32.u64.high %v2964_v7, %v2963_v32, %v10987_v5  ;;  %vm2101_vm5 = vcmask 80896  }
 0x6cb   : > { %v2071_v20 = vadd.f32 %v10958_v15, %v2070_v33  ;;  %v7812_v11 = vadd.s32 4294967294, %v3088_v31  ;;  %2104 = vst.msk [vmem:[%s10991_s11 + $0x10] sm:$0xff] %vm2101_vm5, %v2079_v36  ;;  %v2082_v14 = vadd.f32 %v8384_v61, %v10958_v15  ;;  %v2074_v1 = vadd.f32 %v10958_v15, %v2073_v17 }
 0x6cc   : > { %vm2904_vm9 = vweird.f32 %v10551_v59  ;;  %v2955_v3 = vsel %vm2949_vm15, %v2952_v19, %v2954_v22  ;;  %v2974_v55 = vadd.s32 1, %v10978_v57  ;;  %8412 = vmatmul.mubr.msk.bf16.vlgmr.msra.gmra.mrb[24].mxu1 %vm1443_vm14, %v3141_v54  ;;  %vm2804_vm12 = vcmp.eq.s32.totalorder %v2802_v12, 0 }
 0x6cd   : > { %2102 = vst.msk [vmem:[%s10991_s11] sm:$0xff] %vm2101_vm5, %v2071_v20  ;;  %v2915_v48 = vsel %vm2904_vm9, nan, %v2914_v56  ;;  %vm7813_vm6 = vcmp.lt.s32.totalorder %v7812_v11, 0  ;;  %2105 = vst.msk [vmem:[%s10991_s11 + $0x18] sm:$0xff] %vm2101_vm5, %v2082_v14  ;;  %vm2807_vm3 = vcmp.eq.s32.totalorder %v2802_v12, 2  ;;  %v3076_v0 = vadd.s32 %v10876_v2, %v10893_v44 }
 0x6ce   : > { %2103 = vst.msk [vmem:[%s10991_s11 + $0x8] sm:$0xff] %vm2101_vm5, %v2074_v1  ;;  %v3091_v9 = vsel %vm7813_vm6, 0, %v7812_v11  ;;  %vm2973_vm2 = vc.u32 %v10988_v29, %v10977_v45  ;;  %v2971_v33 = vmul.u32 %v2964_v7, %v2955_v3  ;;  %v3129_v35 = vmul.f32 %v10588_v16, %v2915_v48  ;;  %v11018_v44 = vld [vmem:[#allocation2 + $0x3] ss:$0 sm:$0xff] }
 0x6cf   : > { %v3092_v54 = vsub.s32 32, %v3091_v9  ;;  %v3096_v13 = vsub.s32 4294967266, %v3091_v9  ;;  %v3093_v61 = vshll.u32 %v10950_v42, %v3091_v9  ;;  %v2975_v27 = vsel %vm2973_vm2, %v2974_v55, %v10978_v57 }
 0x6d0   : > { %v9058_v59 = vpop.eup %9057  ;;  %v2976_v2 = vadd.s32 %v2975_v27, %v2971_v33  ;;  %v2281_v23 = vmul.f32 %v11018_v44, %v10338_v39  ;;  %vm2800_vm10 = vweird.f32 %v10658_v4  ;;  %vm2803_vm11 = vcmp.lt.s32.totalorder %v2802_v12, 2 }
 0x6d1   : > { %v9060_v25 = vpop.eup %9059  ;;  %v2808_v6 = vxor.u32 2147483648, %v9058_v59  ;;  %v3094_v17 = vshrl.u32 %v3076_v0, %v3092_v54  ;;  %v3097_v46 = vadd.s32 127, %v3096_v13  ;;  %v2280_v28 = vmul.f32 %v11018_v44, %v10341_v63 }
 0x6d2   : > { %v2805_v41 = vxor.u32 2147483648, %v9060_v25  ;;  %v2977_v42 = vadd.s32 536870912, %v2976_v2  ;;  %v3137_v26 = vadd.f32 %v3129_v35, %v2281_v23  ;;  %vm3022_vm13 = vcmp.lt.s32.totalorder %v10725_v58, 0 }
 0x6d3   : > { %v2809_v30 = vsel %vm2807_vm3, %v2808_v6, %v9060_v25  ;;  %v3095_v10 = vor.u32 %v3094_v17, %v3093_v61  ;;  %v3098_v7 = vshll.u32 %v3097_v46, 23  ;;  %vm11033_vm15 = vcmp.le.f32.partialorder %v3020_v24, 0.7853982 }
 0x6d4   : > { %v2806_v50 = vsel %vm2804_vm12, %v9058_v59, %v2805_v41  ;;  %v2978_v32 = vshrl.u32 %v2977_v42, 30  ;;  %v2972_v55 = vadd.s32 %v10977_v45, %v10988_v29  ;;  %v3106_v0 = vsub.s32 4, %v10925_v34 }
 0x6d5   : > { %v2810_v52 = vsel %vm2803_vm11, %v2806_v50, %v2809_v30  ;;  %v3099_v36 = vor.u32 4788187, %v3098_v7  ;;  %v3102_v56 = vcvt.s32.f32 %v3095_v10  ;;  %vm2918_vm4 = vcmp.lt.s32.totalorder %v10829_v37, 0 }
 0x6d6   : > { %v2811_v18 = vsel %vm2800_vm10, nan, %v2810_v52  ;;  %v2979_v4 = vshll.u32 %v2978_v32, 30  ;;  %v3107_v41 = vsel %vm3022_vm13, %v3106_v0, %v10925_v34  ;;  %v3002_v50 = vsub.s32 4, %v2978_v32 }
 0x6d7   : > { %v3128_v21 = vmul.f32 %v10588_v16, %v2811_v18  ;;  %v3100_v39 = vand.u32 2147483647, %v3099_v36  ;;  %v3109_v46 = vsel %vm11033_vm15, 0, %v3107_v41  ;;  %vm2917_vm9 = vcmp.le.f32.partialorder %v2916_v60, 0.7853982 }
 0x6d8   : > { %v2980_v19 = vsub.s32 %v2976_v2, %v2979_v4  ;;  %v3113_v52 = vadd.s32 3, %v3109_v46  ;;  %vm3112_vm2 = vweird.f32 %v10725_v58  ;;  %v2283_v14 = vmul.f32 %v11018_v44, %v10344_v38  ;;  %v8952_v38 = vld [vmem:[%s12971_s3 + $0x18] sm:$0xff]  }
 0x6d9   : > { %v3136_v57 = vadd.f32 %v3128_v21, %v2280_v28  ;;  %v3103_v12 = vmul.f32 %v3102_v56, %v3100_v39  ;;  %v3003_v28 = vsel %vm2918_vm4, %v3002_v50, %v2978_v32 }
 0x6da   : > { %v2982_v22 = vsub.s32 0, %v2980_v19  ;;  %v3114_v18 = vand.u32 3, %v3113_v52 }
 0x6db   : > { %v3142_v31 = vpack.c.bf16 %v3137_v26, %v3136_v57  ;;  %v3104_v5 = vxor.u32 2147483648, %v3103_v12  ;;  %v3005_v57 = vsel %vm2917_vm9, 0, %v3003_v28 }
 0x6dc   : > { %v7807_v20 = vmin.u32 %v2982_v22, %v2980_v19  ;;  %vm3116_vm12 = vcmp.eq.s32.totalorder %v3114_v18, 0  ;;  %vm3119_vm6 = vcmp.eq.s32.totalorder %v3114_v18, 2  ;;  %v3009_v4 = vadd.s32 3, %v3005_v57 }
 0x6dd   : > { %8415 = vmatprep.mubr.msk.bf16.mxu1 %vm1443_vm14, %v3142_v31  ;;  %v3105_v63 = vsel %vm3022_vm13, %v3104_v5, %v3103_v12  ;;  %vm3115_vm3 = vcmp.lt.s32.totalorder %v3114_v18, 2 }
 0x6de   : > { %v2984_v11 = vclz %v7807_v20  ;;  %v3108_v1 = vsel %vm11033_vm15, %v10725_v58, %v3105_v63  ;;  %v3010_v12 = vand.u32 3, %v3009_v4  ;;  %v9141_v20 = vld [vmem:[#allocation2 + $0x4] ss:$0 sm:$0xff]  ;;  %vm3008_vm15 = vweird.f32 %v10829_v37 }
 0x6df   : > { %9061 = vcosq.f32 %v3108_v1 }
 0x6e0   : > { %v7808_v16 = vadd.s32 4294967294, %v2984_v11  ;;  %9063 = vsinq.f32 %v3108_v1  ;;  %vm3015_vm10 = vcmp.eq.s32.totalorder %v3010_v12, 2  ;;  %vm3012_vm11 = vcmp.eq.s32.totalorder %v3010_v12, 0 }
 0x6e1   : > { %vm3011_vm13 = vcmp.lt.s32.totalorder %v3010_v12, 2 }
 0x6e2   : > { %vm7809_vm7 = vcmp.lt.s32.totalorder %v7808_v16, 0 }
 0x6e3   : > { %v2987_v3 = vsel %vm7809_vm7, 0, %v7808_v16 }
 0x6e4   : > { %v2988_v48 = vsub.s32 32, %v2987_v3  ;;  %v2992_v59 = vsub.s32 4294967266, %v2987_v3  ;;  %v2989_v9 = vshll.u32 %v2980_v19, %v2987_v3 }
 0x6e6   : > { %v2990_v24 = vshrl.u32 %v2972_v55, %v2988_v48  ;;  %v2993_v25 = vadd.s32 127, %v2992_v59  ;;  %v2282_v55 = vmul.f32 %v11018_v44, %v10363_v8  ;;  %v8953_v8 = vld [vmem:[%s12971_s3 + $0x20] sm:$0xff]  }
 0x6e7   : > { %8435 = vmatprep.subr.bf16.mxu1 %v8953_v8  ;;  %v7814_v44 = vld [vmem:[%s12972_s4] ss:$0 sm:$0xff] }
 0x6e8   : > { %v2991_v33 = vor.u32 %v2990_v24, %v2989_v9  ;;  %v2994_v35 = vshll.u32 %v2993_v25, 23  ;;  %v8951_v9 = vld [vmem:[%s12971_s3 + $0x10] sm:$0xff]   ;;  %8436 = vmatpush3.bf16.msra.mxu1 %v8953_v8 }
 0x6e9   : > { %v9062_v10 = vpop.eup %9061  ;;  %8423 = vmatprep.subr.bf16.mxu0 %v8951_v9 }
 0x6ea   : > { %v8387_v6 = vpop.f32.mrb[20].mxu1  ;;  %v2995_v30 = vor.u32 4788187, %v2994_v35  ;;  %v2998_v23 = vcvt.s32.f32 %v2991_v33  ;;  %v9064_v42 = vpop.eup %9063  ;;  %v3120_v36 = vxor.u32 2147483648, %v9062_v10  ;;  %8424 = vmatpush3.bf16.msra.mxu0 %v8951_v9 }
 0x6eb   : > { %v2095_v54 = vadd.f32 %v8387_v6, %v10958_v15  ;;  %v2086_v13 = vpop.f32.mrb[21].mxu1  ;;  %v3117_v21 = vxor.u32 2147483648, %v9064_v42  ;;  %8425 = vmatprep.subr.bf16.mxu0 %v8952_v38 }
 0x6ec   : > { %v2087_v45 = vadd.f32 %v10958_v15, %v2086_v13  ;;  %v8388_v29 = vpop.f32.mrb[22].mxu1  ;;  %v2996_v2 = vand.u32 2147483647, %v2995_v30  ;;  %v3121_v56 = vsel %vm3119_vm6, %v3120_v36, %v9064_v42 }
 0x6ed   : > { %2108 = vst.msk [vmem:[%s10991_s11 + $0x30] sm:$0xff] %vm2101_vm5, %v2095_v54  ;;  %v2098_v61 = vadd.f32 %v8388_v29, %v10958_v15  ;;  %v2089_v27 = vpop.f32.mrb[23].mxu1  ;;  %v3118_v39 = vsel %vm3116_vm12, %v9062_v10, %v3117_v21 }
 0x6ee   : > { %2106 = vst.msk [vmem:[%s10991_s11 + $0x20] sm:$0xff] %vm2101_vm5, %v2087_v45  ;;  %v2090_v17 = vadd.f32 %v10958_v15, %v2089_v27  ;;  %v2999_v34 = vmul.f32 %v2998_v23, %v2996_v2  ;;  %v3122_v31 = vsel %vm3115_vm3, %v3118_v39, %v3121_v56  ;;  %8426 = vmatpush3.bf16.msra.mxu0 %v8952_v38 }
 0x6ef   : > { %2109 = vst.msk [vmem:[%s10991_s11 + $0x38] sm:$0xff] %vm2101_vm5, %v2098_v61  ;;  %v3123_v32 = vsel %vm3112_vm2, nan, %v3122_v31 }
 0x6f0   : > { %2107 = vst.msk [vmem:[%s10991_s11 + $0x28] sm:$0xff] %vm2101_vm5, %v2090_v17  ;;  %v3000_v7 = vxor.u32 2147483648, %v2999_v34  ;;  %v3131_v11 = vmul.f32 %v9141_v20, %v3123_v32  ;;  %v8955_v32 = vld [vmem:[%s12971_s3 + $0x30] sm:$0xff]  }
 0x6f2   : > { %v3001_v15 = vsel %vm2918_vm4, %v3000_v7, %v2999_v34  ;;  %v3139_v58 = vadd.f32 %v3131_v11, %v2283_v14  ;;  %v7823_v11 = vld [vmem:[#allocation4] ss:$0 sm:$0xff] }
 0x6f3   : > { %v3004_v26 = vsel %vm2917_vm9, %v10829_v37, %v3001_v15  ;;  %v8954_v37 = vld [vmem:[%s12971_s3 + $0x28] sm:$0xff]  }
 0x6f4   : > { %9065 = vcosq.f32 %v3004_v26  ;;  %8437 = vmatprep.subr.bf16.mxu1 %v8954_v37 }
 0x6f5   : > { %9067 = vsinq.f32 %v3004_v26  ;;  %8438 = vmatpush3.bf16.msra.mxu1 %v8954_v37 }
 0x6f6   : > { %8439 = vmatprep.subr.bf16.mxu1 %v8955_v32 }
 0x6f9   : > { %8440 = vmatpush3.bf16.msra.mxu1 %v8955_v32 }
 0x6fe   : > { %v9066_v60 = vpop.eup %9065 }
 0x6ff   : > { %v9068_v19 = vpop.eup %9067  ;;  %v3016_v22 = vxor.u32 2147483648, %v9066_v60 }
 0x700   : > { %v3013_v5 = vxor.u32 2147483648, %v9068_v19 }
 0x701   : > { %v3017_v63 = vsel %vm3015_vm10, %v3016_v22, %v9068_v19  ;;  %v8956_v19 = vld [vmem:[%s12971_s3 + $0x38] sm:$0xff]   ;;  %v3840_v22 = vld [vmem:[%s9468_s10 + $0x4] sm:$0x7] }
 0x702   : > { %v3014_v16 = vsel %vm3012_vm11, %v9066_v60, %v3013_v5  ;;  %8441 = vmatprep.subr.bf16.mxu1 %v8956_v19  ;;  %v8957_v5 = vld [vmem:[%s12971_s3 + $0x40] sm:$0xff]   ;;  %3841 = vxpose.xlu1.b32.start.end [1/1] (short) (narrow) %v3840_v22, 64 }
 0x703   : > { %v3018_v1 = vsel %vm3011_vm13, %v3014_v16, %v3017_v63  ;;  %8442 = vmatpush3.bf16.msra.mxu1 %v8956_v19  ;;  %8451 = vmatprep.subr.bf16.mxu0 %v8957_v5 }
 0x704   : > { %v3019_v3 = vsel %vm3008_vm15, nan, %v3018_v1 }
 0x705   : > { %v3130_v48 = vmul.f32 %v9141_v20, %v3019_v3  ;;  %v8958_v20 = vld [vmem:[%s12971_s3 + $0x48] sm:$0xff]  }
 0x707   : > { %v3138_v59 = vadd.f32 %v3130_v48, %v2282_v55 }
 0x709   : > { %v3143_v0 = vpack.c.bf16 %v3139_v58, %v3138_v59 }
 0x70b   : > { %8416 = vmatmul.mubr.msk.bf16.gmra.mrb[28].mxu1 %vm1443_vm14, %v3143_v0 }
 0x79f   : > { %v8413_v24 = vpop.f32.mrb[24].mxu1 }
 0x7a0   : > { %v3240_v25 = vadd.f32 %v8413_v24, %v7814_v44  ;;  %v3231_v6 = vpop.f32.mrb[25].mxu1 }
 0x7a1   : > { %v3232_v54 = vadd.f32 %v7814_v44, %v3231_v6  ;;  %v8414_v13 = vpop.f32.mrb[26].mxu1 }
 0x7a2   : > { %v3272_v33 = vmul.f32 0.01, %v3240_v25  ;;  %v3243_v35 = vadd.f32 %v8414_v13, %v7814_v44  ;;  %v3234_v45 = vpop.f32.mrb[27].mxu1  ;;  %vm3264_vm7 = vcmp.ge.f32.partialorder %v3240_v25, 0.0 }
 0x7a3   : > { %v3270_v29 = vmul.f32 0.01, %v3232_v54  ;;  %v3235_v41 = vadd.f32 %v7814_v44, %v3234_v45  ;;  %vm3262_vm4 = vcmp.ge.f32.partialorder %v3232_v54, 0.0 }
 0x7a4   : > { %vm3265_vm9 = vcmp.ge.f32.partialorder %v3243_v35, 0.0  ;;  %v3273_v61 = vmul.f32 0.01, %v3243_v35  ;;  %v3280_v30 = vsel %vm3264_vm7, %v3240_v25, %v3272_v33 }
 0x7a5   : > { %vm3263_vm12 = vcmp.ge.f32.partialorder %v3235_v41, 0.0  ;;  %v3271_v27 = vmul.f32 0.01, %v3235_v41  ;;  %v3278_v46 = vsel %vm3262_vm4, %v3232_v54, %v3270_v29 }
 0x7a6   : > { %v3281_v17 = vsel %vm3265_vm9, %v3243_v35, %v3273_v61 }
 0x7a7   : > { %v3287_v2 = vpack.c.bf16 %v3281_v17, %v3280_v30  ;;  %v3279_v23 = vsel %vm3263_vm12, %v3235_v41, %v3271_v27 }
 0x7a8   : > { %v3286_v34 = vpack.c.bf16 %v3279_v23, %v3278_v46 }
 0x7aa   : > { %8427 = vmatprep.mubr.msk.bf16.mxu0 %vm1593_vm8, %v3286_v34 }
 0x7ab   : > { %8428 = vmatmul.mubr.msk.bf16.vlgmr.msra.gmra.mrb[32].mxu0 %vm1593_vm8, %v3287_v2 }
 0x7ac   : > { %8452 = vmatpush3.bf16.msra.mxu0 %v8957_v5 }
 0x7ad   : > { %8453 = vmatprep.subr.bf16.mxu0 %v8958_v20 }
 0x7b0   : > { %8454 = vmatpush3.bf16.msra.mxu0 %v8958_v20 }
 0x7de   : > { %v8417_v50 = vpop.f32.mrb[28].mxu1 }
 0x7df   : > { %v3256_v52 = vadd.f32 %v8417_v50, %v7814_v44  ;;  %v3247_v10 = vpop.f32.mrb[29].mxu1 }
 0x7e0   : > { %v3248_v7 = vadd.f32 %v7814_v44, %v3247_v10  ;;  %v8418_v42 = vpop.f32.mrb[30].mxu1 }
 0x7e1   : > { %v3276_v15 = vmul.f32 0.01, %v3256_v52  ;;  %v3259_v28 = vadd.f32 %v8418_v42, %v7814_v44  ;;  %v3250_v18 = vpop.f32.mrb[31].mxu1  ;;  %vm3268_vm6 = vcmp.ge.f32.partialorder %v3256_v52, 0.0  ;;  %v8960_v42 = vld [vmem:[%s12971_s3 + $0x58] sm:$0xff]  }
 0x7e2   : > { %v3274_v26 = vmul.f32 0.01, %v3248_v7  ;;  %v3251_v21 = vadd.f32 %v7814_v44, %v3250_v18  ;;  %vm3266_vm3 = vcmp.ge.f32.partialorder %v3248_v7, 0.0  ;;  %v7840_v18 = vld [vmem:[#allocation4 + $0x1] ss:$0 sm:$0xff] }
 0x7e3   : > { %vm3269_vm2 = vcmp.ge.f32.partialorder %v3259_v28, 0.0  ;;  %v3277_v36 = vmul.f32 0.01, %v3259_v28  ;;  %v3284_v39 = vsel %vm3268_vm6, %v3256_v52, %v3276_v15  ;;  %v9142_v15 = vld [vmem:[#allocation2] sm:$0x7] }
 0x7e4   : > { %vm3267_vm10 = vcmp.ge.f32.partialorder %v3251_v21, 0.0  ;;  %v3275_v57 = vmul.f32 0.01, %v3251_v21  ;;  %v3282_v4 = vsel %vm3266_vm3, %v3248_v7, %v3274_v26  ;;  %v8959_v7 = vld [vmem:[%s12971_s3 + $0x50] sm:$0xff]  }
 0x7e5   : > { %v3285_v56 = vsel %vm3269_vm2, %v3259_v28, %v3277_v36  ;;  %8455 = vmatprep.subr.bf16.mxu0 %v8959_v7  ;;  %v8961_v28 = vld [vmem:[%s12974_s6] sm:$0xff]  }
 0x7e6   : > { %v3289_v31 = vpack.c.bf16 %v3285_v56, %v3284_v39  ;;  %v3283_v12 = vsel %vm3267_vm10, %v3251_v21, %v3275_v57  ;;  %8456 = vmatpush3.bf16.msra.mxu0 %v8959_v7  ;;  %8467 = vmatprep.subr.bf16.mxu1 %v8961_v28 }
 0x7e7   : > { %v3288_v60 = vpack.c.bf16 %v3283_v12, %v3282_v4  ;;  %8457 = vmatprep.subr.bf16.mxu0 %v8960_v42 }
 0x7e9   : > { %8431 = vmatprep.mubr.msk.bf16.mxu0 %vm1593_vm8, %v3288_v60 }
 0x7ea   : > { %8432 = vmatmul.mubr.msk.bf16.gmra.mrb[36].mxu0 %vm1593_vm8, %v3289_v31 }
 0x7eb   : > { %8458 = vmatpush3.bf16.msra.mxu0 %v8960_v42 }
 0x7ec   : > { %8483 = vmatprep.subr.msk.mxu0 %vm416_vm0, %v9142_v15 }
 0x87e   : > { %v8429_v63 = vpop.f32.mrb[32].mxu0 }
 0x87f   : > { %v3382_v16 = vadd.f32 %v8429_v63, %v7823_v11  ;;  %v3373_v14 = vpop.f32.mrb[33].mxu0 }
 0x880   : > { %v3374_v1 = vadd.f32 %v7823_v11, %v3373_v14  ;;  %v8430_v3 = vpop.f32.mrb[34].mxu0  ;;  %v3857_v14 = vpop.trf.xlu1 }
 0x881   : > { %v3414_v58 = vmul.f32 0.01, %v3382_v16  ;;  %v3385_v55 = vadd.f32 %v8430_v3, %v7823_v11  ;;  %v3376_v48 = vpop.f32.mrb[35].mxu0  ;;  %vm3406_vm11 = vcmp.ge.f32.partialorder %v3382_v16, 0.0 }
 0x882   : > { %v3412_v59 = vmul.f32 0.01, %v3374_v1  ;;  %v3377_v0 = vadd.f32 %v7823_v11, %v3376_v48  ;;  %vm3404_vm13 = vcmp.ge.f32.partialorder %v3374_v1, 0.0 }
 0x883   : > { %vm3407_vm15 = vcmp.ge.f32.partialorder %v3385_v55, 0.0  ;;  %v3415_v9 = vmul.f32 0.01, %v3385_v55  ;;  %v3422_v8 = vsel %vm3406_vm11, %v3382_v16, %v3414_v58 }
 0x884   : > { %vm3405_vm7 = vcmp.ge.f32.partialorder %v3377_v0, 0.0  ;;  %v3413_v38 = vmul.f32 0.01, %v3377_v0  ;;  %v3420_v44 = vsel %vm3404_vm13, %v3374_v1, %v3412_v59  ;;  %v3858_v1 = vpop.trf.xlu1 }
 0x885   : > { %v3423_v37 = vsel %vm3407_vm15, %v3385_v55, %v3415_v9 }
 0x886   : > { %v3429_v24 = vpack.c.bf16 %v3423_v37, %v3422_v8  ;;  %v3421_v25 = vsel %vm3405_vm7, %v3377_v0, %v3413_v38 }
 0x887   : > { %v3428_v6 = vpack.c.bf16 %v3421_v25, %v3420_v44 }
 0x888   : > { %v3859_v3 = vpop.trf.xlu1 }
 0x889   : > { %8443 = vmatprep.mubr.msk.bf16.mxu1 %vm1593_vm8, %v3428_v6 }
 0x88a   : > { %8444 = vmatmul.mubr.msk.bf16.vlgmr.msra.gmra.mrb[32].mxu1 %vm1593_vm8, %v3429_v24 }
 0x88b   : > { %8468 = vmatpush3.bf16.msra.mxu1 %v8961_v28 }
 0x88c   : > { %v3860_v25 = vpop.trf.xlu1 }
 0x8bd   : > { %v8433_v54 = vpop.f32.mrb[36].mxu0 }
 0x8be   : > { %v3398_v13 = vadd.f32 %v8433_v54, %v7823_v11  ;;  %v3389_v33 = vpop.f32.mrb[37].mxu0 }
 0x8bf   : > { %v3390_v35 = vadd.f32 %v7823_v11, %v3389_v33  ;;  %v8434_v45 = vpop.f32.mrb[38].mxu0 }
 0x8c0   : > { %v3418_v29 = vmul.f32 0.01, %v3398_v13  ;;  %v3401_v41 = vadd.f32 %v8434_v45, %v7823_v11  ;;  %v3392_v61 = vpop.f32.mrb[39].mxu0  ;;  %vm3410_vm4 = vcmp.ge.f32.partialorder %v3398_v13, 0.0 }
 0x8c1   : > { %v3416_v27 = vmul.f32 0.01, %v3390_v35  ;;  %v3393_v30 = vadd.f32 %v7823_v11, %v3392_v61  ;;  %vm3408_vm9 = vcmp.ge.f32.partialorder %v3390_v35, 0.0 }
 0x8c2   : > { %vm3411_vm12 = vcmp.ge.f32.partialorder %v3401_v41, 0.0  ;;  %v3419_v17 = vmul.f32 0.01, %v3401_v41  ;;  %v3426_v2 = vsel %vm3410_vm4, %v3398_v13, %v3418_v29 }
 0x8c3   : > { %vm3409_vm6 = vcmp.ge.f32.partialorder %v3393_v30, 0.0  ;;  %v3417_v46 = vmul.f32 0.01, %v3393_v30  ;;  %v3424_v34 = vsel %vm3408_vm9, %v3390_v35, %v3416_v27 }
 0x8c4   : > { %v3427_v23 = vsel %vm3411_vm12, %v3401_v41, %v3419_v17  ;;  %v3861_v41 = vpop.trf.xlu1  ;;  %v8962_v17 = vld [vmem:[%s12974_s6 + $0x8] sm:$0xff]  }
 0x8c5   : > { %v3431_v50 = vpack.c.bf16 %v3427_v23, %v3426_v2  ;;  %v3425_v52 = vsel %vm3409_vm6, %v3393_v30, %v3417_v46  ;;  %8469 = vmatprep.subr.bf16.mxu1 %v8962_v17  ;;  %v8963_v46 = vld [vmem:[%s12974_s6 + $0x10] sm:$0xff]   ;;  %v8964_v2 = vld [vmem:[%s12974_s6 + $0x18] sm:$0xff]   ;;  %v7857_v23 = vld [vmem:[#allocation4 + $0x2] ss:$0 sm:$0xff] }
 0x8c6   : > { %v3430_v10 = vpack.c.bf16 %v3425_v52, %v3424_v34  ;;  %8470 = vmatpush3.bf16.msra.mxu1 %v8962_v17 }
 0x8c7   : > { %8471 = vmatprep.subr.bf16.mxu1 %v8963_v46 }
 0x8c8   : > { %8447 = vmatprep.mubr.msk.bf16.mxu1 %vm1593_vm8, %v3430_v10  ;;  %v3862_v61 = vpop.trf.xlu1 }
 0x8c9   : > { %8448 = vmatmul.mubr.msk.bf16.gmra.mrb[36].mxu1 %vm1593_vm8, %v3431_v50 }
 0x8ca   : > { %8472 = vmatpush3.bf16.msra.mxu1 %v8963_v46 }
 0x8cb   : > { %8473 = vmatprep.subr.bf16.mxu1 %v8964_v2 }
 0x8cc   : > { %v3863_v27 = vpop.trf.xlu1 }
 0x8ce   : > { %8474 = vmatpush3.bf16.msra.mxu1 %v8964_v2 }
 0x8d0   : > { %v3864_v30 = vpop.trf.xlu1 }
 0x95d   : > { %v8445_v26 = vpop.f32.mrb[32].mxu1 }
 0x95e   : > { %v3524_v21 = vadd.f32 %v8445_v26, %v7840_v18  ;;  %v3515_v36 = vpop.f32.mrb[33].mxu1 }
 0x95f   : > { %v3516_v57 = vadd.f32 %v7840_v18, %v3515_v36  ;;  %v8446_v39 = vpop.f32.mrb[34].mxu1 }
 0x960   : > { %v3556_v56 = vmul.f32 0.01, %v3524_v21  ;;  %v3527_v4 = vadd.f32 %v8446_v39, %v7840_v18  ;;  %v3518_v31 = vpop.f32.mrb[35].mxu1  ;;  %vm3548_vm3 = vcmp.ge.f32.partialorder %v3524_v21, 0.0 }
 0x961   : > { %v3554_v12 = vmul.f32 0.01, %v3516_v57  ;;  %v3519_v60 = vadd.f32 %v7840_v18, %v3518_v31  ;;  %vm3546_vm2 = vcmp.ge.f32.partialorder %v3516_v57, 0.0 }
 0x962   : > { %vm3549_vm10 = vcmp.ge.f32.partialorder %v3527_v4, 0.0  ;;  %v3557_v32 = vmul.f32 0.01, %v3527_v4  ;;  %v3564_v22 = vsel %vm3548_vm3, %v3524_v21, %v3556_v56 }
 0x963   : > { %vm3547_vm11 = vcmp.ge.f32.partialorder %v3519_v60, 0.0  ;;  %v3555_v19 = vmul.f32 0.01, %v3519_v60  ;;  %v3562_v20 = vsel %vm3546_vm2, %v3516_v57, %v3554_v12 }
 0x964   : > { %v3565_v5 = vsel %vm3549_vm10, %v3527_v4, %v3557_v32 }
 0x965   : > { %v3571_v11 = vpack.c.bf16 %v3565_v5, %v3564_v22  ;;  %v3563_v63 = vsel %vm3547_vm11, %v3519_v60, %v3555_v19 }
 0x966   : > { %v3570_v16 = vpack.c.bf16 %v3563_v63, %v3562_v20 }
 0x968   : > { %8459 = vmatprep.mubr.msk.bf16.mxu0 %vm1593_vm8, %v3570_v16 }
 0x969   : > { %8460 = vmatmul.mubr.msk.bf16.vlgmr.msra.gmra.mrb[40].mxu0 %vm1593_vm8, %v3571_v11 }
 0x96a   : > { %8484 = vmatpush3.msk.msra.mxu0 %vm416_vm0, %v9142_v15 }
 0x99c   : > { %v8449_v58 = vpop.f32.mrb[36].mxu1 }
 0x99d   : > { %v3540_v55 = vadd.f32 %v8449_v58, %v7840_v18  ;;  %v3531_v48 = vpop.f32.mrb[37].mxu1 }
 0x99e   : > { %v3532_v59 = vadd.f32 %v7840_v18, %v3531_v48  ;;  %v8450_v0 = vpop.f32.mrb[38].mxu1 }
 0x99f   : > { %v3560_v9 = vmul.f32 0.01, %v3540_v55  ;;  %v3543_v38 = vadd.f32 %v8450_v0, %v7840_v18  ;;  %v3534_v8 = vpop.f32.mrb[39].mxu1  ;;  %vm3552_vm13 = vcmp.ge.f32.partialorder %v3540_v55, 0.0 }
 0x9a0   : > { %v3558_v37 = vmul.f32 0.01, %v3532_v59  ;;  %v3535_v44 = vadd.f32 %v7840_v18, %v3534_v8  ;;  %vm3550_vm15 = vcmp.ge.f32.partialorder %v3532_v59, 0.0  ;;  %v11143_v8 = vld [vmem:[#allocation2 + $0x5] ss:$0 sm:$0xff] }
 0x9a1   : > { %vm3553_vm7 = vcmp.ge.f32.partialorder %v3543_v38, 0.0  ;;  %v3561_v24 = vmul.f32 0.01, %v3543_v38  ;;  %v3568_v54 = vsel %vm3552_vm13, %v3540_v55, %v3560_v9 }
 0x9a2   : > { %vm3551_vm4 = vcmp.ge.f32.partialorder %v3535_v44, 0.0  ;;  %v3559_v6 = vmul.f32 0.01, %v3535_v44  ;;  %v3566_v33 = vsel %vm3550_vm15, %v3532_v59, %v3558_v37 }
 0x9a3   : > { %v3569_v13 = vsel %vm3553_vm7, %v3543_v38, %v3561_v24 }
 0x9a4   : > { %v3573_v35 = vpack.c.bf16 %v3569_v13, %v3568_v54  ;;  %v3567_v45 = vsel %vm3551_vm4, %v3535_v44, %v3559_v6 }
 0x9a5   : > { %v3572_v29 = vpack.c.bf16 %v3567_v45, %v3566_v33 }
 0x9a7   : > { %8463 = vmatprep.mubr.msk.bf16.mxu0 %vm1593_vm8, %v3572_v29 }
 0x9a8   : > { %8464 = vmatmul.mubr.msk.bf16.gmra.mrb[44].mxu0 %vm1593_vm8, %v3573_v35 }
 0x9a9   : > { %8485 = vmatprep.mubr.msk.f32.mxu0 %vm391_vm1, %v3857_v14 }
 0x9b0   : > { %8486 = vmatmul.mubr.msk.f32.vlgmr.msra.gmra.mrb[48].mxu0 %vm391_vm1, %v3858_v1 }
 0x9b1   : > { %8488 = vmatprep.mubr.msk.f32.mxu0 %vm391_vm1, %v3859_v3 }
 0x9b4   : > { %8489 = vmatmul.mubr.msk.f32.gmra.mrb[50].mxu0 %vm391_vm1, %v3860_v25 }
 0x9b5   : > { %8491 = vmatprep.mubr.msk.f32.mxu0 %vm391_vm1, %v3861_v41 }
 0x9b8   : > { %8492 = vmatmul.mubr.msk.f32.gmra.mrb[52].mxu0 %vm391_vm1, %v3862_v61 }
 0x9b9   : > { %8494 = vmatprep.mubr.msk.f32.mxu0 %vm391_vm1, %v3863_v27 }
 0x9bc   : > { %8495 = vmatmul.mubr.msk.f32.gmra.mrb[54].mxu0 %vm391_vm1, %v3864_v30 }
 0xa3c   : > { %v8461_v34 = vpop.f32.mrb[40].mxu0 }
 0xa3d   : > { %v3666_v50 = vadd.f32 %v8461_v34, %v7857_v23  ;;  %v3657_v52 = vpop.f32.mrb[41].mxu0 }
 0xa3e   : > { %v3658_v10 = vadd.f32 %v7857_v23, %v3657_v52  ;;  %v8462_v7 = vpop.f32.mrb[42].mxu0 }
 0xa3f   : > { %v3698_v42 = vmul.f32 0.01, %v3666_v50  ;;  %v3669_v15 = vadd.f32 %v8462_v7, %v7857_v23  ;;  %v3660_v28 = vpop.f32.mrb[43].mxu0  ;;  %vm3690_vm9 = vcmp.ge.f32.partialorder %v3666_v50, 0.0 }
 0xa40   : > { %v3696_v18 = vmul.f32 0.01, %v3658_v10  ;;  %v3661_v26 = vadd.f32 %v7857_v23, %v3660_v28  ;;  %vm3688_vm12 = vcmp.ge.f32.partialorder %v3658_v10, 0.0 }
 0xa41   : > { %vm3691_vm6 = vcmp.ge.f32.partialorder %v3669_v15, 0.0  ;;  %v3699_v21 = vmul.f32 0.01, %v3669_v15  ;;  %v3706_v57 = vsel %vm3690_vm9, %v3666_v50, %v3698_v42 }
 0xa42   : > { %vm3689_vm3 = vcmp.ge.f32.partialorder %v3661_v26, 0.0  ;;  %v3697_v36 = vmul.f32 0.01, %v3661_v26  ;;  %v3704_v56 = vsel %vm3688_vm12, %v3658_v10, %v3696_v18 }
 0xa43   : > { %v3707_v39 = vsel %vm3691_vm6, %v3669_v15, %v3699_v21 }
 0xa44   : > { %v3713_v4 = vpack.c.bf16 %v3707_v39, %v3706_v57  ;;  %v3705_v31 = vsel %vm3689_vm3, %v3661_v26, %v3697_v36 }
 0xa45   : > { %v3712_v12 = vpack.c.bf16 %v3705_v31, %v3704_v56 }
 0xa47   : > { %8475 = vmatprep.mubr.msk.bf16.mxu1 %vm1593_vm8, %v3712_v12 }
 0xa48   : > { %8476 = vmatmul.mubr.msk.bf16.vlgmr.msra.gmra.mrb[40].mxu1 %vm1593_vm8, %v3713_v4 }
 0xa7b   : > { %v8465_v60 = vpop.f32.mrb[44].mxu0 }
 0xa7c   : > { %v3682_v32 = vadd.f32 %v8465_v60, %v7857_v23  ;;  %v3673_v19 = vpop.f32.mrb[45].mxu0 }
 0xa7d   : > { %v3674_v22 = vadd.f32 %v7857_v23, %v3673_v19  ;;  %v8466_v5 = vpop.f32.mrb[46].mxu0 }
 0xa7e   : > { %v3702_v20 = vmul.f32 0.01, %v3682_v32  ;;  %v3685_v11 = vadd.f32 %v8466_v5, %v7857_v23  ;;  %v3676_v63 = vpop.f32.mrb[47].mxu0  ;;  %vm3694_vm2 = vcmp.ge.f32.partialorder %v3682_v32, 0.0 }
 0xa7f   : > { %v3700_v16 = vmul.f32 0.01, %v3674_v22  ;;  %v3677_v14 = vadd.f32 %v7857_v23, %v3676_v63  ;;  %vm3692_vm10 = vcmp.ge.f32.partialorder %v3674_v22, 0.0 }
 0xa80   : > { %vm3695_vm11 = vcmp.ge.f32.partialorder %v3685_v11, 0.0  ;;  %v3703_v1 = vmul.f32 0.01, %v3685_v11  ;;  %v3710_v58 = vsel %vm3694_vm2, %v3682_v32, %v3702_v20 }
 0xa81   : > { %vm3693_vm13 = vcmp.ge.f32.partialorder %v3677_v14, 0.0  ;;  %v3701_v3 = vmul.f32 0.01, %v3677_v14  ;;  %v3708_v48 = vsel %vm3692_vm10, %v3674_v22, %v3700_v16 }
 0xa82   : > { %v3711_v55 = vsel %vm3695_vm11, %v3685_v11, %v3703_v1 }
 0xa83   : > { %v3715_v59 = vpack.c.bf16 %v3711_v55, %v3710_v58  ;;  %v3709_v0 = vsel %vm3693_vm13, %v3677_v14, %v3701_v3  ;;  %v11141_v9 = vpop.f32.mrb[48].mxu0 }
 0xa84   : > { %v3714_v38 = vpack.c.bf16 %v3709_v0, %v3708_v48  ;;  %v11147_v37 = vadd.f32 %v11143_v8, %v11141_v9  ;;  %v11149_v44 = vpop.f32.mrb[49].mxu0 }
 0xa85   : > { %v11153_v24 = vadd.f32 %v11143_v8, %v11149_v44 }
 0xa86   : > { %v4122_v25 = vand.u32 2147483647, %v11147_v37  ;;  %v4125_v6 = vand.u32 2139095040, %v11147_v37  ;;  %8479 = vmatprep.mubr.msk.bf16.mxu1 %vm1593_vm8, %v3714_v38 }
 0xa87   : > { %v4018_v54 = vand.u32 2147483647, %v11153_v24  ;;  %v4021_v13 = vand.u32 2139095040, %v11153_v24  ;;  %8480 = vmatmul.mubr.msk.bf16.gmra.mrb[44].mxu1 %vm1593_vm8, %v3715_v59  ;;  %v11161_v33 = vpop.f32.mrb[50].mxu0 }
 0xa88   : > { %v4126_v35 = vshrl.u32 %v4125_v6, 23  ;;  %v11163_v45 = vpop.f32.mrb[51].mxu0  ;;  %v4129_v29 = vand.u32 8388607, %v4122_v25  ;;  %v11171_v27 = vadd.f32 %v11143_v8, %v11161_v33 }
 0xa89   : > { %v4022_v41 = vshrl.u32 %v4021_v13, 23  ;;  %v4025_v61 = vand.u32 8388607, %v4018_v54  ;;  %v11183_v36 = vadd.f32 %v11143_v8, %v11163_v45 }
 0xa8a   : > { %v7888_v30 = vadd.s32 4294967169, %v4126_v35  ;;  %v4333_v23 = vand.u32 2139095040, %v11171_v27  ;;  %v4130_v50 = vor.u32 8388608, %v4129_v29  ;;  %v4330_v7 = vand.u32 2147483647, %v11171_v27 }
 0xa8b   : > { %v7884_v17 = vadd.s32 4294967169, %v4022_v41  ;;  %v11173_v46 = vpop.f32.mrb[52].mxu0  ;;  %v4026_v52 = vor.u32 8388608, %v4025_v61 }
 0xa8c   : > { %v4132_v2 = vadd.s32 1, %v7888_v30  ;;  %v11176_v34 = vpop.f32.mrb[53].mxu0  ;;  %v4334_v42 = vshrl.u32 %v4333_v23, 23  ;;  %v11185_v57 = vshll.u32 %v4130_v50, 8  ;;  %v11193_v4 = vand.u32 8388607, %v4330_v7 }
 0xa8d   : > { %v4028_v10 = vadd.s32 1, %v7884_v17  ;;  %v11187_v39 = vshll.u32 %v4026_v52, 8 }
 0xa8e   : > { %vm4133_vm15 = vcmp.gt.s32.totalorder %v4132_v2, 0  ;;  %v11189_v56 = vadd.s32 4294967169, %v4334_v42 }
 0xa8f   : > { %v4134_v15 = vsel %vm4133_vm15, %v4132_v2, 0  ;;  %vm4029_vm7 = vcmp.gt.s32.totalorder %v4028_v10, 0  ;;  %v11179_v28 = vpop.f32.mrb[54].mxu0 }
 0xa90   : > { %v4135_v18 = vshrl.u32 %v4134_v15, 5  ;;  %v4136_v26 = vand.u32 31, %v4134_v15  ;;  %v4030_v21 = vsel %vm4029_vm7, %v4028_v10, 0  ;;  %v11198_v19 = vpop.f32.mrb[55].mxu0 }
 0xa91   : > { %v11196_v60 = vshrl.u32 %v4030_v21, 5  ;;  %v4032_v32 = vand.u32 31, %v4030_v21 }
 0xa92   : > { %v4137_v31 = vsub.s32 32, %v4136_v26  ;;  %v4139_v12 = vshll.u32 %v9310_v43, %v4136_v26  ;;  %v4142_v22 = vshll.u32 %v9311_v47, %v4136_v26  ;;  %v4145_v5 = vshll.u32 %v9312_v49, %v4136_v26 }
 0xa93   : > { %v4148_v20 = vshll.u32 %v9313_v51, %v4136_v26  ;;  %v4151_v11 = vshll.u32 %v9314_v53, %v4136_v26  ;;  %vm4154_vm4 = vcmp.lt.s32.totalorder %v4135_v18, 1  ;;  %vm4155_vm9 = vcmp.lt.s32.totalorder %v4135_v18, 2 }
 0xa94   : > { %v4140_v63 = vshrl.u32 %v9311_v47, %v4137_v31  ;;  %v4143_v16 = vshrl.u32 %v9312_v49, %v4137_v31  ;;  %v4146_v14 = vshrl.u32 %v9313_v51, %v4137_v31  ;;  %v4138_v1 = vshrl.u32 %v9310_v43, %v4137_v31 }
 0xa95   : > { %v4149_v3 = vshrl.u32 %v9314_v53, %v4137_v31  ;;  %v4152_v58 = vshrl.u32 %v9315_v62, %v4137_v31  ;;  %v4033_v0 = vsub.s32 32, %v4032_v32  ;;  %vm4156_vm12 = vcmp.lt.s32.totalorder %v4135_v18, 3 }
 0xa96   : > { %v4141_v55 = vor.u32 %v4140_v63, %v4139_v12  ;;  %v4144_v48 = vor.u32 %v4143_v16, %v4142_v22  ;;  %v4147_v59 = vor.u32 %v4146_v14, %v4145_v5  ;;  %vm4157_vm6 = vcmp.lt.s32.totalorder %v4135_v18, 4 }
 0xa97   : > { %v4150_v38 = vor.u32 %v4149_v3, %v4148_v20  ;;  %v4153_v6 = vor.u32 %v4152_v58, %v4151_v11  ;;  %v4035_v2 = vshll.u32 %v9310_v43, %v4032_v32  ;;  %v4036_v52 = vshrl.u32 %v9311_v47, %v4033_v0 }
 0xa98   : > { %v4158_v13 = vsel %vm4154_vm4, %v4138_v1, %v4141_v55  ;;  %v4159_v35 = vsel %vm4157_vm6, %v4147_v59, 2102212464  ;;  %v4162_v29 = vsel %vm4154_vm4, %v4141_v55, %v4144_v48  ;;  %v4166_v41 = vsel %vm4154_vm4, %v4144_v48, %v4147_v59 }
 0xa99   : > { %v4160_v61 = vsel %vm4156_vm12, %v4144_v48, %v4159_v35  ;;  %v4163_v30 = vsel %vm4157_vm6, %v4150_v38, 920167782  ;;  %v4167_v17 = vsel %vm4157_vm6, %v4153_v6, 1326507024  ;;  %v4038_v10 = vshll.u32 %v9311_v47, %v4032_v32 }
 0xa9a   : > { %v4164_v23 = vsel %vm4156_vm12, %v4147_v59, %v4163_v30  ;;  %v4168_v50 = vsel %vm4156_vm12, %v4150_v38, %v4167_v17  ;;  %v4161_v42 = vsel %vm4155_vm9, %v4158_v13, %v4160_v61  ;;  %v4039_v21 = vshrl.u32 %v9312_v49, %v4033_v0 }
 0xa9b   : > { %v4165_v15 = vsel %vm4155_vm9, %v4162_v29, %v4164_v23  ;;  %v4169_v26 = vsel %vm4155_vm9, %v4166_v41, %v4168_v50  ;;  %v4037_v20 = vor.u32 %v4036_v52, %v4035_v2  ;;  %v4041_v63 = vshll.u32 %v9312_v49, %v4032_v32 }
 0xa9c   : > { %v11221_v31 = vmul.u32.u64.low %v11185_v57, %v4169_v26  ;;  %v11222_v12 = vmul.u32.u64.high %v11185_v57, %v4169_v26, %v11221_v31  ;;  %v11225_v22 = vmul.u32.u64.low %v11185_v57, %v4165_v15  ;;  %v11226_v5 = vmul.u32.u64.high %v11185_v57, %v4165_v15, %v11225_v22 }
 0xa9d   : > { %v4040_v11 = vor.u32 %v4039_v21, %v4038_v10  ;;  %v4042_v16 = vshrl.u32 %v9313_v51, %v4033_v0  ;;  %v4034_v14 = vshrl.u32 %v9310_v43, %v4033_v0  ;;  %v4044_v18 = vshll.u32 %v9313_v51, %v4032_v32 }
 0xa9e   : > { %v4045_v1 = vshrl.u32 %v9314_v53, %v4033_v0  ;;  %v4048_v3 = vshrl.u32 %v9315_v62, %v4033_v0  ;;  %v4177_v58 = vmul.u32 %v11185_v57, %v4161_v42  ;;  %v4047_v48 = vshll.u32 %v9314_v53, %v4032_v32 }
 0xa9f   : > { %v4043_v55 = vor.u32 %v4042_v16, %v4041_v63  ;;  %vm4050_vm3 = vcmp.lt.s32.totalorder %v11196_v60, 1  ;;  %vm4179_vm2 = vc.u32 %v11222_v12, %v11225_v22  ;;  %v4180_v59 = vadd.s32 1, %v11226_v5 }
 0xaa0   : > { %v4046_v38 = vor.u32 %v4045_v1, %v4044_v18  ;;  %vm4051_vm10 = vcmp.lt.s32.totalorder %v11196_v60, 2  ;;  %v4049_v6 = vor.u32 %v4048_v3, %v4047_v48  ;;  %vm4052_vm11 = vcmp.lt.s32.totalorder %v11196_v60, 3 }
 0xaa1   : > { %vm4053_vm13 = vcmp.lt.s32.totalorder %v11196_v60, 4  ;;  %v4058_v0 = vsel %vm4050_vm3, %v4037_v20, %v4040_v11  ;;  %v4181_v57 = vsel %vm4179_vm2, %v4180_v59, %v11226_v5  ;;  %v4062_v32 = vsel %vm4050_vm3, %v4040_v11, %v4043_v55 }
 0xaa2   : > { %v4055_v13 = vsel %vm4053_vm13, %v4043_v55, 2102212464  ;;  %v4059_v35 = vsel %vm4053_vm13, %v4046_v38, 920167782  ;;  %v4182_v29 = vadd.s32 %v4181_v57, %v4177_v58  ;;  %v4054_v41 = vsel %vm4050_vm3, %v4034_v14, %v4037_v20 }
 0xaa3   : > { %v4060_v61 = vsel %vm4052_vm11, %v4043_v55, %v4059_v35  ;;  %v4063_v30 = vsel %vm4053_vm13, %v4049_v6, 1326507024  ;;  %v4056_v17 = vsel %vm4052_vm11, %v4040_v11, %v4055_v13  ;;  %v4340_v50 = vadd.s32 1, %v11189_v56 }
 0xaa4   : > { %v4061_v2 = vsel %vm4051_vm10, %v4058_v0, %v4060_v61  ;;  %v4064_v23 = vsel %vm4052_vm11, %v4046_v38, %v4063_v30  ;;  %v4183_v52 = vadd.s32 536870912, %v4182_v29  ;;  %v4057_v5 = vsel %vm4051_vm10, %v4054_v41, %v4056_v17 }
 0xaa5   : > { %v4065_v10 = vsel %vm4051_vm10, %v4062_v32, %v4064_v23  ;;  %v11249_v42 = vmul.u32.u64.low %v11187_v39, %v4061_v2  ;;  %v11250_v15 = vmul.u32.u64.high %v11187_v39, %v4061_v2, %v11249_v42  ;;  %vm4341_vm15 = vcmp.gt.s32.totalorder %v4340_v50, 0 }
 0xaa6   : > { %v11254_v26 = vmul.u32.u64.low %v11187_v39, %v4065_v10  ;;  %v11255_v21 = vmul.u32.u64.high %v11187_v39, %v4065_v10, %v11254_v26  ;;  %v4184_v31 = vshrl.u32 %v4183_v52, 30  ;;  %v4342_v20 = vsel %vm4341_vm15, %v4340_v50, 0 }
 0xaa7   : > { %v4344_v56 = vand.u32 31, %v4342_v20  ;;  %v4229_v11 = vand.u32 2139095040, %v11183_v36  ;;  %v4076_v16 = vadd.s32 1, %v11250_v15  ;;  %v4338_v14 = vor.u32 8388608, %v11193_v4 }
 0xaa8   : > { %v4185_v63 = vshll.u32 %v4184_v31, 30  ;;  %v4073_v18 = vmul.u32 %v11187_v39, %v4057_v5  ;;  %vm4075_vm7 = vc.u32 %v11255_v21, %v11249_v42  ;;  %vm4124_vm4 = vcmp.lt.s32.totalorder %v11147_v37, 0 }
 0xaa9   : > { %v4345_v1 = vsub.s32 32, %v4344_v56  ;;  %v4077_v60 = vsel %vm4075_vm7, %v4076_v16, %v11250_v15  ;;  %v4230_v55 = vshrl.u32 %v4229_v11, 23  ;;  %v11270_v59 = vshll.u32 %v4338_v14, 8 }
 0xaaa   : > { %v11265_v3 = vsub.s32 %v4182_v29, %v4185_v63  ;;  %v4078_v58 = vadd.s32 %v4077_v60, %v4073_v18  ;;  %v4226_v4 = vand.u32 2147483647, %v11183_v36  ;;  %v4178_v39 = vadd.s32 %v11225_v22, %v11222_v12 }
 0xaab   : > { %v4208_v38 = vsub.s32 4, %v4184_v31  ;;  %v4348_v0 = vshrl.u32 %v9311_v47, %v4345_v1  ;;  %v4343_v13 = vshrl.u32 %v4342_v20, 5  ;;  %v4351_v35 = vshrl.u32 %v9312_v49, %v4345_v1 }
 0xaac   : > { %v4188_v48 = vsub.s32 0, %v11265_v3  ;;  %v4079_v6 = vadd.s32 536870912, %v4078_v58  ;;  %v4354_v32 = vshrl.u32 %v9313_v51, %v4345_v1  ;;  %v4347_v41 = vshll.u32 %v9310_v43, %v4344_v56 }
 0xaad   : > { %v4357_v61 = vshrl.u32 %v9314_v53, %v4345_v1  ;;  %v7892_v30 = vadd.s32 4294967169, %v4230_v55  ;;  %vm4020_vm9 = vcmp.lt.s32.totalorder %v11153_v24, 0  ;;  %v4350_v12 = vshll.u32 %v9311_v47, %v4344_v56 }
 0xaae   : > { %v7889_v57 = vmin.u32 %v4188_v48, %v11265_v3  ;;  %v4080_v29 = vshrl.u32 %v4079_v6, 30  ;;  %v4353_v22 = vshll.u32 %v9312_v49, %v4344_v56  ;;  %v4360_v2 = vshrl.u32 %v9315_v62, %v4345_v1 }
 0xaaf   : > { %v11286_v23 = vsel %vm4124_vm4, %v4208_v38, %v4184_v31  ;;  %v4349_v52 = vor.u32 %v4348_v0, %v4347_v41  ;;  %v4356_v10 = vshll.u32 %v9313_v51, %v4344_v56  ;;  %v4352_v26 = vor.u32 %v4351_v35, %v4350_v12 }
 0xab0   : > { %v4190_v17 = vclz %v7889_v57  ;;  %v4081_v50 = vshll.u32 %v4080_v29, 30  ;;  %v4355_v5 = vor.u32 %v4354_v32, %v4353_v22  ;;  %v4359_v20 = vshll.u32 %v9314_v53, %v4344_v56 }
 0xab1   : > { %v4104_v63 = vsub.s32 4, %v4080_v29  ;;  %v4346_v16 = vshrl.u32 %v9310_v43, %v4345_v1  ;;  %v4358_v14 = vor.u32 %v4357_v61, %v4356_v10  ;;  %vm11295_vm12 = vcmp.le.f32.partialorder %v4122_v25, 0.7853982 }
 0xab2   : > { %v7890_v15 = vadd.s32 4294967294, %v4190_v17  ;;  %v11290_v11 = vsub.s32 %v4078_v58, %v4081_v50  ;;  %v4361_v18 = vor.u32 %v4360_v2, %v4359_v20  ;;  %vm4362_vm3 = vcmp.lt.s32.totalorder %v4343_v13, 1 }
 0xab3   : > { %vm4363_vm2 = vcmp.lt.s32.totalorder %v4343_v13, 2  ;;  %vm11301_vm10 = vcmp.le.f32.partialorder %v4018_v54, 0.7853982  ;;  %vm4364_vm11 = vcmp.lt.s32.totalorder %v4343_v13, 3  ;;  %vm4365_vm13 = vcmp.lt.s32.totalorder %v4343_v13, 4 }
 0xab4   : > { %vm7891_vm6 = vcmp.lt.s32.totalorder %v7890_v15, 0  ;;  %v4084_v1 = vsub.s32 0, %v11290_v11  ;;  %v4367_v55 = vsel %vm4365_vm13, %v4355_v5, 2102212464  ;;  %v4370_v48 = vsel %vm4362_vm3, %v4349_v52, %v4352_v26 }
 0xab5   : > { %v4193_v60 = vsel %vm7891_vm6, 0, %v7890_v15  ;;  %v4371_v0 = vsel %vm4365_vm13, %v4358_v14, 920167782  ;;  %v4374_v57 = vsel %vm4362_vm3, %v4352_v26, %v4355_v5  ;;  %v4375_v41 = vsel %vm4365_vm13, %v4361_v18, 1326507024 }
 0xab6   : > { %v4194_v58 = vsub.s32 32, %v4193_v60  ;;  %v4198_v25 = vsub.s32 4294967266, %v4193_v60  ;;  %v4195_v38 = vshll.u32 %v11265_v3, %v4193_v60  ;;  %v7885_v6 = vmin.u32 %v4084_v1, %v11290_v11 }
 0xab7   : > { %v4372_v32 = vsel %vm4364_vm11, %v4355_v5, %v4371_v0  ;;  %v4105_v17 = vsel %vm4020_vm9, %v4104_v63, %v4080_v29  ;;  %v4366_v12 = vsel %vm4362_vm3, %v4346_v16, %v4349_v52  ;;  %v4368_v22 = vsel %vm4364_vm11, %v4352_v26, %v4367_v55 }
 0xab8   : > { %v4196_v54 = vshrl.u32 %v4178_v39, %v4194_v58  ;;  %v4199_v35 = vadd.s32 127, %v4198_v25  ;;  %v4086_v61 = vclz %v7885_v6  ;;  %v4373_v50 = vsel %vm4363_vm2, %v4370_v48, %v4372_v32 }
 0xab9   : > { %v4376_v10 = vsel %vm4364_vm11, %v4358_v14, %v4375_v41  ;;  %v11319_v5 = vmul.u32.u64.low %v11270_v59, %v4373_v50  ;;  %v11320_v20 = vmul.u32.u64.high %v11270_v59, %v4373_v50, %v11319_v5  ;;  %v4369_v29 = vsel %vm4363_vm2, %v4366_v12, %v4368_v22  ;;  %v11348_v50 = vld [vmem:[#allocation2 + $0x3] ss:$0 sm:$0xff] }
 0xaba   : > { %v4197_v2 = vor.u32 %v4196_v54, %v4195_v38  ;;  %v4200_v3 = vshll.u32 %v4199_v35, 23  ;;  %v7886_v15 = vadd.s32 4294967294, %v4086_v61  ;;  %v4377_v39 = vsel %vm4363_vm2, %v4374_v57, %v4376_v10 }
 0xabb   : > { %v11325_v52 = vmul.u32.u64.low %v11270_v59, %v4377_v39  ;;  %v11326_v26 = vmul.u32.u64.high %v11270_v59, %v4377_v39, %v11325_v52  ;;  %v4211_v63 = vsel %vm11295_vm12, 0, %v11286_v23  ;;  %v4074_v16 = vadd.s32 %v11249_v42, %v11255_v21 }
 0xabc   : > { %v4201_v18 = vor.u32 4788187, %v4200_v3  ;;  %vm7887_vm15 = vcmp.lt.s32.totalorder %v7886_v15, 0  ;;  %v4236_v14 = vadd.s32 1, %v7892_v30  ;;  %v4204_v1 = vcvt.s32.f32 %v4197_v2 }
 0xabd   : > { %v4089_v58 = vsel %vm7887_vm15, 0, %v7886_v15  ;;  %v4107_v13 = vsel %vm11301_vm10, 0, %v4105_v17  ;;  %v4385_v48 = vmul.u32 %v11270_v59, %v4369_v29  ;;  %v4388_v38 = vadd.s32 1, %v11320_v20 }
 0xabe   : > { %v4202_v60 = vand.u32 2147483647, %v4201_v18  ;;  %v4090_v25 = vsub.s32 32, %v4089_v58  ;;  %v4094_v55 = vsub.s32 4294967266, %v4089_v58  ;;  %v4091_v23 = vshll.u32 %v11290_v11, %v4089_v58 }
 0xabf   : > { %vm4387_vm7 = vc.u32 %v11326_v26, %v11319_v5  ;;  %vm4237_vm6 = vcmp.gt.s32.totalorder %v4236_v14, 0  ;;  %v4215_v54 = vadd.s32 3, %v4211_v63  ;;  %v4233_v61 = vand.u32 8388607, %v4226_v4 }
 0xac0   : > { %v4205_v6 = vmul.f32 %v4204_v1, %v4202_v60  ;;  %v4092_v42 = vshrl.u32 %v4074_v16, %v4090_v25  ;;  %v4095_v21 = vadd.s32 127, %v4094_v55  ;;  %v4389_v30 = vsel %vm4387_vm7, %v4388_v38, %v11320_v20 }
 0xac1   : > { %v4238_v0 = vsel %vm4237_vm6, %v4236_v14, 0  ;;  %v4390_v35 = vadd.s32 %v4389_v30, %v4385_v48  ;;  %v4111_v17 = vadd.s32 3, %v4107_v13  ;;  %v11352_v10 = vmul.f32 %v11348_v50, %v11141_v9 }
 0xac2   : > { %v4206_v57 = vxor.u32 2147483648, %v4205_v6  ;;  %v4240_v32 = vand.u32 31, %v4238_v0  ;;  %v4093_v41 = vor.u32 %v4092_v42, %v4091_v23  ;;  %v4096_v59 = vshll.u32 %v4095_v21, 23 }
 0xac3   : > { %v4391_v12 = vadd.s32 536870912, %v4390_v35  ;;  %v11354_v15 = vand.u32 3, %v4215_v54  ;;  %v11360_v20 = vmul.f32 %v11348_v50, %v11149_v44  ;;  %v11362_v29 = vand.u32 3, %v4111_v17 }
 0xac4   : > { %v4207_v11 = vsel %vm4124_vm4, %v4206_v57, %v4205_v6  ;;  %v4241_v22 = vsub.s32 32, %v4240_v32  ;;  %v4097_v3 = vor.u32 4788187, %v4096_v59  ;;  %v4100_v31 = vcvt.s32.f32 %v4093_v41 }
 0xac5   : > { %v4210_v2 = vsel %vm11295_vm12, %v11147_v37, %v4207_v11  ;;  %v11356_v39 = vshrl.u32 %v4391_v12, 30  ;;  %v4234_v63 = vor.u32 8388608, %v4233_v61  ;;  %v4252_v60 = vshll.u32 %v9313_v51, %v4240_v32 }
 0xac6   : > { %9069 = vcosq.f32 %v4210_v2  ;;  %v4098_v18 = vand.u32 2147483647, %v4097_v3  ;;  %v4244_v9 = vshrl.u32 %v9311_v47, %v4241_v22  ;;  %v4250_v14 = vshrl.u32 %v9313_v51, %v4241_v22 }
 0xac7   : > { %9071 = vsinq.f32 %v4210_v2  ;;  %v4393_v52 = vshll.u32 %v11356_v39, 30  ;;  %v4253_v1 = vshrl.u32 %v9314_v53, %v4241_v22  ;;  %vm4221_vm4 = vcmp.eq.s32.totalorder %v11354_v15, 2 }
 0xac8   : > { %v4101_v16 = vmul.f32 %v4100_v31, %v4098_v18  ;;  %v11372_v58 = vshrl.u32 %v4238_v0, 5  ;;  %v4243_v13 = vshll.u32 %v9310_v43, %v4240_v32  ;;  %v4247_v25 = vshrl.u32 %v9312_v49, %v4241_v22 }
 0xac9   : > { %v11370_v44 = vsub.s32 %v4390_v35, %v4393_v52  ;;  %vm4218_vm12 = vcmp.eq.s32.totalorder %v11354_v15, 0  ;;  %v4249_v48 = vshll.u32 %v9312_v49, %v4240_v32  ;;  %v4254_v38 = vor.u32 %v4253_v1, %v4252_v60 }
 0xaca   : > { %v4102_v55 = vxor.u32 2147483648, %v4101_v16  ;;  %v4256_v6 = vshrl.u32 %v9315_v62, %v4241_v22  ;;  %vm4217_vm3 = vcmp.lt.s32.totalorder %v11354_v15, 2  ;;  %v4386_v23 = vadd.s32 %v11319_v5, %v11326_v26 }
 0xacb   : > { %v4396_v42 = vsub.s32 0, %v11370_v44  ;;  %v4246_v21 = vshll.u32 %v9311_v47, %v4240_v32  ;;  %v11386_v30 = vadd.f32 %v11143_v8, %v11173_v46  ;;  %vm4214_vm2 = vweird.f32 %v11147_v37 }
 0xacc   : > { %v4103_v0 = vsel %vm4020_vm9, %v4102_v55, %v4101_v16  ;;  %v4245_v57 = vor.u32 %v4244_v9, %v4243_v13  ;;  %v4251_v54 = vor.u32 %v4250_v14, %v4249_v48  ;;  %v4255_v35 = vshll.u32 %v9314_v53, %v4240_v32 }
 0xacd   : > { %v4106_v5 = vsel %vm11301_vm10, %v11153_v24, %v4103_v0  ;;  %v7897_v26 = vmin.u32 %v4396_v42, %v11370_v44  ;;  %v4248_v41 = vor.u32 %v4247_v25, %v4246_v21  ;;  %vm4261_vm11 = vcmp.lt.s32.totalorder %v11372_v58, 4 }
 0xace   : > { %9073 = vcosq.f32 %v4106_v5  ;;  %v4257_v59 = vor.u32 %v4256_v6, %v4255_v35  ;;  %v4267_v61 = vsel %vm4261_vm11, %v4254_v38, 920167782  ;;  %v11399_v11 = vshll.u32 %v4234_v63, 8 }
 0xacf   : > { %9075 = vsinq.f32 %v4106_v5  ;;  %v4398_v12 = vclz %v7897_v26  ;;  %v4242_v32 = vshrl.u32 %v9310_v43, %v4241_v22  ;;  %vm4258_vm9 = vcmp.lt.s32.totalorder %v11372_v58, 1 }
 0xad0   : > { %v9070_v17 = vpop.eup %9069  ;;  %vm4259_vm10 = vcmp.lt.s32.totalorder %v11372_v58, 2  ;;  %vm4260_vm13 = vcmp.lt.s32.totalorder %v11372_v58, 3  ;;  %v4263_v3 = vsel %vm4261_vm11, %v4251_v54, 2102212464  ;;  %v4266_v52 = vsel %vm4258_vm9, %v4245_v57, %v4248_v41 }
 0xad1   : > { %v9072_v56 = vpop.eup %9071  ;;  %v4222_v2 = vxor.u32 2147483648, %v9070_v17  ;;  %v7898_v31 = vadd.s32 4294967294, %v4398_v12  ;;  %v4268_v63 = vsel %vm4260_vm13, %v4251_v54, %v4267_v61  ;;  %v4262_v16 = vsel %vm4258_vm9, %v4242_v32, %v4245_v57 }
 0xad2   : > { %v4219_v18 = vxor.u32 2147483648, %v9072_v56  ;;  %v4270_v22 = vsel %vm4258_vm9, %v4248_v41, %v4251_v54  ;;  %v4271_v14 = vsel %vm4261_vm11, %v4257_v59, 1326507024  ;;  %v4264_v1 = vsel %vm4260_vm13, %v4248_v41, %v4263_v3 }
 0xad3   : > { %v4223_v9 = vsel %vm4221_vm4, %v4222_v2, %v9072_v56  ;;  %vm7899_vm15 = vcmp.lt.s32.totalorder %v7898_v31, 0  ;;  %v4272_v13 = vsel %vm4260_vm13, %v4254_v38, %v4271_v14  ;;  %v4269_v48 = vsel %vm4259_vm10, %v4266_v52, %v4268_v63  ;;  %v11423_v38 = vld [vmem:[#allocation2 + $0x4] ss:$0 sm:$0xff] }
 0xad4   : > { %v4220_v60 = vsel %vm4218_vm12, %v9070_v17, %v4219_v18  ;;  %v4401_v55 = vsel %vm7899_vm15, 0, %v7898_v31  ;;  %v4273_v6 = vsel %vm4259_vm10, %v4270_v22, %v4272_v13  ;;  %vm4110_vm7 = vweird.f32 %v11153_v24 }
 0xad5   : > { %v4224_v25 = vsel %vm4217_vm3, %v4220_v60, %v4223_v9  ;;  %v4402_v21 = vsub.s32 32, %v4401_v55  ;;  %v4403_v0 = vshll.u32 %v11370_v44, %v4401_v55  ;;  %v4406_v57 = vsub.s32 4294967266, %v4401_v55 }
 0xad6   : > { %v4225_v42 = vsel %vm4214_vm2, nan, %v4224_v25  ;;  %v11427_v54 = vmul.u32.u64.low %v11399_v11, %v4273_v6  ;;  %v11428_v35 = vmul.u32.u64.high %v11399_v11, %v4273_v6, %v11427_v54  ;;  %v4541_v5 = vand.u32 2139095040, %v11386_v30 }
 0xad7   : > { %v4851_v15 = vmul.f32 %v11423_v38, %v4225_v42  ;;  %v4404_v26 = vshrl.u32 %v4386_v23, %v4402_v21  ;;  %v4407_v41 = vadd.s32 127, %v4406_v57  ;;  %vm4113_vm6 = vcmp.lt.s32.totalorder %v11362_v29, 2 }
 0xad8   : > { %v11432_v37 = vmul.u32.u64.low %v11399_v11, %v4269_v48  ;;  %v11433_v59 = vmul.u32.u64.high %v11399_v11, %v4269_v48, %v11432_v37  ;;  %v9074_v61 = vpop.eup %9073  ;;  %vm4114_vm4 = vcmp.eq.s32.totalorder %v11362_v29, 0  ;;  %v4542_v17 = vshrl.u32 %v4541_v5, 23 }
 0xad9   : > { %v4859_v44 = vadd.f32 %v4851_v15, %v11352_v10  ;;  %v9076_v12 = vpop.eup %9075  ;;  %v4118_v32 = vxor.u32 2147483648, %v9074_v61  ;;  %v4405_v56 = vor.u32 %v4404_v26, %v4403_v0  ;;  %v4408_v2 = vshll.u32 %v4407_v41, 23  ;;  %v8965_v15 = vld [vmem:[%s12970_s2] sm:$0xff]  }
 0xada   : > { %v4265_v23 = vsel %vm4259_vm10, %v4262_v16, %v4264_v1  ;;  %v4115_v3 = vxor.u32 2147483648, %v9076_v12  ;;  %vm4117_vm12 = vcmp.eq.s32.totalorder %v11362_v29, 2  ;;  %vm4283_vm3 = vc.u32 %v11428_v35, %v11432_v37  ;;  %8497 = vmatprep.subr.bf16.mxu1 %v8965_v15 }
 0xadb   : > { %v7904_v18 = vadd.s32 4294967169, %v4542_v17  ;;  %v4119_v10 = vsel %vm4117_vm12, %v4118_v32, %v9076_v12  ;;  %v4409_v31 = vor.u32 4788187, %v4408_v2  ;;  %v4284_v52 = vadd.s32 1, %v11433_v59  ;;  %8498 = vmatpush3.bf16.msra.mxu1 %v8965_v15 }
 0xadc   : > { %v4538_v63 = vand.u32 2147483647, %v11386_v30  ;;  %v4116_v9 = vsel %vm4114_vm4, %v9074_v61, %v4115_v3  ;;  %v4416_v22 = vsub.s32 4, %v11356_v39  ;;  %v4281_v58 = vmul.u32 %v11399_v11, %v4265_v23 }
 0xadd   : > { %v4548_v16 = vadd.s32 1, %v7904_v18  ;;  %v4120_v14 = vsel %vm4113_vm6, %v4116_v9, %v4119_v10  ;;  %v4410_v60 = vand.u32 2147483647, %v4409_v31  ;;  %v4412_v1 = vcvt.s32.f32 %v4405_v56 }
 0xade   : > { %v4285_v13 = vsel %vm4283_vm3, %v4284_v52, %v11433_v59  ;;  %v4121_v25 = vsel %vm4110_vm7, nan, %v4120_v14  ;;  %vm4332_vm2 = vcmp.lt.s32.totalorder %v11171_v27, 0  ;;  %v4545_v11 = vand.u32 8388607, %v4538_v63 }
 0xadf   : > { %v4286_v55 = vadd.s32 %v4285_v13, %v4281_v58  ;;  %vm4549_vm11 = vcmp.gt.s32.totalorder %v4548_v16, 0  ;;  %v4850_v48 = vmul.f32 %v11423_v38, %v4121_v25  ;;  %v4413_v6 = vmul.f32 %v4412_v1, %v4410_v60 }
 0xae0   : > { %v4550_v42 = vsel %vm4549_vm11, %v4548_v16, 0  ;;  %v4417_v29 = vsel %vm4332_vm2, %v4416_v22, %v11356_v39  ;;  %vm11465_vm9 = vcmp.le.f32.partialorder %v4330_v7, 0.7853982  ;;  %v4546_v59 = vor.u32 8388608, %v4545_v11 }
 0xae1   : > { %v4287_v21 = vadd.s32 536870912, %v4286_v55  ;;  %v4552_v0 = vand.u32 31, %v4550_v42  ;;  %v4858_v24 = vadd.f32 %v4850_v48, %v11360_v20  ;;  %v4414_v57 = vxor.u32 2147483648, %v4413_v6 }
 0xae2   : > { %v4419_v39 = vsel %vm11465_vm9, 0, %v4417_v29  ;;  %v4551_v23 = vshrl.u32 %v4550_v42, 5  ;;  %v11493_v58 = vadd.f32 %v11143_v8, %v11176_v34  ;;  %v11497_v1 = vshll.u32 %v4546_v59, 8 }
 0xae3   : > { %v11469_v54 = vshrl.u32 %v4287_v21, 30  ;;  %v4553_v5 = vsub.s32 32, %v4552_v0  ;;  %v4866_v26 = vpack.c.bf16 %v4859_v44, %v4858_v24  ;;  %v4415_v41 = vsel %vm4332_vm2, %v4414_v57, %v4413_v6 }
 0xae4   : > { %v4418_v20 = vsel %vm11465_vm9, %v11171_v27, %v4415_v41  ;;  %v4555_v61 = vshll.u32 %v9310_v43, %v4552_v0  ;;  %v4558_v17 = vshll.u32 %v9311_v47, %v4552_v0  ;;  %v4561_v32 = vshll.u32 %v9312_v49, %v4552_v0 }
 0xae5   : > { %v4289_v7 = vshll.u32 %v11469_v54, 30  ;;  %v4556_v12 = vshrl.u32 %v9311_v47, %v4553_v5  ;;  %v4559_v44 = vshrl.u32 %v9312_v49, %v4553_v5  ;;  %v4562_v56 = vshrl.u32 %v9313_v51, %v4553_v5  ;;  %8505 = vmatprep.mubr.msk.bf16.mxu1 %vm1443_vm14, %v4866_v26 }
 0xae6   : > { %v4564_v3 = vshll.u32 %v9313_v51, %v4552_v0  ;;  %v4565_v18 = vshrl.u32 %v9314_v53, %v4553_v5  ;;  %9077 = vcosq.f32 %v4418_v20  ;;  %v4423_v16 = vadd.s32 3, %v4419_v39 }
 0xae7   : > { %v11486_v2 = vsub.s32 %v4286_v55, %v4289_v7  ;;  %v4557_v10 = vor.u32 %v4556_v12, %v4555_v61  ;;  %v4560_v31 = vor.u32 %v4559_v44, %v4558_v17  ;;  %v4563_v52 = vor.u32 %v4562_v56, %v4561_v32 }
 0xae8   : > { %9079 = vsinq.f32 %v4418_v20  ;;  %v4566_v22 = vor.u32 %v4565_v18, %v4564_v3  ;;  %v4567_v14 = vshll.u32 %v9314_v53, %v4552_v0  ;;  %v4568_v60 = vshrl.u32 %v9315_v62, %v4553_v5 }
 0xae9   : > { %v4292_v9 = vsub.s32 0, %v11486_v2  ;;  %v4554_v25 = vshrl.u32 %v9310_v43, %v4553_v5  ;;  %vm4570_vm10 = vcmp.lt.s32.totalorder %v4551_v23, 1  ;;  %vm4573_vm13 = vcmp.lt.s32.totalorder %v4551_v23, 4 }
 0xaea   : > { %v4569_v55 = vor.u32 %v4568_v60, %v4567_v14  ;;  %v4575_v48 = vsel %vm4573_vm13, %v4563_v52, 2102212464  ;;  %v4578_v6 = vsel %vm4570_vm10, %v4557_v10, %v4560_v31  ;;  %v4579_v11 = vsel %vm4573_vm13, %v4566_v22, 920167782 }
 0xaeb   : > { %v7893_v13 = vmin.u32 %v4292_v9, %v11486_v2  ;;  %vm4571_vm15 = vcmp.lt.s32.totalorder %v4551_v23, 2  ;;  %vm4572_vm7 = vcmp.lt.s32.totalorder %v4551_v23, 3  ;;  %v4437_v29 = vand.u32 2139095040, %v11493_v58 }
 0xaec   : > { %v4574_v21 = vsel %vm4570_vm10, %v4554_v25, %v4557_v10  ;;  %v4580_v0 = vsel %vm4572_vm7, %v4563_v52, %v4579_v11  ;;  %v4582_v24 = vsel %vm4570_vm10, %v4560_v31, %v4563_v52  ;;  %v4583_v57 = vsel %vm4573_vm13, %v4569_v55, 1326507024  ;;  %v8966_v10 = vld [vmem:[%s12970_s2 + $0x8] sm:$0xff]  }
 0xaed   : > { %v4294_v42 = vclz %v7893_v13  ;;  %v4576_v26 = vsel %vm4572_vm7, %v4560_v31, %v4575_v48  ;;  %v4581_v41 = vsel %vm4571_vm15, %v4578_v6, %v4580_v0  ;;  %v4584_v39 = vsel %vm4572_vm7, %v4566_v22, %v4583_v57  ;;  %8499 = vmatprep.subr.bf16.mxu1 %v8966_v10 }
 0xaee   : > { %v4312_v59 = vsub.s32 4, %v11469_v54  ;;  %v4585_v20 = vsel %vm4571_vm15, %v4582_v24, %v4584_v39  ;;  %v11509_v7 = vmul.u32.u64.low %v11497_v1, %v4581_v41  ;;  %v11510_v61 = vmul.u32.u64.high %v11497_v1, %v4581_v41, %v11509_v7  ;;  %8500 = vmatpush3.bf16.msra.mxu1 %v8966_v10 }
 0xaef   : > { %v7894_v5 = vadd.s32 4294967294, %v4294_v42  ;;  %v11515_v17 = vmul.f32 %v11348_v50, %v11161_v33  ;;  %v11518_v12 = vmul.u32.u64.low %v11497_v1, %v4585_v20  ;;  %v11519_v44 = vmul.u32.u64.high %v11497_v1, %v4585_v20, %v11518_v12 }
 0xaf0   : > { %v9078_v32 = vpop.eup %9077  ;;  %vm4228_vm4 = vcmp.lt.s32.totalorder %v11183_v36, 0  ;;  %v4577_v3 = vsel %vm4571_vm15, %v4574_v21, %v4576_v26  ;;  %v4438_v18 = vshrl.u32 %v4437_v29, 23  ;;  %v4424_v33 = vand.u32 3, %v4423_v16 }
 0xaf1   : > { %vm7895_vm6 = vcmp.lt.s32.totalorder %v7894_v5, 0  ;;  %v4282_v52 = vadd.s32 %v11432_v37, %v11428_v35  ;;  %v4313_v14 = vsel %vm4228_vm4, %v4312_v59, %v11469_v54  ;;  %v4596_v60 = vadd.s32 1, %v11510_v61  ;;  %v8967_v54 = vld [vmem:[%s12970_s2 + $0x10] sm:$0xff]  }
 0xaf2   : > { %v4297_v56 = vsel %vm7895_vm6, 0, %v7894_v5  ;;  %v9080_v31 = vpop.eup %9079  ;;  %v4434_v23 = vand.u32 2147483647, %v11493_v58  ;;  %v7900_v13 = vadd.s32 4294967169, %v4438_v18  ;;  %v4593_v16 = vmul.u32 %v11497_v1, %v4577_v3  ;;  %8501 = vmatprep.subr.bf16.mxu1 %v8967_v54 }
 0xaf3   : > { %v4298_v9 = vsub.s32 32, %v4297_v56  ;;  %v4302_v22 = vsub.s32 4294967266, %v4297_v56  ;;  %v4299_v25 = vshll.u32 %v11486_v2, %v4297_v56  ;;  %v4427_v35 = vxor.u32 2147483648, %v9080_v31  ;;  %8502 = vmatpush3.bf16.msra.mxu1 %v8967_v54 }
 0xaf4   : > { %v4430_v37 = vxor.u32 2147483648, %v9078_v32  ;;  %vm4595_vm12 = vc.u32 %v11519_v44, %v11509_v7  ;;  %v4444_v6 = vadd.s32 1, %v7900_v13  ;;  %vm11542_vm3 = vcmp.le.f32.partialorder %v4226_v4, 0.7853982 }
 0xaf5   : > { %v4300_v55 = vshrl.u32 %v4282_v52, %v4298_v9  ;;  %v4303_v48 = vadd.s32 127, %v4302_v22  ;;  %v4597_v1 = vsel %vm4595_vm12, %v4596_v60, %v11510_v61  ;;  %vm4426_vm2 = vcmp.eq.s32.totalorder %v4424_v33, 0  ;;  %v8970_v52 = vld [vmem:[%s12971_s3 + $0x8] sm:$0xff]  }
 0xaf6   : > { %vm4429_vm11 = vcmp.eq.s32.totalorder %v4424_v33, 2  ;;  %v4598_v29 = vadd.s32 %v4597_v1, %v4593_v16  ;;  %vm4445_vm9 = vcmp.gt.s32.totalorder %v4444_v6, 0  ;;  %v4315_v0 = vsel %vm11542_vm3, 0, %v4313_v14 }
 0xaf7   : > { %v4301_v2 = vor.u32 %v4300_v55, %v4299_v25  ;;  %v4304_v42 = vshll.u32 %v4303_v48, 23  ;;  %v4441_v24 = vand.u32 8388607, %v4434_v23  ;;  %v4446_v4 = vsel %vm4445_vm9, %v4444_v6, 0 }
 0xaf8   : > { %v4428_v57 = vsel %vm4426_vm2, %v9078_v32, %v4427_v35  ;;  %v4431_v15 = vsel %vm4429_vm11, %v4430_v37, %v9080_v31  ;;  %v4599_v5 = vadd.s32 536870912, %v4598_v29  ;;  %v4448_v26 = vand.u32 31, %v4446_v4 }
 0xaf9   : > { %v4305_v21 = vor.u32 4788187, %v4304_v42  ;;  %vm4422_vm10 = vweird.f32 %v11171_v27  ;;  %v11554_v41 = vmul.f32 %v11348_v50, %v11163_v45  ;;  %v4308_v59 = vcvt.s32.f32 %v4301_v2 }
 0xafa   : > { %vm4425_vm13 = vcmp.lt.s32.totalorder %v4424_v33, 2  ;;  %v4319_v20 = vadd.s32 3, %v4315_v0  ;;  %v11556_v61 = vshrl.u32 %v4599_v5, 30  ;;  %v4449_v12 = vsub.s32 32, %v4448_v26  ;;  %v8969_v33 = vld [vmem:[%s12971_s3] sm:$0xff]  }
 0xafb   : > { %v4306_v39 = vand.u32 2147483647, %v4305_v21  ;;  %v4432_v56 = vsel %vm4425_vm13, %v4428_v57, %v4431_v15  ;;  %v4442_v18 = vor.u32 8388608, %v4441_v24  ;;  %v11560_v32 = vadd.f32 %v11143_v8, %v11179_v28  ;;  %8513 = vmatprep.subr.bf16.mxu0 %v8969_v33 }
 0xafc   : > { %v4601_v10 = vshll.u32 %v11556_v61, 30  ;;  %v11563_v31 = vshrl.u32 %v4446_v4, 5  ;;  %v4451_v45 = vshll.u32 %v9310_v43, %v4448_v26  ;;  %v4452_v50 = vshrl.u32 %v9311_v47, %v4449_v12  ;;  %8514 = vmatpush3.bf16.msra.mxu0 %v8969_v33 }
 0xafd   : > { %v4309_v3 = vmul.f32 %v4308_v59, %v4306_v39  ;;  %v4455_v8 = vshrl.u32 %v9312_v49, %v4449_v12  ;;  %v4458_v22 = vshrl.u32 %v9313_v51, %v4449_v12  ;;  %v4461_v14 = vshrl.u32 %v9314_v53, %v4449_v12  ;;  %8515 = vmatprep.subr.bf16.mxu0 %v8970_v52 }
 0xafe   : > { %v11576_v60 = vsub.s32 %v4598_v29, %v4601_v10  ;;  %v4454_v13 = vshll.u32 %v9311_v47, %v4448_v26  ;;  %v4457_v25 = vshll.u32 %v9312_v49, %v4448_v26  ;;  %v4464_v55 = vshrl.u32 %v9315_v62, %v4449_v12 }
 0xaff   : > { %v4310_v9 = vxor.u32 2147483648, %v4309_v3  ;;  %vm4540_vm15 = vcmp.lt.s32.totalorder %v11386_v30, 0  ;;  %v4453_v16 = vor.u32 %v4452_v50, %v4451_v45  ;;  %v4460_v35 = vshll.u32 %v9313_v51, %v4448_v26 }
 0xb00   : > { %v4463_v37 = vshll.u32 %v9314_v53, %v4448_v26  ;;  %v4604_v54 = vsub.s32 0, %v11576_v60  ;;  %v4456_v2 = vor.u32 %v4455_v8, %v4454_v13  ;;  %v4459_v42 = vor.u32 %v4458_v22, %v4457_v25  ;;  %8516 = vmatpush3.bf16.msra.mxu0 %v8970_v52 }
 0xb01   : > { %v4311_v48 = vsel %vm4228_vm4, %v4310_v9, %v4309_v3  ;;  %v11590_v1 = vand.u32 3, %v4319_v20  ;;  %v4462_v29 = vor.u32 %v4461_v14, %v4460_v35  ;;  %v4433_v0 = vsel %vm4422_vm10, nan, %v4432_v56 }
 0xb02   : > { %v4314_v6 = vsel %vm11542_vm3, %v11183_v36, %v4311_v48  ;;  %v4465_v21 = vor.u32 %v4464_v55, %v4463_v37  ;;  %vm11596_vm7 = vcmp.le.f32.partialorder %v4538_v63, 0.7853982  ;;  %v7905_v11 = vmin.u32 %v4604_v54, %v11576_v60 }
 0xb03   : > { %9081 = vcosq.f32 %v4314_v6  ;;  %v11601_v4 = vshll.u32 %v4442_v18, 8  ;;  %v4624_v57 = vsub.s32 4, %v11556_v61  ;;  %vm4466_vm6 = vcmp.lt.s32.totalorder %v11563_v31, 1 }
 0xb04   : > { %9083 = vsinq.f32 %v4314_v6  ;;  %vm4468_vm4 = vcmp.lt.s32.totalorder %v11563_v31, 3  ;;  %v4749_v27 = vand.u32 2139095040, %v11560_v32  ;;  %v4606_v15 = vclz %v7905_v11 }
 0xb05   : > { %vm4469_vm12 = vcmp.lt.s32.totalorder %v11563_v31, 4  ;;  %v4474_v63 = vsel %vm4466_vm6, %v4453_v16, %v4456_v2  ;;  %v4478_v5 = vsel %vm4466_vm6, %v4456_v2, %v4459_v42  ;;  %vm4325_vm3 = vcmp.eq.s32.totalorder %v11590_v1, 2 }
 0xb06   : > { %v4450_v26 = vshrl.u32 %v9310_v43, %v4449_v12  ;;  %v4471_v39 = vsel %vm4469_vm12, %v4459_v42, 2102212464  ;;  %v4475_v59 = vsel %vm4469_vm12, %v4462_v29, 920167782  ;;  %v4479_v20 = vsel %vm4469_vm12, %v4465_v21, 1326507024 }
 0xb07   : > { %vm4322_vm2 = vcmp.eq.s32.totalorder %v11590_v1, 0  ;;  %v7906_v56 = vadd.s32 4294967294, %v4606_v15  ;;  %vm4467_vm11 = vcmp.lt.s32.totalorder %v11563_v31, 2  ;;  %v4476_v3 = vsel %vm4468_vm4, %v4459_v42, %v4475_v59 }
 0xb08   : > { %v4480_v18 = vsel %vm4468_vm4, %v4462_v29, %v4479_v20  ;;  %vm4321_vm9 = vcmp.lt.s32.totalorder %v11590_v1, 2  ;;  %v4470_v10 = vsel %vm4466_vm6, %v4450_v26, %v4453_v16  ;;  %v4472_v12 = vsel %vm4468_vm4, %v4456_v2, %v4471_v39 }
 0xb09   : > { %v4477_v45 = vsel %vm4467_vm11, %v4474_v63, %v4476_v3  ;;  %v4481_v50 = vsel %vm4467_vm11, %v4478_v5, %v4480_v18  ;;  %vm4318_vm10 = vweird.f32 %v11183_v36  ;;  %vm7907_vm13 = vcmp.lt.s32.totalorder %v7906_v56, 0 }
 0xb0a   : > { %v4625_v33 = vsel %vm4540_vm15, %v4624_v57, %v11556_v61  ;;  %v11634_v52 = vmul.u32.u64.low %v11601_v4, %v4481_v50  ;;  %v11635_v9 = vmul.u32.u64.high %v11601_v4, %v4481_v50, %v11634_v52  ;;  %v4609_v8 = vsel %vm7907_vm13, 0, %v7906_v56 }
 0xb0b   : > { %v11638_v22 = vmul.u32.u64.low %v11601_v4, %v4477_v45  ;;  %v11639_v14 = vmul.u32.u64.high %v11601_v4, %v4477_v45, %v11638_v22  ;;  %v4750_v13 = vshrl.u32 %v4749_v27, 23  ;;  %v4594_v25 = vadd.s32 %v11509_v7, %v11519_v44 }
 0xb0c   : > { %v4610_v55 = vsub.s32 32, %v4609_v8  ;;  %v4614_v48 = vsub.s32 4294967266, %v4609_v8  ;;  %v4473_v16 = vsel %vm4467_vm11, %v4470_v10, %v4472_v12  ;;  %v4853_v35 = vmul.f32 %v11423_v38, %v4433_v0 }
 0xb0d   : > { %v9082_v61 = vpop.eup %9081  ;;  %v4627_v37 = vsel %vm11596_vm7, 0, %v4625_v33  ;;  %v4746_v6 = vand.u32 2147483647, %v11560_v32  ;;  %v7912_v54 = vadd.s32 4294967169, %v4750_v13  ;;  %v4611_v29 = vshll.u32 %v11576_v60, %v4609_v8 }
 0xb0e   : > { %v9084_v2 = vpop.eup %9083  ;;  %v4326_v42 = vxor.u32 2147483648, %v9082_v61  ;;  %v4612_v21 = vshrl.u32 %v4594_v25, %v4610_v55  ;;  %v4615_v7 = vadd.s32 127, %v4614_v48  ;;  %v4489_v11 = vmul.u32 %v11601_v4, %v4473_v16  ;;  %v9146_v4 = vld [vmem:[#allocation2 + $0x5] ss:$0 sm:$0xff] }
 0xb0f   : > { %v4323_v44 = vxor.u32 2147483648, %v9084_v2  ;;  %vm4491_vm6 = vc.u32 %v11635_v9, %v11638_v22  ;;  %v4492_v31 = vadd.s32 1, %v11639_v14  ;;  %v4756_v15 = vadd.s32 1, %v7912_v54 }
 0xb10   : > { %v4327_v0 = vsel %vm4325_vm3, %v4326_v42, %v9084_v2  ;;  %v4613_v57 = vor.u32 %v4612_v21, %v4611_v29  ;;  %v4616_v27 = vshll.u32 %v4615_v7, 23  ;;  %v11658_v63 = vadd.f32 %v4853_v35, %v11515_v17 }
 0xb11   : > { %v4324_v60 = vsel %vm4322_vm2, %v9082_v61, %v4323_v44  ;;  %v4493_v5 = vsel %vm4491_vm6, %v4492_v31, %v11639_v14  ;;  %v11664_v26 = vadd.f32 %v9146_v4, %v11198_v19  ;;  %v4631_v20 = vadd.s32 3, %v4627_v37 }
 0xb12   : > { %v4328_v39 = vsel %vm4321_vm9, %v4324_v60, %v4327_v0  ;;  %v4617_v59 = vor.u32 4788187, %v4616_v27  ;;  %v4494_v56 = vadd.s32 %v4493_v5, %v4489_v11  ;;  %v4620_v17 = vcvt.s32.f32 %v4613_v57 }
 0xb13   : > { %v4329_v3 = vsel %vm4318_vm10, nan, %v4328_v39  ;;  %v4753_v18 = vand.u32 8388607, %v4746_v6  ;;  %vm4757_vm4 = vcmp.gt.s32.totalorder %v4756_v15, 0  ;;  %v4645_v1 = vand.u32 2139095040, %v11664_v26 }
 0xb14   : > { %v4852_v10 = vmul.f32 %v11423_v38, %v4329_v3  ;;  %v4618_v12 = vand.u32 2147483647, %v4617_v59  ;;  %v4495_v45 = vadd.s32 536870912, %v4494_v56  ;;  %v4758_v50 = vsel %vm4757_vm4, %v4756_v15, 0 }
 0xb15   : > { %v4760_v33 = vand.u32 31, %v4758_v50  ;;  %v11679_v36 = vand.u32 3, %v4631_v20  ;;  %v4754_v13 = vor.u32 8388608, %v4753_v18  ;;  %v4642_v61 = vand.u32 2147483647, %v11664_v26 }
 0xb16   : > { %v11675_v52 = vadd.f32 %v4852_v10, %v11554_v41  ;;  %v4621_v8 = vmul.f32 %v4620_v17, %v4618_v12  ;;  %v11677_v14 = vshrl.u32 %v4495_v45, 30  ;;  %v4646_v54 = vshrl.u32 %v4645_v1, 23 }
 0xb17   : > { %v4761_v25 = vsub.s32 32, %v4760_v33  ;;  %v4763_v21 = vshll.u32 %v9310_v43, %v4760_v33  ;;  %v4766_v7 = vshll.u32 %v9311_v47, %v4760_v33  ;;  %v4759_v31 = vshrl.u32 %v4758_v50, 5 }
 0xb18   : > { %v4867_v55 = vpack.c.bf16 %v11658_v63, %v11675_v52  ;;  %v4622_v48 = vxor.u32 2147483648, %v4621_v8  ;;  %v4497_v16 = vshll.u32 %v11677_v14, 30  ;;  %v4769_v0 = vshll.u32 %v9312_v49, %v4760_v33 }
 0xb19   : > { %v4764_v35 = vshrl.u32 %v9311_v47, %v4761_v25  ;;  %v4767_v41 = vshrl.u32 %v9312_v49, %v4761_v25  ;;  %v4770_v37 = vshrl.u32 %v9313_v51, %v4761_v25  ;;  %v11702_v57 = vshll.u32 %v4754_v13, 8 }
 0xb1a   : > { %v4623_v42 = vsel %vm4540_vm15, %v4622_v48, %v4621_v8  ;;  %v11692_v29 = vsub.s32 %v4494_v56, %v4497_v16  ;;  %v4772_v4 = vshll.u32 %v9313_v51, %v4760_v33  ;;  %v4773_v20 = vshrl.u32 %v9314_v53, %v4761_v25 }
 0xb1b   : > { %v11688_v2 = vpop.f32.mrb[40].mxu1  ;;  %v4626_v11 = vsel %vm11596_vm7, %v11386_v30, %v4623_v42  ;;  %v4765_v60 = vor.u32 %v4764_v35, %v4763_v21  ;;  %v4768_v5 = vor.u32 %v4767_v41, %v4766_v7  ;;  %v4771_v59 = vor.u32 %v4770_v37, %v4769_v0 }
 0xb1c   : > { %v11696_v44 = vpop.f32.mrb[41].mxu1  ;;  %v4500_v15 = vsub.s32 0, %v11692_v29  ;;  %v4775_v24 = vshll.u32 %v9314_v53, %v4760_v33  ;;  %v4776_v56 = vshrl.u32 %v9315_v62, %v4761_v25  ;;  %9085 = vcosq.f32 %v4626_v11 }
 0xb1d   : > { %v11704_v27 = vpop.f32.mrb[42].mxu1  ;;  %vm4436_vm15 = vcmp.lt.s32.totalorder %v11493_v58, 0  ;;  %v4520_v17 = vsub.s32 4, %v11677_v14  ;;  %v7908_v18 = vadd.s32 4294967169, %v4646_v54  ;;  %9087 = vsinq.f32 %v4626_v11 }
 0xb1e   : > { %v11708_v39 = vpop.f32.mrb[43].mxu1  ;;  %v7901_v3 = vmin.u32 %v4500_v15, %v11692_v29  ;;  %v4762_v10 = vshrl.u32 %v9310_v43, %v4761_v25  ;;  %v4774_v12 = vor.u32 %v4773_v20, %v4772_v4  ;;  %v4777_v45 = vor.u32 %v4776_v56, %v4775_v24 }
 0xb1f   : > { %vm4778_vm7 = vcmp.lt.s32.totalorder %v4759_v31, 1  ;;  %vm4779_vm12 = vcmp.lt.s32.totalorder %v4759_v31, 2  ;;  %vm4781_vm3 = vcmp.lt.s32.totalorder %v4759_v31, 4  ;;  %vm4780_vm2 = vcmp.lt.s32.totalorder %v4759_v31, 3 }
 0xb20   : > { %v4502_v50 = vclz %v7901_v3  ;;  %v4783_v33 = vsel %vm4781_vm3, %v4771_v59, 2102212464  ;;  %v4786_v1 = vsel %vm4778_vm7, %v4765_v60, %v4768_v5  ;;  %v4787_v8 = vsel %vm4781_vm3, %v4774_v12, 920167782 }
 0xb21   : > { %v4782_v48 = vsel %vm4778_vm7, %v4762_v10, %v4765_v60  ;;  %v4788_v16 = vsel %vm4780_vm2, %v4771_v59, %v4787_v8  ;;  %v4790_v35 = vsel %vm4778_vm7, %v4768_v5, %v4771_v59  ;;  %v4784_v41 = vsel %vm4780_vm2, %v4768_v5, %v4783_v33 }
 0xb22   : > { %v7902_v13 = vadd.s32 4294967294, %v4502_v50  ;;  %v4789_v37 = vsel %vm4779_vm12, %v4786_v1, %v4788_v16  ;;  %v4791_v54 = vsel %vm4781_vm3, %v4777_v45, 1326507024  ;;  %v4652_v42 = vadd.s32 1, %v7908_v18 }
 0xb23   : > { %v4792_v25 = vsel %vm4780_vm2, %v4774_v12, %v4791_v54  ;;  %v11719_v21 = vmul.u32.u64.low %v11702_v57, %v4789_v37  ;;  %v11720_v7 = vmul.u32.u64.high %v11702_v57, %v4789_v37, %v11719_v21  ;;  %v4490_v11 = vadd.s32 %v11638_v22, %v11635_v9 }
 0xb24   : > { %vm7903_vm11 = vcmp.lt.s32.totalorder %v7902_v13, 0  ;;  %v4793_v15 = vsel %vm4779_vm12, %v4790_v35, %v4792_v25  ;;  %vm4653_vm9 = vcmp.gt.s32.totalorder %v4652_v42, 0  ;;  %v11728_v4 = vand.u32 8388607, %v4642_v61 }
 0xb25   : > { %v4505_v0 = vsel %vm7903_vm11, 0, %v7902_v13  ;;  %v4654_v59 = vsel %vm4653_vm9, %v4652_v42, 0  ;;  %v4521_v20 = vsel %vm4436_vm15, %v4520_v17, %v11677_v14  ;;  %v4785_v24 = vsel %vm4779_vm12, %v4782_v48, %v4784_v41 }
 0xb26   : > { %v4506_v60 = vsub.s32 32, %v4505_v0  ;;  %v4510_v5 = vsub.s32 4294967266, %v4505_v0  ;;  %v11735_v56 = vmul.u32.u64.low %v11702_v57, %v4793_v15  ;;  %v11736_v9 = vmul.u32.u64.high %v11702_v57, %v4793_v15, %v11735_v56  ;;  %v9086_v22 = vpop.eup %9085 }
 0xb27   : > { %v4507_v3 = vshll.u32 %v11692_v29, %v4505_v0  ;;  %v4804_v12 = vadd.s32 1, %v11720_v7  ;;  %v9088_v45 = vpop.eup %9087  ;;  %vm11742_vm10 = vcmp.le.f32.partialorder %v4434_v23, 0.7853982  ;;  %v4656_v14 = vand.u32 31, %v4654_v59 }
 0xb28   : > { %v4508_v18 = vshrl.u32 %v4490_v11, %v4506_v60  ;;  %v4511_v10 = vadd.s32 127, %v4510_v5  ;;  %v4523_v33 = vsel %vm11742_vm10, 0, %v4521_v20  ;;  %vm4634_vm13 = vcmp.eq.s32.totalorder %v11679_v36, 0 }
 0xb29   : > { %v4801_v29 = vmul.u32 %v11702_v57, %v4785_v24  ;;  %vm4803_vm6 = vc.u32 %v11736_v9, %v11719_v21  ;;  %v4657_v1 = vsub.s32 32, %v4656_v14  ;;  %vm4637_vm4 = vcmp.eq.s32.totalorder %v11679_v36, 2 }
 0xb2a   : > { %v4509_v31 = vor.u32 %v4508_v18, %v4507_v3  ;;  %v4512_v17 = vshll.u32 %v4511_v10, 23  ;;  %v4805_v8 = vsel %vm4803_vm6, %v4804_v12, %v11720_v7  ;;  %v4650_v13 = vor.u32 8388608, %v11728_v4 }
 0xb2b   : > { %v4638_v48 = vxor.u32 2147483648, %v9086_v22  ;;  %v4527_v35 = vadd.s32 3, %v4523_v33  ;;  %v4806_v41 = vadd.s32 %v4805_v8, %v4801_v29  ;;  %v4659_v54 = vshll.u32 %v9310_v43, %v4656_v14 }
 0xb2c   : > { %v4513_v23 = vor.u32 4788187, %v4512_v17  ;;  %v4516_v16 = vcvt.s32.f32 %v4509_v31  ;;  %v4660_v57 = vshrl.u32 %v9311_v47, %v4657_v1  ;;  %v4663_v42 = vshrl.u32 %v9312_v49, %v4657_v1 }
 0xb2d   : > { %v4807_v25 = vadd.s32 536870912, %v4806_v41  ;;  %v11758_v11 = vshrl.u32 %v4654_v59, 5  ;;  %v4662_v0 = vshll.u32 %v9311_v47, %v4656_v14  ;;  %v4666_v7 = vshrl.u32 %v9313_v51, %v4657_v1 }
 0xb2e   : > { %v4514_v37 = vand.u32 2147483647, %v4513_v23  ;;  %v4635_v15 = vxor.u32 2147483648, %v9088_v45  ;;  %v4661_v5 = vor.u32 %v4660_v57, %v4659_v54  ;;  %v4665_v4 = vshll.u32 %v9312_v49, %v4656_v14 }
 0xb2f   : > { %v11763_v20 = vshrl.u32 %v4807_v25, 30  ;;  %v4664_v24 = vor.u32 %v4663_v42, %v4662_v0  ;;  %v4668_v56 = vshll.u32 %v9313_v51, %v4656_v14  ;;  %v4669_v3 = vshrl.u32 %v9314_v53, %v4657_v1 }
 0xb30   : > { %v4517_v60 = vmul.f32 %v4516_v16, %v4514_v37  ;;  %vm4633_vm7 = vcmp.lt.s32.totalorder %v11679_v36, 2  ;;  %v4667_v18 = vor.u32 %v4666_v7, %v4665_v4  ;;  %v4671_v10 = vshll.u32 %v9314_v53, %v4656_v14  ;;  %v8968_v14 = vld [vmem:[%s12970_s2 + $0x18] sm:$0xff]   ;;  %v11793_v16 = vld [vmem:[%s12975_s7] ss:$0 sm:$0xff] }
 0xb31   : > { %v4672_v12 = vshrl.u32 %v9315_v62, %v4657_v1  ;;  %v4639_v31 = vsel %vm4637_vm4, %v4638_v48, %v9088_v45  ;;  %v4809_v17 = vshll.u32 %v11763_v20, 30  ;;  %v4670_v33 = vor.u32 %v4669_v3, %v4668_v56 }
 0xb32   : > { %v4518_v59 = vxor.u32 2147483648, %v4517_v60  ;;  %vm4674_vm12 = vcmp.lt.s32.totalorder %v11758_v11, 1  ;;  %v4636_v29 = vsel %vm4634_vm13, %v9086_v22, %v4635_v15  ;;  %vm4675_vm3 = vcmp.lt.s32.totalorder %v11758_v11, 2 }
 0xb33   : > { %v4673_v8 = vor.u32 %v4672_v12, %v4671_v10  ;;  %v11785_v48 = vsub.s32 %v4806_v41, %v4809_v17  ;;  %vm4677_vm2 = vcmp.lt.s32.totalorder %v11758_v11, 4  ;;  %v4682_v22 = vsel %vm4674_vm12, %v4661_v5, %v4664_v24 }
 0xb34   : > { %v4519_v23 = vsel %vm4436_vm15, %v4518_v59, %v4517_v60  ;;  %vm4676_vm15 = vcmp.lt.s32.totalorder %v11758_v11, 3  ;;  %v4679_v37 = vsel %vm4677_vm2, %v4667_v18, 2102212464  ;;  %v4683_v54 = vsel %vm4677_vm2, %v4670_v33, 920167782 }
 0xb35   : > { %v4522_v45 = vsel %vm11742_vm10, %v11493_v58, %v4519_v23  ;;  %v4812_v50 = vsub.s32 0, %v11785_v48  ;;  %v4684_v41 = vsel %vm4676_vm15, %v4667_v18, %v4683_v54  ;;  %v4686_v57 = vsel %vm4674_vm12, %v4664_v24, %v4667_v18 }
 0xb36   : > { %9089 = vcosq.f32 %v4522_v45  ;;  %v4685_v42 = vsel %vm4675_vm3, %v4682_v22, %v4684_v41  ;;  %v4687_v25 = vsel %vm4677_vm2, %v4673_v8, 1326507024  ;;  %v4690_v0 = vshll.u32 %v4650_v13, 8 }
 0xb37   : > { %9091 = vsinq.f32 %v4522_v45  ;;  %v4921_v7 = vand.u32 %v8968_v14, %v10190_v40  ;;  %v7913_v15 = vmin.u32 %v4812_v50, %v11785_v48  ;;  %v4658_v60 = vshrl.u32 %v9310_v43, %v4657_v1 }
 0xb38   : > { %v4688_v4 = vsel %vm4676_vm15, %v4670_v33, %v4687_v25  ;;  %v3810_v56 = vadd.f32 %v11688_v2, %v11793_v16  ;;  %v4528_v3 = vand.u32 3, %v4527_v35  ;;  %v4640_v13 = vsel %vm4633_vm7, %v4636_v29, %v4639_v31 }
 0xb39   : > { %v4689_v59 = vsel %vm4675_vm3, %v4686_v57, %v4688_v4  ;;  %v11812_v18 = vmul.u32.u64.low %v4690_v0, %v4685_v42  ;;  %v11813_v10 = vmul.u32.u64.high %v4690_v0, %v4685_v42, %v11812_v18  ;;  %8503 = vmatprep.subr.bf16.mxu1 %v4921_v7  ;;  %v4814_v1 = vclz %v7913_v15 }
 0xb3a   : > { %v4678_v12 = vsel %vm4674_vm12, %v4658_v60, %v4661_v5  ;;  %v4680_v2 = vsel %vm4676_vm15, %v4664_v24, %v4679_v37  ;;  %8504 = vmatpush3.bf16.msra.mxu1 %v4921_v7  ;;  %3834 = vst.msk [vmem:[%s10991_s11 + $0x50] sm:$0xff] %vm2101_vm5, %v3810_v56  ;;  %v11824_v35 = vmul.u32.u64.low %v4690_v0, %v4689_v59  ;;  %v11825_v17 = vmul.u32.u64.high %v4690_v0, %v4689_v59, %v11824_v35 }
 0xb3b   : > { %v3802_v36 = vadd.f32 %v11793_v16, %v11696_v44  ;;  %v3813_v31 = vadd.f32 %v11704_v27, %v11793_v16  ;;  %v7914_v33 = vadd.s32 4294967294, %v4814_v1  ;;  %v3805_v5 = vadd.f32 %v11793_v16, %v11708_v39 }
 0xb3c   : > { %vm4630_vm11 = vweird.f32 %v11386_v30  ;;  %v4681_v24 = vsel %vm4675_vm3, %v4678_v12, %v4680_v2  ;;  %v4700_v29 = vadd.s32 1, %v11813_v10  ;;  %vm4530_vm9 = vcmp.eq.s32.totalorder %v4528_v3, 0 }
 0xb3d   : > { %8506 = vmatmul.mubr.msk.bf16.vlgmr.msra.gmra.mrb[48].mxu1 %vm1443_vm14, %v4867_v55  ;;  %3832 = vst.msk [vmem:[%s10991_s11 + $0x40] sm:$0xff] %vm2101_vm5, %v3802_v36  ;;  %3835 = vst.msk [vmem:[%s10991_s11 + $0x58] sm:$0xff] %vm2101_vm5, %v3813_v31  ;;  %v4641_v44 = vsel %vm4630_vm11, nan, %v4640_v13  ;;  %vm7915_vm10 = vcmp.lt.s32.totalorder %v7914_v33, 0  ;;  %vm4533_vm13 = vcmp.eq.s32.totalorder %v4528_v3, 2  ;;  %v4802_v27 = vadd.s32 %v11719_v21, %v11736_v9 }
 0xb3e   : > { %3833 = vst.msk [vmem:[%s10991_s11 + $0x48] sm:$0xff] %vm2101_vm5, %v3805_v5  ;;  %v4817_v39 = vsel %vm7915_vm10, 0, %v7914_v33  ;;  %vm4699_vm6 = vc.u32 %v11825_v17, %v11812_v18  ;;  %v4697_v23 = vmul.u32 %v4690_v0, %v4681_v24  ;;  %v4855_v8 = vmul.f32 %v11423_v38, %v4641_v44  ;;  %v11854_v9 = vld [vmem:[#allocation2 + $0x3] ss:$0 sm:$0xff] }
 0xb3f   : > { %v4818_v55 = vsub.s32 32, %v4817_v39  ;;  %v4822_v11 = vsub.s32 4294967266, %v4817_v39  ;;  %v4819_v45 = vshll.u32 %v11785_v48, %v4817_v39  ;;  %v4701_v22 = vsel %vm4699_vm6, %v4700_v29, %v11813_v10 }
 0xb40   : > { %v9090_v30 = vpop.eup %9089  ;;  %v4702_v21 = vadd.s32 %v4701_v22, %v4697_v23  ;;  %v4007_v41 = vmul.f32 %v11854_v9, %v11173_v46  ;;  %vm4526_vm4 = vweird.f32 %v11493_v58  ;;  %vm4529_vm7 = vcmp.lt.s32.totalorder %v4528_v3, 2 }
 0xb41   : > { %v9092_v63 = vpop.eup %9091  ;;  %v4534_v52 = vxor.u32 2147483648, %v9090_v30  ;;  %v4820_v54 = vshrl.u32 %v4802_v27, %v4818_v55  ;;  %v4823_v50 = vadd.s32 127, %v4822_v11  ;;  %v4006_v7 = vmul.f32 %v11854_v9, %v11176_v34 }
 0xb42   : > { %v4531_v14 = vxor.u32 2147483648, %v9092_v63  ;;  %v4703_v48 = vadd.s32 536870912, %v4702_v21  ;;  %v4863_v60 = vadd.f32 %v4855_v8, %v4007_v41  ;;  %vm4748_vm12 = vcmp.lt.s32.totalorder %v11560_v32, 0 }
 0xb43   : > { %v4535_v37 = vsel %vm4533_vm13, %v4534_v52, %v9092_v63  ;;  %v4821_v25 = vor.u32 %v4820_v54, %v4819_v45  ;;  %v4824_v0 = vshll.u32 %v4823_v50, 23  ;;  %vm11869_vm3 = vcmp.le.f32.partialorder %v4746_v6, 0.7853982 }
 0xb44   : > { %v4532_v57 = vsel %vm4530_vm9, %v9090_v30, %v4531_v14  ;;  %v4704_v59 = vshrl.u32 %v4703_v48, 30  ;;  %v4698_v29 = vadd.s32 %v11812_v18, %v11825_v17  ;;  %v4832_v27 = vsub.s32 4, %v11763_v20 }
 0xb45   : > { %v4536_v42 = vsel %vm4529_vm7, %v4532_v57, %v4535_v37  ;;  %v4825_v56 = vor.u32 4788187, %v4824_v0  ;;  %v4828_v13 = vcvt.s32.f32 %v4821_v25  ;;  %vm4644_vm15 = vcmp.lt.s32.totalorder %v11664_v26, 0 }
 0xb46   : > { %v4537_v15 = vsel %vm4526_vm4, nan, %v4536_v42  ;;  %v4705_v58 = vshll.u32 %v4704_v59, 30  ;;  %v4833_v14 = vsel %vm4748_vm12, %v4832_v27, %v11763_v20  ;;  %v4728_v57 = vsub.s32 4, %v4704_v59 }
 0xb47   : > { %v4854_v4 = vmul.f32 %v11423_v38, %v4537_v15  ;;  %v4826_v46 = vand.u32 2147483647, %v4825_v56  ;;  %v4835_v50 = vsel %vm11869_vm3, 0, %v4833_v14  ;;  %vm4643_vm11 = vcmp.le.f32.partialorder %v4642_v61, 0.7853982 }
 0xb48   : > { %v4706_v12 = vsub.s32 %v4702_v21, %v4705_v58  ;;  %v4839_v42 = vadd.s32 3, %v4835_v50  ;;  %vm4838_vm6 = vweird.f32 %v11560_v32  ;;  %v4009_v33 = vmul.f32 %v11854_v9, %v11179_v28  ;;  %v8972_v28 = vld [vmem:[%s12971_s3 + $0x18] sm:$0xff]  }
 0xb49   : > { %v4862_v10 = vadd.f32 %v4854_v4, %v4006_v7  ;;  %v4829_v3 = vmul.f32 %v4828_v13, %v4826_v46  ;;  %v4729_v7 = vsel %vm4644_vm15, %v4728_v57, %v4704_v59 }
 0xb4a   : > { %v4708_v2 = vsub.s32 0, %v4706_v12  ;;  %v4840_v15 = vand.u32 3, %v4839_v42 }
 0xb4b   : > { %v4868_v1 = vpack.c.bf16 %v4863_v60, %v4862_v10  ;;  %v4830_v35 = vxor.u32 2147483648, %v4829_v3  ;;  %v4731_v10 = vsel %vm4643_vm11, 0, %v4729_v7 }
 0xb4c   : > { %v7909_v36 = vmin.u32 %v4708_v2, %v4706_v12  ;;  %vm4842_vm9 = vcmp.eq.s32.totalorder %v4840_v15, 0  ;;  %vm4845_vm10 = vcmp.eq.s32.totalorder %v4840_v15, 2  ;;  %v4735_v58 = vadd.s32 3, %v4731_v10 }
 0xb4d   : > { %8509 = vmatprep.mubr.msk.bf16.mxu1 %vm1443_vm14, %v4868_v1  ;;  %v4831_v34 = vsel %vm4748_vm12, %v4830_v35, %v4829_v3  ;;  %vm4841_vm13 = vcmp.lt.s32.totalorder %v4840_v15, 2 }
 0xb4e   : > { %v4710_v31 = vclz %v7909_v36  ;;  %v4834_v5 = vsel %vm11869_vm3, %v11560_v32, %v4831_v34  ;;  %v4736_v3 = vand.u32 3, %v4735_v58  ;;  %v9148_v36 = vld [vmem:[#allocation2 + $0x4] ss:$0 sm:$0xff]  ;;  %vm4734_vm3 = vweird.f32 %v11664_v26 }
 0xb4f   : > { %9093 = vcosq.f32 %v4834_v5 }
 0xb50   : > { %v7910_v38 = vadd.s32 4294967294, %v4710_v31  ;;  %9095 = vsinq.f32 %v4834_v5  ;;  %vm4741_vm4 = vcmp.eq.s32.totalorder %v4736_v3, 2  ;;  %vm4738_vm7 = vcmp.eq.s32.totalorder %v4736_v3, 0 }
 0xb51   : > { %vm4737_vm12 = vcmp.lt.s32.totalorder %v4736_v3, 2 }
 0xb52   : > { %vm7911_vm2 = vcmp.lt.s32.totalorder %v7910_v38, 0 }
 0xb53   : > { %v4713_v24 = vsel %vm7911_vm2, 0, %v7910_v38 }
 0xb54   : > { %v4714_v44 = vsub.s32 32, %v4713_v24  ;;  %v4718_v30 = vsub.s32 4294967266, %v4713_v24  ;;  %v4715_v39 = vshll.u32 %v4706_v12, %v4713_v24 }
 0xb56   : > { %v4716_v6 = vshrl.u32 %v4698_v29, %v4714_v44  ;;  %v4719_v63 = vadd.s32 127, %v4718_v30  ;;  %v4008_v29 = vmul.f32 %v11854_v9, %v11198_v19  ;;  %v8973_v19 = vld [vmem:[%s12971_s3 + $0x20] sm:$0xff]   ;;  %v8974_v9 = vld [vmem:[%s12971_s3 + $0x28] sm:$0xff]  }
 0xb57   : > { %8529 = vmatprep.subr.bf16.mxu1 %v8973_v19 }
 0xb58   : > { %v4717_v23 = vor.u32 %v4716_v6, %v4715_v39  ;;  %v4720_v8 = vshll.u32 %v4719_v63, 23  ;;  %v8971_v39 = vld [vmem:[%s12971_s3 + $0x10] sm:$0xff]   ;;  %8530 = vmatpush3.bf16.msra.mxu1 %v8973_v19  ;;  %v7916_v6 = vld [vmem:[%s12972_s4] ss:$0 sm:$0xff] }
 0xb59   : > { %v9094_v25 = vpop.eup %9093  ;;  %8517 = vmatprep.subr.bf16.mxu0 %v8971_v39  ;;  %8531 = vmatprep.subr.bf16.mxu1 %v8974_v9 }
 0xb5a   : > { %v8481_v52 = vpop.f32.mrb[44].mxu1  ;;  %v4721_v37 = vor.u32 4788187, %v4720_v8  ;;  %v4724_v41 = vcvt.s32.f32 %v4717_v23  ;;  %v9096_v48 = vpop.eup %9095  ;;  %v4846_v56 = vxor.u32 2147483648, %v9094_v25  ;;  %8518 = vmatpush3.bf16.msra.mxu0 %v8971_v39 }
 0xb5b   : > { %v3826_v55 = vadd.f32 %v8481_v52, %v11793_v16  ;;  %v3817_v11 = vpop.f32.mrb[45].mxu1  ;;  %v4843_v4 = vxor.u32 2147483648, %v9096_v48  ;;  %8519 = vmatprep.subr.bf16.mxu0 %v8972_v28 }
 0xb5c   : > { %v3818_v18 = vadd.f32 %v11793_v16, %v3817_v11  ;;  %v8482_v17 = vpop.f32.mrb[46].mxu1  ;;  %v4722_v21 = vand.u32 2147483647, %v4721_v37  ;;  %v4847_v13 = vsel %vm4845_vm10, %v4846_v56, %v9096_v48  ;;  %8532 = vmatpush3.bf16.msra.mxu1 %v8974_v9 }
 0xb5d   : > { %3838 = vst.msk [vmem:[%s10991_s11 + $0x70] sm:$0xff] %vm2101_vm5, %v3826_v55  ;;  %v3829_v45 = vadd.f32 %v8482_v17, %v11793_v16  ;;  %v3820_v22 = vpop.f32.mrb[47].mxu1  ;;  %v4844_v46 = vsel %vm4842_vm9, %v9094_v25, %v4843_v4 }
 0xb5e   : > { %3836 = vst.msk [vmem:[%s10991_s11 + $0x60] sm:$0xff] %vm2101_vm5, %v3818_v18  ;;  %v3821_v54 = vadd.f32 %v11793_v16, %v3820_v22  ;;  %v4725_v20 = vmul.f32 %v4724_v41, %v4722_v21  ;;  %v4848_v1 = vsel %vm4841_vm13, %v4844_v46, %v4847_v13  ;;  %8520 = vmatpush3.bf16.msra.mxu0 %v8972_v28 }
 0xb5f   : > { %3839 = vst.msk [vmem:[%s10991_s11 + $0x78] sm:$0xff] %vm2101_vm5, %v3829_v45  ;;  %v4849_v59 = vsel %vm4838_vm6, nan, %v4848_v1 }
 0xb60   : > { %3837 = vst.msk [vmem:[%s10991_s11 + $0x68] sm:$0xff] %vm2101_vm5, %v3821_v54  ;;  %v4726_v0 = vxor.u32 2147483648, %v4725_v20  ;;  %v4857_v31 = vmul.f32 %v9148_v36, %v4849_v59 }
 0xb62   : > { %v4727_v16 = vsel %vm4644_vm15, %v4726_v0, %v4725_v20  ;;  %v4865_v24 = vadd.f32 %v4857_v31, %v4009_v33  ;;  %v8978_v31 = vld [vmem:[%s12971_s3 + $0x48] sm:$0xff]  }
 0xb63   : > { %v4730_v60 = vsel %vm4643_vm11, %v11664_v26, %v4727_v16  ;;  %v5566_v26 = vld [vmem:[%s9468_s10 + $0x4] sm:$0x7]  ;;  %s8080_s10 = sshll.u32 (%p13046_p9), %s9376_s30, 5 }
 0xb64   : > { %9097 = vcosq.f32 %v4730_v60  ;;  %5568 = vrot.lane.b32.xlu1 %v5566_v26, %s9317_s20  ;;  %s8096_s20 = sshll.u32 (%p13046_p9), %s9376_s30, 8  ;;  %s7304_s14 = ssub.s32 (%p13046_p9), 38, %s8080_s10 }
 0xb65   : > { %9099 = vsinq.f32 %v4730_v60  ;;  %s12836_s17 = scalar_lea.vmem (%p13046_p9), %s12976_s8, %s8096_s20   ;;  %p7305_p13 = scmp.lt.s32.totalorder (%p13046_p9), %s7304_s14, 32 }
 0xb6e   : > { %v9098_v61 = vpop.eup %9097 }
 0xb6f   : > { %v9100_v12 = vpop.eup %9099  ;;  %v4742_v2 = vxor.u32 2147483648, %v9098_v61 }
 0xb70   : > { %v4739_v35 = vxor.u32 2147483648, %v9100_v12 }
 0xb71   : > { %v4743_v34 = vsel %vm4741_vm4, %v4742_v2, %v9100_v12  ;;  %v8975_v12 = vld [vmem:[%s12971_s3 + $0x30] sm:$0xff]   ;;  %v8976_v2 = vld [vmem:[%s12971_s3 + $0x38] sm:$0xff]  }
 0xb72   : > { %v4740_v38 = vsel %vm4738_vm7, %v9098_v61, %v4739_v35  ;;  %8533 = vmatprep.subr.bf16.mxu1 %v8975_v12 }
 0xb73   : > { %v4744_v5 = vsel %vm4737_vm12, %v4740_v38, %v4743_v34  ;;  %8534 = vmatpush3.bf16.msra.mxu1 %v8975_v12  ;;  %v7925_v34 = vld [vmem:[#allocation4] ss:$0 sm:$0xff] }
 0xb74   : > { %v4745_v32 = vsel %vm4734_vm3, nan, %v4744_v5  ;;  %8535 = vmatprep.subr.bf16.mxu1 %v8976_v2 }
 0xb75   : > { %v4856_v44 = vmul.f32 %v9148_v36, %v4745_v32  ;;  %v8977_v36 = vld [vmem:[%s12971_s3 + $0x40] sm:$0xff]  }
 0xb76   : > { %8545 = vmatprep.subr.bf16.mxu0 %v8977_v36 }
 0xb77   : > { %v4864_v30 = vadd.f32 %v4856_v44, %v4008_v29  ;;  %8536 = vmatpush3.bf16.msra.mxu1 %v8976_v2 }
 0xb79   : > { %v4869_v27 = vpack.c.bf16 %v4865_v24, %v4864_v30 }
 0xb7b   : > { %8510 = vmatmul.mubr.msk.bf16.gmra.mrb[52].mxu1 %vm1443_vm14, %v4869_v27 }
 0xbd6   : > { %v5569_v35 = vpop.permute.xlu1 %5568 }
 0xbd7   : > { %5571 = vxpose.xlu0.b32.start.end [1/1] (short) (narrow) %v5569_v35, 64 }
 0xc10   : > { %v8507_v63 = vpop.f32.mrb[48].mxu1 }
 0xc11   : > { %v4966_v52 = vadd.f32 %v8507_v63, %v7916_v6  ;;  %v4957_v55 = vpop.f32.mrb[49].mxu1 }
 0xc12   : > { %v4958_v11 = vadd.f32 %v7916_v6, %v4957_v55  ;;  %v8508_v23 = vpop.f32.mrb[50].mxu1 }
 0xc13   : > { %v4998_v8 = vmul.f32 0.01, %v4966_v52  ;;  %v4969_v18 = vadd.f32 %v8508_v23, %v7916_v6  ;;  %v4960_v17 = vpop.f32.mrb[51].mxu1  ;;  %vm4990_vm2 = vcmp.ge.f32.partialorder %v4966_v52, 0.0 }
 0xc14   : > { %v4996_v14 = vmul.f32 0.01, %v4958_v11  ;;  %v4961_v45 = vadd.f32 %v7916_v6, %v4960_v17  ;;  %vm4988_vm15 = vcmp.ge.f32.partialorder %v4958_v11, 0.0 }
 0xc15   : > { %vm4991_vm11 = vcmp.ge.f32.partialorder %v4969_v18, 0.0  ;;  %v4999_v22 = vmul.f32 0.01, %v4969_v18  ;;  %v5006_v54 = vsel %vm4990_vm2, %v4966_v52, %v4998_v8 }
 0xc16   : > { %vm4989_vm9 = vcmp.ge.f32.partialorder %v4961_v45, 0.0  ;;  %v4997_v37 = vmul.f32 0.01, %v4961_v45  ;;  %v5004_v21 = vsel %vm4988_vm15, %v4958_v11, %v4996_v14 }
 0xc17   : > { %v5007_v50 = vsel %vm4991_vm11, %v4969_v18, %v4999_v22 }
 0xc18   : > { %v5013_v41 = vpack.c.bf16 %v5007_v50, %v5006_v54  ;;  %v5005_v20 = vsel %vm4989_vm9, %v4961_v45, %v4997_v37 }
 0xc19   : > { %v5012_v57 = vpack.c.bf16 %v5005_v20, %v5004_v21 }
 0xc1b   : > { %8521 = vmatprep.mubr.msk.bf16.mxu0 %vm1593_vm8, %v5012_v57 }
 0xc1c   : > { %8522 = vmatmul.mubr.msk.bf16.vlgmr.msra.gmra.mrb[56].mxu0 %vm1593_vm8, %v5013_v41 }
 0xc1d   : > { %8546 = vmatpush3.bf16.msra.mxu0 %v8977_v36 }
 0xc1e   : > { %8547 = vmatprep.subr.bf16.mxu0 %v8978_v31 }
 0xc21   : > { %8548 = vmatpush3.bf16.msra.mxu0 %v8978_v31 }
 0xc4e   : > { %v8511_v42 = vpop.f32.mrb[52].mxu1 }
 0xc4f   : > { %v4982_v25 = vadd.f32 %v8511_v42, %v7916_v6  ;;  %v4973_v0 = vpop.f32.mrb[53].mxu1 }
 0xc50   : > { %v4974_v48 = vadd.f32 %v7916_v6, %v4973_v0  ;;  %v8512_v16 = vpop.f32.mrb[54].mxu1 }
 0xc51   : > { %v5002_v7 = vmul.f32 0.01, %v4982_v25  ;;  %v4985_v15 = vadd.f32 %v8512_v16, %v7916_v6  ;;  %v4976_v60 = vpop.f32.mrb[55].mxu1  ;;  %vm4994_vm10 = vcmp.ge.f32.partialorder %v4982_v25, 0.0  ;;  %v8980_v16 = vld [vmem:[%s12971_s3 + $0x58] sm:$0xff]  }
 0xc52   : > { %v5000_v4 = vmul.f32 0.01, %v4974_v48  ;;  %v4977_v56 = vadd.f32 %v7916_v6, %v4976_v60  ;;  %vm4992_vm13 = vcmp.ge.f32.partialorder %v4974_v48, 0.0  ;;  %v7942_v60 = vld [vmem:[#allocation4 + $0x1] ss:$0 sm:$0xff] }
 0xc53   : > { %vm4995_vm6 = vcmp.ge.f32.partialorder %v4985_v15, 0.0  ;;  %v5003_v10 = vmul.f32 0.01, %v4985_v15  ;;  %v5010_v13 = vsel %vm4994_vm10, %v4982_v25, %v5002_v7  ;;  %v9149_v7 = vld [vmem:[#allocation2] sm:$0x7] }
 0xc54   : > { %vm4993_vm4 = vcmp.ge.f32.partialorder %v4977_v56, 0.0  ;;  %v5001_v46 = vmul.f32 0.01, %v4977_v56  ;;  %v5008_v1 = vsel %vm4992_vm13, %v4974_v48, %v5000_v4  ;;  %v8979_v48 = vld [vmem:[%s12971_s3 + $0x50] sm:$0xff]  }
 0xc55   : > { %v5011_v58 = vsel %vm4995_vm6, %v4985_v15, %v5003_v10  ;;  %8549 = vmatprep.subr.bf16.mxu0 %v8979_v48  ;;  %v8981_v15 = vld [vmem:[%s12974_s6] sm:$0xff]  }
 0xc56   : > { %v5015_v3 = vpack.c.bf16 %v5011_v58, %v5010_v13  ;;  %v5009_v61 = vsel %vm4993_vm4, %v4977_v56, %v5001_v46  ;;  %8550 = vmatpush3.bf16.msra.mxu0 %v8979_v48  ;;  %8561 = vmatprep.subr.bf16.mxu1 %v8981_v15 }
 0xc57   : > { %v5014_v59 = vpack.c.bf16 %v5009_v61, %v5008_v1  ;;  %8551 = vmatprep.subr.bf16.mxu0 %v8980_v16 }
 0xc59   : > { %8525 = vmatprep.mubr.msk.bf16.mxu0 %vm1593_vm8, %v5014_v59 }
 0xc5a   : > { %8526 = vmatmul.mubr.msk.bf16.gmra.mrb[60].mxu0 %vm1593_vm8, %v5015_v3 }
 0xc5b   : > { %8552 = vmatpush3.bf16.msra.mxu0 %v8980_v16 }
 0xc5c   : > { %8577 = vmatprep.subr.msk.mxu0 %vm416_vm0, %v9149_v7 }
 0xcef   : > { %v8523_v38 = vpop.f32.mrb[56].mxu0 }
 0xcf0   : > { %v5108_v33 = vadd.f32 %v8523_v38, %v7925_v34  ;;  %v5099_v5 = vpop.f32.mrb[57].mxu0 }
 0xcf1   : > { %v5100_v32 = vadd.f32 %v7925_v34, %v5099_v5  ;;  %v8524_v24 = vpop.f32.mrb[58].mxu0  ;;  %v5587_v5 = vpop.trf.xlu0 }
 0xcf2   : > { %v5140_v29 = vmul.f32 0.01, %v5108_v33  ;;  %v5111_v44 = vadd.f32 %v8524_v24, %v7925_v34  ;;  %v5102_v30 = vpop.f32.mrb[59].mxu0  ;;  %vm5132_vm7 = vcmp.ge.f32.partialorder %v5108_v33, 0.0 }
 0xcf3   : > { %v5138_v27 = vmul.f32 0.01, %v5100_v32  ;;  %v5103_v39 = vadd.f32 %v7925_v34, %v5102_v30  ;;  %vm5130_vm12 = vcmp.ge.f32.partialorder %v5100_v32, 0.0 }
 0xcf4   : > { %vm5133_vm3 = vcmp.ge.f32.partialorder %v5111_v44, 0.0  ;;  %v5141_v28 = vmul.f32 0.01, %v5111_v44  ;;  %v5148_v19 = vsel %vm5132_vm7, %v5108_v33, %v5140_v29 }
 0xcf5   : > { %vm5131_vm2 = vcmp.ge.f32.partialorder %v5103_v39, 0.0  ;;  %v5139_v26 = vmul.f32 0.01, %v5103_v39  ;;  %v5146_v6 = vsel %vm5130_vm12, %v5100_v32, %v5138_v27  ;;  %v5588_v32 = vpop.trf.xlu0 }
 0xcf6   : > { %v5149_v9 = vsel %vm5133_vm3, %v5111_v44, %v5141_v28 }
 0xcf7   : > { %v5155_v63 = vpack.c.bf16 %v5149_v9, %v5148_v19  ;;  %v5147_v52 = vsel %vm5131_vm2, %v5103_v39, %v5139_v26 }
 0xcf8   : > { %v5154_v55 = vpack.c.bf16 %v5147_v52, %v5146_v6 }
 0xcf9   : > { %v5589_v24 = vpop.trf.xlu0 }
 0xcfa   : > { %8537 = vmatprep.mubr.msk.bf16.mxu1 %vm1593_vm8, %v5154_v55 }
 0xcfb   : > { %8538 = vmatmul.mubr.msk.bf16.vlgmr.msra.gmra.mrb[56].mxu1 %vm1593_vm8, %v5155_v63 }
 0xcfc   : > { %8562 = vmatpush3.bf16.msra.mxu1 %v8981_v15 }
 0xcfd   : > { %v5590_v52 = vpop.trf.xlu0 }
 0xd2d   : > { %v8527_v11 = vpop.f32.mrb[60].mxu0 }
 0xd2e   : > { %v5124_v23 = vadd.f32 %v8527_v11, %v7925_v34  ;;  %v5115_v8 = vpop.f32.mrb[61].mxu0 }
 0xd2f   : > { %v5116_v18 = vadd.f32 %v7925_v34, %v5115_v8  ;;  %v8528_v17 = vpop.f32.mrb[62].mxu0 }
 0xd30   : > { %v5144_v14 = vmul.f32 0.01, %v5124_v23  ;;  %v5127_v45 = vadd.f32 %v8528_v17, %v7925_v34  ;;  %v5118_v22 = vpop.f32.mrb[63].mxu0  ;;  %vm5136_vm15 = vcmp.ge.f32.partialorder %v5124_v23, 0.0 }
 0xd31   : > { %v5142_v37 = vmul.f32 0.01, %v5116_v18  ;;  %v5119_v54 = vadd.f32 %v7925_v34, %v5118_v22  ;;  %vm5134_vm11 = vcmp.ge.f32.partialorder %v5116_v18, 0.0 }
 0xd32   : > { %vm5137_vm9 = vcmp.ge.f32.partialorder %v5127_v45, 0.0  ;;  %v5145_v50 = vmul.f32 0.01, %v5127_v45  ;;  %v5152_v41 = vsel %vm5136_vm15, %v5124_v23, %v5144_v14 }
 0xd33   : > { %vm5135_vm10 = vcmp.ge.f32.partialorder %v5119_v54, 0.0  ;;  %v5143_v21 = vmul.f32 0.01, %v5119_v54  ;;  %v5150_v57 = vsel %vm5134_vm11, %v5116_v18, %v5142_v37 }
 0xd34   : > { %v5153_v20 = vsel %vm5137_vm9, %v5127_v45, %v5145_v50  ;;  %v5591_v45 = vpop.trf.xlu0  ;;  %v8982_v50 = vld [vmem:[%s12974_s6 + $0x8] sm:$0xff]  }
 0xd35   : > { %v5157_v42 = vpack.c.bf16 %v5153_v20, %v5152_v41  ;;  %v5151_v25 = vsel %vm5135_vm10, %v5119_v54, %v5143_v21  ;;  %8563 = vmatprep.subr.bf16.mxu1 %v8982_v50  ;;  %v8983_v21 = vld [vmem:[%s12974_s6 + $0x10] sm:$0xff]   ;;  %v8984_v41 = vld [vmem:[%s12974_s6 + $0x18] sm:$0xff]   ;;  %v7959_v20 = vld [vmem:[#allocation4 + $0x2] ss:$0 sm:$0xff] }
 0xd36   : > { %v5156_v0 = vpack.c.bf16 %v5151_v25, %v5150_v57  ;;  %8564 = vmatpush3.bf16.msra.mxu1 %v8982_v50 }
 0xd37   : > { %8565 = vmatprep.subr.bf16.mxu1 %v8983_v21 }
 0xd38   : > { %8541 = vmatprep.mubr.msk.bf16.mxu1 %vm1593_vm8, %v5156_v0  ;;  %v5592_v22 = vpop.trf.xlu0 }
 0xd39   : > { %8542 = vmatmul.mubr.msk.bf16.gmra.mrb[60].mxu1 %vm1593_vm8, %v5157_v42 }
 0xd3a   : > { %8566 = vmatpush3.bf16.msra.mxu1 %v8983_v21 }
 0xd3b   : > { %8567 = vmatprep.subr.bf16.mxu1 %v8984_v41 }
 0xd3c   : > { %v5593_v37 = vpop.trf.xlu0 }
 0xd3e   : > { %8568 = vmatpush3.bf16.msra.mxu1 %v8984_v41 }
 0xd40   : > { %v5594_v54 = vpop.trf.xlu0 }
 0xdce   : > { %v8539_v4 = vpop.f32.mrb[56].mxu1 }
 0xdcf   : > { %v5250_v56 = vadd.f32 %v8539_v4, %v7942_v60  ;;  %v5241_v10 = vpop.f32.mrb[57].mxu1 }
 0xdd0   : > { %v5242_v46 = vadd.f32 %v7942_v60, %v5241_v10  ;;  %v8540_v13 = vpop.f32.mrb[58].mxu1 }
 0xdd1   : > { %v5282_v58 = vmul.f32 0.01, %v5250_v56  ;;  %v5253_v1 = vadd.f32 %v8540_v13, %v7942_v60  ;;  %v5244_v3 = vpop.f32.mrb[59].mxu1  ;;  %vm5274_vm13 = vcmp.ge.f32.partialorder %v5250_v56, 0.0 }
 0xdd2   : > { %v5280_v61 = vmul.f32 0.01, %v5242_v46  ;;  %v5245_v59 = vadd.f32 %v7942_v60, %v5244_v3  ;;  %vm5272_vm6 = vcmp.ge.f32.partialorder %v5242_v46, 0.0 }
 0xdd3   : > { %vm5275_vm4 = vcmp.ge.f32.partialorder %v5253_v1, 0.0  ;;  %v5283_v12 = vmul.f32 0.01, %v5253_v1  ;;  %v5290_v35 = vsel %vm5274_vm13, %v5250_v56, %v5282_v58 }
 0xdd4   : > { %vm5273_vm7 = vcmp.ge.f32.partialorder %v5245_v59, 0.0  ;;  %v5281_v2 = vmul.f32 0.01, %v5245_v59  ;;  %v5288_v31 = vsel %vm5272_vm6, %v5242_v46, %v5280_v61 }
 0xdd5   : > { %v5291_v36 = vsel %vm5275_vm4, %v5253_v1, %v5283_v12 }
 0xdd6   : > { %v5297_v34 = vpack.c.bf16 %v5291_v36, %v5290_v35  ;;  %v5289_v38 = vsel %vm5273_vm7, %v5245_v59, %v5281_v2 }
 0xdd7   : > { %v5296_v33 = vpack.c.bf16 %v5289_v38, %v5288_v31 }
 0xdd9   : > { %8553 = vmatprep.mubr.msk.bf16.mxu0 %vm1593_vm8, %v5296_v33 }
 0xdda   : > { %8554 = vmatmul.mubr.msk.bf16.vlgmr.msra.gmra.mrb[64].mxu0 %vm1593_vm8, %v5297_v34 }
 0xddb   : > { %8578 = vmatpush3.msk.msra.mxu0 %vm416_vm0, %v9149_v7 }
 0xe0c   : > { %v8543_v29 = vpop.f32.mrb[60].mxu1 }
 0xe0d   : > { %v5266_v44 = vadd.f32 %v8543_v29, %v7942_v60  ;;  %v5257_v30 = vpop.f32.mrb[61].mxu1 }
 0xe0e   : > { %v5258_v27 = vadd.f32 %v7942_v60, %v5257_v30  ;;  %v8544_v39 = vpop.f32.mrb[62].mxu1 }
 0xe0f   : > { %v5286_v28 = vmul.f32 0.01, %v5266_v44  ;;  %v5269_v26 = vadd.f32 %v8544_v39, %v7942_v60  ;;  %v5260_v19 = vpop.f32.mrb[63].mxu1  ;;  %vm5278_vm12 = vcmp.ge.f32.partialorder %v5266_v44, 0.0 }
 0xe10   : > { %v5284_v9 = vmul.f32 0.01, %v5258_v27  ;;  %v5261_v6 = vadd.f32 %v7942_v60, %v5260_v19  ;;  %vm5276_vm3 = vcmp.ge.f32.partialorder %v5258_v27, 0.0  ;;  %v11980_v19 = vld [vmem:[#allocation2 + $0x5] ss:$0 sm:$0xff] }
 0xe11   : > { %vm5279_vm2 = vcmp.ge.f32.partialorder %v5269_v26, 0.0  ;;  %v5287_v63 = vmul.f32 0.01, %v5269_v26  ;;  %v5294_v11 = vsel %vm5278_vm12, %v5266_v44, %v5286_v28 }
 0xe12   : > { %vm5277_vm15 = vcmp.ge.f32.partialorder %v5261_v6, 0.0  ;;  %v5285_v55 = vmul.f32 0.01, %v5261_v6  ;;  %v5292_v8 = vsel %vm5276_vm3, %v5258_v27, %v5284_v9 }
 0xe13   : > { %v5295_v23 = vsel %vm5279_vm2, %v5269_v26, %v5287_v63 }
 0xe14   : > { %v5299_v18 = vpack.c.bf16 %v5295_v23, %v5294_v11  ;;  %v5293_v17 = vsel %vm5277_vm15, %v5261_v6, %v5285_v55 }
 0xe15   : > { %v5298_v14 = vpack.c.bf16 %v5293_v17, %v5292_v8 }
 0xe17   : > { %8557 = vmatprep.mubr.msk.bf16.mxu0 %vm1593_vm8, %v5298_v14 }
 0xe18   : > { %8558 = vmatmul.mubr.msk.bf16.gmra.mrb[68].mxu0 %vm1593_vm8, %v5299_v18 }
 0xe19   : > { %8579 = vmatprep.mubr.msk.f32.mxu0 %vm391_vm1, %v5587_v5 }
 0xe20   : > { %8580 = vmatmul.mubr.msk.f32.vlgmr.msra.gmra.mrb[72].mxu0 %vm391_vm1, %v5588_v32 }
 0xe21   : > { %8582 = vmatprep.mubr.msk.f32.mxu0 %vm391_vm1, %v5589_v24 }
 0xe24   : > { %8583 = vmatmul.mubr.msk.f32.gmra.mrb[74].mxu0 %vm391_vm1, %v5590_v52 }
 0xe25   : > { %8585 = vmatprep.mubr.msk.f32.mxu0 %vm391_vm1, %v5591_v45 }
 0xe28   : > { %8586 = vmatmul.mubr.msk.f32.gmra.mrb[76].mxu0 %vm391_vm1, %v5592_v22 }
 0xe29   : > { %8588 = vmatprep.mubr.msk.f32.mxu0 %vm391_vm1, %v5593_v37 }
 0xe2c   : > { %8589 = vmatmul.mubr.msk.f32.gmra.mrb[78].mxu0 %vm391_vm1, %v5594_v54 }
 0xead   : > { %v8555_v57 = vpop.f32.mrb[64].mxu0 }
 0xeae   : > { %v5392_v42 = vadd.f32 %v8555_v57, %v7959_v20  ;;  %v5383_v25 = vpop.f32.mrb[65].mxu0 }
 0xeaf   : > { %v5384_v0 = vadd.f32 %v7959_v20, %v5383_v25  ;;  %v8556_v48 = vpop.f32.mrb[66].mxu0 }
 0xeb0   : > { %v5424_v16 = vmul.f32 0.01, %v5392_v42  ;;  %v5395_v7 = vadd.f32 %v8556_v48, %v7959_v20  ;;  %v5386_v15 = vpop.f32.mrb[67].mxu0  ;;  %vm5416_vm0 = vcmp.ge.f32.partialorder %v5392_v42, 0.0 }
 0xeb1   : > { %v5422_v60 = vmul.f32 0.01, %v5384_v0  ;;  %v5387_v4 = vadd.f32 %v7959_v20, %v5386_v15  ;;  %vm5414_vm1 = vcmp.ge.f32.partialorder %v5384_v0, 0.0 }
 0xeb2   : > { %vm5417_vm11 = vcmp.ge.f32.partialorder %v5395_v7, 0.0  ;;  %v5425_v56 = vmul.f32 0.01, %v5395_v7  ;;  %v5432_v46 = vsel %vm5416_vm0, %v5392_v42, %v5424_v16 }
 0xeb3   : > { %vm5415_vm9 = vcmp.ge.f32.partialorder %v5387_v4, 0.0  ;;  %v5423_v10 = vmul.f32 0.01, %v5387_v4  ;;  %v5430_v58 = vsel %vm5414_vm1, %v5384_v0, %v5422_v60 }
 0xeb4   : > { %v5433_v13 = vsel %vm5417_vm11, %v5395_v7, %v5425_v56 }
 0xeb5   : > { %v5439_v1 = vpack.c.bf16 %v5433_v13, %v5432_v46  ;;  %v5431_v3 = vsel %vm5415_vm9, %v5387_v4, %v5423_v10 }
 0xeb6   : > { %v5438_v61 = vpack.c.bf16 %v5431_v3, %v5430_v58 }
 0xeb8   : > { %8569 = vmatprep.mubr.msk.bf16.mxu1 %vm1593_vm8, %v5438_v61 }
 0xeb9   : > { %8570 = vmatmul.mubr.msk.bf16.vlgmr.msra.gmra.mrb[64].mxu1 %vm1593_vm8, %v5439_v1 }
 0xeeb   : > { %v8559_v59 = vpop.f32.mrb[68].mxu0 }
 0xeec   : > { %v5408_v12 = vadd.f32 %v8559_v59, %v7959_v20  ;;  %v5399_v2 = vpop.f32.mrb[69].mxu0 }
 0xeed   : > { %v5400_v35 = vadd.f32 %v7959_v20, %v5399_v2  ;;  %v8560_v36 = vpop.f32.mrb[70].mxu0 }
 0xeee   : > { %v5428_v31 = vmul.f32 0.01, %v5408_v12  ;;  %v5411_v34 = vadd.f32 %v8560_v36, %v7959_v20  ;;  %v5402_v38 = vpop.f32.mrb[71].mxu0  ;;  %vm5420_vm10 = vcmp.ge.f32.partialorder %v5408_v12, 0.0 }
 0xeef   : > { %v5426_v33 = vmul.f32 0.01, %v5400_v35  ;;  %v5403_v5 = vadd.f32 %v7959_v20, %v5402_v38  ;;  %vm5418_vm13 = vcmp.ge.f32.partialorder %v5400_v35, 0.0 }
 0xef0   : > { %vm5421_vm6 = vcmp.ge.f32.partialorder %v5411_v34, 0.0  ;;  %v5429_v32 = vmul.f32 0.01, %v5411_v34  ;;  %v5436_v29 = vsel %vm5420_vm10, %v5408_v12, %v5428_v31 }
 0xef1   : > { %vm5419_vm4 = vcmp.ge.f32.partialorder %v5403_v5, 0.0  ;;  %v5427_v24 = vmul.f32 0.01, %v5403_v5  ;;  %v5434_v30 = vsel %vm5418_vm13, %v5400_v35, %v5426_v33 }
 0xef2   : > { %v5437_v44 = vsel %vm5421_vm6, %v5411_v34, %v5429_v32 }
 0xef3   : > { %v5441_v27 = vpack.c.bf16 %v5437_v44, %v5436_v29  ;;  %v5435_v39 = vsel %vm5419_vm4, %v5403_v5, %v5427_v24  ;;  %v11978_v28 = vpop.f32.mrb[72].mxu0 }
 0xef4   : > { %v5440_v26 = vpack.c.bf16 %v5435_v39, %v5434_v30  ;;  %v11984_v9 = vadd.f32 %v11980_v19, %v11978_v28  ;;  %v11986_v6 = vpop.f32.mrb[73].mxu0 }
 0xef5   : > { %v11990_v63 = vadd.f32 %v11980_v19, %v11986_v6 }
 0xef6   : > { %v5852_v52 = vand.u32 2147483647, %v11984_v9  ;;  %v5855_v55 = vand.u32 2139095040, %v11984_v9  ;;  %8573 = vmatprep.mubr.msk.bf16.mxu1 %vm1593_vm8, %v5440_v26 }
 0xef7   : > { %v5748_v11 = vand.u32 2147483647, %v11990_v63  ;;  %v5751_v23 = vand.u32 2139095040, %v11990_v63  ;;  %8574 = vmatmul.mubr.msk.bf16.gmra.mrb[68].mxu1 %vm1593_vm8, %v5441_v27  ;;  %v11998_v8 = vpop.f32.mrb[74].mxu0 }
 0xef8   : > { %v5856_v18 = vshrl.u32 %v5855_v55, 23  ;;  %v12000_v17 = vpop.f32.mrb[75].mxu0  ;;  %v5859_v14 = vand.u32 8388607, %v5852_v52  ;;  %v12008_v37 = vadd.f32 %v11980_v19, %v11998_v8 }
 0xef9   : > { %v5752_v45 = vshrl.u32 %v5751_v23, 23  ;;  %v5755_v22 = vand.u32 8388607, %v5748_v11  ;;  %v12020_v10 = vadd.f32 %v11980_v19, %v12000_v17 }
 0xefa   : > { %v7990_v54 = vadd.s32 4294967169, %v5856_v18  ;;  %v6063_v20 = vand.u32 2139095040, %v12008_v37  ;;  %v5860_v42 = vor.u32 8388608, %v5859_v14  ;;  %v6060_v48 = vand.u32 2147483647, %v12008_v37 }
 0xefb   : > { %v7986_v50 = vadd.s32 4294967169, %v5752_v45  ;;  %v12010_v21 = vpop.f32.mrb[76].mxu0  ;;  %v5756_v25 = vor.u32 8388608, %v5755_v22 }
 0xefc   : > { %v5862_v41 = vadd.s32 1, %v7990_v54  ;;  %v12013_v57 = vpop.f32.mrb[77].mxu0  ;;  %v6064_v16 = vshrl.u32 %v6063_v20, 23  ;;  %v12022_v46 = vshll.u32 %v5860_v42, 8  ;;  %v12030_v1 = vand.u32 8388607, %v6060_v48 }
 0xefd   : > { %v5758_v0 = vadd.s32 1, %v7986_v50  ;;  %v12024_v13 = vshll.u32 %v5756_v25, 8 }
 0xefe   : > { %vm5863_vm7 = vcmp.gt.s32.totalorder %v5862_v41, 0  ;;  %v12026_v58 = vadd.s32 4294967169, %v6064_v16 }
 0xeff   : > { %v5864_v7 = vsel %vm5863_vm7, %v5862_v41, 0  ;;  %vm5759_vm12 = vcmp.gt.s32.totalorder %v5758_v0, 0  ;;  %v12016_v15 = vpop.f32.mrb[78].mxu0  ;;  %vm5854_vm7 = vcmp.lt.s32.totalorder %v11984_v9, 0 }
 0xf00   : > { %v5865_v60 = vshrl.u32 %v5864_v7, 5  ;;  %v5866_v4 = vand.u32 31, %v5864_v7  ;;  %v5760_v56 = vsel %vm5759_vm12, %v5758_v0, 0  ;;  %v12035_v2 = vpop.f32.mrb[79].mxu0  ;;  %vm5750_vm12 = vcmp.lt.s32.totalorder %v11990_v63, 0 }
 0xf01   : > { %v12033_v59 = vshrl.u32 %v5760_v56, 5  ;;  %v5762_v12 = vand.u32 31, %v5760_v56 }
 0xf02   : > { %v5867_v3 = vsub.s32 32, %v5866_v4  ;;  %v5869_v61 = vshll.u32 %v9310_v43, %v5866_v4  ;;  %v5872_v35 = vshll.u32 %v9311_v47, %v5866_v4  ;;  %v5875_v36 = vshll.u32 %v9312_v49, %v5866_v4 }
 0xf03   : > { %v5878_v31 = vshll.u32 %v9313_v51, %v5866_v4  ;;  %v5881_v34 = vshll.u32 %v9314_v53, %v5866_v4  ;;  %vm5884_vm3 = vcmp.lt.s32.totalorder %v5865_v60, 1  ;;  %vm5885_vm2 = vcmp.lt.s32.totalorder %v5865_v60, 2 }
 0xf04   : > { %v5870_v38 = vshrl.u32 %v9311_v47, %v5867_v3  ;;  %v5873_v33 = vshrl.u32 %v9312_v49, %v5867_v3  ;;  %v5876_v5 = vshrl.u32 %v9313_v51, %v5867_v3  ;;  %v5868_v32 = vshrl.u32 %v9310_v43, %v5867_v3 }
 0xf05   : > { %v5879_v24 = vshrl.u32 %v9314_v53, %v5867_v3  ;;  %v5882_v29 = vshrl.u32 %v9315_v62, %v5867_v3  ;;  %v5763_v39 = vsub.s32 32, %v5762_v12  ;;  %vm5886_vm15 = vcmp.lt.s32.totalorder %v5865_v60, 3 }
 0xf06   : > { %v5871_v44 = vor.u32 %v5870_v38, %v5869_v61  ;;  %v5874_v30 = vor.u32 %v5873_v33, %v5872_v35  ;;  %v5877_v27 = vor.u32 %v5876_v5, %v5875_v36  ;;  %vm5887_vm0 = vcmp.lt.s32.totalorder %v5865_v60, 4 }
 0xf07   : > { %v5880_v26 = vor.u32 %v5879_v24, %v5878_v31  ;;  %v5883_v55 = vor.u32 %v5882_v29, %v5881_v34  ;;  %v5765_v41 = vshll.u32 %v9310_v43, %v5762_v12  ;;  %v5766_v25 = vshrl.u32 %v9311_v47, %v5763_v39 }
 0xf08   : > { %v5888_v23 = vsel %vm5884_vm3, %v5868_v32, %v5871_v44  ;;  %v5889_v18 = vsel %vm5887_vm0, %v5877_v27, 2102212464  ;;  %v5892_v14 = vsel %vm5884_vm3, %v5871_v44, %v5874_v30  ;;  %v5896_v45 = vsel %vm5884_vm3, %v5874_v30, %v5877_v27 }
 0xf09   : > { %v5890_v22 = vsel %vm5886_vm15, %v5874_v30, %v5889_v18  ;;  %v5893_v54 = vsel %vm5887_vm0, %v5880_v26, 920167782  ;;  %v5897_v50 = vsel %vm5887_vm0, %v5883_v55, 1326507024  ;;  %v5768_v0 = vshll.u32 %v9311_v47, %v5762_v12 }
 0xf0a   : > { %v5894_v20 = vsel %vm5886_vm15, %v5877_v27, %v5893_v54  ;;  %v5898_v42 = vsel %vm5886_vm15, %v5880_v26, %v5897_v50  ;;  %v5891_v16 = vsel %vm5885_vm2, %v5888_v23, %v5890_v22  ;;  %v5769_v56 = vshrl.u32 %v9312_v49, %v5763_v39 }
 0xf0b   : > { %v5895_v7 = vsel %vm5885_vm2, %v5892_v14, %v5894_v20  ;;  %v5899_v4 = vsel %vm5885_vm2, %v5896_v45, %v5898_v42  ;;  %v5767_v31 = vor.u32 %v5766_v25, %v5765_v41  ;;  %v5771_v38 = vshll.u32 %v9312_v49, %v5762_v12 }
 0xf0c   : > { %v12058_v3 = vmul.u32.u64.low %v12022_v46, %v5899_v4  ;;  %v12059_v61 = vmul.u32.u64.high %v12022_v46, %v5899_v4, %v12058_v3  ;;  %v12062_v35 = vmul.u32.u64.low %v12022_v46, %v5895_v7  ;;  %v12063_v36 = vmul.u32.u64.high %v12022_v46, %v5895_v7, %v12062_v35 }
 0xf0d   : > { %v5770_v34 = vor.u32 %v5769_v56, %v5768_v0  ;;  %v5772_v33 = vshrl.u32 %v9313_v51, %v5763_v39  ;;  %v5764_v5 = vshrl.u32 %v9310_v43, %v5763_v39  ;;  %v5774_v60 = vshll.u32 %v9313_v51, %v5762_v12 }
 0xf0e   : > { %v5775_v32 = vshrl.u32 %v9314_v53, %v5763_v39  ;;  %v5778_v24 = vshrl.u32 %v9315_v62, %v5763_v39  ;;  %v5907_v29 = vmul.u32 %v12022_v46, %v5891_v16  ;;  %v5777_v30 = vshll.u32 %v9314_v53, %v5762_v12 }
 0xf0f   : > { %v5773_v44 = vor.u32 %v5772_v33, %v5771_v38  ;;  %vm5780_vm1 = vcmp.lt.s32.totalorder %v12033_v59, 1  ;;  %vm5909_vm11 = vc.u32 %v12059_v61, %v12062_v35  ;;  %v5910_v27 = vadd.s32 1, %v12063_v36 }
 0xf10   : > { %v5776_v26 = vor.u32 %v5775_v32, %v5774_v60  ;;  %vm5781_vm9 = vcmp.lt.s32.totalorder %v12033_v59, 2  ;;  %v5779_v55 = vor.u32 %v5778_v24, %v5777_v30  ;;  %vm5782_vm10 = vcmp.lt.s32.totalorder %v12033_v59, 3 }
 0xf11   : > { %vm5783_vm13 = vcmp.lt.s32.totalorder %v12033_v59, 4  ;;  %v5788_v39 = vsel %vm5780_vm1, %v5767_v31, %v5770_v34  ;;  %v5911_v46 = vsel %vm5909_vm11, %v5910_v27, %v12063_v36  ;;  %v5792_v12 = vsel %vm5780_vm1, %v5770_v34, %v5773_v44 }
 0xf12   : > { %v5785_v23 = vsel %vm5783_vm13, %v5773_v44, 2102212464  ;;  %v5789_v18 = vsel %vm5783_vm13, %v5776_v26, 920167782  ;;  %v5912_v14 = vadd.s32 %v5911_v46, %v5907_v29  ;;  %v5784_v45 = vsel %vm5780_vm1, %v5764_v5, %v5767_v31 }
 0xf13   : > { %v5790_v22 = vsel %vm5782_vm10, %v5773_v44, %v5789_v18  ;;  %v5793_v54 = vsel %vm5783_vm13, %v5779_v55, 1326507024  ;;  %v5786_v50 = vsel %vm5782_vm10, %v5770_v34, %v5785_v23  ;;  %v6070_v42 = vadd.s32 1, %v12026_v58 }
 0xf14   : > { %v5791_v41 = vsel %vm5781_vm9, %v5788_v39, %v5790_v22  ;;  %v5794_v20 = vsel %vm5782_vm10, %v5776_v26, %v5793_v54  ;;  %v5913_v25 = vadd.s32 536870912, %v5912_v14  ;;  %v5787_v36 = vsel %vm5781_vm9, %v5784_v45, %v5786_v50 }
 0xf15   : > { %v5795_v0 = vsel %vm5781_vm9, %v5792_v12, %v5794_v20  ;;  %v12086_v16 = vmul.u32.u64.low %v12024_v13, %v5791_v41  ;;  %v12087_v7 = vmul.u32.u64.high %v12024_v13, %v5791_v41, %v12086_v16  ;;  %vm6071_vm6 = vcmp.gt.s32.totalorder %v6070_v42, 0 }
 0xf16   : > { %v12091_v4 = vmul.u32.u64.low %v12024_v13, %v5795_v0  ;;  %v12092_v56 = vmul.u32.u64.high %v12024_v13, %v5795_v0, %v12091_v4  ;;  %v5914_v3 = vshrl.u32 %v5913_v25, 30  ;;  %v6072_v31 = vsel %vm6071_vm6, %v6070_v42, 0 }
 0xf17   : > { %v6074_v58 = vand.u32 31, %v6072_v31  ;;  %v5959_v34 = vand.u32 2139095040, %v12020_v10  ;;  %v5806_v33 = vadd.s32 1, %v12087_v7  ;;  %v6068_v5 = vor.u32 8388608, %v12030_v1 }
 0xf18   : > { %v5915_v38 = vshll.u32 %v5914_v3, 30  ;;  %v5803_v60 = vmul.u32 %v12024_v13, %v5787_v36  ;;  %vm5805_vm4 = vc.u32 %v12092_v56, %v12086_v16  ;;  %v5956_v1 = vand.u32 2147483647, %v12020_v10 }
 0xf19   : > { %v6075_v32 = vsub.s32 32, %v6074_v58  ;;  %v5807_v59 = vsel %vm5805_vm4, %v5806_v33, %v12087_v7  ;;  %v5960_v44 = vshrl.u32 %v5959_v34, 23  ;;  %v12107_v27 = vshll.u32 %v6068_v5, 8 }
 0xf1a   : > { %v12102_v24 = vsub.s32 %v5912_v14, %v5915_v38  ;;  %v5808_v29 = vadd.s32 %v5807_v59, %v5803_v60  ;;  %v5908_v13 = vadd.s32 %v12062_v35, %v12059_v61  ;;  %v5938_v26 = vsub.s32 4, %v5914_v3 }
 0xf1b   : > { %v6078_v39 = vshrl.u32 %v9311_v47, %v6075_v32  ;;  %v6073_v23 = vshrl.u32 %v6072_v31, 5  ;;  %v6081_v18 = vshrl.u32 %v9312_v49, %v6075_v32  ;;  %v6084_v12 = vshrl.u32 %v9313_v51, %v6075_v32 }
 0xf1c   : > { %v5918_v30 = vsub.s32 0, %v12102_v24  ;;  %v5809_v55 = vadd.s32 536870912, %v5808_v29  ;;  %v6077_v45 = vshll.u32 %v9310_v43, %v6074_v58  ;;  %v6087_v22 = vshrl.u32 %v9314_v53, %v6075_v32 }
 0xf1d   : > { %v7994_v54 = vadd.s32 4294967169, %v5960_v44  ;;  %v6080_v61 = vshll.u32 %v9311_v47, %v6074_v58  ;;  %v6083_v35 = vshll.u32 %v9312_v49, %v6074_v58  ;;  %v6090_v41 = vshrl.u32 %v9315_v62, %v6075_v32 }
 0xf1e   : > { %v7991_v46 = vmin.u32 %v5918_v30, %v12102_v24  ;;  %v5810_v14 = vshrl.u32 %v5809_v55, 30  ;;  %v12123_v20 = vsel %vm5854_vm7, %v5938_v26, %v5914_v3  ;;  %v6079_v25 = vor.u32 %v6078_v39, %v6077_v45 }
 0xf1f   : > { %v6086_v0 = vshll.u32 %v9313_v51, %v6074_v58  ;;  %v6082_v4 = vor.u32 %v6081_v18, %v6080_v61  ;;  %v6085_v36 = vor.u32 %v6084_v12, %v6083_v35  ;;  %v6089_v31 = vshll.u32 %v9314_v53, %v6074_v58 }
 0xf20   : > { %v5920_v50 = vclz %v7991_v46  ;;  %v5811_v42 = vshll.u32 %v5810_v14, 30  ;;  %v5834_v38 = vsub.s32 4, %v5810_v14  ;;  %v6076_v33 = vshrl.u32 %v9310_v43, %v6075_v32 }
 0xf21   : > { %v6088_v5 = vor.u32 %v6087_v22, %v6086_v0  ;;  %vm12132_vm3 = vcmp.le.f32.partialorder %v5852_v52, 0.7853982  ;;  %v6091_v60 = vor.u32 %v6090_v41, %v6089_v31  ;;  %vm6092_vm15 = vcmp.lt.s32.totalorder %v6073_v23, 1 }
 0xf22   : > { %v7992_v7 = vadd.s32 4294967294, %v5920_v50  ;;  %v12127_v34 = vsub.s32 %v5808_v29, %v5811_v42  ;;  %vm6093_vm0 = vcmp.lt.s32.totalorder %v6073_v23, 2  ;;  %vm12138_vm1 = vcmp.le.f32.partialorder %v5748_v11, 0.7853982 }
 0xf23   : > { %vm6094_vm11 = vcmp.lt.s32.totalorder %v6073_v23, 3  ;;  %vm6095_vm9 = vcmp.lt.s32.totalorder %v6073_v23, 4  ;;  %v6100_v30 = vsel %vm6092_vm15, %v6079_v25, %v6082_v4  ;;  %v6104_v46 = vsel %vm6092_vm15, %v6082_v4, %v6085_v36 }
 0xf24   : > { %vm7993_vm2 = vcmp.lt.s32.totalorder %v7992_v7, 0  ;;  %v5814_v32 = vsub.s32 0, %v12127_v34  ;;  %v6097_v44 = vsel %vm6095_vm9, %v6085_v36, 2102212464  ;;  %v6101_v39 = vsel %vm6095_vm9, %v6088_v5, 920167782 }
 0xf25   : > { %v5923_v59 = vsel %vm7993_vm2, 0, %v7992_v7  ;;  %v6102_v12 = vsel %vm6094_vm11, %v6085_v36, %v6101_v39  ;;  %v6105_v45 = vsel %vm6095_vm9, %v6091_v60, 1326507024  ;;  %v5835_v50 = vsel %vm5750_vm12, %v5834_v38, %v5810_v14 }
 0xf26   : > { %v5924_v29 = vsub.s32 32, %v5923_v59  ;;  %v5928_v52 = vsub.s32 4294967266, %v5923_v59  ;;  %v5925_v26 = vshll.u32 %v12102_v24, %v5923_v59  ;;  %v7987_v55 = vmin.u32 %v5814_v32, %v12127_v34 }
 0xf27   : > { %v6096_v61 = vsel %vm6092_vm15, %v6076_v33, %v6079_v25  ;;  %v6098_v35 = vsel %vm6094_vm11, %v6082_v4, %v6097_v44  ;;  %v6103_v42 = vsel %vm6093_vm0, %v6100_v30, %v6102_v12  ;;  %v6106_v0 = vsel %vm6094_vm11, %v6088_v5, %v6105_v45 }
 0xf28   : > { %v5926_v11 = vshrl.u32 %v5908_v13, %v5924_v29  ;;  %v5929_v18 = vadd.s32 127, %v5928_v52  ;;  %v5816_v22 = vclz %v7987_v55  ;;  %v6107_v13 = vsel %vm6093_vm0, %v6104_v46, %v6106_v0 }
 0xf29   : > { %v12156_v36 = vmul.u32.u64.low %v12107_v27, %v6103_v42  ;;  %v12157_v31 = vmul.u32.u64.high %v12107_v27, %v6103_v42, %v12156_v36  ;;  %v6099_v14 = vsel %vm6093_vm0, %v6096_v61, %v6098_v35  ;;  %v5941_v38 = vsel %vm12132_vm3, 0, %v12123_v20  ;;  %v12185_v42 = vld [vmem:[#allocation2 + $0x3] ss:$0 sm:$0xff] }
 0xf2a   : > { %v5927_v41 = vor.u32 %v5926_v11, %v5925_v26  ;;  %v5930_v24 = vshll.u32 %v5929_v18, 23  ;;  %v7988_v7 = vadd.s32 4294967294, %v5816_v22  ;;  %v5804_v33 = vadd.s32 %v12086_v16, %v12092_v56 }
 0xf2b   : > { %v12162_v25 = vmul.u32.u64.low %v12107_v27, %v6107_v13  ;;  %v12163_v4 = vmul.u32.u64.high %v12107_v27, %v6107_v13, %v12162_v25  ;;  %v5966_v5 = vadd.s32 1, %v7994_v54  ;;  %v5837_v23 = vsel %vm12138_vm1, 0, %v5835_v50 }
 0xf2c   : > { %v5931_v60 = vor.u32 4788187, %v5930_v24  ;;  %vm7989_vm10 = vcmp.lt.s32.totalorder %v7988_v7, 0  ;;  %v5934_v32 = vcvt.s32.f32 %v5927_v41  ;;  %v6115_v30 = vmul.u32 %v12107_v27, %v6099_v14 }
 0xf2d   : > { %v5819_v29 = vsel %vm7989_vm10, 0, %v7988_v7  ;;  %v6118_v26 = vadd.s32 1, %v12157_v31  ;;  %vm6117_vm13 = vc.u32 %v12163_v4, %v12156_v36  ;;  %vm5967_vm6 = vcmp.gt.s32.totalorder %v5966_v5, 0 }
 0xf2e   : > { %v5932_v59 = vand.u32 2147483647, %v5931_v60  ;;  %v5820_v52 = vsub.s32 32, %v5819_v29  ;;  %v5824_v44 = vsub.s32 4294967266, %v5819_v29  ;;  %v5821_v20 = vshll.u32 %v12127_v34, %v5819_v29 }
 0xf2f   : > { %v6119_v54 = vsel %vm6117_vm13, %v6118_v26, %v12157_v31  ;;  %v5968_v39 = vsel %vm5967_vm6, %v5966_v5, 0  ;;  %v5945_v11 = vadd.s32 3, %v5941_v38  ;;  %v5963_v22 = vand.u32 8388607, %v5956_v1 }
 0xf30   : > { %v5935_v55 = vmul.f32 %v5934_v32, %v5932_v59  ;;  %v5822_v16 = vshrl.u32 %v5804_v33, %v5820_v52  ;;  %v5825_v56 = vadd.s32 127, %v5824_v44  ;;  %v6120_v18 = vadd.s32 %v6119_v54, %v6115_v30 }
 0xf31   : > { %v5970_v12 = vand.u32 31, %v5968_v39  ;;  %v5841_v50 = vadd.s32 3, %v5837_v23  ;;  %v12189_v0 = vmul.f32 %v12185_v42, %v11978_v28  ;;  %v12191_v7 = vand.u32 3, %v5945_v11 }
 0xf32   : > { %v5936_v46 = vxor.u32 2147483648, %v5935_v55  ;;  %v5823_v45 = vor.u32 %v5822_v16, %v5821_v20  ;;  %v5826_v27 = vshll.u32 %v5825_v56, 23  ;;  %v6121_v61 = vadd.s32 536870912, %v6120_v18 }
 0xf33   : > { %v5971_v35 = vsub.s32 32, %v5970_v12  ;;  %v12197_v31 = vmul.f32 %v12185_v42, %v11986_v6  ;;  %v12199_v14 = vand.u32 3, %v5841_v50  ;;  %v5964_v38 = vor.u32 8388608, %v5963_v22 }
 0xf34   : > { %v5937_v34 = vsel %vm5854_vm7, %v5936_v46, %v5935_v55  ;;  %v5827_v24 = vor.u32 4788187, %v5826_v27  ;;  %v12193_v13 = vshrl.u32 %v6121_v61, 30  ;;  %v5830_v3 = vcvt.s32.f32 %v5823_v45 }
 0xf35   : > { %v5940_v41 = vsel %vm12132_vm3, %v11984_v9, %v5937_v34  ;;  %v5974_v28 = vshrl.u32 %v9311_v47, %v5971_v35  ;;  %v5980_v5 = vshrl.u32 %v9313_v51, %v5971_v35  ;;  %v5982_v59 = vshll.u32 %v9313_v51, %v5970_v12 }
 0xf36   : > { %9101 = vcosq.f32 %v5940_v41  ;;  %v5828_v60 = vand.u32 2147483647, %v5827_v24  ;;  %v6123_v25 = vshll.u32 %v12193_v13, 30  ;;  %v5983_v32 = vshrl.u32 %v9314_v53, %v5971_v35 }
 0xf37   : > { %9103 = vsinq.f32 %v5940_v41  ;;  %vm5951_vm4 = vcmp.eq.s32.totalorder %v12191_v7, 2  ;;  %v12209_v29 = vshrl.u32 %v5968_v39, 5  ;;  %v5973_v23 = vshll.u32 %v9310_v43, %v5970_v12 }
 0xf38   : > { %v5831_v33 = vmul.f32 %v5830_v3, %v5828_v60  ;;  %v12207_v6 = vsub.s32 %v6120_v18, %v6123_v25  ;;  %v5977_v52 = vshrl.u32 %v9312_v49, %v5971_v35  ;;  %vm5948_vm7 = vcmp.eq.s32.totalorder %v12191_v7, 0 }
 0xf39   : > { %v5979_v30 = vshll.u32 %v9312_v49, %v5970_v12  ;;  %v5984_v26 = vor.u32 %v5983_v32, %v5982_v59  ;;  %v5986_v55 = vshrl.u32 %v9315_v62, %v5971_v35  ;;  %vm5947_vm3 = vcmp.lt.s32.totalorder %v12191_v7, 2 }
 0xf3a   : > { %v5832_v44 = vxor.u32 2147483648, %v5831_v33  ;;  %v6116_v20 = vadd.s32 %v12156_v36, %v12163_v4  ;;  %v6126_v16 = vsub.s32 0, %v12207_v6  ;;  %v5976_v56 = vshll.u32 %v9311_v47, %v5970_v12 }
 0xf3b   : > { %v12223_v54 = vadd.f32 %v11980_v19, %v12010_v21  ;;  %vm5944_vm2 = vweird.f32 %v11984_v9  ;;  %v5975_v46 = vor.u32 %v5974_v28, %v5973_v23  ;;  %v5981_v11 = vor.u32 %v5980_v5, %v5979_v30 }
 0xf3c   : > { %v5833_v39 = vsel %vm5750_vm12, %v5832_v44, %v5831_v33  ;;  %v5985_v18 = vshll.u32 %v9314_v53, %v5970_v12  ;;  %v7999_v4 = vmin.u32 %v6126_v16, %v12207_v6  ;;  %v5978_v45 = vor.u32 %v5977_v52, %v5976_v56 }
 0xf3d   : > { %v5836_v36 = vsel %vm12138_vm1, %v11990_v63, %v5833_v39  ;;  %vm5991_vm15 = vcmp.lt.s32.totalorder %v12209_v29, 4  ;;  %v12236_v34 = vshll.u32 %v5964_v38, 8  ;;  %v5972_v12 = vshrl.u32 %v9310_v43, %v5971_v35 }
 0xf3e   : > { %9105 = vcosq.f32 %v5836_v36  ;;  %v5987_v27 = vor.u32 %v5986_v55, %v5985_v18  ;;  %v5997_v22 = vsel %vm5991_vm15, %v5984_v26, 920167782  ;;  %v6128_v61 = vclz %v7999_v4 }
 0xf3f   : > { %9107 = vsinq.f32 %v5836_v36  ;;  %vm5988_vm12 = vcmp.lt.s32.totalorder %v12209_v29, 1  ;;  %vm5989_vm0 = vcmp.lt.s32.totalorder %v12209_v29, 2  ;;  %vm5990_vm1 = vcmp.lt.s32.totalorder %v12209_v29, 3 }
 0xf40   : > { %v9102_v50 = vpop.eup %9101  ;;  %v5993_v24 = vsel %vm5991_vm15, %v5981_v11, 2102212464  ;;  %v8000_v3 = vadd.s32 4294967294, %v6128_v61  ;;  %v5996_v25 = vsel %vm5988_vm12, %v5975_v46, %v5978_v45  ;;  %v5998_v38 = vsel %vm5990_vm1, %v5981_v11, %v5997_v22 }
 0xf41   : > { %v9104_v58 = vpop.eup %9103  ;;  %v5952_v41 = vxor.u32 2147483648, %v9102_v50  ;;  %v5992_v33 = vsel %vm5988_vm12, %v5972_v12, %v5975_v46  ;;  %v6000_v35 = vsel %vm5988_vm12, %v5978_v45, %v5981_v11  ;;  %v6001_v5 = vsel %vm5991_vm15, %v5987_v27, 1326507024 }
 0xf42   : > { %v5949_v60 = vxor.u32 2147483648, %v9104_v58  ;;  %vm8001_vm11 = vcmp.lt.s32.totalorder %v8000_v3, 0  ;;  %v5994_v32 = vsel %vm5990_vm1, %v5978_v45, %v5993_v24  ;;  %v6002_v23 = vsel %vm5990_vm1, %v5984_v26, %v6001_v5  ;;  %v12260_v26 = vld [vmem:[#allocation2 + $0x4] ss:$0 sm:$0xff] }
 0xf43   : > { %v5953_v28 = vsel %vm5951_vm4, %v5952_v41, %v9104_v58  ;;  %v6131_v44 = vsel %vm8001_vm11, 0, %v8000_v3  ;;  %v5999_v30 = vsel %vm5989_vm0, %v5996_v25, %v5998_v38  ;;  %v6003_v55 = vsel %vm5989_vm0, %v6000_v35, %v6002_v23 }
 0xf44   : > { %v5950_v59 = vsel %vm5948_vm7, %v9102_v50, %v5949_v60  ;;  %vm5840_vm9 = vweird.f32 %v11990_v63  ;;  %v6132_v56 = vsub.s32 32, %v6131_v44  ;;  %v6133_v39 = vshll.u32 %v12207_v6, %v6131_v44 }
 0xf45   : > { %v5954_v52 = vsel %vm5947_vm3, %v5950_v59, %v5953_v28  ;;  %v6136_v46 = vsub.s32 4294967266, %v6131_v44  ;;  %v12264_v11 = vmul.u32.u64.low %v12236_v34, %v6003_v55  ;;  %v12265_v18 = vmul.u32.u64.high %v12236_v34, %v6003_v55, %v12264_v11 }
 0xf46   : > { %v5955_v16 = vsel %vm5944_vm2, nan, %v5954_v52  ;;  %v6271_v36 = vand.u32 2139095040, %v12223_v54  ;;  %v6134_v4 = vshrl.u32 %v6116_v20, %v6132_v56  ;;  %vm5843_vm10 = vcmp.lt.s32.totalorder %v12199_v14, 2 }
 0xf47   : > { %v6581_v7 = vmul.f32 %v12260_v26, %v5955_v16  ;;  %v6137_v45 = vadd.s32 127, %v6136_v46  ;;  %v12269_v9 = vmul.u32.u64.low %v12236_v34, %v5999_v30  ;;  %v12270_v27 = vmul.u32.u64.high %v12236_v34, %v5999_v30, %v12269_v9 }
 0xf48   : > { %v9106_v22 = vpop.eup %9105  ;;  %vm5844_vm13 = vcmp.eq.s32.totalorder %v12199_v14, 0  ;;  %v6272_v50 = vshrl.u32 %v6271_v36, 23  ;;  %v6135_v58 = vor.u32 %v6134_v4, %v6133_v39  ;;  %v5995_v20 = vsel %vm5989_vm0, %v5992_v33, %v5994_v32 }
 0xf49   : > { %v6589_v6 = vadd.f32 %v6581_v7, %v12189_v0  ;;  %v9108_v61 = vpop.eup %9107  ;;  %v5848_v12 = vxor.u32 2147483648, %v9106_v22  ;;  %v6138_v41 = vshll.u32 %v6137_v45, 23  ;;  %vm5847_vm6 = vcmp.eq.s32.totalorder %v12199_v14, 2  ;;  %v8985_v7 = vld [vmem:[%s12970_s2] sm:$0xff]  }
 0xf4a   : > { %v5845_v24 = vxor.u32 2147483648, %v9108_v61  ;;  %vm6013_vm4 = vc.u32 %v12265_v18, %v12269_v9  ;;  %v8006_v60 = vadd.s32 4294967169, %v6272_v50  ;;  %v6014_v25 = vadd.s32 1, %v12270_v27  ;;  %8591 = vmatprep.subr.bf16.mxu1 %v8985_v7 }
 0xf4b   : > { %v5849_v0 = vsel %vm5847_vm6, %v5848_v12, %v9108_v61  ;;  %v6139_v3 = vor.u32 4788187, %v6138_v41  ;;  %v6268_v38 = vand.u32 2147483647, %v12223_v54  ;;  %v6146_v35 = vsub.s32 4, %v12193_v13  ;;  %8592 = vmatpush3.bf16.msra.mxu1 %v8985_v7 }
 0xf4c   : > { %v5846_v28 = vsel %vm5844_vm13, %v9106_v22, %v5845_v24  ;;  %v6011_v29 = vmul.u32 %v12236_v34, %v5995_v20  ;;  %v6278_v33 = vadd.s32 1, %v8006_v60  ;;  %v6142_v32 = vcvt.s32.f32 %v6135_v58 }
 0xf4d   : > { %v5850_v5 = vsel %vm5843_vm10, %v5846_v28, %v5849_v0  ;;  %v6140_v59 = vand.u32 2147483647, %v6139_v3  ;;  %v6015_v23 = vsel %vm6013_vm4, %v6014_v25, %v12270_v27  ;;  %vm6062_vm7 = vcmp.lt.s32.totalorder %v12008_v37, 0 }
 0xf4e   : > { %v5851_v52 = vsel %vm5840_vm9, nan, %v5850_v5  ;;  %v6016_v44 = vadd.s32 %v6015_v23, %v6011_v29  ;;  %vm6279_vm3 = vcmp.gt.s32.totalorder %v6278_v33, 0  ;;  %v6275_v34 = vand.u32 8388607, %v6268_v38 }
 0xf4f   : > { %v6580_v30 = vmul.f32 %v12260_v26, %v5851_v52  ;;  %v6143_v55 = vmul.f32 %v6142_v32, %v6140_v59  ;;  %v6280_v16 = vsel %vm6279_vm3, %v6278_v33, 0  ;;  %v6147_v14 = vsel %vm6062_vm7, %v6146_v35, %v12193_v13 }
 0xf50   : > { %v6017_v56 = vadd.s32 536870912, %v6016_v44  ;;  %v6282_v39 = vand.u32 31, %v6280_v16  ;;  %vm12302_vm2 = vcmp.le.f32.partialorder %v6060_v48, 0.7853982  ;;  %v6276_v27 = vor.u32 8388608, %v6275_v34 }
 0xf51   : > { %v6588_v63 = vadd.f32 %v6580_v30, %v12197_v31  ;;  %v6144_v46 = vxor.u32 2147483648, %v6143_v55  ;;  %v6149_v13 = vsel %vm12302_vm2, 0, %v6147_v14  ;;  %v6281_v20 = vshrl.u32 %v6280_v16, 5 }
 0xf52   : > { %v12306_v11 = vshrl.u32 %v6017_v56, 30  ;;  %v6283_v36 = vsub.s32 32, %v6282_v39  ;;  %v6285_v22 = vshll.u32 %v9310_v43, %v6282_v39  ;;  %v6288_v50 = vshll.u32 %v9311_v47, %v6282_v39 }
 0xf53   : > { %v6596_v4 = vpack.c.bf16 %v6589_v6, %v6588_v63  ;;  %v6145_v45 = vsel %vm6062_vm7, %v6144_v46, %v6143_v55  ;;  %v6291_v12 = vshll.u32 %v9312_v49, %v6282_v39  ;;  %v6294_v24 = vshll.u32 %v9313_v51, %v6282_v39 }
 0xf54   : > { %v6148_v31 = vsel %vm12302_vm2, %v12008_v37, %v6145_v45  ;;  %v6019_v48 = vshll.u32 %v12306_v11, 30  ;;  %v6286_v61 = vshrl.u32 %v9311_v47, %v6283_v36  ;;  %v6289_v6 = vshrl.u32 %v9312_v49, %v6283_v36 }
 0xf55   : > { %v6292_v58 = vshrl.u32 %v9313_v51, %v6283_v36  ;;  %8599 = vmatprep.mubr.msk.bf16.mxu1 %vm1443_vm14, %v6596_v4  ;;  %v6295_v60 = vshrl.u32 %v9314_v53, %v6283_v36  ;;  %9109 = vcosq.f32 %v6148_v31  ;;  %v12330_v29 = vadd.f32 %v11980_v19, %v12013_v57 }
 0xf56   : > { %v12323_v41 = vsub.s32 %v6016_v44, %v6019_v48  ;;  %v6287_v0 = vor.u32 %v6286_v61, %v6285_v22  ;;  %v6290_v3 = vor.u32 %v6289_v6, %v6288_v50  ;;  %9111 = vsinq.f32 %v6148_v31 }
 0xf57   : > { %v6293_v25 = vor.u32 %v6292_v58, %v6291_v12  ;;  %v6296_v35 = vor.u32 %v6295_v60, %v6294_v24  ;;  %v6153_v33 = vadd.s32 3, %v6149_v13  ;;  %v6297_v5 = vshll.u32 %v9314_v53, %v6282_v39 }
 0xf58   : > { %v6022_v28 = vsub.s32 0, %v12323_v41  ;;  %v6298_v59 = vshrl.u32 %v9315_v62, %v6283_v36  ;;  %v12334_v32 = vshll.u32 %v6276_v27, 8  ;;  %v6284_v52 = vshrl.u32 %v9310_v43, %v6283_v36 }
 0xf59   : > { %vm6300_vm15 = vcmp.lt.s32.totalorder %v6281_v20, 1  ;;  %vm6303_vm12 = vcmp.lt.s32.totalorder %v6281_v20, 4  ;;  %vm6301_vm0 = vcmp.lt.s32.totalorder %v6281_v20, 2  ;;  %vm6302_vm1 = vcmp.lt.s32.totalorder %v6281_v20, 3 }
 0xf5a   : > { %v7995_v23 = vmin.u32 %v6022_v28, %v12323_v41  ;;  %v6299_v44 = vor.u32 %v6298_v59, %v6297_v5  ;;  %v6305_v30 = vsel %vm6303_vm12, %v6293_v25, 2102212464  ;;  %v6308_v55 = vsel %vm6300_vm15, %v6287_v0, %v6290_v3 }
 0xf5b   : > { %v6309_v34 = vsel %vm6303_vm12, %v6296_v35, 920167782  ;;  %v6167_v14 = vand.u32 2139095040, %v12330_v29  ;;  %v6304_v56 = vsel %vm6300_vm15, %v6284_v52, %v6287_v0  ;;  %v6312_v63 = vsel %vm6300_vm15, %v6290_v3, %v6293_v25  ;;  %v8986_v0 = vld [vmem:[%s12970_s2 + $0x8] sm:$0xff]  }
 0xf5c   : > { %v6024_v16 = vclz %v7995_v23  ;;  %v6310_v39 = vsel %vm6302_vm1, %v6293_v25, %v6309_v34  ;;  %v6313_v46 = vsel %vm6303_vm12, %v6299_v44, 1326507024  ;;  %v6306_v4 = vsel %vm6302_vm1, %v6290_v3, %v6305_v30  ;;  %8593 = vmatprep.subr.bf16.mxu1 %v8986_v0 }
 0xf5d   : > { %v6311_v45 = vsel %vm6301_vm0, %v6308_v55, %v6310_v39  ;;  %v6314_v13 = vsel %vm6302_vm1, %v6296_v35, %v6313_v46  ;;  %v6042_v27 = vsub.s32 4, %v12306_v11  ;;  %v12352_v50 = vmul.f32 %v12185_v42, %v11998_v8  ;;  %8594 = vmatpush3.bf16.msra.mxu1 %v8986_v0 }
 0xf5e   : > { %v7996_v36 = vadd.s32 4294967294, %v6024_v16  ;;  %v6315_v31 = vsel %vm6301_vm0, %v6312_v63, %v6314_v13  ;;  %v12346_v48 = vmul.u32.u64.low %v12334_v32, %v6311_v45  ;;  %v12347_v22 = vmul.u32.u64.high %v12334_v32, %v6311_v45, %v12346_v48 }
 0xf5f   : > { %v12355_v61 = vmul.u32.u64.low %v12334_v32, %v6315_v31  ;;  %v12356_v6 = vmul.u32.u64.high %v12334_v32, %v6315_v31, %v12355_v61  ;;  %v9110_v12 = vpop.eup %9109  ;;  %vm5958_vm9 = vcmp.lt.s32.totalorder %v12020_v10, 0  ;;  %v6307_v24 = vsel %vm6301_vm0, %v6304_v56, %v6306_v4 }
 0xf60   : > { %vm7997_vm11 = vcmp.lt.s32.totalorder %v7996_v36, 0  ;;  %v6168_v60 = vshrl.u32 %v6167_v14, 23  ;;  %v9112_v3 = vpop.eup %9111  ;;  %v6154_v8 = vand.u32 3, %v6153_v33  ;;  %v6012_v25 = vadd.s32 %v12269_v9, %v12265_v18 }
 0xf61   : > { %v6027_v58 = vsel %vm7997_vm11, 0, %v7996_v36  ;;  %v6043_v5 = vsel %vm5958_vm9, %v6042_v27, %v12306_v11  ;;  %v6326_v59 = vadd.s32 1, %v12347_v22  ;;  %v6164_v20 = vand.u32 2147483647, %v12330_v29  ;;  %v8987_v11 = vld [vmem:[%s12970_s2 + $0x10] sm:$0xff]  }
 0xf62   : > { %v6028_v28 = vsub.s32 32, %v6027_v58  ;;  %v6032_v35 = vsub.s32 4294967266, %v6027_v58  ;;  %v8002_v23 = vadd.s32 4294967169, %v6168_v60  ;;  %v6029_v52 = vshll.u32 %v12323_v41, %v6027_v58  ;;  %8595 = vmatprep.subr.bf16.mxu1 %v8987_v11 }
 0xf63   : > { %v6323_v33 = vmul.u32 %v12334_v32, %v6307_v24  ;;  %v6157_v18 = vxor.u32 2147483648, %v9112_v3  ;;  %v6160_v9 = vxor.u32 2147483648, %v9110_v12  ;;  %vm6325_vm10 = vc.u32 %v12356_v6, %v12346_v48  ;;  %8596 = vmatpush3.bf16.msra.mxu1 %v8987_v11 }
 0xf64   : > { %v6030_v44 = vshrl.u32 %v6012_v25, %v6028_v28  ;;  %v6033_v30 = vadd.s32 127, %v6032_v35  ;;  %v6174_v55 = vadd.s32 1, %v8002_v23  ;;  %vm12379_vm13 = vcmp.le.f32.partialorder %v5956_v1, 0.7853982  ;;  %v8990_v25 = vld [vmem:[%s12971_s3 + $0x8] sm:$0xff]  }
 0xf65   : > { %v6327_v32 = vsel %vm6325_vm10, %v6326_v59, %v12347_v22  ;;  %vm6156_vm6 = vcmp.eq.s32.totalorder %v6154_v8, 0  ;;  %vm6159_vm4 = vcmp.eq.s32.totalorder %v6154_v8, 2  ;;  %v6045_v39 = vsel %vm12379_vm13, 0, %v6043_v5 }
 0xf66   : > { %v6031_v41 = vor.u32 %v6030_v44, %v6029_v52  ;;  %v6034_v16 = vshll.u32 %v6033_v30, 23  ;;  %v6328_v14 = vadd.s32 %v6327_v32, %v6323_v33  ;;  %vm6175_vm7 = vcmp.gt.s32.totalorder %v6174_v55, 0 }
 0xf67   : > { %v6171_v63 = vand.u32 8388607, %v6164_v20  ;;  %v6176_v1 = vsel %vm6175_vm7, %v6174_v55, 0  ;;  %v6158_v46 = vsel %vm6156_vm6, %v9110_v12, %v6157_v18  ;;  %v6161_v7 = vsel %vm6159_vm4, %v6160_v9, %v9112_v3 }
 0xf68   : > { %v6035_v56 = vor.u32 4788187, %v6034_v16  ;;  %v6329_v36 = vadd.s32 536870912, %v6328_v14  ;;  %v6178_v4 = vand.u32 31, %v6176_v1  ;;  %vm6152_vm3 = vweird.f32 %v12008_v37 }
 0xf69   : > { %v12391_v45 = vmul.f32 %v12185_v42, %v12000_v17  ;;  %v6038_v27 = vcvt.s32.f32 %v6031_v41  ;;  %vm6155_vm2 = vcmp.lt.s32.totalorder %v6154_v8, 2  ;;  %v6049_v31 = vadd.s32 3, %v6045_v39  ;;  %v8989_v8 = vld [vmem:[%s12971_s3] sm:$0xff]  }
 0xf6a   : > { %v6036_v13 = vand.u32 2147483647, %v6035_v56  ;;  %v12393_v22 = vshrl.u32 %v6329_v36, 30  ;;  %v6179_v61 = vsub.s32 32, %v6178_v4  ;;  %v6162_v58 = vsel %vm6155_vm2, %v6158_v46, %v6161_v7  ;;  %8607 = vmatprep.subr.bf16.mxu0 %v8989_v8 }
 0xf6b   : > { %v6172_v60 = vor.u32 8388608, %v6171_v63  ;;  %v12397_v12 = vadd.f32 %v11980_v19, %v12016_v15  ;;  %v12400_v3 = vshrl.u32 %v6176_v1, 5  ;;  %v6181_v17 = vshll.u32 %v9310_v43, %v6178_v4  ;;  %8608 = vmatpush3.bf16.msra.mxu0 %v8989_v8 }
 0xf6c   : > { %v6039_v24 = vmul.f32 %v6038_v27, %v6036_v13  ;;  %v6331_v0 = vshll.u32 %v12393_v22, 30  ;;  %v6182_v42 = vshrl.u32 %v9311_v47, %v6179_v61  ;;  %v6185_v19 = vshrl.u32 %v9312_v49, %v6179_v61  ;;  %8609 = vmatprep.subr.bf16.mxu0 %v8990_v25 }
 0xf6d   : > { %v6188_v35 = vshrl.u32 %v9313_v51, %v6179_v61  ;;  %v6191_v5 = vshrl.u32 %v9314_v53, %v6179_v61  ;;  %v6184_v23 = vshll.u32 %v9311_v47, %v6178_v4  ;;  %v6187_v52 = vshll.u32 %v9312_v49, %v6178_v4 }
 0xf6e   : > { %v6040_v28 = vxor.u32 2147483648, %v6039_v24  ;;  %v12413_v59 = vsub.s32 %v6328_v14, %v6331_v0  ;;  %v6194_v44 = vshrl.u32 %v9315_v62, %v6179_v61  ;;  %vm6270_vm15 = vcmp.lt.s32.totalorder %v12223_v54, 0 }
 0xf6f   : > { %v6183_v33 = vor.u32 %v6182_v42, %v6181_v17  ;;  %v6190_v18 = vshll.u32 %v9313_v51, %v6178_v4  ;;  %v6193_v9 = vshll.u32 %v9314_v53, %v6178_v4  ;;  %v6186_v41 = vor.u32 %v6185_v19, %v6184_v23  ;;  %8610 = vmatpush3.bf16.msra.mxu0 %v8990_v25 }
 0xf70   : > { %v6041_v30 = vsel %vm5958_vm9, %v6040_v28, %v6039_v24  ;;  %v6334_v11 = vsub.s32 0, %v12413_v59  ;;  %v6189_v16 = vor.u32 %v6188_v35, %v6187_v52  ;;  %v12427_v32 = vand.u32 3, %v6049_v31 }
 0xf71   : > { %v6044_v55 = vsel %vm12379_vm13, %v12020_v10, %v6041_v30  ;;  %v6192_v14 = vor.u32 %v6191_v5, %v6190_v18  ;;  %v6195_v56 = vor.u32 %v6194_v44, %v6193_v9  ;;  %v6163_v39 = vsel %vm6152_vm3, nan, %v6162_v58 }
 0xf72   : > { %9113 = vcosq.f32 %v6044_v55  ;;  %vm12433_vm12 = vcmp.le.f32.partialorder %v6268_v38, 0.7853982  ;;  %v8007_v34 = vmin.u32 %v6334_v11, %v12413_v59  ;;  %v12438_v1 = vshll.u32 %v6172_v60, 8 }
 0xf73   : > { %9115 = vsinq.f32 %v6044_v55  ;;  %v6354_v46 = vsub.s32 4, %v12393_v22  ;;  %vm6196_vm0 = vcmp.lt.s32.totalorder %v12400_v3, 1  ;;  %vm6198_vm1 = vcmp.lt.s32.totalorder %v12400_v3, 3 }
 0xf74   : > { %v6479_v37 = vand.u32 2139095040, %v12397_v12  ;;  %v6336_v7 = vclz %v8007_v34  ;;  %vm6199_vm11 = vcmp.lt.s32.totalorder %v12400_v3, 4  ;;  %v6204_v38 = vsel %vm6196_vm0, %v6183_v33, %v6186_v41 }
 0xf75   : > { %v6208_v36 = vsel %vm6196_vm0, %v6186_v41, %v6189_v16  ;;  %vm6055_vm9 = vcmp.eq.s32.totalorder %v12427_v32, 2  ;;  %v6180_v4 = vshrl.u32 %v9310_v43, %v6179_v61  ;;  %v6201_v13 = vsel %vm6199_vm11, %v6189_v16, 2102212464 }
 0xf76   : > { %v6205_v27 = vsel %vm6199_vm11, %v6192_v14, 920167782  ;;  %v6209_v31 = vsel %vm6199_vm11, %v6195_v56, 1326507024  ;;  %vm6052_vm10 = vcmp.eq.s32.totalorder %v12427_v32, 0  ;;  %v8008_v58 = vadd.s32 4294967294, %v6336_v7 }
 0xf77   : > { %vm6197_vm13 = vcmp.lt.s32.totalorder %v12400_v3, 2  ;;  %v6206_v24 = vsel %vm6198_vm1, %v6189_v16, %v6205_v27  ;;  %v6210_v60 = vsel %vm6198_vm1, %v6192_v14, %v6209_v31  ;;  %vm6051_vm6 = vcmp.lt.s32.totalorder %v12427_v32, 2 }
 0xf78   : > { %v6200_v0 = vsel %vm6196_vm0, %v6180_v4, %v6183_v33  ;;  %v6202_v61 = vsel %vm6198_vm1, %v6186_v41, %v6201_v13  ;;  %v6207_v17 = vsel %vm6197_vm13, %v6204_v38, %v6206_v24  ;;  %v6211_v42 = vsel %vm6197_vm13, %v6208_v36, %v6210_v60 }
 0xf79   : > { %vm6048_vm4 = vweird.f32 %v12020_v10  ;;  %vm8009_vm7 = vcmp.lt.s32.totalorder %v8008_v58, 0  ;;  %v6355_v8 = vsel %vm6270_vm15, %v6354_v46, %v12393_v22  ;;  %v6480_v23 = vshrl.u32 %v6479_v37, 23 }
 0xf7a   : > { %v12471_v25 = vmul.u32.u64.low %v12438_v1, %v6211_v42  ;;  %v12472_v28 = vmul.u32.u64.high %v12438_v1, %v6211_v42, %v12471_v25  ;;  %v6339_v19 = vsel %vm8009_vm7, 0, %v8008_v58  ;;  %v6324_v52 = vadd.s32 %v12346_v48, %v12356_v6 }
 0xf7b   : > { %v12475_v35 = vmul.u32.u64.low %v12438_v1, %v6207_v17  ;;  %v12476_v5 = vmul.u32.u64.high %v12438_v1, %v6207_v17, %v12475_v35  ;;  %v6340_v44 = vsub.s32 32, %v6339_v19  ;;  %v6344_v30 = vsub.s32 4294967266, %v6339_v19 }
 0xf7c   : > { %v6203_v33 = vsel %vm6197_vm13, %v6200_v0, %v6202_v61  ;;  %v9114_v22 = vpop.eup %9113  ;;  %v6583_v18 = vmul.f32 %v12260_v26, %v6163_v39  ;;  %v6357_v9 = vsel %vm12433_vm12, 0, %v6355_v8  ;;  %v6476_v55 = vand.u32 2147483647, %v12397_v12 }
 0xf7d   : > { %v8014_v11 = vadd.s32 4294967169, %v6480_v23  ;;  %v9116_v41 = vpop.eup %9115  ;;  %v6056_v16 = vxor.u32 2147483648, %v9114_v22  ;;  %v6341_v14 = vshll.u32 %v12413_v59, %v6339_v19  ;;  %v6342_v56 = vshrl.u32 %v6324_v52, %v6340_v44 }
 0xf7e   : > { %v6345_v48 = vadd.s32 127, %v6344_v30  ;;  %v6053_v6 = vxor.u32 2147483648, %v9116_v41  ;;  %v6219_v34 = vmul.u32 %v12438_v1, %v6203_v33  ;;  %vm6221_vm3 = vc.u32 %v12472_v28, %v12475_v35  ;;  %v9153_v1 = vld [vmem:[#allocation2 + $0x5] ss:$0 sm:$0xff] }
 0xf7f   : > { %v6222_v3 = vadd.s32 1, %v12476_v5  ;;  %v6057_v39 = vsel %vm6055_vm9, %v6056_v16, %v9116_v41  ;;  %v6343_v46 = vor.u32 %v6342_v56, %v6341_v14  ;;  %v6486_v7 = vadd.s32 1, %v8014_v11 }
 0xf80   : > { %v6346_v37 = vshll.u32 %v6345_v48, 23  ;;  %v12495_v38 = vadd.f32 %v6583_v18, %v12352_v50  ;;  %v6054_v59 = vsel %vm6052_vm10, %v9114_v22, %v6053_v6  ;;  %v12501_v4 = vadd.f32 %v9153_v1, %v12035_v2 }
 0xf81   : > { %v6223_v36 = vsel %vm6221_vm3, %v6222_v3, %v12476_v5  ;;  %v6058_v13 = vsel %vm6051_vm6, %v6054_v59, %v6057_v39  ;;  %v6361_v31 = vadd.s32 3, %v6357_v9  ;;  %v6350_v50 = vcvt.s32.f32 %v6343_v46 }
 0xf82   : > { %v6347_v27 = vor.u32 4788187, %v6346_v37  ;;  %v6224_v58 = vadd.s32 %v6223_v36, %v6219_v34  ;;  %v6059_v24 = vsel %vm6048_vm4, nan, %v6058_v13  ;;  %v6483_v60 = vand.u32 8388607, %v6476_v55 }
 0xf83   : > { %vm6487_vm2 = vcmp.gt.s32.totalorder %v6486_v7, 0  ;;  %v6582_v0 = vmul.f32 %v12260_v26, %v6059_v24  ;;  %v6375_v32 = vand.u32 2139095040, %v12501_v4  ;;  %v12516_v10 = vand.u32 3, %v6361_v31 }
 0xf84   : > { %v6348_v61 = vand.u32 2147483647, %v6347_v27  ;;  %v6225_v17 = vadd.s32 536870912, %v6224_v58  ;;  %v6488_v42 = vsel %vm6487_vm2, %v6486_v7, 0  ;;  %v6484_v23 = vor.u32 8388608, %v6483_v60 }
 0xf85   : > { %v6490_v8 = vand.u32 31, %v6488_v42  ;;  %v12512_v25 = vadd.f32 %v6582_v0, %v12391_v45  ;;  %v6372_v22 = vand.u32 2147483647, %v12501_v4  ;;  %v6376_v11 = vshrl.u32 %v6375_v32, 23 }
 0xf86   : > { %v6351_v19 = vmul.f32 %v6350_v50, %v6348_v61  ;;  %v12514_v5 = vshrl.u32 %v6225_v17, 30  ;;  %v6489_v3 = vshrl.u32 %v6488_v42, 5  ;;  %v12539_v46 = vshll.u32 %v6484_v23, 8 }
 0xf87   : > { %v6491_v52 = vsub.s32 32, %v6490_v8  ;;  %v6597_v44 = vpack.c.bf16 %v12495_v38, %v12512_v25  ;;  %v6493_v56 = vshll.u32 %v9310_v43, %v6490_v8  ;;  %v6496_v48 = vshll.u32 %v9311_v47, %v6490_v8 }
 0xf88   : > { %v6352_v30 = vxor.u32 2147483648, %v6351_v19  ;;  %v6227_v33 = vshll.u32 %v12514_v5, 30  ;;  %v6499_v39 = vshll.u32 %v9312_v49, %v6490_v8  ;;  %v6502_v1 = vshll.u32 %v9313_v51, %v6490_v8 }
 0xf89   : > { %v6494_v18 = vshrl.u32 %v9311_v47, %v6491_v52  ;;  %v6497_v45 = vshrl.u32 %v9312_v49, %v6491_v52  ;;  %v6500_v9 = vshrl.u32 %v9313_v51, %v6491_v52  ;;  %v6503_v31 = vshrl.u32 %v9314_v53, %v6491_v52 }
 0xf8a   : > { %v6353_v16 = vsel %vm6270_vm15, %v6352_v30, %v6351_v19  ;;  %v12529_v14 = vsub.s32 %v6224_v58, %v6227_v33  ;;  %v6505_v63 = vshll.u32 %v9314_v53, %v6490_v8  ;;  %v6506_v58 = vshrl.u32 %v9315_v62, %v6491_v52 }
 0xf8b   : > { %v6356_v34 = vsel %vm12433_vm12, %v12223_v54, %v6353_v16  ;;  %v6495_v59 = vor.u32 %v6494_v18, %v6493_v56  ;;  %v6498_v36 = vor.u32 %v6497_v45, %v6496_v48  ;;  %v6501_v27 = vor.u32 %v6500_v9, %v6499_v39 }
 0xf8c   : > { %v12525_v41 = vpop.f32.mrb[64].mxu1  ;;  %v6230_v7 = vsub.s32 0, %v12529_v14  ;;  %9117 = vcosq.f32 %v6356_v34  ;;  %vm6166_vm15 = vcmp.lt.s32.totalorder %v12330_v29, 0  ;;  %v6250_v50 = vsub.s32 4, %v12514_v5 }
 0xf8d   : > { %v12533_v6 = vpop.f32.mrb[65].mxu1  ;;  %v8010_v60 = vadd.s32 4294967169, %v6376_v11  ;;  %9119 = vsinq.f32 %v6356_v34  ;;  %v6492_v0 = vshrl.u32 %v9310_v43, %v6491_v52  ;;  %v6504_v61 = vor.u32 %v6503_v31, %v6502_v1 }
 0xf8e   : > { %v12541_v37 = vpop.f32.mrb[66].mxu1  ;;  %v8003_v24 = vmin.u32 %v6230_v7, %v12529_v14  ;;  %v6507_v17 = vor.u32 %v6506_v58, %v6505_v63  ;;  %vm6508_vm12 = vcmp.lt.s32.totalorder %v6489_v3, 1  ;;  %vm6509_vm0 = vcmp.lt.s32.totalorder %v6489_v3, 2 }
 0xf8f   : > { %v12545_v13 = vpop.f32.mrb[67].mxu1  ;;  %vm6511_vm1 = vcmp.lt.s32.totalorder %v6489_v3, 4  ;;  %vm6510_vm11 = vcmp.lt.s32.totalorder %v6489_v3, 3  ;;  %v6516_v32 = vsel %vm6508_vm12, %v6495_v59, %v6498_v36  ;;  %v6512_v30 = vsel %vm6508_vm12, %v6492_v0, %v6495_v59 }
 0xf90   : > { %v6232_v42 = vclz %v8003_v24  ;;  %v6513_v8 = vsel %vm6511_vm1, %v6501_v27, 2102212464  ;;  %v6517_v19 = vsel %vm6511_vm1, %v6504_v61, 920167782  ;;  %v6520_v18 = vsel %vm6508_vm12, %v6498_v36, %v6501_v27 }
 0xf91   : > { %v6518_v33 = vsel %vm6510_vm11, %v6501_v27, %v6517_v19  ;;  %v6514_v45 = vsel %vm6510_vm11, %v6498_v36, %v6513_v8  ;;  %v6521_v11 = vsel %vm6511_vm1, %v6507_v17, 1326507024  ;;  %v6382_v16 = vadd.s32 1, %v8010_v60 }
 0xf92   : > { %v8004_v23 = vadd.s32 4294967294, %v6232_v42  ;;  %v6519_v9 = vsel %vm6509_vm0, %v6516_v32, %v6518_v33  ;;  %v6522_v52 = vsel %vm6510_vm11, %v6504_v61, %v6521_v11  ;;  %v6220_v34 = vadd.s32 %v12475_v35, %v12472_v28 }
 0xf93   : > { %v12556_v56 = vmul.u32.u64.low %v12539_v46, %v6519_v9  ;;  %v12557_v48 = vmul.u32.u64.high %v12539_v46, %v6519_v9, %v12556_v56  ;;  %v6523_v7 = vsel %vm6509_vm0, %v6520_v18, %v6522_v52  ;;  %vm6383_vm10 = vcmp.gt.s32.totalorder %v6382_v16, 0 }
 0xf94   : > { %vm8005_vm9 = vcmp.lt.s32.totalorder %v8004_v23, 0  ;;  %v12565_v1 = vand.u32 8388607, %v6372_v22  ;;  %v6384_v27 = vsel %vm6383_vm10, %v6382_v16, 0  ;;  %v6251_v31 = vsel %vm6166_vm15, %v6250_v50, %v12514_v5 }
 0xf95   : > { %v6235_v39 = vsel %vm8005_vm9, 0, %v8004_v23  ;;  %v6515_v63 = vsel %vm6509_vm0, %v6512_v30, %v6514_v45  ;;  %v12572_v58 = vmul.u32.u64.low %v12539_v46, %v6523_v7  ;;  %v12573_v28 = vmul.u32.u64.high %v12539_v46, %v6523_v7, %v12572_v58 }
 0xf96   : > { %v6236_v59 = vsub.s32 32, %v6235_v39  ;;  %v6240_v36 = vsub.s32 4294967266, %v6235_v39  ;;  %v9118_v35 = vpop.eup %9117  ;;  %v6237_v24 = vshll.u32 %v12529_v14, %v6235_v39  ;;  %v6534_v61 = vadd.s32 1, %v12557_v48 }
 0xf97   : > { %v9120_v17 = vpop.eup %9119  ;;  %vm12579_vm13 = vcmp.le.f32.partialorder %v6164_v20, 0.7853982  ;;  %v6386_v5 = vand.u32 31, %v6384_v27  ;;  %vm6364_vm6 = vcmp.eq.s32.totalorder %v12516_v10, 0  ;;  %v6531_v14 = vmul.u32 %v12539_v46, %v6515_v63 }
 0xf98   : > { %v6238_v60 = vshrl.u32 %v6220_v34, %v6236_v59  ;;  %v6241_v0 = vadd.s32 127, %v6240_v36  ;;  %v6253_v8 = vsel %vm12579_vm13, 0, %v6251_v31  ;;  %vm6533_vm4 = vc.u32 %v12573_v28, %v12556_v56 }
 0xf99   : > { %v6387_v32 = vsub.s32 32, %v6386_v5  ;;  %vm6367_vm7 = vcmp.eq.s32.totalorder %v12516_v10, 2  ;;  %v6535_v19 = vsel %vm6533_vm4, %v6534_v61, %v12557_v48  ;;  %v6380_v23 = vor.u32 8388608, %v12565_v1 }
 0xf9a   : > { %v6239_v3 = vor.u32 %v6238_v60, %v6237_v24  ;;  %v6242_v50 = vshll.u32 %v6241_v0, 23  ;;  %v6368_v30 = vxor.u32 2147483648, %v9118_v35  ;;  %v6257_v18 = vadd.s32 3, %v6253_v8 }
 0xf9b   : > { %v6536_v45 = vadd.s32 %v6535_v19, %v6531_v14  ;;  %v6389_v11 = vshll.u32 %v9310_v43, %v6386_v5  ;;  %v6390_v46 = vshrl.u32 %v9311_v47, %v6387_v32  ;;  %v6393_v16 = vshrl.u32 %v9312_v49, %v6387_v32 }
 0xf9c   : > { %v6243_v20 = vor.u32 4788187, %v6242_v50  ;;  %v6246_v33 = vcvt.s32.f32 %v6239_v3  ;;  %v12595_v34 = vshrl.u32 %v6384_v27, 5  ;;  %v6392_v39 = vshll.u32 %v9311_v47, %v6386_v5 }
 0xf9d   : > { %v6537_v52 = vadd.s32 536870912, %v6536_v45  ;;  %v6396_v48 = vshrl.u32 %v9313_v51, %v6387_v32  ;;  %v6365_v7 = vxor.u32 2147483648, %v9120_v17  ;;  %v6391_v36 = vor.u32 %v6390_v46, %v6389_v11 }
 0xf9e   : > { %v6244_v9 = vand.u32 2147483647, %v6243_v20  ;;  %v6395_v1 = vshll.u32 %v9312_v49, %v6386_v5  ;;  %v6394_v63 = vor.u32 %v6393_v16, %v6392_v39  ;;  %v6398_v58 = vshll.u32 %v9313_v51, %v6386_v5 }
 0xf9f   : > { %v12600_v31 = vshrl.u32 %v6537_v52, 30  ;;  %v6399_v24 = vshrl.u32 %v9314_v53, %v6387_v32  ;;  %vm6363_vm3 = vcmp.lt.s32.totalorder %v12516_v10, 2  ;;  %v6401_v47 = vshll.u32 %v9314_v53, %v6386_v5  ;;  %v8988_v53 = vld [vmem:[%s12970_s2 + $0x18] sm:$0xff]   ;;  %v12630_v5 = vld [vmem:[%s12975_s7] ss:$0 sm:$0xff] }
 0xfa0   : > { %v6247_v59 = vmul.f32 %v6246_v33, %v6244_v9  ;;  %v6397_v60 = vor.u32 %v6396_v48, %v6395_v1  ;;  %v6402_v0 = vshrl.u32 %v9315_v62, %v6387_v32  ;;  %v6369_v61 = vsel %vm6367_vm7, %v6368_v30, %v9120_v17 }
 0xfa1   : > { %v6539_v49 = vshll.u32 %v12600_v31, 30  ;;  %v6400_v3 = vor.u32 %v6399_v24, %v6398_v58  ;;  %vm6404_vm2 = vcmp.lt.s32.totalorder %v12595_v34, 1  ;;  %v6366_v51 = vsel %vm6364_vm6, %v9118_v35, %v6365_v7 }
 0xfa2   : > { %v6248_v27 = vxor.u32 2147483648, %v6247_v59  ;;  %v6403_v8 = vor.u32 %v6402_v0, %v6401_v47  ;;  %vm6405_vm12 = vcmp.lt.s32.totalorder %v12595_v34, 2  ;;  %vm6407_vm0 = vcmp.lt.s32.totalorder %v12595_v34, 4 }
 0xfa3   : > { %v12622_v17 = vsub.s32 %v6536_v45, %v6539_v49  ;;  %v6412_v35 = vsel %vm6404_vm2, %v6391_v36, %v6394_v63  ;;  %v6409_v14 = vsel %vm6407_vm0, %v6397_v60, 2102212464  ;;  %v6413_v20 = vsel %vm6407_vm0, %v6400_v3, 920167782 }
 0xfa4   : > { %v6249_v50 = vsel %vm6166_vm15, %v6248_v27, %v6247_v59  ;;  %vm6406_vm15 = vcmp.lt.s32.totalorder %v12595_v34, 3  ;;  %v6416_v30 = vsel %vm6404_vm2, %v6394_v63, %v6397_v60  ;;  %v6417_v45 = vsel %vm6407_vm0, %v6403_v8, 1326507024 }
 0xfa5   : > { %v6252_v62 = vsel %vm12579_vm13, %v12330_v29, %v6249_v50  ;;  %v6542_v42 = vsub.s32 0, %v12622_v17  ;;  %v6414_v19 = vsel %vm6406_vm15, %v6397_v60, %v6413_v20  ;;  %v6420_v9 = vshll.u32 %v6380_v23, 8 }
 0xfa6   : > { %9121 = vcosq.f32 %v6252_v62  ;;  %v6415_v33 = vsel %vm6405_vm12, %v6412_v35, %v6414_v19  ;;  %v6651_v11 = vand.u32 %v8988_v53, %v10190_v40  ;;  %v6388_v16 = vshrl.u32 %v9310_v43, %v6387_v32 }
 0xfa7   : > { %9123 = vsinq.f32 %v6252_v62  ;;  %v8015_v46 = vmin.u32 %v6542_v42, %v12622_v17  ;;  %v6418_v52 = vsel %vm6406_vm15, %v6400_v3, %v6417_v45  ;;  %v5536_v39 = vadd.f32 %v12525_v41, %v12630_v5 }
 0xfa8   : > { %v6258_v48 = vand.u32 3, %v6257_v18  ;;  %v6419_v7 = vsel %vm6405_vm12, %v6416_v30, %v6418_v52  ;;  %v12649_v59 = vmul.u32.u64.low %v6420_v9, %v6415_v33  ;;  %v12650_v1 = vmul.u32.u64.high %v6420_v9, %v6415_v33, %v12649_v59  ;;  %8597 = vmatprep.subr.bf16.mxu1 %v6651_v11 }
 0xfa9   : > { %v6370_v40 = vsel %vm6363_vm3, %v6366_v51, %v6369_v61  ;;  %v6544_v43 = vclz %v8015_v46  ;;  %v6408_v32 = vsel %vm6404_vm2, %v6388_v16, %v6391_v36  ;;  %v6410_v41 = vsel %vm6406_vm15, %v6394_v63, %v6409_v14  ;;  %8598 = vmatpush3.bf16.msra.mxu1 %v6651_v11  ;;  %5560 = vst.msk [vmem:[%s10991_s11 + $0x90] sm:$0xff] %vm2101_vm5, %v5536_v39 }
 0xfaa   : > { %v12661_v23 = vmul.u32.u64.low %v6420_v9, %v6419_v7  ;;  %v12662_v18 = vmul.u32.u64.high %v6420_v9, %v6419_v7, %v12661_v23  ;;  %v5528_v10 = vadd.f32 %v12630_v5, %v12533_v6  ;;  %v5539_v58 = vadd.f32 %v12541_v37, %v12630_v5 }
 0xfab   : > { %v8016_v24 = vadd.s32 4294967294, %v6544_v43  ;;  %v5531_v36 = vadd.f32 %v12630_v5, %v12545_v13  ;;  %vm6360_vm1 = vweird.f32 %v12223_v54  ;;  %v6411_v63 = vsel %vm6405_vm12, %v6408_v32, %v6410_v41 }
 0xfac   : > { %v6430_v27 = vadd.s32 1, %v12650_v1  ;;  %8600 = vmatmul.mubr.msk.bf16.vlgmr.msra.gmra.mrb[72].mxu1 %vm1443_vm14, %v6597_v44  ;;  %5558 = vst.msk [vmem:[%s10991_s11 + $0x80] sm:$0xff] %vm2101_vm5, %v5528_v10  ;;  %5561 = vst.msk [vmem:[%s10991_s11 + $0x98] sm:$0xff] %vm2101_vm5, %v5539_v58  ;;  %v6371_v6 = vsel %vm6360_vm1, nan, %v6370_v40  ;;  %vm6260_vm11 = vcmp.eq.s32.totalorder %v6258_v48, 0  ;;  %vm6263_vm10 = vcmp.eq.s32.totalorder %v6258_v48, 2 }
 0xfad   : > { %vm8017_vm9 = vcmp.lt.s32.totalorder %v8016_v24, 0  ;;  %5559 = vst.msk [vmem:[%s10991_s11 + $0x88] sm:$0xff] %vm2101_vm5, %v5531_v36  ;;  %v6532_v37 = vadd.s32 %v12556_v56, %v12573_v28  ;;  %vm6429_vm13 = vc.u32 %v12662_v18, %v12649_v59  ;;  %v6427_v60 = vmul.u32 %v6420_v9, %v6411_v63  ;;  %v12691_v28 = vld [vmem:[#allocation2 + $0x3] ss:$0 sm:$0xff] }
 0xfae   : > { %v6547_v13 = vsel %vm8017_vm9, 0, %v8016_v24  ;;  %v6585_v47 = vmul.f32 %v12260_v26, %v6371_v6  ;;  %v6431_v49 = vsel %vm6429_vm13, %v6430_v27, %v12650_v1  ;;  %v5737_v8 = vmul.f32 %v12691_v28, %v12010_v21 }
 0xfaf   : > { %v6548_v44 = vsub.s32 32, %v6547_v13  ;;  %v6552_v34 = vsub.s32 4294967266, %v6547_v13  ;;  %v6549_v61 = vshll.u32 %v12622_v17, %v6547_v13  ;;  %v6432_v56 = vadd.s32 %v6431_v49, %v6427_v60 }
 0xfb0   : > { %v9122_v54 = vpop.eup %9121  ;;  %vm6256_vm6 = vweird.f32 %v12330_v29  ;;  %vm6259_vm4 = vcmp.lt.s32.totalorder %v6258_v48, 2  ;;  %v5736_v20 = vmul.f32 %v12691_v28, %v12013_v57  ;;  %v6593_v19 = vadd.f32 %v6585_v47, %v5737_v8 }
 0xfb1   : > { %v9124_v38 = vpop.eup %9123  ;;  %v6264_v25 = vxor.u32 2147483648, %v9122_v54  ;;  %v6550_v51 = vshrl.u32 %v6532_v37, %v6548_v44  ;;  %v6553_v50 = vadd.s32 127, %v6552_v34  ;;  %v6433_v17 = vadd.s32 536870912, %v6432_v56 }
 0xfb2   : > { %v6261_v0 = vxor.u32 2147483648, %v9124_v38  ;;  %vm6478_vm7 = vcmp.lt.s32.totalorder %v12397_v12, 0  ;;  %vm12706_vm3 = vcmp.le.f32.partialorder %v6476_v55, 0.7853982  ;;  %v6428_v41 = vadd.s32 %v12649_v59, %v12662_v18 }
 0xfb3   : > { %v6265_v3 = vsel %vm6263_vm10, %v6264_v25, %v9124_v38  ;;  %v6551_v35 = vor.u32 %v6550_v51, %v6549_v61  ;;  %v6554_v14 = vshll.u32 %v6553_v50, 23  ;;  %v6434_v45 = vshrl.u32 %v6433_v17, 30 }
 0xfb4   : > { %v6262_v53 = vsel %vm6260_vm11, %v9122_v54, %v6261_v0  ;;  %v6562_v58 = vsub.s32 4, %v12600_v31  ;;  %vm6374_vm12 = vcmp.lt.s32.totalorder %v12501_v4, 0  ;;  %vm6373_vm0 = vcmp.le.f32.partialorder %v6372_v22, 0.7853982 }
 0xfb5   : > { %v6266_v62 = vsel %vm6259_vm4, %v6262_v53, %v6265_v3  ;;  %v6555_v33 = vor.u32 4788187, %v6554_v14  ;;  %v6558_v11 = vcvt.s32.f32 %v6551_v35  ;;  %v6435_v29 = vshll.u32 %v6434_v45, 30 }
 0xfb6   : > { %v6267_v42 = vsel %vm6256_vm6, nan, %v6266_v62  ;;  %v6563_v13 = vsel %vm6478_vm7, %v6562_v58, %v12600_v31  ;;  %v6458_v61 = vsub.s32 4, %v6434_v45  ;;  %vm6568_vm9 = vweird.f32 %v12397_v12 }
 0xfb7   : > { %v6584_v30 = vmul.f32 %v12260_v26, %v6267_v42  ;;  %v6556_v21 = vand.u32 2147483647, %v6555_v33  ;;  %v6436_v52 = vsub.s32 %v6432_v56, %v6435_v29  ;;  %v6565_v60 = vsel %vm12706_vm3, 0, %v6563_v13  ;;  %v9155_v29 = vld [vmem:[#allocation2 + $0x4] ss:$0 sm:$0xff] }
 0xfb8   : > { %v6569_v49 = vadd.s32 3, %v6565_v60  ;;  %v6459_v8 = vsel %vm6374_vm12, %v6458_v61, %v6434_v45  ;;  %vm6464_vm4 = vweird.f32 %v12501_v4 }
 0xfb9   : > { %v6592_v9 = vadd.f32 %v6584_v30, %v5736_v20  ;;  %v6559_v16 = vmul.f32 %v6558_v11, %v6556_v21  ;;  %v6438_v39 = vsub.s32 0, %v6436_v52  ;;  %v6461_v17 = vsel %vm6373_vm0, 0, %v6459_v8 }
 0xfba   : > { %v6570_v53 = vand.u32 3, %v6569_v49 }
 0xfbb   : > { %v6598_v46 = vpack.c.bf16 %v6593_v19, %v6592_v9  ;;  %v6560_v48 = vxor.u32 2147483648, %v6559_v16  ;;  %v8011_v7 = vmin.u32 %v6438_v39, %v6436_v52  ;;  %v6465_v19 = vadd.s32 3, %v6461_v17 }
 0xfbc   : > { %vm6572_vm15 = vcmp.eq.s32.totalorder %v6570_v53, 0  ;;  %vm6575_vm1 = vcmp.eq.s32.totalorder %v6570_v53, 2  ;;  %vm6571_vm11 = vcmp.lt.s32.totalorder %v6570_v53, 2  ;;  %v5739_v39 = vmul.f32 %v12691_v28, %v12016_v15  ;;  %v8992_v15 = vld [vmem:[%s12971_s3 + $0x18] sm:$0xff]  }
 0xfbd   : > { %8603 = vmatprep.mubr.msk.bf16.mxu1 %vm1443_vm14, %v6598_v46  ;;  %v6440_v1 = vclz %v8011_v7  ;;  %v6561_v57 = vsel %vm6478_vm7, %v6560_v48, %v6559_v16  ;;  %v6466_v33 = vand.u32 3, %v6465_v19  ;;  %v8997_v19 = vld [vmem:[%s12971_s3 + $0x40] sm:$0xff]  }
 0xfbe   : > { %v6564_v43 = vsel %vm12706_vm3, %v12397_v12, %v6561_v57 }
 0xfbf   : > { %v8012_v26 = vadd.s32 4294967294, %v6440_v1  ;;  %9125 = vcosq.f32 %v6564_v43  ;;  %vm6471_vm10 = vcmp.eq.s32.totalorder %v6466_v33, 2  ;;  %vm6468_vm13 = vcmp.eq.s32.totalorder %v6466_v33, 0 }
 0xfc0   : > { %9127 = vsinq.f32 %v6564_v43  ;;  %vm6467_vm6 = vcmp.lt.s32.totalorder %v6466_v33, 2  ;;  %v5738_v1 = vmul.f32 %v12691_v28, %v12035_v2  ;;  %v8991_v43 = vld [vmem:[%s12971_s3 + $0x10] sm:$0xff]   ;;  %v8993_v2 = vld [vmem:[%s12971_s3 + $0x20] sm:$0xff]   ;;  %v8027_v33 = vld [vmem:[#allocation4] ss:$0 sm:$0xff] }
 0xfc1   : > { %vm8013_vm2 = vcmp.lt.s32.totalorder %v8012_v26, 0  ;;  %8611 = vmatprep.subr.bf16.mxu0 %v8991_v43  ;;  %8623 = vmatprep.subr.bf16.mxu1 %v8993_v2  ;;  %v8018_v28 = vld [vmem:[%s12972_s4] ss:$0 sm:$0xff] }
 0xfc2   : > { %v6443_v32 = vsel %vm8013_vm2, 0, %v8012_v26  ;;  %8612 = vmatpush3.bf16.msra.mxu0 %v8991_v43  ;;  %8624 = vmatpush3.bf16.msra.mxu1 %v8993_v2 }
 0xfc3   : > { %v6444_v23 = vsub.s32 32, %v6443_v32  ;;  %v6448_v10 = vsub.s32 4294967266, %v6443_v32  ;;  %v6445_v24 = vshll.u32 %v6436_v52, %v6443_v32  ;;  %8613 = vmatprep.subr.bf16.mxu0 %v8992_v15 }
 0xfc5   : > { %v6446_v55 = vshrl.u32 %v6428_v41, %v6444_v23  ;;  %v6449_v36 = vadd.s32 127, %v6448_v10 }
 0xfc6   : > { %8614 = vmatpush3.bf16.msra.mxu0 %v8992_v15 }
 0xfc7   : > { %v6447_v54 = vor.u32 %v6446_v55, %v6445_v24  ;;  %v6450_v37 = vshll.u32 %v6449_v36, 23  ;;  %8639 = vmatprep.subr.bf16.mxu0 %v8997_v19 }
 0xfc9   : > { %v6451_v44 = vor.u32 4788187, %v6450_v37  ;;  %v6454_v0 = vcvt.s32.f32 %v6447_v54  ;;  %v9126_v3 = vpop.eup %9125 }
 0xfca   : > { %v8575_v63 = vpop.f32.mrb[68].mxu1  ;;  %v9128_v50 = vpop.eup %9127  ;;  %v6576_v14 = vxor.u32 2147483648, %v9126_v3 }
 0xfcb   : > { %v5552_v27 = vadd.f32 %v8575_v63, %v12630_v5  ;;  %v5543_v6 = vpop.f32.mrb[69].mxu1  ;;  %v6452_v47 = vand.u32 2147483647, %v6451_v44  ;;  %v6573_v35 = vxor.u32 2147483648, %v9128_v50 }
 0xfcc   : > { %v5544_v59 = vadd.f32 %v12630_v5, %v5543_v6  ;;  %v8576_v18 = vpop.f32.mrb[70].mxu1  ;;  %v6577_v42 = vsel %vm6575_vm1, %v6576_v14, %v9128_v50 }
 0xfcd   : > { %5564 = vst.msk [vmem:[%s10991_s11 + $0xb0] sm:$0xff] %vm2101_vm5, %v5552_v27  ;;  %v5555_v38 = vadd.f32 %v8576_v18, %v12630_v5  ;;  %v5546_v25 = vpop.f32.mrb[71].mxu1  ;;  %v6455_v31 = vmul.f32 %v6454_v0, %v6452_v47  ;;  %v6574_v20 = vsel %vm6572_vm15, %v9126_v3, %v6573_v35 }
 0xfce   : > { %5562 = vst.msk [vmem:[%s10991_s11 + $0xa0] sm:$0xff] %vm2101_vm5, %v5544_v59  ;;  %v5547_v34 = vadd.f32 %v12630_v5, %v5546_v25  ;;  %v6578_v30 = vsel %vm6571_vm11, %v6574_v20, %v6577_v42  ;;  %v8995_v20 = vld [vmem:[%s12971_s3 + $0x30] sm:$0xff]   ;;  %v8996_v42 = vld [vmem:[%s12971_s3 + $0x38] sm:$0xff]  }
 0xfcf   : > { %5565 = vst.msk [vmem:[%s10991_s11 + $0xb8] sm:$0xff] %vm2101_vm5, %v5555_v38  ;;  %v6456_v51 = vxor.u32 2147483648, %v6455_v31  ;;  %v6579_v45 = vsel %vm6568_vm9, nan, %v6578_v30  ;;  %v8998_v30 = vld [vmem:[%s12971_s3 + $0x48] sm:$0xff]  }
 0xfd0   : > { %5563 = vst.msk [vmem:[%s10991_s11 + $0xa8] sm:$0xff] %vm2101_vm5, %v5547_v34  ;;  %v6587_v46 = vmul.f32 %v9155_v29, %v6579_v45 }
 0xfd1   : > { %v6457_v56 = vsel %vm6374_vm12, %v6456_v51, %v6455_v31 }
 0xfd2   : > { %v6460_v62 = vsel %vm6373_vm0, %v12501_v4, %v6457_v56  ;;  %v6595_v12 = vadd.f32 %v6587_v46, %v5739_v39  ;;  %v8994_v4 = vld [vmem:[%s12971_s3 + $0x28] sm:$0xff]  }
 0xfd3   : > { %9129 = vcosq.f32 %v6460_v62  ;;  %8625 = vmatprep.subr.bf16.mxu1 %v8994_v4 }
 0xfd4   : > { %9131 = vsinq.f32 %v6460_v62  ;;  %8626 = vmatpush3.bf16.msra.mxu1 %v8994_v4 }
 0xfd5   : > { %8627 = vmatprep.subr.bf16.mxu1 %v8995_v20 }
 0xfd8   : > { %8628 = vmatpush3.bf16.msra.mxu1 %v8995_v20 }
 0xfd9   : > { %8629 = vmatprep.subr.bf16.mxu1 %v8996_v42 }
 0xfdc   : > { %8630 = vmatpush3.bf16.msra.mxu1 %v8996_v42 }
 0xfdd   : > { %v9130_v22 = vpop.eup %9129 }
 0xfde   : > { %v9132_v9 = vpop.eup %9131  ;;  %v6472_v21 = vxor.u32 2147483648, %v9130_v22 }
 0xfdf   : > { %v6469_v11 = vxor.u32 2147483648, %v9132_v9 }
 0xfe0   : > { %v6473_v16 = vsel %vm6471_vm10, %v6472_v21, %v9132_v9 }
 0xfe1   : > { %v6470_v52 = vsel %vm6468_vm13, %v9130_v22, %v6469_v11 }
 0xfe2   : > { %v6474_v48 = vsel %vm6467_vm6, %v6470_v52, %v6473_v16 }
 0xfe3   : > { %v6475_v7 = vsel %vm6464_vm4, nan, %v6474_v48 }
 0xfe4   : > { %v6586_v57 = vmul.f32 %v9155_v29, %v6475_v7 }
 0xfe6   : > { %v6594_v26 = vadd.f32 %v6586_v57, %v5738_v1 }
 0xfe8   : > { %v6599_v40 = vpack.c.bf16 %v6595_v12, %v6594_v26 }
 0xfea   : > { %8604 = vmatmul.mubr.msk.bf16.gmra.mrb[76].mxu1 %vm1443_vm14, %v6599_v40 }
0x107f   : > { %v8601_v32 = vpop.f32.mrb[72].mxu1 }
0x1080   : > { %v6696_v41 = vadd.f32 %v8601_v32, %v8018_v28  ;;  %v6687_v23 = vpop.f32.mrb[73].mxu1 }
0x1081   : > { %v6688_v10 = vadd.f32 %v8018_v28, %v6687_v23  ;;  %v8602_v58 = vpop.f32.mrb[74].mxu1 }
0x1082   : > { %v6728_v24 = vmul.f32 0.01, %v6696_v41  ;;  %v6699_v55 = vadd.f32 %v8602_v58, %v8018_v28  ;;  %v6690_v36 = vpop.f32.mrb[75].mxu1  ;;  %vm6720_vm14 = vcmp.ge.f32.partialorder %v6696_v41, 0.0 }
0x1083   : > { %v6726_v63 = vmul.f32 0.01, %v6688_v10  ;;  %v6691_v27 = vadd.f32 %v8018_v28, %v6690_v36  ;;  %vm6718_vm7 = vcmp.ge.f32.partialorder %v6688_v10, 0.0 }
0x1084   : > { %vm6721_vm3 = vcmp.ge.f32.partialorder %v6699_v55, 0.0  ;;  %v6729_v6 = vmul.f32 0.01, %v6699_v55  ;;  %v6736_v37 = vsel %vm6720_vm14, %v6696_v41, %v6728_v24 }
0x1085   : > { %vm6719_vm2 = vcmp.ge.f32.partialorder %v6691_v27, 0.0  ;;  %v6727_v54 = vmul.f32 0.01, %v6691_v27  ;;  %v6734_v18 = vsel %vm6718_vm7, %v6688_v10, %v6726_v63 }
0x1086   : > { %v6737_v59 = vsel %vm6721_vm3, %v6699_v55, %v6729_v6 }
0x1087   : > { %v6743_v13 = vpack.c.bf16 %v6737_v59, %v6736_v37  ;;  %v6735_v38 = vsel %vm6719_vm2, %v6691_v27, %v6727_v54 }
0x1088   : > { %v6742_v25 = vpack.c.bf16 %v6735_v38, %v6734_v18  ;;  %v8999_v18 = vld [vmem:[%s12971_s3 + $0x50] sm:$0xff]   ;;  %v9001_v38 = vld [vmem:[%s12974_s6] sm:$0xff]  }
0x1089   : > { %8671 = vmatprep.subr.bf16.mxu1 %v9001_v38 }
0x108a   : > { %8615 = vmatprep.mubr.msk.bf16.mxu0 %vm1593_vm8, %v6742_v25  ;;  %v8044_v25 = vld [vmem:[#allocation4 + $0x1] ss:$0 sm:$0xff] }
0x108b   : > { %8616 = vmatmul.mubr.msk.bf16.vlgmr.msra.gmra.mrb[80].mxu0 %vm1593_vm8, %v6743_v13  ;;  %v9000_v13 = vld [vmem:[%s12971_s3 + $0x58] sm:$0xff]  }
0x108c   : > { %8640 = vmatpush3.bf16.msra.mxu0 %v8997_v19 }
0x108d   : > { %8641 = vmatprep.subr.bf16.mxu0 %v8998_v30 }
0x1090   : > { %8642 = vmatpush3.bf16.msra.mxu0 %v8998_v30 }
0x1091   : > { %8643 = vmatprep.subr.bf16.mxu0 %v8999_v18 }
0x1094   : > { %8644 = vmatpush3.bf16.msra.mxu0 %v8999_v18 }
0x1095   : > { %8645 = vmatprep.subr.bf16.mxu0 %v9000_v13 }
0x1098   : > { %8646 = vmatpush3.bf16.msra.mxu0 %v9000_v13 }
0x1099   : > { %8655 = vmatprep.subr.bf16.mxu0 %v9001_v38 }
0x10bd   : > { %v8605_v44 = vpop.f32.mrb[76].mxu1 }
0x10be   : > { %v6712_v34 = vadd.f32 %v8605_v44, %v8018_v28  ;;  %v6703_v60 = vpop.f32.mrb[77].mxu1 }
0x10bf   : > { %v6704_v47 = vadd.f32 %v8018_v28, %v6703_v60  ;;  %v8606_v0 = vpop.f32.mrb[78].mxu1 }
0x10c0   : > { %v6732_v31 = vmul.f32 0.01, %v6712_v34  ;;  %v6715_v61 = vadd.f32 %v8606_v0, %v8018_v28  ;;  %v6706_v49 = vpop.f32.mrb[79].mxu1  ;;  %vm6724_vm12 = vcmp.ge.f32.partialorder %v6712_v34, 0.0 }
0x10c1   : > { %v6730_v3 = vmul.f32 0.01, %v6704_v47  ;;  %v6707_v51 = vadd.f32 %v8018_v28, %v6706_v49  ;;  %vm6722_vm0 = vcmp.ge.f32.partialorder %v6704_v47, 0.0 }
0x10c2   : > { %vm6725_vm15 = vcmp.ge.f32.partialorder %v6715_v61, 0.0  ;;  %v6733_v50 = vmul.f32 0.01, %v6715_v61  ;;  %v6740_v8 = vsel %vm6724_vm12, %v6712_v34, %v6732_v31 }
0x10c3   : > { %vm6723_vm1 = vcmp.ge.f32.partialorder %v6707_v51, 0.0  ;;  %v6731_v56 = vmul.f32 0.01, %v6707_v51  ;;  %v6738_v62 = vsel %vm6722_vm0, %v6704_v47, %v6730_v3 }
0x10c4   : > { %v6741_v53 = vsel %vm6725_vm15, %v6715_v61, %v6733_v50 }
0x10c5   : > { %v6745_v35 = vpack.c.bf16 %v6741_v53, %v6740_v8  ;;  %v6739_v14 = vsel %vm6723_vm1, %v6707_v51, %v6731_v56 }
0x10c6   : > { %v6744_v17 = vpack.c.bf16 %v6739_v14, %v6738_v62 }
0x10c8   : > { %8619 = vmatprep.mubr.msk.bf16.mxu0 %vm1593_vm8, %v6744_v17 }
0x10c9   : > { %8620 = vmatmul.mubr.msk.bf16.gmra.mrb[84].mxu0 %vm1593_vm8, %v6745_v35 }
0x115e   : > { %v8617_v22 = vpop.f32.mrb[80].mxu0 }
0x115f   : > { %v6838_v45 = vadd.f32 %v8617_v22, %v8027_v33  ;;  %v6829_v9 = vpop.f32.mrb[81].mxu0 }
0x1160   : > { %v6830_v21 = vadd.f32 %v8027_v33, %v6829_v9  ;;  %v8618_v11 = vpop.f32.mrb[82].mxu0 }
0x1161   : > { %v6870_v29 = vmul.f32 0.01, %v6838_v45  ;;  %v6841_v46 = vadd.f32 %v8618_v11, %v8027_v33  ;;  %v6832_v16 = vpop.f32.mrb[83].mxu0  ;;  %vm6862_vm11 = vcmp.ge.f32.partialorder %v6838_v45, 0.0 }
0x1162   : > { %v6868_v52 = vmul.f32 0.01, %v6830_v21  ;;  %v6833_v39 = vadd.f32 %v8027_v33, %v6832_v16  ;;  %vm6860_vm9 = vcmp.ge.f32.partialorder %v6830_v21, 0.0 }
0x1163   : > { %vm6863_vm10 = vcmp.ge.f32.partialorder %v6841_v46, 0.0  ;;  %v6871_v48 = vmul.f32 0.01, %v6841_v46  ;;  %v6878_v12 = vsel %vm6862_vm11, %v6838_v45, %v6870_v29 }
0x1164   : > { %vm6861_vm13 = vcmp.ge.f32.partialorder %v6833_v39, 0.0  ;;  %v6869_v7 = vmul.f32 0.01, %v6833_v39  ;;  %v6876_v57 = vsel %vm6860_vm9, %v6830_v21, %v6868_v52 }
0x1165   : > { %v6879_v1 = vsel %vm6863_vm10, %v6841_v46, %v6871_v48 }
0x1166   : > { %v6885_v26 = vpack.c.bf16 %v6879_v1, %v6878_v12  ;;  %v6877_v40 = vsel %vm6861_vm13, %v6833_v39, %v6869_v7  ;;  %v9002_v1 = vld [vmem:[%s12974_s6 + $0x8] sm:$0xff]  }
0x1167   : > { %v6884_v43 = vpack.c.bf16 %v6877_v40, %v6876_v57  ;;  %v9003_v57 = vld [vmem:[%s12974_s6 + $0x10] sm:$0xff]   ;;  %v8061_v40 = vld [vmem:[#allocation4 + $0x2] ss:$0 sm:$0xff] }
0x1169   : > { %8631 = vmatprep.mubr.msk.bf16.mxu1 %vm1593_vm8, %v6884_v43 }
0x116a   : > { %8632 = vmatmul.mubr.msk.bf16.vlgmr.msra.gmra.mrb[80].mxu1 %vm1593_vm8, %v6885_v26  ;;  %v9004_v26 = vld [vmem:[%s12974_s6 + $0x18] sm:$0xff]  }
0x116b   : > { %8675 = vmatpush3.bf16.msra.mxu1 %v9001_v38 }
0x116c   : > { %8672 = vmatprep.subr.bf16.mxu1 %v9002_v1 }
0x116f   : > { %8676 = vmatpush3.bf16.msra.mxu1 %v9002_v1 }
0x1170   : > { %8673 = vmatprep.subr.bf16.mxu1 %v9003_v57 }
0x1173   : > { %8677 = vmatpush3.bf16.msra.mxu1 %v9003_v57 }
0x1174   : > { %8674 = vmatprep.subr.bf16.mxu1 %v9004_v26 }
0x1177   : > { %8678 = vmatpush3.bf16.msra.mxu1 %v9004_v26 }
0x119c   : > { %v8621_v15 = vpop.f32.mrb[84].mxu0 }
0x119d   : > { %v6854_v2 = vadd.f32 %v8621_v15, %v8027_v33  ;;  %v6845_v4 = vpop.f32.mrb[85].mxu0 }
0x119e   : > { %v6846_v28 = vadd.f32 %v8027_v33, %v6845_v4  ;;  %v8622_v32 = vpop.f32.mrb[86].mxu0 }
0x119f   : > { %v6874_v41 = vmul.f32 0.01, %v6854_v2  ;;  %v6857_v23 = vadd.f32 %v8622_v32, %v8027_v33  ;;  %v6848_v10 = vpop.f32.mrb[87].mxu0  ;;  %vm6866_vm6 = vcmp.ge.f32.partialorder %v6854_v2, 0.0 }
0x11a0   : > { %v6872_v58 = vmul.f32 0.01, %v6846_v28  ;;  %v6849_v24 = vadd.f32 %v8027_v33, %v6848_v10  ;;  %vm6864_vm4 = vcmp.ge.f32.partialorder %v6846_v28, 0.0 }
0x11a1   : > { %vm6867_vm14 = vcmp.ge.f32.partialorder %v6857_v23, 0.0  ;;  %v6875_v55 = vmul.f32 0.01, %v6857_v23  ;;  %v6882_v63 = vsel %vm6866_vm6, %v6854_v2, %v6874_v41 }
0x11a2   : > { %vm6865_vm7 = vcmp.ge.f32.partialorder %v6849_v24, 0.0  ;;  %v6873_v36 = vmul.f32 0.01, %v6849_v24  ;;  %v6880_v6 = vsel %vm6864_vm4, %v6846_v28, %v6872_v58 }
0x11a3   : > { %v6883_v27 = vsel %vm6867_vm14, %v6857_v23, %v6875_v55 }
0x11a4   : > { %v6887_v54 = vpack.c.bf16 %v6883_v27, %v6882_v63  ;;  %v6881_v37 = vsel %vm6865_vm7, %v6849_v24, %v6873_v36 }
0x11a5   : > { %v6886_v59 = vpack.c.bf16 %v6881_v37, %v6880_v6 }
0x11a7   : > { %8635 = vmatprep.mubr.msk.bf16.mxu1 %vm1593_vm8, %v6886_v59 }
0x11a8   : > { %8636 = vmatmul.mubr.msk.bf16.gmra.mrb[84].mxu1 %vm1593_vm8, %v6887_v54 }
0x123d   : > { %v8633_v44 = vpop.f32.mrb[80].mxu1 }
0x123e   : > { %v6980_v34 = vadd.f32 %v8633_v44, %v8044_v25  ;;  %v6971_v60 = vpop.f32.mrb[81].mxu1 }
0x123f   : > { %v6972_v47 = vadd.f32 %v8044_v25, %v6971_v60  ;;  %v8634_v0 = vpop.f32.mrb[82].mxu1 }
0x1240   : > { %v7012_v31 = vmul.f32 0.01, %v6980_v34  ;;  %v6983_v61 = vadd.f32 %v8634_v0, %v8044_v25  ;;  %v6974_v49 = vpop.f32.mrb[83].mxu1  ;;  %vm7004_vm3 = vcmp.ge.f32.partialorder %v6980_v34, 0.0 }
0x1241   : > { %v7010_v3 = vmul.f32 0.01, %v6972_v47  ;;  %v6975_v51 = vadd.f32 %v8044_v25, %v6974_v49  ;;  %vm7002_vm2 = vcmp.ge.f32.partialorder %v6972_v47, 0.0 }
0x1242   : > { %vm7005_vm12 = vcmp.ge.f32.partialorder %v6983_v61, 0.0  ;;  %v7013_v50 = vmul.f32 0.01, %v6983_v61  ;;  %v7020_v8 = vsel %vm7004_vm3, %v6980_v34, %v7012_v31 }
0x1243   : > { %vm7003_vm0 = vcmp.ge.f32.partialorder %v6975_v51, 0.0  ;;  %v7011_v56 = vmul.f32 0.01, %v6975_v51  ;;  %v7018_v62 = vsel %vm7002_vm2, %v6972_v47, %v7010_v3 }
0x1244   : > { %v7021_v53 = vsel %vm7005_vm12, %v6983_v61, %v7013_v50 }
0x1245   : > { %v7027_v35 = vpack.c.bf16 %v7021_v53, %v7020_v8  ;;  %v7019_v14 = vsel %vm7003_vm0, %v6975_v51, %v7011_v56 }
0x1246   : > { %v7026_v17 = vpack.c.bf16 %v7019_v14, %v7018_v62 }
0x1248   : > { %8647 = vmatprep.mubr.msk.bf16.mxu0 %vm1593_vm8, %v7026_v17 }
0x1249   : > { %8648 = vmatmul.mubr.msk.bf16.vlgmr.msra.gmra.mrb[88].mxu0 %vm1593_vm8, %v7027_v35 }
0x124a   : > { %8656 = vmatpush3.bf16.msra.mxu0 %v9001_v38 }
0x124b   : > { %8657 = vmatprep.subr.bf16.mxu0 %v9002_v1 }
0x124e   : > { %8658 = vmatpush3.bf16.msra.mxu0 %v9002_v1 }
0x124f   : > { %8659 = vmatprep.subr.bf16.mxu0 %v9003_v57 }
0x1252   : > { %8660 = vmatpush3.bf16.msra.mxu0 %v9003_v57 }
0x1253   : > { %8661 = vmatprep.subr.bf16.mxu0 %v9004_v26 }
0x1256   : > { %8662 = vmatpush3.bf16.msra.mxu0 %v9004_v26 }
0x127b   : > { %v8637_v20 = vpop.f32.mrb[84].mxu1 }
0x127c   : > { %v6996_v42 = vadd.f32 %v8637_v20, %v8044_v25  ;;  %v6987_v19 = vpop.f32.mrb[85].mxu1 }
0x127d   : > { %v6988_v30 = vadd.f32 %v8044_v25, %v6987_v19  ;;  %v8638_v33 = vpop.f32.mrb[86].mxu1 }
0x127e   : > { %v7016_v22 = vmul.f32 0.01, %v6996_v42  ;;  %v6999_v45 = vadd.f32 %v8638_v33, %v8044_v25  ;;  %v6990_v9 = vpop.f32.mrb[87].mxu1  ;;  %vm7008_vm15 = vcmp.ge.f32.partialorder %v6996_v42, 0.0 }
0x127f   : > { %v7014_v21 = vmul.f32 0.01, %v6988_v30  ;;  %v6991_v11 = vadd.f32 %v8044_v25, %v6990_v9  ;;  %vm7006_vm1 = vcmp.ge.f32.partialorder %v6988_v30, 0.0 }
0x1280   : > { %vm7009_vm11 = vcmp.ge.f32.partialorder %v6999_v45, 0.0  ;;  %v7017_v29 = vmul.f32 0.01, %v6999_v45  ;;  %v7024_v16 = vsel %vm7008_vm15, %v6996_v42, %v7016_v22 }
0x1281   : > { %vm7007_vm9 = vcmp.ge.f32.partialorder %v6991_v11, 0.0  ;;  %v7015_v46 = vmul.f32 0.01, %v6991_v11  ;;  %v7022_v39 = vsel %vm7006_vm1, %v6988_v30, %v7014_v21 }
0x1282   : > { %v7025_v52 = vsel %vm7009_vm11, %v6999_v45, %v7017_v29 }
0x1283   : > { %v7029_v48 = vpack.c.bf16 %v7025_v52, %v7024_v16  ;;  %v7023_v7 = vsel %vm7007_vm9, %v6991_v11, %v7015_v46 }
0x1284   : > { %v7028_v12 = vpack.c.bf16 %v7023_v7, %v7022_v39 }
0x1286   : > { %8651 = vmatprep.mubr.msk.bf16.mxu0 %vm1593_vm8, %v7028_v12 }
0x1287   : > { %8652 = vmatmul.mubr.msk.bf16.gmra.mrb[92].mxu0 %vm1593_vm8, %v7029_v48 }
0x131c   : > { %v8649_v43 = vpop.f32.mrb[88].mxu0 }
0x131d   : > { %v7122_v15 = vadd.f32 %v8649_v43, %v8061_v40  ;;  %v7113_v2 = vpop.f32.mrb[89].mxu0 }
0x131e   : > { %v7114_v4 = vadd.f32 %v8061_v40, %v7113_v2  ;;  %v8650_v28 = vpop.f32.mrb[90].mxu0 }
0x131f   : > { %v7154_v32 = vmul.f32 0.01, %v7122_v15  ;;  %v7125_v41 = vadd.f32 %v8650_v28, %v8061_v40  ;;  %v7116_v23 = vpop.f32.mrb[91].mxu0  ;;  %vm7146_vm10 = vcmp.ge.f32.partialorder %v7122_v15, 0.0 }
0x1320   : > { %v7152_v10 = vmul.f32 0.01, %v7114_v4  ;;  %v7117_v58 = vadd.f32 %v8061_v40, %v7116_v23  ;;  %vm7144_vm13 = vcmp.ge.f32.partialorder %v7114_v4, 0.0 }
0x1321   : > { %vm7147_vm6 = vcmp.ge.f32.partialorder %v7125_v41, 0.0  ;;  %v7155_v24 = vmul.f32 0.01, %v7125_v41  ;;  %v7162_v36 = vsel %vm7146_vm10, %v7122_v15, %v7154_v32 }
0x1322   : > { %vm7145_vm4 = vcmp.ge.f32.partialorder %v7117_v58, 0.0  ;;  %v7153_v55 = vmul.f32 0.01, %v7117_v58  ;;  %v7160_v27 = vsel %vm7144_vm13, %v7114_v4, %v7152_v10 }
0x1323   : > { %v7163_v63 = vsel %vm7147_vm6, %v7125_v41, %v7155_v24 }
0x1324   : > { %v7169_v6 = vpack.c.bf16 %v7163_v63, %v7162_v36  ;;  %v7161_v54 = vsel %vm7145_vm4, %v7117_v58, %v7153_v55 }
0x1325   : > { %v7168_v37 = vpack.c.bf16 %v7161_v54, %v7160_v27 }
0x1327   : > { %8663 = vmatprep.mubr.msk.bf16.mxu0 %vm1593_vm8, %v7168_v37 }
0x1328   : > { %8664 = vmatmul.mubr.msk.bf16.vlgmr.msra.gmra.mrb[96].mxu0 %vm1593_vm8, %v7169_v6 }
0x135a   : > { %v8653_v59 = vpop.f32.mrb[92].mxu0 }
0x135b   : > { %v7138_v18 = vadd.f32 %v8653_v59, %v8061_v40  ;;  %v7129_v13 = vpop.f32.mrb[93].mxu0 }
0x135c   : > { %v7130_v38 = vadd.f32 %v8061_v40, %v7129_v13  ;;  %v8654_v25 = vpop.f32.mrb[94].mxu0 }
0x135d   : > { %v7158_v44 = vmul.f32 0.01, %v7138_v18  ;;  %v7141_v34 = vadd.f32 %v8654_v25, %v8061_v40  ;;  %v7132_v60 = vpop.f32.mrb[95].mxu0  ;;  %vm7150_vm14 = vcmp.ge.f32.partialorder %v7138_v18, 0.0 }
0x135e   : > { %v7156_v47 = vmul.f32 0.01, %v7130_v38  ;;  %v7133_v0 = vadd.f32 %v8061_v40, %v7132_v60  ;;  %vm7148_vm7 = vcmp.ge.f32.partialorder %v7130_v38, 0.0 }
0x135f   : > { %vm7151_vm3 = vcmp.ge.f32.partialorder %v7141_v34, 0.0  ;;  %v7159_v31 = vmul.f32 0.01, %v7141_v34  ;;  %v7166_v49 = vsel %vm7150_vm14, %v7138_v18, %v7158_v44 }
0x1360   : > { %vm7149_vm2 = vcmp.ge.f32.partialorder %v7133_v0, 0.0  ;;  %v7157_v61 = vmul.f32 0.01, %v7133_v0  ;;  %v7164_v51 = vsel %vm7148_vm7, %v7130_v38, %v7156_v47 }
0x1361   : > { %v7167_v3 = vsel %vm7151_vm3, %v7141_v34, %v7159_v31 }
0x1362   : > { %v7171_v50 = vpack.c.bf16 %v7167_v3, %v7166_v49  ;;  %v7165_v56 = vsel %vm7149_vm2, %v7133_v0, %v7157_v61 }
0x1363   : > { %v7170_v8 = vpack.c.bf16 %v7165_v56, %v7164_v51 }
0x1365   : > { %8667 = vmatprep.mubr.msk.bf16.mxu1 %vm1593_vm8, %v7170_v8 }
0x1366   : > { %8668 = vmatmul.mubr.msk.bf16.vlgmr.msra.gmra.mrb[88].mxu1 %vm1593_vm8, %v7171_v50 }
0x13fb   : > { %v8665_v53 = vpop.f32.mrb[96].mxu0 }
0x13fc   : > { %v7266_v62 = vadd.f32 %v8665_v53, %v12630_v5  ;;  %v7257_v35 = vpop.f32.mrb[97].mxu0 }
0x13fd   : > { %v7258_v14 = vadd.f32 %v12630_v5, %v7257_v35  ;;  %v8666_v17 = vpop.f32.mrb[98].mxu0 }
0x13fe   : > { %7290 = vst.msk [vmem:[%s10991_s11 + $0xd0] sm:$0xff] %vm2101_vm5, %v7266_v62  ;;  %v7269_v20 = vadd.f32 %v8666_v17, %v12630_v5  ;;  %v7260_v42 = vpop.f32.mrb[99].mxu0 }
0x13ff   : > { %7288 = vst.msk [vmem:[%s10991_s11 + $0xc0] sm:$0xff] %vm2101_vm5, %v7258_v14  ;;  %v7261_v19 = vadd.f32 %v12630_v5, %v7260_v42 }
0x1400   : > { %7291 = vst.msk [vmem:[%s10991_s11 + $0xd8] sm:$0xff] %vm2101_vm5, %v7269_v20 }
0x1401   : > { %7289 = vst.msk [vmem:[%s10991_s11 + $0xc8] sm:$0xff] %vm2101_vm5, %v7261_v19 }
0x1439   : > { %v8669_v30 = vpop.f32.mrb[88].mxu1  ;;  %7302 = sbr.rel (!%p13046_p9) target bundleno = 5240 (0x1478), region = 64 }
0x143a   : > { %v7282_v33 = vadd.f32 %v8669_v30, %v12630_v5  ;;  %v7273_v22 = vpop.f32.mrb[89].mxu1 }
0x143b   : > { %v7274_v45 = vadd.f32 %v12630_v5, %v7273_v22  ;;  %v8670_v9 = vpop.f32.mrb[90].mxu1 }
0x143c   : > { %7294 = vst.msk [vmem:[%s10991_s11 + $0xf0] sm:$0xff] %vm2101_vm5, %v7282_v33  ;;  %v7285_v21 = vadd.f32 %v8670_v9, %v12630_v5  ;;  %v7276_v11 = vpop.f32.mrb[91].mxu1 }
0x143d   : > { %7292 = vst.msk [vmem:[%s10991_s11 + $0xe0] sm:$0xff] %vm2101_vm5, %v7274_v45  ;;  %v7277_v29 = vadd.f32 %v12630_v5, %v7276_v11 }
0x143e   : > { %7295 = vst.msk [vmem:[%s10991_s11 + $0xf8] sm:$0xff] %vm2101_vm5, %v7285_v21 }
0x143f   : > { %7293 = vst.msk [vmem:[%s10991_s11 + $0xe8] sm:$0xff] %vm2101_vm5, %v7277_v29 }
0x1440   : > { %s13058_s14 = smov (!%p7305_p13, %s7304_s14), 32 }
0x1441   : > { %s8081_s21 = sshll.u32 %s13058_s14, 7 }
0x1442   : > { %p8084_p0 = scmp.eq.s32.totalorder %s8081_s21, 0 }
0x1443   : > { %s12842_s13 = sshrl.u32 (!%p8084_p0), %s13058_s14, 5 }
0x1444   : > { %7313 = sbr.rel (%p8084_p0) target bundleno = 5240 (0x1478), region = 68  ;;  %p8085_p1 = scmp.le.s32.totalorder (!%p8084_p0), %s12842_s13, 0 }
0x144b   : > { %7595 = sbr.rel (%p8085_p1) target bundleno = 5219 (0x1463), region = 147  ;;  %s13047_s30 = smov (!%p8085_p1), %s12836_s17 }
0x144c   : > { %s13048_s22 = smov (!%p8085_p1), %s10991_s11  ;;  %s12851_s23 = smov (!%p8085_p1), 0  }
0x144d   : > { %s12853_s24 = smov (!%p8085_p1), 0  }
0x1452 LB: >> { %v7437_v5 = vld [vmem:[%s9282_s22] sm:$0xff]  ;;  %v7439_v46 = vld [vmem:[%s9282_s22 + $0x8] sm:$0xff]  ;;  %v7441_v16 = vld [vmem:[%s9282_s22 + $0x10] sm:$0xff]  ;;  %s7501_s16 = sadd.s32 1, %s9286_s23  ;;  %s7431_s24 = sadd.s32 1, %s9290_s24   ;;  %s9290_s24 = sphi %s12853_s24, %s7431_s24   ;;  %s9286_s23 = sphi %s12851_s23, %s13051_s23   ;;  %s9282_s22 = sphi %s13048_s22, %s13050_s22   ;;  %s9278_s30 = sphi %s13047_s30, %s13049_s30  }
0x1453   : >> { %7438 = vst [vmem:[%s9278_s30] sm:$0xff] %v7437_v5  ;;  %7440 = vst [vmem:[%s9278_s30 + $0x8] sm:$0xff] %v7439_v46  ;;  %v7443_v52 = vld [vmem:[%s9282_s22 + $0x18] sm:$0xff]  ;;  %v7445_v39 = vld [vmem:[%s9282_s22 + $0x20] sm:$0xff]  ;;  %p7502_p2 = scmp.ge.s32.totalorder %s7501_s16, %s12842_s13  ;;  %p7430_p3 = scmp.ge.s32.totalorder %s7431_s24, %s12842_s13 }
0x1454   : >> { %7442 = vst [vmem:[%s9278_s30 + $0x10] sm:$0xff] %v7441_v16  ;;  %v7447_v48 = vld [vmem:[%s9282_s22 + $0x28] sm:$0xff]  ;;  %7444 = vst [vmem:[%s9278_s30 + $0x18] sm:$0xff] %v7443_v52  ;;  %v7449_v7 = vld [vmem:[%s9282_s22 + $0x30] sm:$0xff] }
0x1455   : >> { %7446 = vst [vmem:[%s9278_s30 + $0x20] sm:$0xff] %v7445_v39  ;;  %7448 = vst [vmem:[%s9278_s30 + $0x28] sm:$0xff] %v7447_v48  ;;  %v7451_v12 = vld [vmem:[%s9282_s22 + $0x38] sm:$0xff]  ;;  %v7453_v1 = vld [vmem:[%s9282_s22 + $0x40] sm:$0xff]  ;;  %s13060_s16 = smov (%p7502_p2, %s7501_s16), 0 }
0x1456   : >> { %7450 = vst [vmem:[%s9278_s30 + $0x30] sm:$0xff] %v7449_v7  ;;  %7452 = vst [vmem:[%s9278_s30 + $0x38] sm:$0xff] %v7451_v12  ;;  %v7455_v57 = vld [vmem:[%s9282_s22 + $0x48] sm:$0xff]  ;;  %v7457_v26 = vld [vmem:[%s9282_s22 + $0x50] sm:$0xff]  ;;  %s8086_s25 = sshll.u32 %s13060_s16, 8  ;;  %s13051_s23 = smov %s13060_s16 }
0x1457   : >> { %7454 = vst [vmem:[%s9278_s30 + $0x40] sm:$0xff] %v7453_v1  ;;  %v7459_v40 = vld [vmem:[%s9282_s22 + $0x58] sm:$0xff]  ;;  %7456 = vst [vmem:[%s9278_s30 + $0x48] sm:$0xff] %v7455_v57  ;;  %v7461_v43 = vld [vmem:[%s9282_s22 + $0x60] sm:$0xff]  ;;  %s12909_s26 = scalar_lea.vmem %s10991_s11, %s8086_s25 [#allocation6]   ;;  %s7507_s19 = scalar_lea.vmem %s12836_s17, %s8086_s25  }
0x1458   : >> { %7458 = vst [vmem:[%s9278_s30 + $0x50] sm:$0xff] %v7457_v26  ;;  %7460 = vst [vmem:[%s9278_s30 + $0x58] sm:$0xff] %v7459_v40  ;;  %v7463_v15 = vld [vmem:[%s9282_s22 + $0x68] sm:$0xff]  ;;  %v7465_v2 = vld [vmem:[%s9282_s22 + $0x70] sm:$0xff] }
0x1459   : >> { %7462 = vst [vmem:[%s9278_s30 + $0x60] sm:$0xff] %v7461_v43  ;;  %7464 = vst [vmem:[%s9278_s30 + $0x68] sm:$0xff] %v7463_v15  ;;  %v7467_v4 = vld [vmem:[%s9282_s22 + $0x78] sm:$0xff]  ;;  %v7469_v28 = vld [vmem:[%s9282_s22 + $0x80] sm:$0xff] }
0x145a   : >> { %7466 = vst [vmem:[%s9278_s30 + $0x70] sm:$0xff] %v7465_v2  ;;  %v7471_v32 = vld [vmem:[%s9282_s22 + $0x88] sm:$0xff]  ;;  %7468 = vst [vmem:[%s9278_s30 + $0x78] sm:$0xff] %v7467_v4  ;;  %v7473_v41 = vld [vmem:[%s9282_s22 + $0x90] sm:$0xff] }
0x145b   : >> { %7470 = vst [vmem:[%s9278_s30 + $0x80] sm:$0xff] %v7469_v28  ;;  %7472 = vst [vmem:[%s9278_s30 + $0x88] sm:$0xff] %v7471_v32  ;;  %v7475_v23 = vld [vmem:[%s9282_s22 + $0x98] sm:$0xff]  ;;  %v7477_v10 = vld [vmem:[%s9282_s22 + $0xa0] sm:$0xff] }
0x145c   : >> { %7474 = vst [vmem:[%s9278_s30 + $0x90] sm:$0xff] %v7473_v41  ;;  %7476 = vst [vmem:[%s9278_s30 + $0x98] sm:$0xff] %v7475_v23  ;;  %v7479_v58 = vld [vmem:[%s9282_s22 + $0xa8] sm:$0xff]  ;;  %v7481_v24 = vld [vmem:[%s9282_s22 + $0xb0] sm:$0xff]  ;;  %7433 = sbr.rel (!%p7430_p3) target bundleno = 5202 (0x1452), region = 153 }
0x145d   : >> { %7478 = vst [vmem:[%s9278_s30 + $0xa0] sm:$0xff] %v7477_v10  ;;  %v7483_v55 = vld [vmem:[%s9282_s22 + $0xb8] sm:$0xff]  ;;  %7480 = vst [vmem:[%s9278_s30 + $0xa8] sm:$0xff] %v7479_v58  ;;  %v7485_v36 = vld [vmem:[%s9282_s22 + $0xc0] sm:$0xff] }
0x145e   : >> { %7482 = vst [vmem:[%s9278_s30 + $0xb0] sm:$0xff] %v7481_v24  ;;  %7484 = vst [vmem:[%s9278_s30 + $0xb8] sm:$0xff] %v7483_v55  ;;  %v7487_v63 = vld [vmem:[%s9282_s22 + $0xc8] sm:$0xff]  ;;  %v7489_v27 = vld [vmem:[%s9282_s22 + $0xd0] sm:$0xff] }
0x145f   : >> { %7486 = vst [vmem:[%s9278_s30 + $0xc0] sm:$0xff] %v7485_v36  ;;  %7488 = vst [vmem:[%s9278_s30 + $0xc8] sm:$0xff] %v7487_v63  ;;  %v7491_v6 = vld [vmem:[%s9282_s22 + $0xd8] sm:$0xff]  ;;  %v7493_v54 = vld [vmem:[%s9282_s22 + $0xe0] sm:$0xff] }
0x1460   : >> { %7490 = vst [vmem:[%s9278_s30 + $0xd0] sm:$0xff] %v7489_v27  ;;  %v7495_v37 = vld [vmem:[%s9282_s22 + $0xe8] sm:$0xff]  ;;  %7492 = vst [vmem:[%s9278_s30 + $0xd8] sm:$0xff] %v7491_v6  ;;  %v7497_v59 = vld [vmem:[%s9282_s22 + $0xf0] sm:$0xff] }
0x1461   : >> { %7494 = vst [vmem:[%s9278_s30 + $0xe0] sm:$0xff] %v7493_v54  ;;  %7496 = vst [vmem:[%s9278_s30 + $0xe8] sm:$0xff] %v7495_v37  ;;  %v7499_v18 = vld [vmem:[%s9282_s22 + $0xf8] sm:$0xff]  ;;  %s13050_s22 = smov %s12909_s26 }
0x1462   : >> { %7498 = vst [vmem:[%s9278_s30 + $0xf0] sm:$0xff] %v7497_v59  ;;  %7500 = vst [vmem:[%s9278_s30 + $0xf8] sm:$0xff] %v7499_v18  ;;  %s13049_s30 = smov %s7507_s19 }
0x1463 PF: > { %s12950_s18 = sand.u32 31, %s13058_s14   ;;  %s8097_s29 = sshll.u32 %s12842_s13, 8 }
0x1464   : > { %s7512_s10 = scalar_lea.vmem %s10991_s11, %s8097_s29 [#allocation6]   ;;  %s7514_s20 = scalar_lea.vmem %s12836_s17, %s8097_s29  }
0x1465   : > { %p8091_p5 = scmp.le.s32.totalorder %s12950_s18, 0 }
0x1466   : > { %s9292_s27 = smov (!%p8091_p5), %s7514_s20   ;;  %s9296_s15 = smov (!%p8091_p5), %s7512_s10  }
0x1467   : > { %7609 = sbr.rel (%p8091_p5) target bundleno = 5240 (0x1478), region = 158  ;;  %s9300_s21 = smov (!%p8091_p5), 0  }
0x1468   : > { %s9304_s16 = smov (!%p8091_p5), 0  }
0x146e LB: >> { %v7524_v13 = vld [vmem:[%s9298_s15] sm:$0xff]  ;;  %s7526_s14 = sadd.s32 1, %s9302_s21  ;;  %s7518_s16 = sadd.s32 1, %s9306_s16   ;;  %s9306_s16 = sphi %s9304_s16, %s7518_s16   ;;  %s9302_s21 = sphi %s9300_s21, %s9301_s21   ;;  %s9298_s15 = sphi %s9296_s15, %s7531_s15   ;;  %s9294_s27 = sphi %s9292_s27, %s7532_s27  }
0x146f   : >> { %7525 = vst [vmem:[%s9294_s27] sm:$0xff] %v7524_v13  ;;  %p7527_p8 = scmp.ge.s32.totalorder %s7526_s14, %s12950_s18  ;;  %p7517_p10 = scmp.ge.s32.totalorder %s7518_s16, %s12950_s18 }
0x1471   : >> { %s13062_s14 = smov (%p7527_p8, %s7526_s14), 0  ;;  %7520 = sbr.rel (!%p7517_p10) target bundleno = 5230 (0x146e), region = 164 }
0x1472   : >> { %s8092_s11 = sshll.u32 %s13062_s14, 3  ;;  %s9301_s21 = smov %s13062_s14  }
0x1473   : >> { %s7531_s15 = scalar_lea.vmem %s7512_s10, %s8092_s11 [#allocation6]   ;;  %s7532_s27 = scalar_lea.vmem %s7514_s20, %s8092_s11  }
0x1478 PF: > { %p17_p6 = scmp.ge.s32.totalorder %s9378_s9, 4   ;;  %s13052_s27 = smov %s9270_s28 }
0x1479   : > { %s13053_s28 = smov %s9386_s12  ;;  %s13054_s29 = smov %s9378_s9 }
0x147a   :  { %19 = sbr.rel (!%p17_p6) target bundleno = 3 (0x3), region = 175 }
0x1481   :  { %7548 = vsyncpa [#allocation3], 1 }
0x1482   :  { %7550 = vsyncpa [#allocation3 + $0x1], 1 }
0x1483   :  { %7551 = vsyncpa [#allocation5], 1 }

</bundles_post_ra>
